<compile_context>
chip_gen: v7x
topology: tpu7x:2x2x1
jax: 0.10.0
libtpu: 0.0.40
codegen_flags: <defaults>
</compile_context>

<pallas_src>
import functools

import jax
import jax.numpy as jnp
from jax.experimental import pallas as pl
from jax.experimental.pallas import tpu as pltpu


_VMEM_LIMIT = 48 * 1024 * 1024   # under v7x's 64 MiB physical VMEM, above default scoped limits
_STEM_K = 64                     # 7*7*1 = 49 stem taps, zero-padded to a friendly K


def _cparams(n_parallel_axes):
    return pltpu.CompilerParams(
        dimension_semantics=("parallel",) * n_parallel_axes,
        vmem_limit_bytes=_VMEM_LIMIT,
    )


def _pick_nb(n, hw, m_target=128):
    """Images folded into one grid step so the matmul M dim (= nb*hw) reaches ~m_target."""
    nb = max(1, min(n, -(-m_target // hw)))
    while n % nb:
        nb -= 1
    return nb


# ----------------------------------------------------------------------------
# Stem kernel: (already im2col'd) patches -> matmul + bias + ReLU
# ----------------------------------------------------------------------------
def _stem_kernel(x_ref, w_ref, b_ref, o_ref):
    nb, Ho, Wo, K = x_ref.shape
    Cout = w_ref.shape[-1]
    M = nb * Ho * Wo
    y = jnp.dot(x_ref[...].reshape(M, K), w_ref[...], preferred_element_type=jnp.float32)
    y = jnp.maximum(y + b_ref[...], 0.0)
    o_ref[...] = y.reshape(nb, Ho * Wo, Cout).astype(o_ref.dtype)


def stem_conv(patches, wmat, bias):
    """patches: (N, Ho, Wo, K) bf16; wmat: (K, Cout) bf16; bias: (1, Cout) f32."""
    N, Ho, Wo, K = patches.shape
    Cout = wmat.shape[-1]
    nb = _pick_nb(N, Ho * Wo)
    out = pl.pallas_call(
        _stem_kernel,
        out_shape=jax.ShapeDtypeStruct((N, Ho * Wo, Cout), jnp.bfloat16),
        grid=(N // nb,),
        in_specs=[
            pl.BlockSpec((nb, Ho, Wo, K), lambda n: (n, 0, 0, 0)),
            pl.BlockSpec((K, Cout), lambda n: (0, 0)),
            pl.BlockSpec((1, Cout), lambda n: (0, 0)),
        ],
        out_specs=pl.BlockSpec((nb, Ho * Wo, Cout), lambda n: (n, 0, 0)),
        compiler_params=_cparams(1),
    )(patches, wmat, bias)
    return out.reshape(N, Ho, Wo, Cout)


# ----------------------------------------------------------------------------
# Fused BasicBlock kernel: conv1+BN1+ReLU -> conv2+BN2 -> shortcut -> add -> ReLU
# ----------------------------------------------------------------------------
def _block_kernel(*refs, H, W, has_proj):
    if has_proj:
        (xp_ref, w1_ref, s1_ref, b1_ref, w2_ref, s2_ref, b2_ref,
         ws_ref, ss_ref, bs_ref, o_ref, hpad_ref, p1_ref, p2_ref) = refs
    else:
        (xp_ref, w1_ref, s1_ref, b1_ref, w2_ref, s2_ref, b2_ref,
         o_ref, hpad_ref, p1_ref, p2_ref) = refs
    nb, _, _, Cin = xp_ref.shape
    Cmid = w1_ref.shape[-1]
    Cout = w2_ref.shape[-1]
    M = nb * H * W

    # Zero the padded-intermediate borders once; the interior is rewritten every grid step.
    @pl.when(pl.program_id(0) == 0)
    def _():
        hpad_ref[...] = jnp.zeros_like(hpad_ref)

    # conv1: gather the 9 shifted-window taps via ref-level static views into a VMEM patch
    # matrix, then ONE K=9*Cin MXU matmul (instead of 9 small dots + VPU accumulate adds).
    for t in range(9):
        i, j = divmod(t, 3)
        p1_ref[:, t * Cin:(t + 1) * Cin] = xp_ref[:, i:i + H, j:j + W, :].reshape(M, Cin)
    h = jnp.dot(p1_ref[...], w1_ref[...], preferred_element_type=jnp.float32)
    h = jnp.maximum(h * s1_ref[...] + b1_ref[...], 0.0)             # BN1 + ReLU (fp32 epilogue)
    hpad_ref[:, 1:1 + H, 1:1 + W, :] = h.astype(hpad_ref.dtype).reshape(nb, H, W, Cmid)

    # conv2 over the padded intermediate held in VMEM (never round-trips HBM).
    for t in range(9):
        i, j = divmod(t, 3)
        p2_ref[:, t * Cmid:(t + 1) * Cmid] = hpad_ref[:, i:i + H, j:j + W, :].reshape(M, Cmid)
    y = jnp.dot(p2_ref[...], w2_ref[...], preferred_element_type=jnp.float32)
    y = y * s2_ref[...] + b2_ref[...]                               # BN2

    # Shortcut (identity, or fused 1x1 conv + BN), residual add, final ReLU.
    x_int = xp_ref[:, 1:1 + H, 1:1 + W, :].reshape(M, Cin)
    if has_proj:
        sc = jnp.dot(x_int, ws_ref[...], preferred_element_type=jnp.float32)
        sc = sc * ss_ref[...] + bs_ref[...]
    else:
        sc = x_int.astype(jnp.float32)
    y = jnp.maximum(y + sc, 0.0)
    o_ref[...] = y.reshape(nb, H * W, Cout).astype(o_ref.dtype)


def basic_block(blk, x_nhwc):
    """Whole BasicBlock as ONE pallas_call.  x_nhwc: (N, H, W, Cin) bf16 -> (N, H, W, Cout) bf16."""
    N, H, W, Cin = x_nhwc.shape
    Cmid = blk["w1"].shape[-1]
    Cout = blk["w2"].shape[-1]
    has_proj = "ws" in blk
    xp = jnp.pad(x_nhwc, ((0, 0), (1, 1), (1, 1), (0, 0)))          # pad=1 for both 3x3 convs
    Hp, Wp = H + 2, W + 2
    nb = _pick_nb(N, H * W)

    in_specs = [
        pl.BlockSpec((nb, Hp, Wp, Cin), lambda n: (n, 0, 0, 0)),
        pl.BlockSpec((9 * Cin, Cmid), lambda n: (0, 0)),
        pl.BlockSpec((1, Cmid), lambda n: (0, 0)),
        pl.BlockSpec((1, Cmid), lambda n: (0, 0)),
        pl.BlockSpec((9 * Cmid, Cout), lambda n: (0, 0)),
        pl.BlockSpec((1, Cout), lambda n: (0, 0)),
        pl.BlockSpec((1, Cout), lambda n: (0, 0)),
    ]
    args = [xp, blk["w1"], blk["s1"], blk["b1"], blk["w2"], blk["s2"], blk["b2"]]
    if has_proj:
        in_specs += [
            pl.BlockSpec((Cin, Cout), lambda n: (0, 0)),
            pl.BlockSpec((1, Cout), lambda n: (0, 0)),
            pl.BlockSpec((1, Cout), lambda n: (0, 0)),
        ]
        args += [blk["ws"], blk["ss"], blk["bs"]]

    out = pl.pallas_call(
        functools.partial(_block_kernel, H=H, W=W, has_proj=has_proj),
        out_shape=jax.ShapeDtypeStruct((N, H * W, Cout), jnp.bfloat16),
        grid=(N // nb,),
        in_specs=in_specs,
        out_specs=pl.BlockSpec((nb, H * W, Cout), lambda n: (n, 0, 0)),
        scratch_shapes=[
            pltpu.VMEM((nb, Hp, Wp, Cmid), jnp.bfloat16),          # padded conv1 output
            pltpu.VMEM((nb * H * W, 9 * Cin), jnp.bfloat16),       # conv1 patch matrix
            pltpu.VMEM((nb * H * W, 9 * Cmid), jnp.bfloat16),      # conv2 patch matrix
        ],
        compiler_params=_cparams(1),
    )(*args)
    return out.reshape(N, H, W, Cout)


# ----------------------------------------------------------------------------
# Pooling kernels
# ----------------------------------------------------------------------------
def _maxpool2x2_kernel(x_ref, o_ref):
    H2, Wh, C = o_ref.shape[1], o_ref.shape[2], o_ref.shape[3]
    x = x_ref[0]                                     # (H, W//2, 2*C): W-pairs folded into lanes
    xw = jnp.maximum(x[..., :C], x[..., C:])         # pool the W pair (lane halves)
    xw = xw.reshape(H2, 2, Wh, C)                    # leading-dim split only (no lane reshape)
    o_ref[0] = jnp.maximum(xw[:, 0], xw[:, 1])       # pool the H pair


def maxpool2x2(x_nhwc):
    """2x2 max pool, stride 2 (PyTorch semantics for even H, W).  One grid step per image."""
    N, H, W, C = x_nhwc.shape
    assert H % 2 == 0 and W % 2 == 0
    xr = x_nhwc.reshape(N, H, W // 2, 2 * C)         # free contiguous host-side reshape
    return pl.pallas_call(
        _maxpool2x2_kernel,
        out_shape=jax.ShapeDtypeStruct((N, H // 2, W // 2, C), x_nhwc.dtype),
        grid=(N,),
        in_specs=[pl.BlockSpec((1, H, W // 2, 2 * C), lambda n: (n, 0, 0, 0))],
        out_specs=pl.BlockSpec((1, H // 2, W // 2, C), lambda n: (n, 0, 0, 0)),
        compiler_params=_cparams(1),
    )(xr)


def _hmax_kernel(x_ref, o_ref):
    o_ref[0] = jnp.max(x_ref[0].astype(jnp.float32), axis=0)        # collapse the height axis


def height_maxpool(x_nhwc):
    """F.max_pool2d(y, [H, 1], stride=[H, 1], padding=[0, 0]) -> (N, W, C) fp32."""
    N, H, W, C = x_nhwc.shape
    return pl.pallas_call(
        _hmax_kernel,
        out_shape=jax.ShapeDtypeStruct((N, W, C), jnp.float32),
        grid=(N,),
        in_specs=[pl.BlockSpec((1, H, W, C), lambda n: (n, 0, 0, 0))],
        out_specs=pl.BlockSpec((1, W, C), lambda n: (n, 0, 0)),
        compiler_params=_cparams(1),
    )(x_nhwc)


# ----------------------------------------------------------------------------
# Plain-JAX glue: im2col for the Cin==1 stem, BN folding, weight repacking, params
# ----------------------------------------------------------------------------
def im2col(x_nhwc, kh, kw, stride, pad):
    """Only used for the Cin==1 stem (stride 2); output is (N, Ho, Wo, kh*kw*C)."""
    N, H, W, C = x_nhwc.shape
    xp = jnp.pad(x_nhwc, ((0, 0), (pad, pad), (pad, pad), (0, 0)))
    Ho = (H + 2 * pad - kh) // stride + 1
    Wo = (W + 2 * pad - kw) // stride + 1
    cols = [xp[:, i:i + stride * Ho:stride, j:j + stride * Wo:stride, :]
            for i in range(kh) for j in range(kw)]
    return jnp.concatenate(cols, axis=-1)


def bn_fold(gamma, beta, mean, var, eps=1e-5):
    scale = gamma / jnp.sqrt(var + eps)
    bias = beta - mean * scale
    return scale[None, :], bias[None, :]


def _pack_conv3x3(w_oihw):
    Cout, Cin, KH, KW = w_oihw.shape
    return jnp.transpose(w_oihw, (2, 3, 1, 0)).reshape(KH * KW * Cin, Cout).astype(jnp.bfloat16)


def _pack_stem(w_oihw):
    Cout, Cin, KH, KW = w_oihw.shape
    w = jnp.transpose(w_oihw, (2, 3, 1, 0)).reshape(KH * KW * Cin, Cout)
    w = jnp.pad(w, ((0, _STEM_K - KH * KW * Cin), (0, 0)))          # zero rows match zero patch pad
    return w.astype(jnp.bfloat16)


def init_bn(key, c):
    k1, k2, k3, k4 = jax.random.split(key, 4)
    gamma = (1.0 + 0.1 * jax.random.normal(k1, (c,))).astype(jnp.float32)
    beta = (0.1 * jax.random.normal(k2, (c,))).astype(jnp.float32)
    mean = (0.1 * jax.random.normal(k3, (c,))).astype(jnp.float32)
    var = (1.0 + 0.1 * jnp.abs(jax.random.normal(k4, (c,)))).astype(jnp.float32)
    return (gamma, beta, mean, var)


def init_params(key, cnn_cfg):
    keys = iter(jax.random.split(key, 256))
    stem_w = 0.1 * jax.random.normal(next(keys), (32, 1, 7, 7), jnp.float32)
    stem_b = 0.1 * jax.random.normal(next(keys), (32,), jnp.float32)
    p = {"stem_w": _pack_stem(stem_w), "stem_b": stem_b[None, :], "blocks": []}
    in_ch = 32
    for m in cnn_cfg:
        if m == "M":
            p["blocks"].append({"type": "M"})
            continue
        for _ in range(int(m[0])):
            out_ch = int(m[1])
            w1 = 0.1 * jax.random.normal(next(keys), (out_ch, in_ch, 3, 3), jnp.float32)
            s1, b1 = bn_fold(*init_bn(next(keys), out_ch))
            w2 = 0.1 * jax.random.normal(next(keys), (out_ch, out_ch, 3, 3), jnp.float32)
            s2, b2 = bn_fold(*init_bn(next(keys), out_ch))
            blk = {"type": "B",
                   "w1": _pack_conv3x3(w1), "s1": s1, "b1": b1,
                   "w2": _pack_conv3x3(w2), "s2": s2, "b2": b2}
            if in_ch != out_ch:                                      # stride is always 1 here
                ws = 0.1 * jax.random.normal(next(keys), (out_ch, in_ch, 1, 1), jnp.float32)
                ss, bs = bn_fold(*init_bn(next(keys), out_ch))
                blk["ws"] = jnp.transpose(ws[:, :, 0, 0], (1, 0)).astype(jnp.bfloat16)
                blk["ss"] = ss
                blk["bs"] = bs
            p["blocks"].append(blk)
            in_ch = out_ch
    return p


def cnn_forward(params, x_nchw):
    """CNN.forward with flattening='maxpool'.  x: [N,1,H,W] -> [N,C,1,W_out] (fp32)."""
    x = jnp.transpose(x_nchw, (0, 2, 3, 1)).astype(jnp.float32)      # NCHW -> NHWC
    # stem: Conv2d(1, 32, 7, stride=2, padding=3) + ReLU (conv bias, no BN)
    patches = im2col(x, 7, 7, stride=2, pad=3)                       # (N, Ho, Wo, 49), Cin == 1
    k = patches.shape[-1]
    patches = jnp.pad(patches, ((0, 0), (0, 0), (0, 0), (0, _STEM_K - k))).astype(jnp.bfloat16)
    y = stem_conv(patches, params["stem_w"], params["stem_b"])       # (N, Ho, Wo, 32) bf16

    for blk in params["blocks"]:
        if blk["type"] == "M":
            y = maxpool2x2(y)
        else:
            y = basic_block(blk, y)

    # flattening == 'maxpool': F.max_pool2d(y, [H, 1], stride=[H, 1], padding=[0, 0])
    y = height_maxpool(y)                                            # (N, W, C) fp32
    return jnp.transpose(y, (0, 2, 1))[:, :, None, :]                # (N, C, 1, W)


# ----------------------------------------------------------------------------
if __name__ == "__main__":
    cnn_cfg = [[1, 32], "M", [1, 64]]                # small synthetic config
    key = jax.random.PRNGKey(0)
    kx, kp = jax.random.split(key)
    x = jax.random.normal(kx, (2, 1, 16, 16), dtype=jnp.float32)     # NCHW, like PyTorch

    params = init_params(kp, cnn_cfg)

    fwd = jax.jit(lambda inp: cnn_forward(params, inp))
    y = jax.block_until_ready(fwd(x))

    # input 16x16 -> stem /2 -> 8x8 -> block(32) -> 'M' /2 -> 4x4 -> block(64)
    # -> height maxpool -> (2, 64, 1, 4)
    assert y.shape == (2, 64, 1, 4), y.shape
    assert y.dtype == jnp.float32
    assert bool(jnp.all(jnp.isfinite(y)))
    print("KERNEL_OK")
</pallas_src>

<mosaic_0001>
module attributes {stable_mosaic.version = 11 : i64} {
  func.func @_stem_kernel(%arg0: i32, %arg1: memref<2x8x8x64xbf16, #tpu.memory_space<vmem>>, %arg2: memref<64x32xbf16, #tpu.memory_space<vmem>>, %arg3: memref<1x32xf32, #tpu.memory_space<vmem>>, %arg4: memref<2x64x32xbf16, #tpu.memory_space<vmem>>) attributes {dimension_semantics = [#tpu.dimension_semantics<parallel>], iteration_bounds = array<i64: 1>, scalar_prefetch = 0 : i64, scratch_operands = 0 : i64, tpu.core_type = #tpu.core_type<tc>, window_params = [{transform_indices = @transform_0, window_bounds = array<i64: 2, 8, 8, 64>}, {pipeline_mode = #tpu.pipeline_mode<synchronous>, transform_indices = @transform_1, window_bounds = array<i64: 64, 32>}, {pipeline_mode = #tpu.pipeline_mode<synchronous>, transform_indices = @transform_2, window_bounds = array<i64: 1, 32>}, {transform_indices = @transform_3, window_bounds = array<i64: 2, 64, 32>}]} {
    %c0 = arith.constant 0 : index
    %c0_0 = arith.constant 0 : index
    %c0_1 = arith.constant 0 : index
    %c0_2 = arith.constant 0 : index
    %0 = vector.load %arg1[%c0, %c0_0, %c0_1, %c0_2] : memref<2x8x8x64xbf16, #tpu.memory_space<vmem>>, vector<2x8x8x64xbf16>
    %1 = vector.shape_cast %0 : vector<2x8x8x64xbf16> to vector<128x64xbf16>
    %c0_3 = arith.constant 0 : index
    %c0_4 = arith.constant 0 : index
    %2 = vector.load %arg2[%c0_3, %c0_4] : memref<64x32xbf16, #tpu.memory_space<vmem>>, vector<64x32xbf16>
    %cst = arith.constant dense<0.000000e+00> : vector<128x32xf32>
    %3 = tpu.matmul %1, %2, %cst {dimension_numbers = #tpu.dot_dimension_numbers<[1], [0], [0], [1], [0, 0, 1, 1], [], []>} : vector<128x64xbf16>, vector<64x32xbf16>, vector<128x32xf32> -> vector<128x32xf32>
    %c0_5 = arith.constant 0 : index
    %c0_6 = arith.constant 0 : index
    %4 = vector.load %arg3[%c0_5, %c0_6] : memref<1x32xf32, #tpu.memory_space<vmem>>, vector<1x32xf32>
    %5 = vector.broadcast %4 : vector<1x32xf32> to vector<128x32xf32>
    %6 = arith.addf %3, %5 : vector<128x32xf32>
    %cst_7 = arith.constant 0.000000e+00 : f32
    %7 = vector.broadcast %cst_7 : f32 to vector<128x32xf32>
    %8 = arith.maximumf %6, %7 : vector<128x32xf32>
    %9 = vector.shape_cast %8 : vector<128x32xf32> to vector<2x64x32xf32>
    %10 = arith.truncf %9 : vector<2x64x32xf32> to vector<2x64x32xbf16>
    %c0_8 = arith.constant 0 : index
    %c0_9 = arith.constant 0 : index
    %c0_10 = arith.constant 0 : index
    %11 = vector.load %arg4[%c0_8, %c0_9, %c0_10] : memref<2x64x32xbf16, #tpu.memory_space<vmem>>, vector<2x64x32xbf16>
    tpu.vector_store %arg4[%c0_8, %c0_9, %c0_10], %10 {strides = array<i32>} : memref<2x64x32xbf16, #tpu.memory_space<vmem>>, vector<2x64x32xbf16>,
    return
  }
  func.func @transform_0(%arg0: i32) -> (i32, i32, i32, i32) {
    %c0_i32 = arith.constant 0 : i32
    %c0_i32_0 = arith.constant 0 : i32
    %c0_i32_1 = arith.constant 0 : i32
    %c0_i32_2 = arith.constant 0 : i32
    return %arg0, %c0_i32, %c0_i32_0, %c0_i32_1 : i32, i32, i32, i32
  }
  func.func @transform_1(%arg0: i32) -> (i32, i32) {
    %c0_i32 = arith.constant 0 : i32
    %c0_i32_0 = arith.constant 0 : i32
    %c0_i32_1 = arith.constant 0 : i32
    return %c0_i32, %c0_i32_0 : i32, i32
  }
  func.func @transform_2(%arg0: i32) -> (i32, i32) {
    %c0_i32 = arith.constant 0 : i32
    %c0_i32_0 = arith.constant 0 : i32
    %c0_i32_1 = arith.constant 0 : i32
    return %c0_i32, %c0_i32_0 : i32, i32
  }
  func.func @transform_3(%arg0: i32) -> (i32, i32, i32) {
    %c0_i32 = arith.constant 0 : i32
    %c0_i32_0 = arith.constant 0 : i32
    %c0_i32_1 = arith.constant 0 : i32
    return %arg0, %c0_i32, %c0_i32_0 : i32, i32, i32
  }
}

module attributes {stable_mosaic.version = 11 : i64} {
  func.func @_block_kernel(%arg0: i32, %arg1: memref<2x10x10x32xbf16, #tpu.memory_space<vmem>>, %arg2: memref<288x32xbf16, #tpu.memory_space<vmem>>, %arg3: memref<1x32xf32, #tpu.memory_space<vmem>>, %arg4: memref<1x32xf32, #tpu.memory_space<vmem>>, %arg5: memref<288x32xbf16, #tpu.memory_space<vmem>>, %arg6: memref<1x32xf32, #tpu.memory_space<vmem>>, %arg7: memref<1x32xf32, #tpu.memory_space<vmem>>, %arg8: memref<2x64x32xbf16, #tpu.memory_space<vmem>>, %arg9: memref<2x10x10x32xbf16, #tpu.memory_space<vmem>>, %arg10: memref<128x288xbf16, #tpu.memory_space<vmem>>, %arg11: memref<128x288xbf16, #tpu.memory_space<vmem>>) attributes {dimension_semantics = [#tpu.dimension_semantics<parallel>], iteration_bounds = array<i64: 1>, scalar_prefetch = 0 : i64, scratch_operands = 3 : i64, tpu.core_type = #tpu.core_type<tc>, window_params = [{transform_indices = @transform_0, window_bounds = array<i64: 2, 10, 10, 32>}, {pipeline_mode = #tpu.pipeline_mode<synchronous>, transform_indices = @transform_1, window_bounds = array<i64: 288, 32>}, {pipeline_mode = #tpu.pipeline_mode<synchronous>, transform_indices = @transform_2, window_bounds = array<i64: 1, 32>}, {pipeline_mode = #tpu.pipeline_mode<synchronous>, transform_indices = @transform_3, window_bounds = array<i64: 1, 32>}, {pipeline_mode = #tpu.pipeline_mode<synchronous>, transform_indices = @transform_4, window_bounds = array<i64: 288, 32>}, {pipeline_mode = #tpu.pipeline_mode<synchronous>, transform_indices = @transform_5, window_bounds = array<i64: 1, 32>}, {pipeline_mode = #tpu.pipeline_mode<synchronous>, transform_indices = @transform_6, window_bounds = array<i64: 1, 32>}, {transform_indices = @transform_7, window_bounds = array<i64: 2, 64, 32>}]} {
    %c0_i32 = arith.constant 0 : i32
    %0 = arith.cmpi eq, %arg0, %c0_i32 : i32
    %1 = arith.extui %0 : i1 to i32
    %c0_i32_0 = arith.constant 0 : i32
    %2 = arith.cmpi ne, %1, %c0_i32_0 : i32
    scf.if %2 {
      %cst_128 = arith.constant 0.000000e+00 : bf16
      %89 = vector.broadcast %cst_128 : bf16 to vector<2x10x10x32xbf16>
      %c0_129 = arith.constant 0 : index
      %c0_130 = arith.constant 0 : index
      %c0_131 = arith.constant 0 : index
      %c0_132 = arith.constant 0 : index
      %90 = vector.load %arg9[%c0_129, %c0_130, %c0_131, %c0_132] : memref<2x10x10x32xbf16, #tpu.memory_space<vmem>>, vector<2x10x10x32xbf16>
      tpu.vector_store %arg9[%c0_129, %c0_130, %c0_131, %c0_132], %89 {strides = array<i32>} : memref<2x10x10x32xbf16, #tpu.memory_space<vmem>>, vector<2x10x10x32xbf16>,
    } else {
    }
    %c0 = arith.constant 0 : index
    %c0_1 = arith.constant 0 : index
    %c0_2 = arith.constant 0 : index
    %c0_3 = arith.constant 0 : index
    %3 = vector.load %arg1[%c0, %c0_1, %c0_2, %c0_3] : memref<2x10x10x32xbf16, #tpu.memory_space<vmem>>, vector<2x8x8x32xbf16>
    %4 = vector.shape_cast %3 : vector<2x8x8x32xbf16> to vector<128x32xbf16>
    %c0_4 = arith.constant 0 : index
    %c0_5 = arith.constant 0 : index
    %5 = vector.load %arg10[%c0_4, %c0_5] : memref<128x288xbf16, #tpu.memory_space<vmem>>, vector<128x32xbf16>
    tpu.vector_store %arg10[%c0_4, %c0_5], %4 {strides = array<i32>} : memref<128x288xbf16, #tpu.memory_space<vmem>>, vector<128x32xbf16>,
    %c0_6 = arith.constant 0 : index
    %c0_7 = arith.constant 0 : index
    %c1 = arith.constant 1 : index
    %c0_8 = arith.constant 0 : index
    %6 = vector.load %arg1[%c0_6, %c0_7, %c1, %c0_8] : memref<2x10x10x32xbf16, #tpu.memory_space<vmem>>, vector<2x8x8x32xbf16>
    %7 = vector.shape_cast %6 : vector<2x8x8x32xbf16> to vector<128x32xbf16>
    %c0_9 = arith.constant 0 : index
    %c32 = arith.constant 32 : index
    %8 = vector.load %arg10[%c0_9, %c32] : memref<128x288xbf16, #tpu.memory_space<vmem>>, vector<128x32xbf16>
    tpu.vector_store %arg10[%c0_9, %c32], %7 {strides = array<i32>} : memref<128x288xbf16, #tpu.memory_space<vmem>>, vector<128x32xbf16>,
    %c0_10 = arith.constant 0 : index
    %c0_11 = arith.constant 0 : index
    %c2 = arith.constant 2 : index
    %c0_12 = arith.constant 0 : index
    %9 = vector.load %arg1[%c0_10, %c0_11, %c2, %c0_12] : memref<2x10x10x32xbf16, #tpu.memory_space<vmem>>, vector<2x8x8x32xbf16>
    %10 = vector.shape_cast %9 : vector<2x8x8x32xbf16> to vector<128x32xbf16>
    %c0_13 = arith.constant 0 : index
    %c64 = arith.constant 64 : index
    %11 = vector.load %arg10[%c0_13, %c64] : memref<128x288xbf16, #tpu.memory_space<vmem>>, vector<128x32xbf16>
    tpu.vector_store %arg10[%c0_13, %c64], %10 {strides = array<i32>} : memref<128x288xbf16, #tpu.memory_space<vmem>>, vector<128x32xbf16>,
    %c0_14 = arith.constant 0 : index
    %c1_15 = arith.constant 1 : index
    %c0_16 = arith.constant 0 : index
    %c0_17 = arith.constant 0 : index
    %12 = vector.load %arg1[%c0_14, %c1_15, %c0_16, %c0_17] : memref<2x10x10x32xbf16, #tpu.memory_space<vmem>>, vector<2x8x8x32xbf16>
    %13 = vector.shape_cast %12 : vector<2x8x8x32xbf16> to vector<128x32xbf16>
    %c0_18 = arith.constant 0 : index
    %c96 = arith.constant 96 : index
    %14 = vector.load %arg10[%c0_18, %c96] : memref<128x288xbf16, #tpu.memory_space<vmem>>, vector<128x32xbf16>
    tpu.vector_store %arg10[%c0_18, %c96], %13 {strides = array<i32>} : memref<128x288xbf16, #tpu.memory_space<vmem>>, vector<128x32xbf16>,
    %c0_19 = arith.constant 0 : index
    %c1_20 = arith.constant 1 : index
    %c1_21 = arith.constant 1 : index
    %c0_22 = arith.constant 0 : index
    %15 = vector.load %arg1[%c0_19, %c1_20, %c1_21, %c0_22] : memref<2x10x10x32xbf16, #tpu.memory_space<vmem>>, vector<2x8x8x32xbf16>
    %16 = vector.shape_cast %15 : vector<2x8x8x32xbf16> to vector<128x32xbf16>
    %c0_23 = arith.constant 0 : index
    %c128 = arith.constant 128 : index
    %17 = vector.load %arg10[%c0_23, %c128] : memref<128x288xbf16, #tpu.memory_space<vmem>>, vector<128x32xbf16>
    tpu.vector_store %arg10[%c0_23, %c128], %16 {strides = array<i32>} : memref<128x288xbf16, #tpu.memory_space<vmem>>, vector<128x32xbf16>,
    %c0_24 = arith.constant 0 : index
    %c1_25 = arith.constant 1 : index
    %c2_26 = arith.constant 2 : index
    %c0_27 = arith.constant 0 : index
    %18 = vector.load %arg1[%c0_24, %c1_25, %c2_26, %c0_27] : memref<2x10x10x32xbf16, #tpu.memory_space<vmem>>, vector<2x8x8x32xbf16>
    %19 = vector.shape_cast %18 : vector<2x8x8x32xbf16> to vector<128x32xbf16>
    %c0_28 = arith.constant 0 : index
    %c160 = arith.constant 160 : index
    %20 = vector.load %arg10[%c0_28, %c160] : memref<128x288xbf16, #tpu.memory_space<vmem>>, vector<128x32xbf16>
    tpu.vector_store %arg10[%c0_28, %c160], %19 {strides = array<i32>} : memref<128x288xbf16, #tpu.memory_space<vmem>>, vector<128x32xbf16>,
    %c0_29 = arith.constant 0 : index
    %c2_30 = arith.constant 2 : index
    %c0_31 = arith.constant 0 : index
    %c0_32 = arith.constant 0 : index
    %21 = vector.load %arg1[%c0_29, %c2_30, %c0_31, %c0_32] : memref<2x10x10x32xbf16, #tpu.memory_space<vmem>>, vector<2x8x8x32xbf16>
    %22 = vector.shape_cast %21 : vector<2x8x8x32xbf16> to vector<128x32xbf16>
    %c0_33 = arith.constant 0 : index
    %c192 = arith.constant 192 : index
    %23 = vector.load %arg10[%c0_33, %c192] : memref<128x288xbf16, #tpu.memory_space<vmem>>, vector<128x32xbf16>
    tpu.vector_store %arg10[%c0_33, %c192], %22 {strides = array<i32>} : memref<128x288xbf16, #tpu.memory_space<vmem>>, vector<128x32xbf16>,
    %c0_34 = arith.constant 0 : index
    %c2_35 = arith.constant 2 : index
    %c1_36 = arith.constant 1 : index
    %c0_37 = arith.constant 0 : index
    %24 = vector.load %arg1[%c0_34, %c2_35, %c1_36, %c0_37] : memref<2x10x10x32xbf16, #tpu.memory_space<vmem>>, vector<2x8x8x32xbf16>
    %25 = vector.shape_cast %24 : vector<2x8x8x32xbf16> to vector<128x32xbf16>
    %c0_38 = arith.constant 0 : index
    %c224 = arith.constant 224 : index
    %26 = vector.load %arg10[%c0_38, %c224] : memref<128x288xbf16, #tpu.memory_space<vmem>>, vector<128x32xbf16>
    tpu.vector_store %arg10[%c0_38, %c224], %25 {strides = array<i32>} : memref<128x288xbf16, #tpu.memory_space<vmem>>, vector<128x32xbf16>,
    %c0_39 = arith.constant 0 : index
    %c2_40 = arith.constant 2 : index
    %c2_41 = arith.constant 2 : index
    %c0_42 = arith.constant 0 : index
    %27 = vector.load %arg1[%c0_39, %c2_40, %c2_41, %c0_42] : memref<2x10x10x32xbf16, #tpu.memory_space<vmem>>, vector<2x8x8x32xbf16>
    %28 = vector.shape_cast %27 : vector<2x8x8x32xbf16> to vector<128x32xbf16>
    %c0_43 = arith.constant 0 : index
    %c256 = arith.constant 256 : index
    %29 = vector.load %arg10[%c0_43, %c256] : memref<128x288xbf16, #tpu.memory_space<vmem>>, vector<128x32xbf16>
    tpu.vector_store %arg10[%c0_43, %c256], %28 {strides = array<i32>} : memref<128x288xbf16, #tpu.memory_space<vmem>>, vector<128x32xbf16>,
    %c0_44 = arith.constant 0 : index
    %c0_45 = arith.constant 0 : index
    %30 = vector.load %arg10[%c0_44, %c0_45] : memref<128x288xbf16, #tpu.memory_space<vmem>>, vector<128x288xbf16>
    %c0_46 = arith.constant 0 : index
    %c0_47 = arith.constant 0 : index
    %31 = vector.load %arg2[%c0_46, %c0_47] : memref<288x32xbf16, #tpu.memory_space<vmem>>, vector<288x32xbf16>
    %cst = arith.constant dense<0.000000e+00> : vector<128x32xf32>
    %32 = tpu.matmul %30, %31, %cst {dimension_numbers = #tpu.dot_dimension_numbers<[1], [0], [0], [1], [0, 0, 1, 1], [], []>} : vector<128x288xbf16>, vector<288x32xbf16>, vector<128x32xf32> -> vector<128x32xf32>
    %c0_48 = arith.constant 0 : index
    %c0_49 = arith.constant 0 : index
    %33 = vector.load %arg3[%c0_48, %c0_49] : memref<1x32xf32, #tpu.memory_space<vmem>>, vector<1x32xf32>
    %34 = vector.broadcast %33 : vector<1x32xf32> to vector<128x32xf32>
    %35 = arith.mulf %32, %34 : vector<128x32xf32>
    %c0_50 = arith.constant 0 : index
    %c0_51 = arith.constant 0 : index
    %36 = vector.load %arg4[%c0_50, %c0_51] : memref<1x32xf32, #tpu.memory_space<vmem>>, vector<1x32xf32>
    %37 = vector.broadcast %36 : vector<1x32xf32> to vector<128x32xf32>
    %38 = arith.addf %35, %37 : vector<128x32xf32>
    %cst_52 = arith.constant 0.000000e+00 : f32
    %39 = vector.broadcast %cst_52 : f32 to vector<128x32xf32>
    %40 = arith.maximumf %38, %39 : vector<128x32xf32>
    %41 = arith.truncf %40 : vector<128x32xf32> to vector<128x32xbf16>
    %42 = vector.shape_cast %41 : vector<128x32xbf16> to vector<2x8x8x32xbf16>
    %c0_53 = arith.constant 0 : index
    %c1_54 = arith.constant 1 : index
    %c1_55 = arith.constant 1 : index
    %c0_56 = arith.constant 0 : index
    %43 = vector.load %arg9[%c0_53, %c1_54, %c1_55, %c0_56] : memref<2x10x10x32xbf16, #tpu.memory_space<vmem>>, vector<2x8x8x32xbf16>
    tpu.vector_store %arg9[%c0_53, %c1_54, %c1_55, %c0_56], %42 {strides = array<i32>} : memref<2x10x10x32xbf16, #tpu.memory_space<vmem>>, vector<2x8x8x32xbf16>,
    %c0_57 = arith.constant 0 : index
    %c0_58 = arith.constant 0 : index
    %c0_59 = arith.constant 0 : index
    %c0_60 = arith.constant 0 : index
    %44 = vector.load %arg9[%c0_57, %c0_58, %c0_59, %c0_60] : memref<2x10x10x32xbf16, #tpu.memory_space<vmem>>, vector<2x8x8x32xbf16>
    %45 = vector.shape_cast %44 : vector<2x8x8x32xbf16> to vector<128x32xbf16>
    %c0_61 = arith.constant 0 : index
    %c0_62 = arith.constant 0 : index
    %46 = vector.load %arg11[%c0_61, %c0_62] : memref<128x288xbf16, #tpu.memory_space<vmem>>, vector<128x32xbf16>
    tpu.vector_store %arg11[%c0_61, %c0_62], %45 {strides = array<i32>} : memref<128x288xbf16, #tpu.memory_space<vmem>>, vector<128x32xbf16>,
    %c0_63 = arith.constant 0 : index
    %c0_64 = arith.constant 0 : index
    %c1_65 = arith.constant 1 : index
    %c0_66 = arith.constant 0 : index
    %47 = vector.load %arg9[%c0_63, %c0_64, %c1_65, %c0_66] : memref<2x10x10x32xbf16, #tpu.memory_space<vmem>>, vector<2x8x8x32xbf16>
    %48 = vector.shape_cast %47 : vector<2x8x8x32xbf16> to vector<128x32xbf16>
    %c0_67 = arith.constant 0 : index
    %c32_68 = arith.constant 32 : index
    %49 = vector.load %arg11[%c0_67, %c32_68] : memref<128x288xbf16, #tpu.memory_space<vmem>>, vector<128x32xbf16>
    tpu.vector_store %arg11[%c0_67, %c32_68], %48 {strides = array<i32>} : memref<128x288xbf16, #tpu.memory_space<vmem>>, vector<128x32xbf16>,
    %c0_69 = arith.constant 0 : index
    %c0_70 = arith.constant 0 : index
    %c2_71 = arith.constant 2 : index
    %c0_72 = arith.constant 0 : index
    %50 = vector.load %arg9[%c0_69, %c0_70, %c2_71, %c0_72] : memref<2x10x10x32xbf16, #tpu.memory_space<vmem>>, vector<2x8x8x32xbf16>
    %51 = vector.shape_cast %50 : vector<2x8x8x32xbf16> to vector<128x32xbf16>
    %c0_73 = arith.constant 0 : index
    %c64_74 = arith.constant 64 : index
    %52 = vector.load %arg11[%c0_73, %c64_74] : memref<128x288xbf16, #tpu.memory_space<vmem>>, vector<128x32xbf16>
    tpu.vector_store %arg11[%c0_73, %c64_74], %51 {strides = array<i32>} : memref<128x288xbf16, #tpu.memory_space<vmem>>, vector<128x32xbf16>,
    %c0_75 = arith.constant 0 : index
    %c1_76 = arith.constant 1 : index
    %c0_77 = arith.constant 0 : index
    %c0_78 = arith.constant 0 : index
    %53 = vector.load %arg9[%c0_75, %c1_76, %c0_77, %c0_78] : memref<2x10x10x32xbf16, #tpu.memory_space<vmem>>, vector<2x8x8x32xbf16>
    %54 = vector.shape_cast %53 : vector<2x8x8x32xbf16> to vector<128x32xbf16>
    %c0_79 = arith.constant 0 : index
    %c96_80 = arith.constant 96 : index
    %55 = vector.load %arg11[%c0_79, %c96_80] : memref<128x288xbf16, #tpu.memory_space<vmem>>, vector<128x32xbf16>
    tpu.vector_store %arg11[%c0_79, %c96_80], %54 {strides = array<i32>} : memref<128x288xbf16, #tpu.memory_space<vmem>>, vector<128x32xbf16>,
    %c0_81 = arith.constant 0 : index
    %c1_82 = arith.constant 1 : index
    %c1_83 = arith.constant 1 : index
    %c0_84 = arith.constant 0 : index
    %56 = vector.load %arg9[%c0_81, %c1_82, %c1_83, %c0_84] : memref<2x10x10x32xbf16, #tpu.memory_space<vmem>>, vector<2x8x8x32xbf16>
    %57 = vector.shape_cast %56 : vector<2x8x8x32xbf16> to vector<128x32xbf16>
    %c0_85 = arith.constant 0 : index
    %c128_86 = arith.constant 128 : index
    %58 = vector.load %arg11[%c0_85, %c128_86] : memref<128x288xbf16, #tpu.memory_space<vmem>>, vector<128x32xbf16>
    tpu.vector_store %arg11[%c0_85, %c128_86], %57 {strides = array<i32>} : memref<128x288xbf16, #tpu.memory_space<vmem>>, vector<128x32xbf16>,
    %c0_87 = arith.constant 0 : index
    %c1_88 = arith.constant 1 : index
    %c2_89 = arith.constant 2 : index
    %c0_90 = arith.constant 0 : index
    %59 = vector.load %arg9[%c0_87, %c1_88, %c2_89, %c0_90] : memref<2x10x10x32xbf16, #tpu.memory_space<vmem>>, vector<2x8x8x32xbf16>
    %60 = vector.shape_cast %59 : vector<2x8x8x32xbf16> to vector<128x32xbf16>
    %c0_91 = arith.constant 0 : index
    %c160_92 = arith.constant 160 : index
    %61 = vector.load %arg11[%c0_91, %c160_92] : memref<128x288xbf16, #tpu.memory_space<vmem>>, vector<128x32xbf16>
    tpu.vector_store %arg11[%c0_91, %c160_92], %60 {strides = array<i32>} : memref<128x288xbf16, #tpu.memory_space<vmem>>, vector<128x32xbf16>,
    %c0_93 = arith.constant 0 : index
    %c2_94 = arith.constant 2 : index
    %c0_95 = arith.constant 0 : index
    %c0_96 = arith.constant 0 : index
    %62 = vector.load %arg9[%c0_93, %c2_94, %c0_95, %c0_96] : memref<2x10x10x32xbf16, #tpu.memory_space<vmem>>, vector<2x8x8x32xbf16>
    %63 = vector.shape_cast %62 : vector<2x8x8x32xbf16> to vector<128x32xbf16>
    %c0_97 = arith.constant 0 : index
    %c192_98 = arith.constant 192 : index
    %64 = vector.load %arg11[%c0_97, %c192_98] : memref<128x288xbf16, #tpu.memory_space<vmem>>, vector<128x32xbf16>
    tpu.vector_store %arg11[%c0_97, %c192_98], %63 {strides = array<i32>} : memref<128x288xbf16, #tpu.memory_space<vmem>>, vector<128x32xbf16>,
    %c0_99 = arith.constant 0 : index
    %c2_100 = arith.constant 2 : index
    %c1_101 = arith.constant 1 : index
    %c0_102 = arith.constant 0 : index
    %65 = vector.load %arg9[%c0_99, %c2_100, %c1_101, %c0_102] : memref<2x10x10x32xbf16, #tpu.memory_space<vmem>>, vector<2x8x8x32xbf16>
    %66 = vector.shape_cast %65 : vector<2x8x8x32xbf16> to vector<128x32xbf16>
    %c0_103 = arith.constant 0 : index
    %c224_104 = arith.constant 224 : index
    %67 = vector.load %arg11[%c0_103, %c224_104] : memref<128x288xbf16, #tpu.memory_space<vmem>>, vector<128x32xbf16>
    tpu.vector_store %arg11[%c0_103, %c224_104], %66 {strides = array<i32>} : memref<128x288xbf16, #tpu.memory_space<vmem>>, vector<128x32xbf16>,
    %c0_105 = arith.constant 0 : index
    %c2_106 = arith.constant 2 : index
    %c2_107 = arith.constant 2 : index
    %c0_108 = arith.constant 0 : index
    %68 = vector.load %arg9[%c0_105, %c2_106, %c2_107, %c0_108] : memref<2x10x10x32xbf16, #tpu.memory_space<vmem>>, vector<2x8x8x32xbf16>
    %69 = vector.shape_cast %68 : vector<2x8x8x32xbf16> to vector<128x32xbf16>
    %c0_109 = arith.constant 0 : index
    %c256_110 = arith.constant 256 : index
    %70 = vector.load %arg11[%c0_109, %c256_110] : memref<128x288xbf16, #tpu.memory_space<vmem>>, vector<128x32xbf16>
    tpu.vector_store %arg11[%c0_109, %c256_110], %69 {strides = array<i32>} : memref<128x288xbf16, #tpu.memory_space<vmem>>, vector<128x32xbf16>,
    %c0_111 = arith.constant 0 : index
    %c0_112 = arith.constant 0 : index
    %71 = vector.load %arg11[%c0_111, %c0_112] : memref<128x288xbf16, #tpu.memory_space<vmem>>, vector<128x288xbf16>
    %c0_113 = arith.constant 0 : index
    %c0_114 = arith.constant 0 : index
    %72 = vector.load %arg5[%c0_113, %c0_114] : memref<288x32xbf16, #tpu.memory_space<vmem>>, vector<288x32xbf16>
    %cst_115 = arith.constant dense<0.000000e+00> : vector<128x32xf32>
    %73 = tpu.matmul %71, %72, %cst_115 {dimension_numbers = #tpu.dot_dimension_numbers<[1], [0], [0], [1], [0, 0, 1, 1], [], []>} : vector<128x288xbf16>, vector<288x32xbf16>, vector<128x32xf32> -> vector<128x32xf32>
    %c0_116 = arith.constant 0 : index
    %c0_117 = arith.constant 0 : index
    %74 = vector.load %arg6[%c0_116, %c0_117] : memref<1x32xf32, #tpu.memory_space<vmem>>, vector<1x32xf32>
    %75 = vector.broadcast %74 : vector<1x32xf32> to vector<128x32xf32>
    %76 = arith.mulf %73, %75 : vector<128x32xf32>
    %c0_118 = arith.constant 0 : index
    %c0_119 = arith.constant 0 : index
    %77 = vector.load %arg7[%c0_118, %c0_119] : memref<1x32xf32, #tpu.memory_space<vmem>>, vector<1x32xf32>
    %78 = vector.broadcast %77 : vector<1x32xf32> to vector<128x32xf32>
    %79 = arith.addf %76, %78 : vector<128x32xf32>
    %c0_120 = arith.constant 0 : index
    %c1_121 = arith.constant 1 : index
    %c1_122 = arith.constant 1 : index
    %c0_123 = arith.constant 0 : index
    %80 = vector.load %arg1[%c0_120, %c1_121, %c1_122, %c0_123] : memref<2x10x10x32xbf16, #tpu.memory_space<vmem>>, vector<2x8x8x32xbf16>
    %81 = vector.shape_cast %80 : vector<2x8x8x32xbf16> to vector<128x32xbf16>
    %82 = arith.extf %81 : vector<128x32xbf16> to vector<128x32xf32>
    %83 = arith.addf %79, %82 : vector<128x32xf32>
    %cst_124 = arith.constant 0.000000e+00 : f32
    %84 = vector.broadcast %cst_124 : f32 to vector<128x32xf32>
    %85 = arith.maximumf %83, %84 : vector<128x32xf32>
    %86 = vector.shape_cast %85 : vector<128x32xf32> to vector<2x64x32xf32>
    %87 = arith.truncf %86 : vector<2x64x32xf32> to vector<2x64x32xbf16>
    %c0_125 = arith.constant 0 : index
    %c0_126 = arith.constant 0 : index
    %c0_127 = arith.constant 0 : index
    %88 = vector.load %arg8[%c0_125, %c0_126, %c0_127] : memref<2x64x32xbf16, #tpu.memory_space<vmem>>, vector<2x64x32xbf16>
    tpu.vector_store %arg8[%c0_125, %c0_126, %c0_127], %87 {strides = array<i32>} : memref<2x64x32xbf16, #tpu.memory_space<vmem>>, vector<2x64x32xbf16>,
    return
  }
  func.func @transform_0(%arg0: i32) -> (i32, i32, i32, i32) {
    %c0_i32 = arith.constant 0 : i32
    %c0_i32_0 = arith.constant 0 : i32
    %c0_i32_1 = arith.constant 0 : i32
    %c0_i32_2 = arith.constant 0 : i32
    return %arg0, %c0_i32, %c0_i32_0, %c0_i32_1 : i32, i32, i32, i32
  }
  func.func @transform_1(%arg0: i32) -> (i32, i32) {
    %c0_i32 = arith.constant 0 : i32
    %c0_i32_0 = arith.constant 0 : i32
    %c0_i32_1 = arith.constant 0 : i32
    return %c0_i32, %c0_i32_0 : i32, i32
  }
  func.func @transform_2(%arg0: i32) -> (i32, i32) {
    %c0_i32 = arith.constant 0 : i32
    %c0_i32_0 = arith.constant 0 : i32
    %c0_i32_1 = arith.constant 0 : i32
    return %c0_i32, %c0_i32_0 : i32, i32
  }
  func.func @transform_3(%arg0: i32) -> (i32, i32) {
    %c0_i32 = arith.constant 0 : i32
    %c0_i32_0 = arith.constant 0 : i32
    %c0_i32_1 = arith.constant 0 : i32
    return %c0_i32, %c0_i32_0 : i32, i32
  }
  func.func @transform_4(%arg0: i32) -> (i32, i32) {
    %c0_i32 = arith.constant 0 : i32
    %c0_i32_0 = arith.constant 0 : i32
    %c0_i32_1 = arith.constant 0 : i32
    return %c0_i32, %c0_i32_0 : i32, i32
  }
  func.func @transform_5(%arg0: i32) -> (i32, i32) {
    %c0_i32 = arith.constant 0 : i32
    %c0_i32_0 = arith.constant 0 : i32
    %c0_i32_1 = arith.constant 0 : i32
    return %c0_i32, %c0_i32_0 : i32, i32
  }
  func.func @transform_6(%arg0: i32) -> (i32, i32) {
    %c0_i32 = arith.constant 0 : i32
    %c0_i32_0 = arith.constant 0 : i32
    %c0_i32_1 = arith.constant 0 : i32
    return %c0_i32, %c0_i32_0 : i32, i32
  }
  func.func @transform_7(%arg0: i32) -> (i32, i32, i32) {
    %c0_i32 = arith.constant 0 : i32
    %c0_i32_0 = arith.constant 0 : i32
    %c0_i32_1 = arith.constant 0 : i32
    return %arg0, %c0_i32, %c0_i32_0 : i32, i32, i32
  }
}

module attributes {stable_mosaic.version = 11 : i64} {
  func.func @_maxpool2x2_kernel(%arg0: i32, %arg1: memref<1x8x4x64xbf16, #tpu.memory_space<vmem>>, %arg2: memref<1x4x4x32xbf16, #tpu.memory_space<vmem>>) attributes {dimension_semantics = [#tpu.dimension_semantics<parallel>], iteration_bounds = array<i64: 2>, scalar_prefetch = 0 : i64, scratch_operands = 0 : i64, tpu.core_type = #tpu.core_type<tc>, window_params = [{transform_indices = @transform_0, window_bounds = array<i64: 1, 8, 4, 64>}, {transform_indices = @transform_1, window_bounds = array<i64: 1, 4, 4, 32>}]} {
    %c0 = arith.constant 0 : index
    %c0_0 = arith.constant 0 : index
    %c0_1 = arith.constant 0 : index
    %c0_2 = arith.constant 0 : index
    %0 = vector.load %arg1[%c0, %c0_0, %c0_1, %c0_2] : memref<1x8x4x64xbf16, #tpu.memory_space<vmem>>, vector<1x8x4x64xbf16>
    %1 = vector.shape_cast %0 : vector<1x8x4x64xbf16> to vector<8x4x64xbf16>
    %2 = vector.extract_strided_slice %1 {offsets = [0, 0, 0], sizes = [8, 4, 32], strides = [1, 1, 1]} : vector<8x4x64xbf16> to vector<8x4x32xbf16>
    %3 = vector.extract_strided_slice %1 {offsets = [0, 0, 32], sizes = [8, 4, 32], strides = [1, 1, 1]} : vector<8x4x64xbf16> to vector<8x4x32xbf16>
    %4 = arith.maximumf %2, %3 : vector<8x4x32xbf16>
    %5 = vector.shape_cast %4 : vector<8x4x32xbf16> to vector<4x2x4x32xbf16>
    %6 = vector.extract_strided_slice %5 {offsets = [0, 0, 0, 0], sizes = [4, 1, 4, 32], strides = [1, 1, 1, 1]} : vector<4x2x4x32xbf16> to vector<4x1x4x32xbf16>
    %7 = vector.shape_cast %6 : vector<4x1x4x32xbf16> to vector<4x4x32xbf16>
    %8 = vector.extract_strided_slice %5 {offsets = [0, 1, 0, 0], sizes = [4, 1, 4, 32], strides = [1, 1, 1, 1]} : vector<4x2x4x32xbf16> to vector<4x1x4x32xbf16>
    %9 = vector.shape_cast %8 : vector<4x1x4x32xbf16> to vector<4x4x32xbf16>
    %10 = arith.maximumf %7, %9 : vector<4x4x32xbf16>
    %c0_3 = arith.constant 0 : index
    %c0_4 = arith.constant 0 : index
    %c0_5 = arith.constant 0 : index
    %c0_6 = arith.constant 0 : index
    %11 = vector.load %arg2[%c0_3, %c0_4, %c0_5, %c0_6] : memref<1x4x4x32xbf16, #tpu.memory_space<vmem>>, vector<1x4x4x32xbf16>
    %12 = vector.shape_cast %11 : vector<1x4x4x32xbf16> to vector<4x4x32xbf16>
    %13 = vector.shape_cast %10 : vector<4x4x32xbf16> to vector<1x4x4x32xbf16>
    tpu.vector_store %arg2[%c0_3, %c0_4, %c0_5, %c0_6], %13 {strides = array<i32>} : memref<1x4x4x32xbf16, #tpu.memory_space<vmem>>, vector<1x4x4x32xbf16>,
    return
  }
  func.func @transform_0(%arg0: i32) -> (i32, i32, i32, i32) {
    %c0_i32 = arith.constant 0 : i32
    %c0_i32_0 = arith.constant 0 : i32
    %c0_i32_1 = arith.constant 0 : i32
    %c0_i32_2 = arith.constant 0 : i32
    return %arg0, %c0_i32, %c0_i32_0, %c0_i32_1 : i32, i32, i32, i32
  }
  func.func @transform_1(%arg0: i32) -> (i32, i32, i32, i32) {
    %c0_i32 = arith.constant 0 : i32
    %c0_i32_0 = arith.constant 0 : i32
    %c0_i32_1 = arith.constant 0 : i32
    %c0_i32_2 = arith.constant 0 : i32
    return %arg0, %c0_i32, %c0_i32_0, %c0_i32_1 : i32, i32, i32, i32
  }
}

module attributes {stable_mosaic.version = 11 : i64} {
  func.func @_block_kernel(%arg0: i32, %arg1: memref<2x6x6x32xbf16, #tpu.memory_space<vmem>>, %arg2: memref<288x64xbf16, #tpu.memory_space<vmem>>, %arg3: memref<1x64xf32, #tpu.memory_space<vmem>>, %arg4: memref<1x64xf32, #tpu.memory_space<vmem>>, %arg5: memref<576x64xbf16, #tpu.memory_space<vmem>>, %arg6: memref<1x64xf32, #tpu.memory_space<vmem>>, %arg7: memref<1x64xf32, #tpu.memory_space<vmem>>, %arg8: memref<32x64xbf16, #tpu.memory_space<vmem>>, %arg9: memref<1x64xf32, #tpu.memory_space<vmem>>, %arg10: memref<1x64xf32, #tpu.memory_space<vmem>>, %arg11: memref<2x16x64xbf16, #tpu.memory_space<vmem>>, %arg12: memref<2x6x6x64xbf16, #tpu.memory_space<vmem>>, %arg13: memref<32x288xbf16, #tpu.memory_space<vmem>>, %arg14: memref<32x576xbf16, #tpu.memory_space<vmem>>) attributes {dimension_semantics = [#tpu.dimension_semantics<parallel>], iteration_bounds = array<i64: 1>, scalar_prefetch = 0 : i64, scratch_operands = 3 : i64, tpu.core_type = #tpu.core_type<tc>, window_params = [{transform_indices = @transform_0, window_bounds = array<i64: 2, 6, 6, 32>}, {pipeline_mode = #tpu.pipeline_mode<synchronous>, transform_indices = @transform_1, window_bounds = array<i64: 288, 64>}, {pipeline_mode = #tpu.pipeline_mode<synchronous>, transform_indices = @transform_2, window_bounds = array<i64: 1, 64>}, {pipeline_mode = #tpu.pipeline_mode<synchronous>, transform_indices = @transform_3, window_bounds = array<i64: 1, 64>}, {pipeline_mode = #tpu.pipeline_mode<synchronous>, transform_indices = @transform_4, window_bounds = array<i64: 576, 64>}, {pipeline_mode = #tpu.pipeline_mode<synchronous>, transform_indices = @transform_5, window_bounds = array<i64: 1, 64>}, {pipeline_mode = #tpu.pipeline_mode<synchronous>, transform_indices = @transform_6, window_bounds = array<i64: 1, 64>}, {pipeline_mode = #tpu.pipeline_mode<synchronous>, transform_indices = @transform_7, window_bounds = array<i64: 32, 64>}, {pipeline_mode = #tpu.pipeline_mode<synchronous>, transform_indices = @transform_8, window_bounds = array<i64: 1, 64>}, {pipeline_mode = #tpu.pipeline_mode<synchronous>, transform_indices = @transform_9, window_bounds = array<i64: 1, 64>}, {transform_indices = @transform_10, window_bounds = array<i64: 2, 16, 64>}]} {
    %c0_i32 = arith.constant 0 : i32
    %0 = arith.cmpi eq, %arg0, %c0_i32 : i32
    %1 = arith.extui %0 : i1 to i32
    %c0_i32_0 = arith.constant 0 : i32
    %2 = arith.cmpi ne, %1, %c0_i32_0 : i32
    scf.if %2 {
      %cst_131 = arith.constant 0.000000e+00 : bf16
      %96 = vector.broadcast %cst_131 : bf16 to vector<2x6x6x64xbf16>
      %c0_132 = arith.constant 0 : index
      %c0_133 = arith.constant 0 : index
      %c0_134 = arith.constant 0 : index
      %c0_135 = arith.constant 0 : index
      %97 = vector.load %arg12[%c0_132, %c0_133, %c0_134, %c0_135] : memref<2x6x6x64xbf16, #tpu.memory_space<vmem>>, vector<2x6x6x64xbf16>
      tpu.vector_store %arg12[%c0_132, %c0_133, %c0_134, %c0_135], %96 {strides = array<i32>} : memref<2x6x6x64xbf16, #tpu.memory_space<vmem>>, vector<2x6x6x64xbf16>,
    } else {
    }
    %c0 = arith.constant 0 : index
    %c0_1 = arith.constant 0 : index
    %c0_2 = arith.constant 0 : index
    %c0_3 = arith.constant 0 : index
    %3 = vector.load %arg1[%c0, %c0_1, %c0_2, %c0_3] : memref<2x6x6x32xbf16, #tpu.memory_space<vmem>>, vector<2x4x4x32xbf16>
    %4 = vector.shape_cast %3 : vector<2x4x4x32xbf16> to vector<32x32xbf16>
    %c0_4 = arith.constant 0 : index
    %c0_5 = arith.constant 0 : index
    %5 = vector.load %arg13[%c0_4, %c0_5] : memref<32x288xbf16, #tpu.memory_space<vmem>>, vector<32x32xbf16>
    tpu.vector_store %arg13[%c0_4, %c0_5], %4 {strides = array<i32>} : memref<32x288xbf16, #tpu.memory_space<vmem>>, vector<32x32xbf16>,
    %c0_6 = arith.constant 0 : index
    %c0_7 = arith.constant 0 : index
    %c1 = arith.constant 1 : index
    %c0_8 = arith.constant 0 : index
    %6 = vector.load %arg1[%c0_6, %c0_7, %c1, %c0_8] : memref<2x6x6x32xbf16, #tpu.memory_space<vmem>>, vector<2x4x4x32xbf16>
    %7 = vector.shape_cast %6 : vector<2x4x4x32xbf16> to vector<32x32xbf16>
    %c0_9 = arith.constant 0 : index
    %c32 = arith.constant 32 : index
    %8 = vector.load %arg13[%c0_9, %c32] : memref<32x288xbf16, #tpu.memory_space<vmem>>, vector<32x32xbf16>
    tpu.vector_store %arg13[%c0_9, %c32], %7 {strides = array<i32>} : memref<32x288xbf16, #tpu.memory_space<vmem>>, vector<32x32xbf16>,
    %c0_10 = arith.constant 0 : index
    %c0_11 = arith.constant 0 : index
    %c2 = arith.constant 2 : index
    %c0_12 = arith.constant 0 : index
    %9 = vector.load %arg1[%c0_10, %c0_11, %c2, %c0_12] : memref<2x6x6x32xbf16, #tpu.memory_space<vmem>>, vector<2x4x4x32xbf16>
    %10 = vector.shape_cast %9 : vector<2x4x4x32xbf16> to vector<32x32xbf16>
    %c0_13 = arith.constant 0 : index
    %c64 = arith.constant 64 : index
    %11 = vector.load %arg13[%c0_13, %c64] : memref<32x288xbf16, #tpu.memory_space<vmem>>, vector<32x32xbf16>
    tpu.vector_store %arg13[%c0_13, %c64], %10 {strides = array<i32>} : memref<32x288xbf16, #tpu.memory_space<vmem>>, vector<32x32xbf16>,
    %c0_14 = arith.constant 0 : index
    %c1_15 = arith.constant 1 : index
    %c0_16 = arith.constant 0 : index
    %c0_17 = arith.constant 0 : index
    %12 = vector.load %arg1[%c0_14, %c1_15, %c0_16, %c0_17] : memref<2x6x6x32xbf16, #tpu.memory_space<vmem>>, vector<2x4x4x32xbf16>
    %13 = vector.shape_cast %12 : vector<2x4x4x32xbf16> to vector<32x32xbf16>
    %c0_18 = arith.constant 0 : index
    %c96 = arith.constant 96 : index
    %14 = vector.load %arg13[%c0_18, %c96] : memref<32x288xbf16, #tpu.memory_space<vmem>>, vector<32x32xbf16>
    tpu.vector_store %arg13[%c0_18, %c96], %13 {strides = array<i32>} : memref<32x288xbf16, #tpu.memory_space<vmem>>, vector<32x32xbf16>,
    %c0_19 = arith.constant 0 : index
    %c1_20 = arith.constant 1 : index
    %c1_21 = arith.constant 1 : index
    %c0_22 = arith.constant 0 : index
    %15 = vector.load %arg1[%c0_19, %c1_20, %c1_21, %c0_22] : memref<2x6x6x32xbf16, #tpu.memory_space<vmem>>, vector<2x4x4x32xbf16>
    %16 = vector.shape_cast %15 : vector<2x4x4x32xbf16> to vector<32x32xbf16>
    %c0_23 = arith.constant 0 : index
    %c128 = arith.constant 128 : index
    %17 = vector.load %arg13[%c0_23, %c128] : memref<32x288xbf16, #tpu.memory_space<vmem>>, vector<32x32xbf16>
    tpu.vector_store %arg13[%c0_23, %c128], %16 {strides = array<i32>} : memref<32x288xbf16, #tpu.memory_space<vmem>>, vector<32x32xbf16>,
    %c0_24 = arith.constant 0 : index
    %c1_25 = arith.constant 1 : index
    %c2_26 = arith.constant 2 : index
    %c0_27 = arith.constant 0 : index
    %18 = vector.load %arg1[%c0_24, %c1_25, %c2_26, %c0_27] : memref<2x6x6x32xbf16, #tpu.memory_space<vmem>>, vector<2x4x4x32xbf16>
    %19 = vector.shape_cast %18 : vector<2x4x4x32xbf16> to vector<32x32xbf16>
    %c0_28 = arith.constant 0 : index
    %c160 = arith.constant 160 : index
    %20 = vector.load %arg13[%c0_28, %c160] : memref<32x288xbf16, #tpu.memory_space<vmem>>, vector<32x32xbf16>
    tpu.vector_store %arg13[%c0_28, %c160], %19 {strides = array<i32>} : memref<32x288xbf16, #tpu.memory_space<vmem>>, vector<32x32xbf16>,
    %c0_29 = arith.constant 0 : index
    %c2_30 = arith.constant 2 : index
    %c0_31 = arith.constant 0 : index
    %c0_32 = arith.constant 0 : index
    %21 = vector.load %arg1[%c0_29, %c2_30, %c0_31, %c0_32] : memref<2x6x6x32xbf16, #tpu.memory_space<vmem>>, vector<2x4x4x32xbf16>
    %22 = vector.shape_cast %21 : vector<2x4x4x32xbf16> to vector<32x32xbf16>
    %c0_33 = arith.constant 0 : index
    %c192 = arith.constant 192 : index
    %23 = vector.load %arg13[%c0_33, %c192] : memref<32x288xbf16, #tpu.memory_space<vmem>>, vector<32x32xbf16>
    tpu.vector_store %arg13[%c0_33, %c192], %22 {strides = array<i32>} : memref<32x288xbf16, #tpu.memory_space<vmem>>, vector<32x32xbf16>,
    %c0_34 = arith.constant 0 : index
    %c2_35 = arith.constant 2 : index
    %c1_36 = arith.constant 1 : index
    %c0_37 = arith.constant 0 : index
    %24 = vector.load %arg1[%c0_34, %c2_35, %c1_36, %c0_37] : memref<2x6x6x32xbf16, #tpu.memory_space<vmem>>, vector<2x4x4x32xbf16>
    %25 = vector.shape_cast %24 : vector<2x4x4x32xbf16> to vector<32x32xbf16>
    %c0_38 = arith.constant 0 : index
    %c224 = arith.constant 224 : index
    %26 = vector.load %arg13[%c0_38, %c224] : memref<32x288xbf16, #tpu.memory_space<vmem>>, vector<32x32xbf16>
    tpu.vector_store %arg13[%c0_38, %c224], %25 {strides = array<i32>} : memref<32x288xbf16, #tpu.memory_space<vmem>>, vector<32x32xbf16>,
    %c0_39 = arith.constant 0 : index
    %c2_40 = arith.constant 2 : index
    %c2_41 = arith.constant 2 : index
    %c0_42 = arith.constant 0 : index
    %27 = vector.load %arg1[%c0_39, %c2_40, %c2_41, %c0_42] : memref<2x6x6x32xbf16, #tpu.memory_space<vmem>>, vector<2x4x4x32xbf16>
    %28 = vector.shape_cast %27 : vector<2x4x4x32xbf16> to vector<32x32xbf16>
    %c0_43 = arith.constant 0 : index
    %c256 = arith.constant 256 : index
    %29 = vector.load %arg13[%c0_43, %c256] : memref<32x288xbf16, #tpu.memory_space<vmem>>, vector<32x32xbf16>
    tpu.vector_store %arg13[%c0_43, %c256], %28 {strides = array<i32>} : memref<32x288xbf16, #tpu.memory_space<vmem>>, vector<32x32xbf16>,
    %c0_44 = arith.constant 0 : index
    %c0_45 = arith.constant 0 : index
    %30 = vector.load %arg13[%c0_44, %c0_45] : memref<32x288xbf16, #tpu.memory_space<vmem>>, vector<32x288xbf16>
    %c0_46 = arith.constant 0 : index
    %c0_47 = arith.constant 0 : index
    %31 = vector.load %arg2[%c0_46, %c0_47] : memref<288x64xbf16, #tpu.memory_space<vmem>>, vector<288x64xbf16>
    %cst = arith.constant dense<0.000000e+00> : vector<32x64xf32>
    %32 = tpu.matmul %30, %31, %cst {dimension_numbers = #tpu.dot_dimension_numbers<[1], [0], [0], [1], [0, 0, 1, 1], [], []>} : vector<32x288xbf16>, vector<288x64xbf16>, vector<32x64xf32> -> vector<32x64xf32>
    %c0_48 = arith.constant 0 : index
    %c0_49 = arith.constant 0 : index
    %33 = vector.load %arg3[%c0_48, %c0_49] : memref<1x64xf32, #tpu.memory_space<vmem>>, vector<1x64xf32>
    %34 = vector.broadcast %33 : vector<1x64xf32> to vector<32x64xf32>
    %35 = arith.mulf %32, %34 : vector<32x64xf32>
    %c0_50 = arith.constant 0 : index
    %c0_51 = arith.constant 0 : index
    %36 = vector.load %arg4[%c0_50, %c0_51] : memref<1x64xf32, #tpu.memory_space<vmem>>, vector<1x64xf32>
    %37 = vector.broadcast %36 : vector<1x64xf32> to vector<32x64xf32>
    %38 = arith.addf %35, %37 : vector<32x64xf32>
    %cst_52 = arith.constant 0.000000e+00 : f32
    %39 = vector.broadcast %cst_52 : f32 to vector<32x64xf32>
    %40 = arith.maximumf %38, %39 : vector<32x64xf32>
    %41 = arith.truncf %40 : vector<32x64xf32> to vector<32x64xbf16>
    %42 = vector.shape_cast %41 : vector<32x64xbf16> to vector<2x4x4x64xbf16>
    %c0_53 = arith.constant 0 : index
    %c1_54 = arith.constant 1 : index
    %c1_55 = arith.constant 1 : index
    %c0_56 = arith.constant 0 : index
    %43 = vector.load %arg12[%c0_53, %c1_54, %c1_55, %c0_56] : memref<2x6x6x64xbf16, #tpu.memory_space<vmem>>, vector<2x4x4x64xbf16>
    tpu.vector_store %arg12[%c0_53, %c1_54, %c1_55, %c0_56], %42 {strides = array<i32>} : memref<2x6x6x64xbf16, #tpu.memory_space<vmem>>, vector<2x4x4x64xbf16>,
    %c0_57 = arith.constant 0 : index
    %c0_58 = arith.constant 0 : index
    %c0_59 = arith.constant 0 : index
    %c0_60 = arith.constant 0 : index
    %44 = vector.load %arg12[%c0_57, %c0_58, %c0_59, %c0_60] : memref<2x6x6x64xbf16, #tpu.memory_space<vmem>>, vector<2x4x4x64xbf16>
    %45 = vector.shape_cast %44 : vector<2x4x4x64xbf16> to vector<32x64xbf16>
    %c0_61 = arith.constant 0 : index
    %c0_62 = arith.constant 0 : index
    %46 = vector.load %arg14[%c0_61, %c0_62] : memref<32x576xbf16, #tpu.memory_space<vmem>>, vector<32x64xbf16>
    tpu.vector_store %arg14[%c0_61, %c0_62], %45 {strides = array<i32>} : memref<32x576xbf16, #tpu.memory_space<vmem>>, vector<32x64xbf16>,
    %c0_63 = arith.constant 0 : index
    %c0_64 = arith.constant 0 : index
    %c1_65 = arith.constant 1 : index
    %c0_66 = arith.constant 0 : index
    %47 = vector.load %arg12[%c0_63, %c0_64, %c1_65, %c0_66] : memref<2x6x6x64xbf16, #tpu.memory_space<vmem>>, vector<2x4x4x64xbf16>
    %48 = vector.shape_cast %47 : vector<2x4x4x64xbf16> to vector<32x64xbf16>
    %c0_67 = arith.constant 0 : index
    %c64_68 = arith.constant 64 : index
    %49 = vector.load %arg14[%c0_67, %c64_68] : memref<32x576xbf16, #tpu.memory_space<vmem>>, vector<32x64xbf16>
    tpu.vector_store %arg14[%c0_67, %c64_68], %48 {strides = array<i32>} : memref<32x576xbf16, #tpu.memory_space<vmem>>, vector<32x64xbf16>,
    %c0_69 = arith.constant 0 : index
    %c0_70 = arith.constant 0 : index
    %c2_71 = arith.constant 2 : index
    %c0_72 = arith.constant 0 : index
    %50 = vector.load %arg12[%c0_69, %c0_70, %c2_71, %c0_72] : memref<2x6x6x64xbf16, #tpu.memory_space<vmem>>, vector<2x4x4x64xbf16>
    %51 = vector.shape_cast %50 : vector<2x4x4x64xbf16> to vector<32x64xbf16>
    %c0_73 = arith.constant 0 : index
    %c128_74 = arith.constant 128 : index
    %52 = vector.load %arg14[%c0_73, %c128_74] : memref<32x576xbf16, #tpu.memory_space<vmem>>, vector<32x64xbf16>
    tpu.vector_store %arg14[%c0_73, %c128_74], %51 {strides = array<i32>} : memref<32x576xbf16, #tpu.memory_space<vmem>>, vector<32x64xbf16>,
    %c0_75 = arith.constant 0 : index
    %c1_76 = arith.constant 1 : index
    %c0_77 = arith.constant 0 : index
    %c0_78 = arith.constant 0 : index
    %53 = vector.load %arg12[%c0_75, %c1_76, %c0_77, %c0_78] : memref<2x6x6x64xbf16, #tpu.memory_space<vmem>>, vector<2x4x4x64xbf16>
    %54 = vector.shape_cast %53 : vector<2x4x4x64xbf16> to vector<32x64xbf16>
    %c0_79 = arith.constant 0 : index
    %c192_80 = arith.constant 192 : index
    %55 = vector.load %arg14[%c0_79, %c192_80] : memref<32x576xbf16, #tpu.memory_space<vmem>>, vector<32x64xbf16>
    tpu.vector_store %arg14[%c0_79, %c192_80], %54 {strides = array<i32>} : memref<32x576xbf16, #tpu.memory_space<vmem>>, vector<32x64xbf16>,
    %c0_81 = arith.constant 0 : index
    %c1_82 = arith.constant 1 : index
    %c1_83 = arith.constant 1 : index
    %c0_84 = arith.constant 0 : index
    %56 = vector.load %arg12[%c0_81, %c1_82, %c1_83, %c0_84] : memref<2x6x6x64xbf16, #tpu.memory_space<vmem>>, vector<2x4x4x64xbf16>
    %57 = vector.shape_cast %56 : vector<2x4x4x64xbf16> to vector<32x64xbf16>
    %c0_85 = arith.constant 0 : index
    %c256_86 = arith.constant 256 : index
    %58 = vector.load %arg14[%c0_85, %c256_86] : memref<32x576xbf16, #tpu.memory_space<vmem>>, vector<32x64xbf16>
    tpu.vector_store %arg14[%c0_85, %c256_86], %57 {strides = array<i32>} : memref<32x576xbf16, #tpu.memory_space<vmem>>, vector<32x64xbf16>,
    %c0_87 = arith.constant 0 : index
    %c1_88 = arith.constant 1 : index
    %c2_89 = arith.constant 2 : index
    %c0_90 = arith.constant 0 : index
    %59 = vector.load %arg12[%c0_87, %c1_88, %c2_89, %c0_90] : memref<2x6x6x64xbf16, #tpu.memory_space<vmem>>, vector<2x4x4x64xbf16>
    %60 = vector.shape_cast %59 : vector<2x4x4x64xbf16> to vector<32x64xbf16>
    %c0_91 = arith.constant 0 : index
    %c320 = arith.constant 320 : index
    %61 = vector.load %arg14[%c0_91, %c320] : memref<32x576xbf16, #tpu.memory_space<vmem>>, vector<32x64xbf16>
    tpu.vector_store %arg14[%c0_91, %c320], %60 {strides = array<i32>} : memref<32x576xbf16, #tpu.memory_space<vmem>>, vector<32x64xbf16>,
    %c0_92 = arith.constant 0 : index
    %c2_93 = arith.constant 2 : index
    %c0_94 = arith.constant 0 : index
    %c0_95 = arith.constant 0 : index
    %62 = vector.load %arg12[%c0_92, %c2_93, %c0_94, %c0_95] : memref<2x6x6x64xbf16, #tpu.memory_space<vmem>>, vector<2x4x4x64xbf16>
    %63 = vector.shape_cast %62 : vector<2x4x4x64xbf16> to vector<32x64xbf16>
    %c0_96 = arith.constant 0 : index
    %c384 = arith.constant 384 : index
    %64 = vector.load %arg14[%c0_96, %c384] : memref<32x576xbf16, #tpu.memory_space<vmem>>, vector<32x64xbf16>
    tpu.vector_store %arg14[%c0_96, %c384], %63 {strides = array<i32>} : memref<32x576xbf16, #tpu.memory_space<vmem>>, vector<32x64xbf16>,
    %c0_97 = arith.constant 0 : index
    %c2_98 = arith.constant 2 : index
    %c1_99 = arith.constant 1 : index
    %c0_100 = arith.constant 0 : index
    %65 = vector.load %arg12[%c0_97, %c2_98, %c1_99, %c0_100] : memref<2x6x6x64xbf16, #tpu.memory_space<vmem>>, vector<2x4x4x64xbf16>
    %66 = vector.shape_cast %65 : vector<2x4x4x64xbf16> to vector<32x64xbf16>
    %c0_101 = arith.constant 0 : index
    %c448 = arith.constant 448 : index
    %67 = vector.load %arg14[%c0_101, %c448] : memref<32x576xbf16, #tpu.memory_space<vmem>>, vector<32x64xbf16>
    tpu.vector_store %arg14[%c0_101, %c448], %66 {strides = array<i32>} : memref<32x576xbf16, #tpu.memory_space<vmem>>, vector<32x64xbf16>,
    %c0_102 = arith.constant 0 : index
    %c2_103 = arith.constant 2 : index
    %c2_104 = arith.constant 2 : index
    %c0_105 = arith.constant 0 : index
    %68 = vector.load %arg12[%c0_102, %c2_103, %c2_104, %c0_105] : memref<2x6x6x64xbf16, #tpu.memory_space<vmem>>, vector<2x4x4x64xbf16>
    %69 = vector.shape_cast %68 : vector<2x4x4x64xbf16> to vector<32x64xbf16>
    %c0_106 = arith.constant 0 : index
    %c512 = arith.constant 512 : index
    %70 = vector.load %arg14[%c0_106, %c512] : memref<32x576xbf16, #tpu.memory_space<vmem>>, vector<32x64xbf16>
    tpu.vector_store %arg14[%c0_106, %c512], %69 {strides = array<i32>} : memref<32x576xbf16, #tpu.memory_space<vmem>>, vector<32x64xbf16>,
    %c0_107 = arith.constant 0 : index
    %c0_108 = arith.constant 0 : index
    %71 = vector.load %arg14[%c0_107, %c0_108] : memref<32x576xbf16, #tpu.memory_space<vmem>>, vector<32x576xbf16>
    %c0_109 = arith.constant 0 : index
    %c0_110 = arith.constant 0 : index
    %72 = vector.load %arg5[%c0_109, %c0_110] : memref<576x64xbf16, #tpu.memory_space<vmem>>, vector<576x64xbf16>
    %cst_111 = arith.constant dense<0.000000e+00> : vector<32x64xf32>
    %73 = tpu.matmul %71, %72, %cst_111 {dimension_numbers = #tpu.dot_dimension_numbers<[1], [0], [0], [1], [0, 0, 1, 1], [], []>} : vector<32x576xbf16>, vector<576x64xbf16>, vector<32x64xf32> -> vector<32x64xf32>
    %c0_112 = arith.constant 0 : index
    %c0_113 = arith.constant 0 : index
    %74 = vector.load %arg6[%c0_112, %c0_113] : memref<1x64xf32, #tpu.memory_space<vmem>>, vector<1x64xf32>
    %75 = vector.broadcast %74 : vector<1x64xf32> to vector<32x64xf32>
    %76 = arith.mulf %73, %75 : vector<32x64xf32>
    %c0_114 = arith.constant 0 : index
    %c0_115 = arith.constant 0 : index
    %77 = vector.load %arg7[%c0_114, %c0_115] : memref<1x64xf32, #tpu.memory_space<vmem>>, vector<1x64xf32>
    %78 = vector.broadcast %77 : vector<1x64xf32> to vector<32x64xf32>
    %79 = arith.addf %76, %78 : vector<32x64xf32>
    %c0_116 = arith.constant 0 : index
    %c1_117 = arith.constant 1 : index
    %c1_118 = arith.constant 1 : index
    %c0_119 = arith.constant 0 : index
    %80 = vector.load %arg1[%c0_116, %c1_117, %c1_118, %c0_119] : memref<2x6x6x32xbf16, #tpu.memory_space<vmem>>, vector<2x4x4x32xbf16>
    %81 = vector.shape_cast %80 : vector<2x4x4x32xbf16> to vector<32x32xbf16>
    %c0_120 = arith.constant 0 : index
    %c0_121 = arith.constant 0 : index
    %82 = vector.load %arg8[%c0_120, %c0_121] : memref<32x64xbf16, #tpu.memory_space<vmem>>, vector<32x64xbf16>
    %cst_122 = arith.constant dense<0.000000e+00> : vector<32x64xf32>
    %83 = tpu.matmul %81, %82, %cst_122 {dimension_numbers = #tpu.dot_dimension_numbers<[1], [0], [0], [1], [0, 0, 1, 1], [], []>} : vector<32x32xbf16>, vector<32x64xbf16>, vector<32x64xf32> -> vector<32x64xf32>
    %c0_123 = arith.constant 0 : index
    %c0_124 = arith.constant 0 : index
    %84 = vector.load %arg9[%c0_123, %c0_124] : memref<1x64xf32, #tpu.memory_space<vmem>>, vector<1x64xf32>
    %85 = vector.broadcast %84 : vector<1x64xf32> to vector<32x64xf32>
    %86 = arith.mulf %83, %85 : vector<32x64xf32>
    %c0_125 = arith.constant 0 : index
    %c0_126 = arith.constant 0 : index
    %87 = vector.load %arg10[%c0_125, %c0_126] : memref<1x64xf32, #tpu.memory_space<vmem>>, vector<1x64xf32>
    %88 = vector.broadcast %87 : vector<1x64xf32> to vector<32x64xf32>
    %89 = arith.addf %86, %88 : vector<32x64xf32>
    %90 = arith.addf %79, %89 : vector<32x64xf32>
    %cst_127 = arith.constant 0.000000e+00 : f32
    %91 = vector.broadcast %cst_127 : f32 to vector<32x64xf32>
    %92 = arith.maximumf %90, %91 : vector<32x64xf32>
    %93 = vector.shape_cast %92 : vector<32x64xf32> to vector<2x16x64xf32>
    %94 = arith.truncf %93 : vector<2x16x64xf32> to vector<2x16x64xbf16>
    %c0_128 = arith.constant 0 : index
    %c0_129 = arith.constant 0 : index
    %c0_130 = arith.constant 0 : index
    %95 = vector.load %arg11[%c0_128, %c0_129, %c0_130] : memref<2x16x64xbf16, #tpu.memory_space<vmem>>, vector<2x16x64xbf16>
    tpu.vector_store %arg11[%c0_128, %c0_129, %c0_130], %94 {strides = array<i32>} : memref<2x16x64xbf16, #tpu.memory_space<vmem>>, vector<2x16x64xbf16>,
    return
  }
  func.func @transform_0(%arg0: i32) -> (i32, i32, i32, i32) {
    %c0_i32 = arith.constant 0 : i32
    %c0_i32_0 = arith.constant 0 : i32
    %c0_i32_1 = arith.constant 0 : i32
    %c0_i32_2 = arith.constant 0 : i32
    return %arg0, %c0_i32, %c0_i32_0, %c0_i32_1 : i32, i32, i32, i32
  }
  func.func @transform_1(%arg0: i32) -> (i32, i32) {
    %c0_i32 = arith.constant 0 : i32
    %c0_i32_0 = arith.constant 0 : i32
    %c0_i32_1 = arith.constant 0 : i32
    return %c0_i32, %c0_i32_0 : i32, i32
  }
  func.func @transform_2(%arg0: i32) -> (i32, i32) {
    %c0_i32 = arith.constant 0 : i32
    %c0_i32_0 = arith.constant 0 : i32
    %c0_i32_1 = arith.constant 0 : i32
    return %c0_i32, %c0_i32_0 : i32, i32
  }
  func.func @transform_3(%arg0: i32) -> (i32, i32) {
    %c0_i32 = arith.constant 0 : i32
    %c0_i32_0 = arith.constant 0 : i32
    %c0_i32_1 = arith.constant 0 : i32
    return %c0_i32, %c0_i32_0 : i32, i32
  }
  func.func @transform_4(%arg0: i32) -> (i32, i32) {
    %c0_i32 = arith.constant 0 : i32
    %c0_i32_0 = arith.constant 0 : i32
    %c0_i32_1 = arith.constant 0 : i32
    return %c0_i32, %c0_i32_0 : i32, i32
  }
  func.func @transform_5(%arg0: i32) -> (i32, i32) {
    %c0_i32 = arith.constant 0 : i32
    %c0_i32_0 = arith.constant 0 : i32
    %c0_i32_1 = arith.constant 0 : i32
    return %c0_i32, %c0_i32_0 : i32, i32
  }
  func.func @transform_6(%arg0: i32) -> (i32, i32) {
    %c0_i32 = arith.constant 0 : i32
    %c0_i32_0 = arith.constant 0 : i32
    %c0_i32_1 = arith.constant 0 : i32
    return %c0_i32, %c0_i32_0 : i32, i32
  }
  func.func @transform_7(%arg0: i32) -> (i32, i32) {
    %c0_i32 = arith.constant 0 : i32
    %c0_i32_0 = arith.constant 0 : i32
    %c0_i32_1 = arith.constant 0 : i32
    return %c0_i32, %c0_i32_0 : i32, i32
  }
  func.func @transform_8(%arg0: i32) -> (i32, i32) {
    %c0_i32 = arith.constant 0 : i32
    %c0_i32_0 = arith.constant 0 : i32
    %c0_i32_1 = arith.constant 0 : i32
    return %c0_i32, %c0_i32_0 : i32, i32
  }
  func.func @transform_9(%arg0: i32) -> (i32, i32) {
    %c0_i32 = arith.constant 0 : i32
    %c0_i32_0 = arith.constant 0 : i32
    %c0_i32_1 = arith.constant 0 : i32
    return %c0_i32, %c0_i32_0 : i32, i32
  }
  func.func @transform_10(%arg0: i32) -> (i32, i32, i32) {
    %c0_i32 = arith.constant 0 : i32
    %c0_i32_0 = arith.constant 0 : i32
    %c0_i32_1 = arith.constant 0 : i32
    return %arg0, %c0_i32, %c0_i32_0 : i32, i32, i32
  }
}

module attributes {stable_mosaic.version = 11 : i64} {
  func.func @_hmax_kernel(%arg0: i32, %arg1: memref<1x4x4x64xbf16, #tpu.memory_space<vmem>>, %arg2: memref<1x4x64xf32, #tpu.memory_space<vmem>>) attributes {dimension_semantics = [#tpu.dimension_semantics<parallel>], iteration_bounds = array<i64: 2>, scalar_prefetch = 0 : i64, scratch_operands = 0 : i64, tpu.core_type = #tpu.core_type<tc>, window_params = [{transform_indices = @transform_0, window_bounds = array<i64: 1, 4, 4, 64>}, {transform_indices = @transform_1, window_bounds = array<i64: 1, 4, 64>}]} {
    %c0 = arith.constant 0 : index
    %c0_0 = arith.constant 0 : index
    %c0_1 = arith.constant 0 : index
    %c0_2 = arith.constant 0 : index
    %0 = vector.load %arg1[%c0, %c0_0, %c0_1, %c0_2] : memref<1x4x4x64xbf16, #tpu.memory_space<vmem>>, vector<1x4x4x64xbf16>
    %1 = vector.shape_cast %0 : vector<1x4x4x64xbf16> to vector<4x4x64xbf16>
    %2 = arith.extf %1 : vector<4x4x64xbf16> to vector<4x4x64xf32>
    %cst = arith.constant dense<0xFF800000> : vector<4x64xf32>
    %3 = vector.multi_reduction <maximumf>, %2, %cst [0] : vector<4x4x64xf32> to vector<4x64xf32>
    %c0_3 = arith.constant 0 : index
    %c0_4 = arith.constant 0 : index
    %c0_5 = arith.constant 0 : index
    %4 = vector.load %arg2[%c0_3, %c0_4, %c0_5] : memref<1x4x64xf32, #tpu.memory_space<vmem>>, vector<1x4x64xf32>
    %5 = vector.shape_cast %4 : vector<1x4x64xf32> to vector<4x64xf32>
    %6 = vector.shape_cast %3 : vector<4x64xf32> to vector<1x4x64xf32>
    tpu.vector_store %arg2[%c0_3, %c0_4, %c0_5], %6 {strides = array<i32>} : memref<1x4x64xf32, #tpu.memory_space<vmem>>, vector<1x4x64xf32>,
    return
  }
  func.func @transform_0(%arg0: i32) -> (i32, i32, i32, i32) {
    %c0_i32 = arith.constant 0 : i32
    %c0_i32_0 = arith.constant 0 : i32
    %c0_i32_1 = arith.constant 0 : i32
    %c0_i32_2 = arith.constant 0 : i32
    return %arg0, %c0_i32, %c0_i32_0, %c0_i32_1 : i32, i32, i32, i32
  }
  func.func @transform_1(%arg0: i32) -> (i32, i32, i32) {
    %c0_i32 = arith.constant 0 : i32
    %c0_i32_0 = arith.constant 0 : i32
    %c0_i32_1 = arith.constant 0 : i32
    return %arg0, %c0_i32, %c0_i32_0 : i32, i32, i32
  }
}

</mosaic_0001>

<bundles_post_ra>
// kernel: _lambda_.7
= control target key start
LH: loop header
LB: loop body
LE: loop exit
PB: predicated region body
PF: predicated region fallthrough
CT: control target
= control target key end

     0   :  { %s270_s6 = smov 0   ;;  %s295_s0 = inlined_call_operand.vmem [shape: bf16[2,8,4,64], index: 0, kind: input, shape index: {}]   ;;  %s296_s1 = inlined_call_operand.vmem [shape: bf16[2,4,4,32], index: 1, kind: output, shape index: {}]  }
   0x1 LB: > { %s229_s7 = sadd.s32 4294967295, %s257_s6   ;;  %p233_p0 = scmp.ge.s32.totalorder %s257_s6, 1  ;;  %s257_s6 = sphi %s270_s6, %s11_s6  }
   0x2   : > { %p87_p1 = scmp.lt.s32.totalorder %s257_s6, 3 }
   0x4   : > { %p88_p2 = pnand %p233_p0, %p87_p1 }
   0x5   : > { %p107_p3 = scmp.lt.s32.totalorder (!%p88_p2), %s229_s7, 1  ;;  %s259_s12 = smov (!%p88_p2), 96   ;;  %vm169_vm0 = vcmask (!%p88_p2), 254976  }
   0x6   : > { %91 = sbr.rel (%p88_p2) target bundleno = 149 (0x95), region = 24 }
   0xd   : > { %s298_s7 = smov (!%p107_p3, %s229_s7), 1 }
   0xe   : > { %s240_s8 = sshll.u32 %s298_s7, 4  ;;  %s241_s13 = sshll.u32 %s298_s7, 3 }
   0xf   : > { %s111_s11 = scalar_lea.vmem %s295_s0, %s240_s8  ;;  %s116_s16 = scalar_lea.vmem %s296_s1, %s241_s13 }
  0x10   : > { %v119_v0 = vld [vmem:[%s111_s11 + $0x4] sm:$0x3]  ;;  %v117_v1 = vld [vmem:[%s111_s11] sm:$0x3]  ;;  %v120_v2 = vld [vmem:[%s111_s11 + $0x6] sm:$0x3] }
  0x11   : > { %137 = vrot.lane.b32.xlu1 %v119_v0, %s259_s12  ;;  %133 = vrot.lane.b32.xlu0 %v117_v1, %s259_s12  ;;  %v118_v3 = vld [vmem:[%s111_s11 + $0x2] sm:$0x3]  ;;  %v122_v4 = vld [vmem:[%s111_s11 + $0xa] sm:$0x3] }
  0x12   : > { %v121_v5 = vld [vmem:[%s111_s11 + $0x8] sm:$0x3]  ;;  %v124_v6 = vld [vmem:[%s111_s11 + $0xe] sm:$0x3]  ;;  %v123_v7 = vld [vmem:[%s111_s11 + $0xc] sm:$0x3] }
  0x15   : > { %139 = vrot.lane.b32.xlu1 %v120_v2, %s259_s12  ;;  %135 = vrot.lane.b32.xlu0 %v118_v3, %s259_s12 }
  0x19   : > { %143 = vrot.lane.b32.xlu1 %v122_v4, %s259_s12  ;;  %141 = vrot.lane.b32.xlu0 %v121_v5, %s259_s12 }
  0x1d   : > { %147 = vrot.lane.b32.xlu1 %v124_v6, %s259_s12  ;;  %145 = vrot.lane.b32.xlu0 %v123_v7, %s259_s12 }
  0x83   : > { %v138_v8 = vpop.permute.xlu1 %137  ;;  %v134_v9 = vpop.permute.xlu0 %133 }
  0x84   : > { %v159_v12 = vmax.bf16 %v138_v8, %v119_v0  ;;  %v157_v13 = vmax.bf16 %v134_v9, %v117_v1 }
  0x87   : > { %v140_v10 = vpop.permute.xlu1 %139  ;;  %v136_v11 = vpop.permute.xlu0 %135 }
  0x88   : > { %v160_v14 = vmax.bf16 %v140_v10, %v120_v2  ;;  %v158_v15 = vmax.bf16 %v136_v11, %v118_v3 }
  0x8a   : > { %v166_v16 = vmax.bf16 %v160_v14, %v159_v12  ;;  %v165_v17 = vmax.bf16 %v158_v15, %v157_v13 }
  0x8b   : > { %v144_v18 = vpop.permute.xlu1 %143  ;;  %v142_v19 = vpop.permute.xlu0 %141 }
  0x8c   : > { %171 = vst.msk [vmem:[%s116_s16 + $0x2] sm:$0x3] %vm169_vm0, %v166_v16  ;;  %170 = vst.msk [vmem:[%s116_s16] sm:$0x3] %vm169_vm0, %v165_v17  ;;  %v162_v20 = vmax.bf16 %v144_v18, %v122_v4  ;;  %v161_v21 = vmax.bf16 %v142_v19, %v121_v5 }
  0x8e   : > { %v167_v22 = vmax.bf16 %v162_v20, %v161_v21 }
  0x8f   : > { %v148_v23 = vpop.permute.xlu1 %147  ;;  %v146_v24 = vpop.permute.xlu0 %145 }
  0x90   : > { %172 = vst.msk [vmem:[%s116_s16 + $0x4] sm:$0x3] %vm169_vm0, %v167_v22  ;;  %v164_v25 = vmax.bf16 %v148_v23, %v124_v6  ;;  %v163_v26 = vmax.bf16 %v146_v24, %v123_v7 }
  0x92   : > { %v168_v27 = vmax.bf16 %v164_v25, %v163_v26 }
  0x94   : > { %173 = vst.msk [vmem:[%s116_s16 + $0x6] sm:$0x3] %vm169_vm0, %v168_v27 }
  0x95 PF: > { %s11_s6 = sadd.s32 1, %s257_s6  }
  0x96   : > { %p8_p4 = scmp.ge.s32.totalorder %s11_s6, 4  }
  0x98   :  { %10 = sbr.rel (!%p8_p4) target bundleno = 1 (0x1), region = 54 }

// kernel: _lambda_.5
= control target key start
LH: loop header
LB: loop body
LE: loop exit
PB: predicated region body
PF: predicated region fallthrough
CT: control target
= control target key end

     0   :  { %vm110_vm0 = vcmask 523264   ;;  %vm312_vm1 = vcmask 257024   ;;  %s573_s1 = inlined_call_operand.vmem [shape: bf16[64,32], index: 1, kind: input, shape index: {}]   ;;  %s574_s0 = inlined_call_operand.vmem [shape: bf16[2,8,8,64], index: 0, kind: input, shape index: {}]   ;;  %s575_s2 = inlined_call_operand.vmem [shape: f32[1,32], index: 2, kind: input, shape index: {}]   ;;  %s576_s3 = inlined_call_operand.vmem [shape: bf16[2,64,32], index: 3, kind: output, shape index: {}]  }
   0x1   :  { %v430_v0 = vld [vmem:[%s573_s1] sm:$0xff]   ;;  %v431_v1 = vld [vmem:[%s573_s1 + $0x8] sm:$0xff]   ;;  %v432_v2 = vld [vmem:[%s573_s1 + $0x10] sm:$0xff]  }
   0x2   :  { %398 = vmatprep.subr.bf16.mxu0 %v430_v0  ;;  %422 = vmatprep.subr.bf16.mxu1 %v430_v0  ;;  %v434_v3 = vld [vmem:[%s574_s0] sm:$0xff]   ;;  %v433_v5 = vld [vmem:[%s573_s1 + $0x18] sm:$0xff]   ;;  %v436_v6 = vld [vmem:[%s574_s0 + $0x8] sm:$0xff]  }
   0x3   :  { %399 = vmatpush3.bf16.msra.mxu0 %v430_v0  ;;  %426 = vmatpush3.bf16.msra.mxu1 %v430_v0  ;;  %v435_v4 = vld [vmem:[%s574_s0 + $0x20] sm:$0xff]   ;;  %v437_v7 = vld [vmem:[%s574_s0 + $0x28] sm:$0xff]   ;;  %v438_v8 = vld [vmem:[%s574_s0 + $0x10] sm:$0xff]  }
   0x4   :  { %400 = vmatprep.subr.bf16.mxu0 %v431_v1  ;;  %423 = vmatprep.subr.bf16.mxu1 %v431_v1  ;;  %v439_v9 = vld [vmem:[%s574_s0 + $0x30] sm:$0xff]   ;;  %v440_v10 = vld [vmem:[%s574_s0 + $0x18] sm:$0xff]   ;;  %v333_v12 = vld [vmem:[%s575_s2] ss:$0 sm:$0xff] }
   0x5   :  { %406 = vmatprep.mubr.msk.bf16.mxu0 %vm110_vm0, %v434_v3  ;;  %414 = vmatprep.mubr.msk.bf16.mxu1 %vm110_vm0, %v435_v4  ;;  %v441_v11 = vld [vmem:[%s574_s0 + $0x38] sm:$0xff]  }
   0x7   :  { %401 = vmatpush3.bf16.msra.mxu0 %v431_v1  ;;  %427 = vmatpush3.bf16.msra.mxu1 %v431_v1 }
   0x8   :  { %402 = vmatprep.subr.bf16.mxu0 %v432_v2  ;;  %424 = vmatprep.subr.bf16.mxu1 %v432_v2 }
   0xb   :  { %403 = vmatpush3.bf16.msra.mxu0 %v432_v2  ;;  %428 = vmatpush3.bf16.msra.mxu1 %v432_v2 }
   0xc   :  { %404 = vmatprep.subr.bf16.mxu0 %v433_v5  ;;  %425 = vmatprep.subr.bf16.mxu1 %v433_v5 }
   0xf   :  { %405 = vmatpush3.bf16.msra.mxu0 %v433_v5  ;;  %429 = vmatpush3.bf16.msra.mxu1 %v433_v5 }
  0x12   :  { %407 = vmatmul.mubr.msk.bf16.vlgmr.msra.gmra.mrb[0].mxu0 %vm110_vm0, %v436_v6  ;;  %415 = vmatmul.mubr.msk.bf16.vlgmr.msra.gmra.mrb[0].mxu1 %vm110_vm0, %v437_v7 }
  0x13   :  { %410 = vmatprep.mubr.msk.bf16.mxu0 %vm110_vm0, %v438_v8  ;;  %418 = vmatprep.mubr.msk.bf16.mxu1 %vm110_vm0, %v439_v9 }
  0x1a   :  { %411 = vmatmul.mubr.msk.bf16.gmra.mrb[4].mxu0 %vm110_vm0, %v440_v10  ;;  %419 = vmatmul.mubr.msk.bf16.gmra.mrb[4].mxu1 %vm110_vm0, %v441_v11 }
  0xe5   :  { %v408_v13 = vpop.f32.mrb[0].mxu0  ;;  %v416_v14 = vpop.f32.mrb[0].mxu1 }
  0xe6   :  { %v178_v15 = vadd.f32 %v408_v13, %v333_v12  ;;  %v210_v16 = vadd.f32 %v416_v14, %v333_v12  ;;  %v169_v17 = vpop.f32.mrb[1].mxu0  ;;  %v201_v18 = vpop.f32.mrb[1].mxu1 }
  0xe7   :  { %v170_v19 = vadd.f32 %v333_v12, %v169_v17  ;;  %v202_v20 = vadd.f32 %v333_v12, %v201_v18  ;;  %v409_v21 = vpop.f32.mrb[2].mxu0  ;;  %v417_v22 = vpop.f32.mrb[2].mxu1 }
  0xe8   :  { %v234_v23 = vmax.f32 %v178_v15, 0.0  ;;  %v242_v24 = vmax.f32 %v210_v16, 0.0  ;;  %v181_v25 = vadd.f32 %v409_v21, %v333_v12  ;;  %v213_v26 = vadd.f32 %v417_v22, %v333_v12  ;;  %v172_v27 = vpop.f32.mrb[3].mxu0  ;;  %v204_v28 = vpop.f32.mrb[3].mxu1 }
  0xe9   :  { %v232_v29 = vmax.f32 %v170_v19, 0.0  ;;  %v240_v30 = vmax.f32 %v202_v20, 0.0  ;;  %v173_v31 = vadd.f32 %v333_v12, %v172_v27  ;;  %v205_v32 = vadd.f32 %v333_v12, %v204_v28 }
  0xea   :  { %v372_v33 = vpack.c.bf16 %v234_v23, %v234_v23  ;;  %v380_v34 = vpack.c.bf16 %v242_v24, %v242_v24  ;;  %v235_v35 = vmax.f32 %v181_v25, 0.0  ;;  %v243_v36 = vmax.f32 %v213_v26, 0.0 }
  0xeb   :  { %v370_v37 = vpack.c.bf16 %v232_v29, %v232_v29  ;;  %v378_v38 = vpack.c.bf16 %v240_v30, %v240_v30  ;;  %v233_v39 = vmax.f32 %v173_v31, 0.0  ;;  %v241_v40 = vmax.f32 %v205_v32, 0.0 }
  0xec   :  { %315 = vst.msk [vmem:[%s576_s3 + $0x8] sm:$0xf] %vm312_vm1, %v372_v33  ;;  %323 = vst.msk [vmem:[%s576_s3 + $0x28] sm:$0xf] %vm312_vm1, %v380_v34  ;;  %v373_v41 = vpack.c.bf16 %v235_v35, %v235_v35  ;;  %v381_v42 = vpack.c.bf16 %v243_v36, %v243_v36 }
  0xed   :  { %313 = vst.msk [vmem:[%s576_s3] sm:$0xf] %vm312_vm1, %v370_v37  ;;  %321 = vst.msk [vmem:[%s576_s3 + $0x20] sm:$0xf] %vm312_vm1, %v378_v38  ;;  %v371_v43 = vpack.c.bf16 %v233_v39, %v233_v39  ;;  %v379_v44 = vpack.c.bf16 %v241_v40, %v241_v40  ;;  %v412_v45 = vpop.f32.mrb[4].mxu0  ;;  %v420_v46 = vpop.f32.mrb[4].mxu1 }
  0xee   :  { %316 = vst.msk [vmem:[%s576_s3 + $0xc] sm:$0xf] %vm312_vm1, %v373_v41  ;;  %324 = vst.msk [vmem:[%s576_s3 + $0x2c] sm:$0xf] %vm312_vm1, %v381_v42  ;;  %v194_v47 = vadd.f32 %v412_v45, %v333_v12  ;;  %v226_v48 = vadd.f32 %v420_v46, %v333_v12  ;;  %v185_v49 = vpop.f32.mrb[5].mxu0  ;;  %v217_v50 = vpop.f32.mrb[5].mxu1 }
  0xef   :  { %314 = vst.msk [vmem:[%s576_s3 + $0x4] sm:$0xf] %vm312_vm1, %v371_v43  ;;  %322 = vst.msk [vmem:[%s576_s3 + $0x24] sm:$0xf] %vm312_vm1, %v379_v44  ;;  %v186_v51 = vadd.f32 %v333_v12, %v185_v49  ;;  %v218_v52 = vadd.f32 %v333_v12, %v217_v50  ;;  %v413_v53 = vpop.f32.mrb[6].mxu0  ;;  %v421_v54 = vpop.f32.mrb[6].mxu1 }
  0xf0   :  { %v238_v55 = vmax.f32 %v194_v47, 0.0  ;;  %v246_v56 = vmax.f32 %v226_v48, 0.0  ;;  %v197_v57 = vadd.f32 %v413_v53, %v333_v12  ;;  %v229_v58 = vadd.f32 %v421_v54, %v333_v12  ;;  %v188_v59 = vpop.f32.mrb[7].mxu0  ;;  %v220_v60 = vpop.f32.mrb[7].mxu1 }
  0xf1   :  { %v236_v61 = vmax.f32 %v186_v51, 0.0  ;;  %v244_v62 = vmax.f32 %v218_v52, 0.0  ;;  %v189_v63 = vadd.f32 %v333_v12, %v188_v59  ;;  %v221_v0 = vadd.f32 %v333_v12, %v220_v60 }
  0xf2   :  { %v376_v1 = vpack.c.bf16 %v238_v55, %v238_v55  ;;  %v384_v2 = vpack.c.bf16 %v246_v56, %v246_v56  ;;  %v239_v3 = vmax.f32 %v197_v57, 0.0  ;;  %v247_v4 = vmax.f32 %v229_v58, 0.0 }
  0xf3   :  { %v374_v5 = vpack.c.bf16 %v236_v61, %v236_v61  ;;  %v382_v6 = vpack.c.bf16 %v244_v62, %v244_v62  ;;  %v237_v7 = vmax.f32 %v189_v63, 0.0  ;;  %v245_v8 = vmax.f32 %v221_v0, 0.0 }
  0xf4   :  { %319 = vst.msk [vmem:[%s576_s3 + $0x18] sm:$0xf] %vm312_vm1, %v376_v1  ;;  %327 = vst.msk [vmem:[%s576_s3 + $0x38] sm:$0xf] %vm312_vm1, %v384_v2  ;;  %v377_v9 = vpack.c.bf16 %v239_v3, %v239_v3  ;;  %v385_v10 = vpack.c.bf16 %v247_v4, %v247_v4 }
  0xf5   :  { %317 = vst.msk [vmem:[%s576_s3 + $0x10] sm:$0xf] %vm312_vm1, %v374_v5  ;;  %325 = vst.msk [vmem:[%s576_s3 + $0x30] sm:$0xf] %vm312_vm1, %v382_v6  ;;  %v375_v11 = vpack.c.bf16 %v237_v7, %v237_v7  ;;  %v383_v12 = vpack.c.bf16 %v245_v8, %v245_v8 }
  0xf6   :  { %320 = vst.msk [vmem:[%s576_s3 + $0x1c] sm:$0xf] %vm312_vm1, %v377_v9  ;;  %328 = vst.msk [vmem:[%s576_s3 + $0x3c] sm:$0xf] %vm312_vm1, %v385_v10 }
  0xf7   :  { %318 = vst.msk [vmem:[%s576_s3 + $0x14] sm:$0xf] %vm312_vm1, %v375_v11  ;;  %326 = vst.msk [vmem:[%s576_s3 + $0x34] sm:$0xf] %vm312_vm1, %v383_v12 }

// kernel: _lambda_.9
= control target key start
LH: loop header
LB: loop body
LE: loop exit
PB: predicated region body
PF: predicated region fallthrough
CT: control target
= control target key end

     0   :  { %6 = vsyncpa [#allocation3], 0  ;;  %s436_s0 = inlined_call_operand.vmem [shape: bf16[2,4,4,64], index: 0, kind: input, shape index: {}]   ;;  %s437_s1 = inlined_call_operand.hbm [shape: f32[2,4,64], index: 1, kind: output, shape index: {}]  }
   0x1   :  { %8 = vsyncpa [#allocation3 + $0x1], 0  ;;  %s331_s6 = smov 0   ;;  %s333_s7 = smov 0  }
   0x2   :  { %s335_s8 = smov 0   ;;  %s337_s9 = smov 0  }
   0x3 LB: > { %s352_s10 = sadd.s32 4294967295, %s318_s9   ;;  %s205_s11 = sadd.s32 4294967294, %s318_s9   ;;  %s318_s9 = sphi %s337_s9, %s443_s9   ;;  %s314_s8 = sphi %s335_s8, %s442_s8   ;;  %s310_s7 = sphi %s333_s7, %s441_s7   ;;  %s306_s6 = sphi %s331_s6, %s440_s6  }
   0x4   : > { %s356_s12 = sadd.s32 1, %s318_s9   ;;  %s47_s13 = sadd.s32 1, %s314_s8 }
   0x5   : > { %s44_s14 = ssub.s32 %s318_s9, %s356_s12  ;;  %p57_p0 = scmp.ne.s32.totalorder %s314_s8, %s310_s7 }
   0x6   : > { %p45_p1 = scmp.eq.s32.totalorder %s44_s14, 0  ;;  %p58_p2 = scmp.eq.s32.totalorder %s352_s10, 1 }
   0x7   : > { %p63_p3 = scmp.ne.s32.totalorder %s310_s7, %s306_s6  ;;  %p64_p4 = scmp.eq.s32.totalorder %s205_s11, 1 }
   0x8   : > { %s367_s15 = scalar_select %p45_p1, %s314_s8, %s47_s13  }
   0x9   : > { %p369_p5 = por %p58_p2, %p57_p0  ;;  %p373_p6 = por %p64_p4, %p63_p3 }
   0xa   : > { %p208_p7 = scmp.ge.s32.totalorder %s318_s9, 1  ;;  %p90_p8 = scmp.lt.s32.totalorder %s318_s9, 3 }
   0xc   : > { %p91_p9 = pnand %p208_p7, %p90_p8 }
   0xd   : > { %p110_p10 = scmp.lt.s32.totalorder (!%p91_p9), %s352_s10, 1  ;;  %s107_s18 = sand.u32 (!%p91_p9), 1, %s310_s7   ;;  %vm123_vm0 = vcmask (!%p91_p9), 519168  }
   0xe   : > { %94 = sbr.rel (%p91_p9) target bundleno = 48 (0x30), region = 24  ;;  %s209_s20 = sshll.u32 (!%p91_p9), %s107_s18, 2 }
   0xf   : > { %s109_s25 = scalar_lea.vmem (!%p91_p9), [#allocation2], %s209_s20  ;;  %s213_s27 = sshll.u32 (!%p91_p9), %s352_s10, 6 }
  0x10   : > { %s146_s26 = sshll.u32 (!%p91_p9), %s109_s25, 4  ;;  %s395_s30 = scalar_lea.hbm (!%p91_p9), %s437_s1, %s213_s27  ;;  %s390_s26 = int_to_ptr.vmem [resolvable:$true] %s146_s26 }
  0x11   : > { %s133_s2 = scalar_lea.sflag (!%p91_p9), [#allocation3], %s107_s18  ;;  %s256_s3 = scalar_lea.vmem (!%p91_p9), %s390_s26, 64 }
  0x12   : > { %p257_p11 = scmp.ne.s32.totalorder (!%p91_p9), %s390_s26, %s256_s3  ;;  %s320_s4 = smov (!%p91_p9), [#allocation2]  }
  0x13   : > { %s260_s5 = sshll.u32 (!%p91_p9), %s320_s4, 4  ;;  %s261_s5 = int_to_ptr.vmem [resolvable:$false] %s260_s5 }
  0x14   : > { %p258_p12 = pnand (!%p91_p9), %p257_p11, %p369_p5  ;;  %p263_p0 = scmp.lt.s32.totalorder (!%p91_p9), %s390_s26, %s261_s5 }
  0x15   : > { %s111_s19 = scalar_select %p110_p10, %s352_s10, 1 }
  0x16   : > { %p259_p13 = pneg %p258_p12  ;;  %s262_s10 = scalar_lea.vmem %s261_s5, 128 }
  0x17   : > { %s216_s21 = sshll.u32 %s111_s19, 3  ;;  %p264_p1 = scmp.lt.s32.totalorder %s262_s10, %s256_s3 }
  0x18   : > { %s114_s24 = scalar_lea.vmem %s436_s0, %s216_s21 }
  0x19   : > { %v115_v0 = vld [vmem:[%s114_s24] sm:$0x3]  ;;  %v116_v1 = vld [vmem:[%s114_s24 + $0x2] sm:$0x3]  ;;  %v117_v2 = vld [vmem:[%s114_s24 + $0x4] sm:$0x3]  ;;  %p265_p2 = por %p264_p1, %p263_p0 }
  0x1a   : > { %v118_v3 = vld [vmem:[%s114_s24 + $0x6] sm:$0x3]  ;;  %v119_v4 = vunpack.c.l.bf16 %v115_v0  ;;  %v120_v5 = vunpack.c.l.bf16 %v116_v1  ;;  %v121_v6 = vunpack.c.l.bf16 %v117_v2 }
  0x1b   : > { %v122_v7 = vunpack.c.l.bf16 %v118_v3  ;;  %p266_p3 = pnand %p265_p2, %p259_p13 }
  0x1c   : > { %v124_v8 = vsel %vm123_vm0, %v119_v4, -inf  ;;  %v125_v9 = vsel %vm123_vm0, %v120_v5, -inf  ;;  %v126_v10 = vsel %vm123_vm0, %v121_v6, -inf }
  0x1d   : > { %v127_v11 = vsel %vm123_vm0, %v122_v7, -inf  ;;  %v128_v12 = vmax.f32 %v124_v8, %v125_v9 }
  0x1e   : > { %v129_v13 = vmax.f32 %v126_v10, %v127_v11 }
  0x20   : > { %v130_v14 = vmax.f32 %v128_v12, %v129_v13 }
  0x22   : > { %131 = vst.msk [vmem:[%s109_s25] sm:$0xf] %vm123_vm0, %v130_v14 }
  0x23   : > { %269 = shalt.err (!%p266_p3)
}
  0x24   : > { %s270_s11 = scalar_lea.hbm %s395_s30, 64  ;;  %s274_s18 = scalar_lea.hbm %s437_s1, 128 }
  0x25   : > { %p271_p4 = scmp.ne.s32.totalorder %s395_s30, %s270_s11  ;;  %p275_p9 = scmp.lt.u32.totalorder %s395_s30, %s437_s1 }
  0x26   : > { %p276_p10 = scmp.lt.u32.totalorder %s274_s18, %s270_s11  ;;  %p278_p12 = scmp.lt.u32.totalorder %s270_s11, %s395_s30 }
  0x27   : > { %p272_p7 = pnand %p271_p4, %p369_p5 }
  0x28   : > { %p277_p11 = por %p276_p10, %p275_p9 }
  0x29   : > { %p273_p8 = pneg %p272_p7 }
  0x2a   : > { %p279_p13 = por %p278_p12, %p277_p11 }
  0x2c   : > { %p280_p0 = pnand %p279_p13, %p273_p8 }
  0x2e   : > { %283 = shalt.err (!%p280_p0)
}
  0x2f   : > { %217 = dma.vmem_to_hbm [thread:$0]  (%p369_p5), %s390_s26, 64, %s395_s30, %s133_s2  }
  0x30 PF: > { %p223_p1 = scmp.ge.s32.totalorder %s318_s9, 2  ;;  %s158_s21 = sand.u32 1, %s306_s6  }
  0x31   : > { %s159_s22 = scalar_lea.sflag [#allocation3], %s158_s21 }
  0x32   : > { %p220_p2 = pnand %p223_p1, %p373_p6 }
  0x34   : > { %301 = dma.done.wait (!%p220_p2), %s159_s22, 64  }
  0x35   : > { %303 = vsyncadd (!%p220_p2), %s159_s22, 4294967232  ;;  %p11_p3 = scmp.ge.s32.totalorder %s356_s12, 4   ;;  %s440_s6 = smov %s310_s7 }
  0x36   : > { %s441_s7 = smov %s314_s8  ;;  %s442_s8 = smov %s367_s15 }
  0x37   : > { %s443_s9 = smov %s356_s12  ;;  %13 = sbr.rel (!%p11_p3) target bundleno = 3 (0x3), region = 59 }
  0x3e   :  { %164 = vsyncpa [#allocation3], 1 }
  0x3f   :  { %166 = vsyncpa [#allocation3 + $0x1], 1 }

// kernel: _lambda_.8
= control target key start
LH: loop header
LB: loop body
LE: loop exit
PB: predicated region body
PF: predicated region fallthrough
CT: control target
= control target key end

     0   :  { %v74_v0 = vlaneseq  ;;  %vm430_vm0 = vcmask 1040384   ;;  %vm431_vm1 = vcmask 1042434   ;;  %v4532_v1 = vmov 1983009808   ;;  %s4533_s19 = smov 64   ;;  %s4534_s16 = smov 96   ;;  %s5472_s0 = inlined_call_operand.vmem [shape: bf16[2,6,6,32], index: 0, kind: input, shape index: {}]   ;;  %s5473_s1 = inlined_call_operand.vmem [shape: bf16[288,64], index: 1, kind: input, shape index: {}]   ;;  %s5474_s4 = inlined_call_operand.vmem [shape: bf16[576,64], index: 4, kind: input, shape index: {}]   ;;  %s5475_s2 = inlined_call_operand.vmem [shape: f32[1,64], index: 2, kind: input, shape index: {}]   ;;  %s5476_s3 = inlined_call_operand.vmem [shape: f32[1,64], index: 3, kind: input, shape index: {}]   ;;  %s5477_s7 = inlined_call_operand.vmem [shape: bf16[32,64], index: 7, kind: input, shape index: {}]   ;;  %s5478_s5 = inlined_call_operand.vmem [shape: f32[1,64], index: 5, kind: input, shape index: {}]   ;;  %s5479_s8 = inlined_call_operand.vmem [shape: f32[1,64], index: 8, kind: input, shape index: {}]   ;;  %s5480_s6 = inlined_call_operand.vmem [shape: f32[1,64], index: 6, kind: input, shape index: {}]   ;;  %s5481_s9 = inlined_call_operand.vmem [shape: f32[1,64], index: 9, kind: input, shape index: {}]   ;;  %s5482_s10 = inlined_call_operand.vmem [shape: bf16[2,16,64], index: 10, kind: output, shape index: {}]  }
   0x1   :  { %v72_v2 = vunpack.c.l.s4 %v4532_v1  ;;  %v4508_v4 = vld.sshfl [vmem:[%s5472_s0 + $0x8] sm:$0xf pattern:$0x76325410]  ;;  %vm432_vm2 = vmor %vm430_vm0, %vm431_vm1  ;;  %vm433_vm3 = vcmask 1044484   ;;  %vm435_vm5 = vcmask 1046534  }
   0x2   :  { %v75_v3 = vshrl.u32 %v74_v0, 7  ;;  %v4509_v6 = vld.sshfl [vmem:[%s5472_s0 + $0x10] sm:$0xf pattern:$0x76325410]  ;;  %vm434_vm4 = vmor %vm432_vm2, %vm433_vm3  ;;  %v4436_v12 = vld [vmem:[%s5473_s1 + $0x40] sm:$0xff]  }
   0x3   :  { %v73_v5 = vunpack.c.0.s8 %v72_v2  ;;  %v4067_v7 = vld.sshfl [vmem:[%s5472_s0 + $0x4] sm:$0x12 pattern:$0x76325410]  ;;  %vm4609_vm6 = vmor %vm434_vm4, %vm435_vm5  ;;  %4297 = vmatprep.subr.bf16.mxu0 %v4436_v12  ;;  %v4438_v21 = vld [vmem:[%s5473_s1 + $0x48] sm:$0xff]   ;;  %v989_v27 = vcombine.low %v4508_v4, %v4509_v6  ;;  %s4535_s26 = smov 32  }
   0x4   :  { %v4068_v9 = vld.sshfl [vmem:[%s5472_s0 + $0x8] sm:$0x12 pattern:$0x76325410]  ;;  %v825_v10 = vcombine.high %v4067_v7, %v4067_v7  ;;  %v4075_v11 = vrot.slane %v4067_v7, 9  ;;  %v4437_v17 = vld [vmem:[%s5473_s1] sm:$0xff]  }
   0x5   :  { %v4601_v8 = vsub.s32 %v73_v5, %v75_v3  ;;  %v4069_v14 = vld.sshfl [vmem:[%s5472_s0 + $0xc] sm:$0x12 pattern:$0x76325410]  ;;  %v833_v15 = vcombine.high %v4068_v9, %v4068_v9  ;;  %v4076_v16 = vrot.slane %v4068_v9, 9  ;;  %4298 = vmatpush3.bf16.msra.mxu0 %v4437_v17  ;;  %v4440_v31 = vld [vmem:[%s5473_s1 + $0x50] sm:$0xff]   ;;  %1007 = vrot.lane.b32.xlu1 %v989_v27, %s4533_s19 }
   0x6   :  { %v4070_v18 = vld.sshfl [vmem:[%s5472_s0 + $0x10] sm:$0x12 pattern:$0x76325410]  ;;  %v841_v19 = vcombine.high %v4069_v14, %v4069_v14  ;;  %v884_v20 = vrot.slane %v825_v10, 7  ;;  %v4077_v24 = vrot.slane %v4069_v14, 9  ;;  %4299 = vmatprep.subr.bf16.mxu0 %v4438_v21 }
   0x7   :  { %v849_v22 = vcombine.high %v4070_v18, %v4070_v18  ;;  %v888_v23 = vrot.slane %v833_v15, 7  ;;  %v4078_v25 = vrot.slane %v4070_v18, 9  ;;  %v4439_v26 = vld [vmem:[%s5473_s1 + $0x8] sm:$0xff]   ;;  %vm188_vm7 = vsmask.f32 1280  ;;  %v4441_v42 = vld [vmem:[%s5473_s1 + $0x10] sm:$0xff]  }
   0x8   :  { %v4630_v28 = vsel %vm4609_vm6, %v4075_v11, %v884_v20  ;;  %v892_v29 = vrot.slane %v841_v19, 7  ;;  %v4510_v30 = vld.sshfl [vmem:[%s5472_s0 + $0x4] sm:$0xf pattern:$0x76325410]  ;;  %v4442_v48 = vld [vmem:[%s5473_s1 + $0x58] sm:$0xff]  }
   0x9   :  { %v889_v32 = vsel %vm4609_vm6, %v4076_v16, %v888_v23  ;;  %v896_v33 = vrot.slane %v849_v22, 7  ;;  %v4511_v34 = vld.sshfl [vmem:[%s5472_s0 + $0xc] sm:$0xf pattern:$0x76325410]  ;;  %4300 = vmatpush3.bf16.msra.mxu0 %v4439_v26  ;;  %v4443_v54 = vld [vmem:[%s5473_s1 + $0x18] sm:$0xff]  }
   0xa   :  { %v893_v35 = vsel %vm4609_vm6, %v4077_v24, %v892_v29  ;;  %v914_v36 = vcombine.low %v4630_v28, %v889_v32  ;;  %v4071_v37 = vld.sshfl [vmem:[%s5472_s0 + $0x1c] sm:$0x12 pattern:$0x76325410]  ;;  %vm189_vm8 = vsmask.f32 3336  ;;  %4301 = vmatprep.subr.bf16.mxu0 %v4440_v31  ;;  %v545_v49 = vcombine.low %v4510_v30, %v4511_v34 }
   0xb   :  { %v897_v38 = vsel %vm4609_vm6, %v4078_v25, %v896_v33  ;;  %v4072_v39 = vld.sshfl [vmem:[%s5472_s0 + $0x20] sm:$0x12 pattern:$0x76325410]  ;;  %v857_v40 = vcombine.high %v4071_v37, %v4071_v37  ;;  %v4079_v41 = vrot.slane %v4071_v37, 9  ;;  %v470_v4 = vcombine.low %v889_v32, %v893_v35  ;;  %vm190_vm9 = vmor %vm188_vm7, %vm189_vm8 }
   0xc   :  { %v915_v43 = vcombine.low %v893_v35, %v897_v38  ;;  %v922_v44 = vrot.slane %v914_v36, %v4601_v8  ;;  %v4073_v45 = vld.sshfl [vmem:[%s5472_s0 + $0x24] sm:$0x12 pattern:$0x76325410]  ;;  %v865_v46 = vcombine.high %v4072_v39, %v4072_v39  ;;  %v4080_v47 = vrot.slane %v4072_v39, 9  ;;  %563 = vrot.lane.b32.xlu1 %v545_v49, %s4534_s16 }
   0xd   :  { %v4074_v50 = vld.sshfl [vmem:[%s5472_s0 + $0x28] sm:$0x12 pattern:$0x76325410]  ;;  %v873_v51 = vcombine.high %v4073_v45, %v4073_v45  ;;  %v900_v52 = vrot.slane %v857_v40, 7  ;;  %v4081_v53 = vrot.slane %v4073_v45, 9  ;;  %4302 = vmatpush3.bf16.msra.mxu0 %v4441_v42  ;;  %v484_v15 = vrot.slane %v470_v4, %v4601_v8 }
   0xe   :  { %v929_v55 = vrot.slane %v915_v43, %v4601_v8  ;;  %v881_v56 = vcombine.high %v4074_v50, %v4074_v50  ;;  %v904_v57 = vrot.slane %v865_v46, 7  ;;  %v4082_v58 = vrot.slane %v4074_v50, 9  ;;  %v4019_v59 = vld.sshfl [vmem:[%s5472_s0] sm:$0x12 pattern:$0x76325410]  ;;  %4303 = vmatprep.subr.bf16.mxu0 %v4442_v48 }
   0xf   :  { %v4678_v60 = vsel %vm4609_vm6, %v4079_v41, %v900_v52  ;;  %v908_v61 = vrot.slane %v873_v51, 7  ;;  %v373_v62 = vcombine.high %v4019_v59, %v4019_v59  ;;  %v4027_v63 = vrot.slane %v4019_v59, 9  ;;  %v4011_v0 = vld.sshfl [vmem:[%s5472_s0] sm:$0x13 pattern:$0x76325410] }
  0x10   :  { %v930_v1 = vcombine.low %v922_v44, %v929_v55  ;;  %v4685_v2 = vsel %vm4609_vm6, %v4080_v47, %v904_v57  ;;  %v912_v3 = vrot.slane %v881_v56, 7  ;;  %v4012_v5 = vld.sshfl [vmem:[%s5472_s0 + $0x4] sm:$0x13 pattern:$0x76325410]  ;;  %v131_v12 = vcombine.high %v4011_v0, %v4011_v0  ;;  %v4448_v4 = vld [vmem:[%s5473_s1 + $0x68] sm:$0xff]  }
  0x11   :  { %v4444_v6 = vld [vmem:[%s5473_s1 + $0x60] sm:$0xff]   ;;  %v4695_v7 = vsel %vm4609_vm6, %v4081_v53, %v908_v61  ;;  %v931_v9 = vcombine.low %v4678_v60, %v4685_v2  ;;  %v439_v10 = vrot.slane %v373_v62, 7  ;;  %v4013_v11 = vld.sshfl [vmem:[%s5472_s0 + $0x8] sm:$0x13 pattern:$0x76325410]  ;;  %v139_v17 = vcombine.high %v4012_v5, %v4012_v5  ;;  %4304 = vmatpush3.bf16.msra.mxu0 %v4443_v54 }
  0x12   :  { %948 = vrot.lane.b32.xlu0 %v930_v1, %s4535_s26  ;;  %v913_v14 = vsel %vm4609_vm6, %v4082_v58, %v912_v3  ;;  %v4014_v16 = vld.sshfl [vmem:[%s5472_s0 + $0xc] sm:$0x13 pattern:$0x76325410]  ;;  %v147_v18 = vcombine.high %v4013_v11, %v4013_v11  ;;  %v4445_v23 = vld [vmem:[%s5473_s1 + $0x20] sm:$0xff]   ;;  %v196_v25 = vshrl.u32 %v4011_v0, 16  ;;  %4305 = vmatprep.subr.bf16.mxu0 %v4444_v6  ;;  %v487_v1 = vcombine.low %v4685_v2, %v4695_v7 }
  0x13   :  { %v932_v19 = vcombine.low %v4695_v7, %v913_v14  ;;  %v939_v20 = vrot.slane %v931_v9, %v4601_v8  ;;  %v440_v21 = vsel %vm4609_vm6, %v4027_v63, %v439_v10  ;;  %v155_v22 = vcombine.high %v4014_v16, %v4014_v16  ;;  %v4023_v39 = vld.sshfl [vmem:[%s5472_s0 + $0x18] sm:$0x12 pattern:$0x76325410]  ;;  %v4449_v2 = vld [vmem:[%s5473_s1 + $0x28] sm:$0xff]  }
  0x14   :  { %v469_v24 = vcombine.low %v440_v21, %v4630_v28  ;;  %vm191_vm10 = vsmask.f32 5392  ;;  %vm193_vm11 = vsmask.f32 7448  ;;  %v199_v27 = vshll.u32 %v4011_v0, 16 }
  0x15   :  { %v946_v26 = vrot.slane %v932_v19, %v4601_v8  ;;  %v205_v29 = vshll.u32 %v131_v12, 16  ;;  %v210_v30 = vshrl.u32 %v4012_v5, 16  ;;  %v198_v32 = vrot.slane %v196_v25, 6  ;;  %vm4721_vm12 = vmor %vm190_vm9, %vm191_vm10  ;;  %4306 = vmatpush3.bf16.msra.mxu0 %v4445_v23 }
  0x16   :  { %v477_v31 = vrot.slane %v469_v24, %v4601_v8  ;;  %v213_v33 = vshll.u32 %v4012_v5, 16  ;;  %v219_v34 = vshll.u32 %v139_v17, 16  ;;  %v201_v36 = vrot.slane %v199_v27, 7  ;;  %vm4733_vm13 = vmor %vm4721_vm12, %vm193_vm11  ;;  %4307 = vmatprep.subr.bf16.mxu0 %v4448_v4 }
  0x17   :  { %v947_v35 = vcombine.low %v939_v20, %v946_v26  ;;  %v207_v37 = vrot.slane %v205_v29, 7  ;;  %v212_v38 = vrot.slane %v210_v30, 6  ;;  %v224_v43 = vshrl.u32 %v4013_v11, 16 }
  0x18   :  { %v485_v40 = vcombine.low %v477_v31, %v484_v15  ;;  %v215_v41 = vrot.slane %v213_v33, 7  ;;  %v221_v42 = vrot.slane %v219_v34, 7  ;;  %v202_v44 = vor.u32 %v201_v36, %v198_v32  ;;  %v4101_v3 = vld.sshfl [vmem:[%s5472_s0 + $0x10] sm:$0x13 pattern:$0x76325410] }
  0x19   :  { %950 = vrot.lane.b32.xlu0 %v947_v35, %s4535_s26  ;;  %v227_v45 = vshll.u32 %v4013_v11, 16  ;;  %v233_v46 = vshll.u32 %v147_v18, 16  ;;  %v238_v47 = vshrl.u32 %v4014_v16, 16  ;;  %v226_v50 = vrot.slane %v224_v43, 6  ;;  %4308 = vmatpush3.bf16.msra.mxu0 %v4449_v2  ;;  %v4450_v43 = vld [vmem:[%s5473_s1 + $0x70] sm:$0xff]  }
  0x1a   :  { %503 = vrot.lane.b32.xlu1 %v485_v40, %s4533_s19  ;;  %v216_v49 = vor.u32 %v215_v41, %v212_v38  ;;  %v241_v51 = vshll.u32 %v4014_v16, 16  ;;  %v247_v52 = vshll.u32 %v155_v22, 16  ;;  %v203_v53 = vrot.slane %v202_v44, 2  ;;  %4309 = vmatprep.subr.bf16.mxu0 %v4450_v43 }
  0x1b   :  { %v229_v54 = vrot.slane %v227_v45, 7  ;;  %v235_v55 = vrot.slane %v233_v46, 7  ;;  %v240_v56 = vrot.slane %v238_v47, 6  ;;  %v405_v61 = vcombine.high %v4023_v39, %v4023_v39 }
  0x1c   :  { %v217_v57 = vrot.slane %v216_v49, 2  ;;  %v243_v58 = vrot.slane %v241_v51, 7  ;;  %v249_v59 = vrot.slane %v247_v52, 7  ;;  %v208_v62 = vsel %vm4733_vm13, %v203_v53, %v207_v37 }
  0x1d   :  { %v230_v63 = vor.u32 %v229_v54, %v226_v50  ;;  %v4031_v0 = vrot.slane %v4023_v39, 9  ;;  %v455_v9 = vrot.slane %v405_v61, 7  ;;  %v4102_v10 = vld.sshfl [vmem:[%s5472_s0 + $0x14] sm:$0x13 pattern:$0x76325410]  ;;  %v1054_v11 = vcombine.high %v4101_v3, %v4101_v3 }
  0x1e   :  { %v4749_v5 = vsel %vm4733_vm13, %v217_v57, %v221_v42  ;;  %v244_v6 = vor.u32 %v243_v58, %v240_v56  ;;  %v501_v14 = vrot.slane %v487_v1, %v4601_v8  ;;  %v1062_v15 = vcombine.high %v4102_v10, %v4102_v10  ;;  %v4015_v24 = vld.sshfl [vmem:[%s5472_s0 + $0x18] sm:$0x13 pattern:$0x76325410] }
  0x1f   :  { %v231_v7 = vrot.slane %v230_v63, 2  ;;  %v307_v12 = vcombine.low %v208_v62, %v4749_v5  ;;  %v456_v17 = vsel %vm4609_vm6, %v4031_v0, %v455_v9  ;;  %v1124_v18 = vshrl.u32 %v4101_v3, 16  ;;  %v4017_v36 = vld.sshfl [vmem:[%s5472_s0 + $0x20] sm:$0x13 pattern:$0x76325410] }
  0x20   :  { %v245_v16 = vrot.slane %v244_v6, 2  ;;  %v1127_v19 = vshll.u32 %v4101_v3, 16  ;;  %v486_v22 = vcombine.low %v456_v17, %v4678_v60  ;;  %v1133_v23 = vshll.u32 %v1054_v11, 16 }
  0x21   :  { %v4763_v20 = vsel %vm4733_vm13, %v231_v7, %v235_v55  ;;  %v315_v21 = vrot.slane %v307_v12, %v4601_v8  ;;  %v1126_v26 = vrot.slane %v1124_v18, 6  ;;  %v1138_v29 = vshrl.u32 %v4102_v10, 16  ;;  %v4016_v60 = vld.sshfl [vmem:[%s5472_s0 + $0x1c] sm:$0x13 pattern:$0x76325410] }
  0x22   :  { %v4772_v25 = vsel %vm4733_vm13, %v245_v16, %v249_v59  ;;  %v1129_v27 = vrot.slane %v1127_v19, 7  ;;  %v494_v31 = vrot.slane %v486_v22, %v4601_v8  ;;  %v1135_v32 = vrot.slane %v1133_v23, 7  ;;  %v4018_v41 = vld.sshfl [vmem:[%s5472_s0 + $0x24] sm:$0x13 pattern:$0x76325410] }
  0x23   :  { %v308_v30 = vcombine.low %v4763_v20, %v4772_v25  ;;  %v1141_v33 = vshll.u32 %v4102_v10, 16  ;;  %v1140_v35 = vrot.slane %v1138_v29, 6  ;;  %v1147_v28 = vshll.u32 %v1062_v15, 16 }
  0x24   :  { %v1130_v34 = vor.u32 %v1129_v27, %v1126_v26  ;;  %v163_v37 = vcombine.high %v4015_v24, %v4015_v24  ;;  %v502_v39 = vcombine.low %v494_v31, %v501_v14  ;;  %v171_v42 = vcombine.high %v4016_v60, %v4016_v60  ;;  %v4512_v3 = vld.sshfl [vmem:[%s5472_s0 + $0x20] sm:$0xf pattern:$0x76325410] }
  0x25   :  { %v322_v38 = vrot.slane %v308_v30, %v4601_v8  ;;  %v1143_v40 = vrot.slane %v1141_v33, 7  ;;  %v1149_v45 = vrot.slane %v1147_v28, 7  ;;  %v179_v46 = vcombine.high %v4017_v36, %v4017_v36  ;;  %v4513_v11 = vld.sshfl [vmem:[%s5472_s0 + $0x28] sm:$0xf pattern:$0x76325410] }
  0x26   :  { %v1131_v44 = vrot.slane %v1130_v34, 2  ;;  %v187_v47 = vcombine.high %v4018_v41, %v4018_v41  ;;  %505 = vrot.lane.b32.xlu1 %v502_v39, %s4533_s19  ;;  %v252_v51 = vshrl.u32 %v4015_v24, 16  ;;  %v255_v52 = vshll.u32 %v4015_v24, 16  ;;  %v4453_v34 = vld [vmem:[%s5473_s1 + $0x30] sm:$0xff]  }
  0x27   :  { %v323_v49 = vcombine.low %v315_v21, %v322_v38  ;;  %v1144_v50 = vor.u32 %v1143_v40, %v1140_v35  ;;  %v261_v54 = vshll.u32 %v163_v37, 16  ;;  %v266_v55 = vshrl.u32 %v4016_v60, 16  ;;  %v4105_v19 = vld.sshfl [vmem:[%s5472_s0 + $0x28] sm:$0x13 pattern:$0x76325410]  ;;  %4310 = vmatpush3.bf16.msra.mxu0 %v4453_v34 }
  0x28   :  { %v4793_v53 = vsel %vm4733_vm13, %v1131_v44, %v1135_v32  ;;  %v269_v56 = vshll.u32 %v4016_v60, 16  ;;  %v254_v58 = vrot.slane %v252_v51, 6  ;;  %v257_v59 = vrot.slane %v255_v52, 7 }
  0x29   :  { %341 = vrot.lane.b32.xlu0 %v323_v49, %s4535_s26  ;;  %v1145_v57 = vrot.slane %v1144_v50, 2  ;;  %v275_v61 = vshll.u32 %v171_v42, 16  ;;  %v263_v62 = vrot.slane %v261_v54, 7  ;;  %v268_v63 = vrot.slane %v266_v55, 6 }
  0x2a   :  { %v271_v0 = vrot.slane %v269_v56, 7  ;;  %v280_v1 = vshrl.u32 %v4017_v36, 16  ;;  %v258_v6 = vor.u32 %v257_v59, %v254_v58  ;;  %v283_v10 = vshll.u32 %v4017_v36, 16 }
  0x2b   :  { %v1150_v4 = vsel %vm4733_vm13, %v1145_v57, %v1149_v45  ;;  %v277_v9 = vrot.slane %v275_v61, 7  ;;  %v289_v14 = vshll.u32 %v179_v46, 16  ;;  %v294_v17 = vshrl.u32 %v4018_v41, 16 }
  0x2c   :  { %v1208_v2 = vcombine.low %v4793_v53, %v1150_v4  ;;  %v272_v7 = vor.u32 %v271_v0, %v268_v63  ;;  %v282_v12 = vrot.slane %v280_v1, 6  ;;  %v259_v15 = vrot.slane %v258_v6, 2  ;;  %v4106_v31 = vld.sshfl [vmem:[%s5472_s0 + $0x2c] sm:$0x13 pattern:$0x76325410] }
  0x2d   :  { %v285_v16 = vrot.slane %v283_v10, 7  ;;  %v297_v18 = vshll.u32 %v4018_v41, 16  ;;  %v291_v23 = vrot.slane %v289_v14, 7  ;;  %v303_v24 = vshll.u32 %v187_v47, 16  ;;  %v4455_v47 = vld [vmem:[%s5473_s1 + $0x78] sm:$0xff]  }
  0x2e   :  { %v1222_v21 = vrot.slane %v1208_v2, %v4601_v8  ;;  %v273_v22 = vrot.slane %v272_v7, 2  ;;  %v264_v26 = vsel %vm4733_vm13, %v259_v15, %v263_v62  ;;  %v296_v29 = vrot.slane %v294_v17, 6  ;;  %v4822_v37 = vld.sshfl [vmem:[%s5472_s0 + $0x1c] sm:$0xf pattern:$0x76325410]  ;;  %4311 = vmatprep.subr.bf16.mxu0 %v4455_v47 }
  0x2f   :  { %v286_v27 = vor.u32 %v285_v16, %v282_v12  ;;  %v299_v30 = vrot.slane %v297_v18, 7  ;;  %v305_v60 = vrot.slane %v303_v24, 7  ;;  %v1086_v39 = vcombine.high %v4105_v19, %v4105_v19  ;;  %v4515_v43 = vld.sshfl [vmem:[%s5472_s0 + $0x24] sm:$0xf pattern:$0x76325410] }
  0x30   :  { %v1223_v32 = vcombine.low %v322_v38, %v1222_v21  ;;  %v278_v33 = vsel %vm4733_vm13, %v273_v22, %v277_v9  ;;  %v4454_v38 = vld [vmem:[%s5473_s1 + $0x80] sm:$0xff]   ;;  %v1094_v40 = vcombine.high %v4106_v31, %v4106_v31  ;;  %v1180_v41 = vshrl.u32 %v4105_v19, 16  ;;  %v4517_v0 = vld.sshfl [vmem:[%s5472_s0 + $0x8] sm:$0xf pattern:$0x76325410] }
  0x31   :  { %v287_v35 = vrot.slane %v286_v27, 2  ;;  %v300_v28 = vor.u32 %v299_v30, %v296_v29  ;;  %v324_v36 = vcombine.low %v264_v26, %v278_v33  ;;  %v1183_v42 = vshll.u32 %v4105_v19, 16  ;;  %4395 = vmatprep.subr.bf16.mxu1 %v4454_v38  ;;  %v4516_v63 = vld.sshfl [vmem:[%s5472_s0] sm:$0xf pattern:$0x76325410] }
  0x32   :  { %1241 = vrot.lane.b32.xlu0 %v1223_v32, %s4534_s16  ;;  %v1006_v46 = vcombine.low %v4512_v3, %v4513_v11  ;;  %v1182_v49 = vrot.slane %v1180_v41, 6  ;;  %v1189_v51 = vshll.u32 %v1086_v39, 16  ;;  %v1194_v52 = vshrl.u32 %v4106_v31, 16  ;;  %4396 = vmatpush3.bf16.msra.mxu1 %v4454_v38  ;;  %v4456_v4 = vld [vmem:[%s5473_s1 + $0x38] sm:$0xff]   ;;  %v4457_v16 = vld [vmem:[%s5473_s1 + $0x88] sm:$0xff]  }
  0x33   :  { %v292_v44 = vsel %vm4733_vm13, %v287_v35, %v291_v23  ;;  %v301_v45 = vrot.slane %v300_v28, 2  ;;  %v1185_v50 = vrot.slane %v1183_v42, 7  ;;  %v332_v55 = vrot.slane %v324_v36, %v4601_v8  ;;  %4312 = vmatpush3.bf16.msra.mxu0 %v4456_v4  ;;  %v4519_v19 = vld.sshfl [vmem:[%s5472_s0 + $0x20] sm:$0xf pattern:$0x76325410]  ;;  %4397 = vmatprep.subr.bf16.mxu1 %v4457_v16 }
  0x34   :  { %v1197_v56 = vshll.u32 %v4106_v31, 16  ;;  %v1203_v57 = vshll.u32 %v1094_v40, 16  ;;  %v1191_v61 = vrot.slane %v1189_v51, 7  ;;  %v1196_v62 = vrot.slane %v1194_v52, 6 }
  0x35   :  { %v306_v54 = vsel %vm4733_vm13, %v301_v45, %v305_v60  ;;  %v1186_v59 = vor.u32 %v1185_v50, %v1182_v49  ;;  %v764_v10 = vcombine.low %v4749_v5, %v4763_v20  ;;  %v765_v2 = vcombine.low %v4772_v25, %v4793_v53  ;;  %v4518_v53 = vld.sshfl [vmem:[%s5472_s0 + $0x18] sm:$0xf pattern:$0x76325410] }
  0x36   :  { %v325_v58 = vcombine.low %v292_v44, %v306_v54  ;;  %1009 = vrot.lane.b32.xlu0 %v1006_v46, %s4533_s19  ;;  %v1199_v1 = vrot.slane %v1197_v56, 7  ;;  %v1205_v3 = vrot.slane %v1203_v57, 7  ;;  %v781_v7 = vcombine.low %v278_v33, %v292_v44  ;;  %4398 = vmatpush3.bf16.msra.mxu1 %v4457_v16  ;;  %v4115_v31 = vld.sshfl [vmem:[%s5472_s0 + $0x8] sm:$0x12 pattern:$0x76325410] }
  0x37   :  { %v1187_v9 = vrot.slane %v1186_v59, 2  ;;  %v772_v15 = vrot.slane %v764_v10, %v4601_v8  ;;  %v779_v18 = vrot.slane %v765_v2, %v4601_v8  ;;  %v562_v25 = vcombine.low %v4822_v37, %v4515_v43  ;;  %v4116_v32 = vld.sshfl [vmem:[%s5472_s0 + $0xc] sm:$0x12 pattern:$0x76325410] }
  0x38   :  { %v339_v6 = vrot.slane %v325_v58, %v4601_v8  ;;  %v1200_v11 = vor.u32 %v1199_v1, %v1196_v62  ;;  %v789_v20 = vrot.slane %v781_v7, %v4601_v8  ;;  %vm105_vm14 = vcmask 261120   ;;  %v4117_v35 = vld.sshfl [vmem:[%s5472_s0 + $0x10] sm:$0x12 pattern:$0x76325410] }
  0x39   :  { %v1192_v14 = vsel %vm4733_vm13, %v1187_v9, %v1191_v61  ;;  %v780_v22 = vcombine.low %v772_v15, %v779_v18  ;;  %v85_v26 = vcombine.low %v4516_v63, %v4517_v0  ;;  %v102_v30 = vcombine.low %v4518_v53, %v4519_v19  ;;  %v4118_v37 = vld.sshfl [vmem:[%s5472_s0 + $0x14] sm:$0x12 pattern:$0x76325410] }
  0x3a   :  { %v340_v12 = vcombine.low %v332_v55, %v339_v6  ;;  %v1201_v17 = vrot.slane %v1200_v11, 2  ;;  %v782_v5 = vcombine.low %v306_v54, %v1192_v14  ;;  %v1272_v33 = vcombine.high %v4115_v31, %v4115_v31  ;;  %v4119_v44 = vld.sshfl [vmem:[%s5472_s0 + $0x20] sm:$0x12 pattern:$0x76325410] }
  0x3b   :  { %800 = vst.msk [vmem:[#allocation3 + $0x8] sm:$0xff] %vm105_vm14, %v780_v22  ;;  %106 = vst.msk [vmem:[#allocation3] sm:$0xff] %vm105_vm14, %v85_v26  ;;  %v4123_v60 = vrot.slane %v4115_v31, 9  ;;  %v1280_v28 = vcombine.high %v4116_v32, %v4116_v32  ;;  %v4124_v36 = vrot.slane %v4116_v32, 9  ;;  %v1288_v38 = vcombine.high %v4117_v35, %v4117_v35 }
  0x3c   :  { %343 = vrot.lane.b32.xlu1 %v340_v12, %s4535_s26  ;;  %v1206_v21 = vsel %vm4733_vm13, %v1201_v17, %v1205_v3  ;;  %v796_v23 = vrot.slane %v782_v5, %v4601_v8  ;;  %107 = vst.msk [vmem:[#allocation3 + $0x18] sm:$0xff] %vm105_vm14, %v102_v30  ;;  %v1331_v39 = vrot.slane %v1272_v33, 7  ;;  %v4125_v40 = vrot.slane %v4117_v35, 9 }
  0x3d   :  { %v1225_v24 = vcombine.low %v1192_v14, %v1206_v21  ;;  %v1296_v41 = vcombine.high %v4118_v37, %v4118_v37  ;;  %v1335_v42 = vrot.slane %v1280_v28, 7  ;;  %v4126_v43 = vrot.slane %v4118_v37, 9  ;;  %v4120_v47 = vld.sshfl [vmem:[%s5472_s0 + $0x24] sm:$0x12 pattern:$0x76325410] }
  0x3e   :  { %v797_v27 = vcombine.low %v789_v20, %v796_v23  ;;  %v1332_v45 = vsel %vm4609_vm6, %v4123_v60, %v1331_v39  ;;  %v1339_v46 = vrot.slane %v1288_v38, 7  ;;  %v1304_v49 = vcombine.high %v4119_v44, %v4119_v44  ;;  %v4121_v54 = vld.sshfl [vmem:[%s5472_s0 + $0x28] sm:$0x12 pattern:$0x76325410] }
  0x3f   :  { %v1239_v29 = vrot.slane %v1225_v24, %v4601_v8  ;;  %v4127_v50 = vrot.slane %v4119_v44, 9  ;;  %v1336_v51 = vsel %vm4609_vm6, %v4124_v36, %v1335_v42  ;;  %v1343_v52 = vrot.slane %v1296_v41, 7  ;;  %v4122_v59 = vld.sshfl [vmem:[%s5472_s0 + $0x2c] sm:$0x12 pattern:$0x76325410] }
  0x40   :  { %565 = vrot.lane.b32.xlu1 %v562_v25, %s4534_s16  ;;  %801 = vst.msk [vmem:[#allocation3 + $0x20] sm:$0xff] %vm105_vm14, %v797_v27  ;;  %v1312_v55 = vcombine.high %v4120_v47, %v4120_v47  ;;  %v4128_v56 = vrot.slane %v4120_v47, 9  ;;  %v1340_v57 = vsel %vm4609_vm6, %v4125_v40, %v1339_v46  ;;  %v1361_v58 = vcombine.low %v1332_v45, %v1336_v51  ;;  %v4462_v42 = vld [vmem:[%s5474_s4 + $0x40] sm:$0xff]   ;;  %v4464_v44 = vld [vmem:[%s5474_s4 + $0x48] sm:$0xff]   ;;  %v4466_v46 = vld [vmem:[%s5474_s4 + $0x50] sm:$0xff]  }
  0x41   :  { %v1240_v34 = vcombine.low %v339_v6, %v1239_v29  ;;  %v1320_v61 = vcombine.high %v4121_v54, %v4121_v54  ;;  %v1347_v62 = vrot.slane %v1304_v49, 7  ;;  %v1344_v63 = vsel %vm4609_vm6, %v4126_v43, %v1343_v52  ;;  %v4463_v43 = vld [vmem:[%s5474_s4] sm:$0xff]   ;;  %4329 = vmatprep.subr.bf16.mxu1 %v4462_v42  ;;  %v4465_v45 = vld [vmem:[%s5474_s4 + $0x8] sm:$0xff]   ;;  %v4467_v47 = vld [vmem:[%s5474_s4 + $0x10] sm:$0xff]  }
  0x42   :  { %v1328_v0 = vcombine.high %v4122_v59, %v4122_v59  ;;  %v1351_v1 = vrot.slane %v1312_v55, 7  ;;  %v4129_v3 = vrot.slane %v4121_v54, 9  ;;  %v1362_v4 = vcombine.low %v1340_v57, %v1344_v63  ;;  %v4469_v49 = vld [vmem:[%s5474_s4 + $0xc0] sm:$0xff]   ;;  %v4470_v51 = vld [vmem:[%s5474_s4 + $0x18] sm:$0xff]  }
  0x43   :  { %1243 = vrot.lane.b32.xlu0 %v1240_v34, %s4534_s16  ;;  %v1369_v6 = vrot.slane %v1361_v58, %v4601_v8  ;;  %v1348_v9 = vsel %vm4609_vm6, %v4127_v50, %v1347_v62  ;;  %v1355_v10 = vrot.slane %v1320_v61, 7  ;;  %v4130_v2 = vrot.slane %v4122_v59, 9  ;;  %v4468_v50 = vld [vmem:[%s5474_s4 + $0x58] sm:$0xff]   ;;  %4357 = vmatprep.subr.bf16.mxu0 %v4469_v49  ;;  %v4471_v52 = vld [vmem:[%s5474_s4 + $0x80] sm:$0xff]  }
  0x44   :  { %v1352_v11 = vsel %vm4609_vm6, %v4128_v56, %v1351_v1  ;;  %v1359_v7 = vrot.slane %v1328_v0, 7  ;;  %v1376_v12 = vrot.slane %v1362_v4, %v4601_v8  ;;  %vm347_vm15 = vcmask 523520   ;;  %v4989_v59 = vld [vmem:[%s5475_s2] ss:$0 sm:$0xff] }
  0x45   :  { %v1356_v14 = vsel %vm4609_vm6, %v4129_v3, %v1355_v10  ;;  %v1378_v15 = vcombine.low %v1348_v9, %v1352_v11  ;;  %vm509_vm0 = vcmask 785920   ;;  %vm569_vm1 = vcmask 1048320   ;;  %v4994_v1 = vld [vmem:[%s5476_s3] ss:$0 sm:$0xff] }
  0x46   :  { %v1360_v16 = vsel %vm4609_vm6, %v4130_v2, %v1359_v7  ;;  %v1377_v17 = vcombine.low %v1369_v6, %v1376_v12  ;;  %vm40_vm2 = vcmask 518144   ;;  %v4536_v37 = vmov 0  }
  0x47   :  { %v1379_v18 = vcombine.low %v1356_v14, %v1360_v16  ;;  %v1386_v5 = vrot.slane %v1378_v15, %v4601_v8  ;;  %42 = vst.msk [vmem:[#allocation2 + $0x4] sm:$0x7] %vm40_vm2, %v4536_v37  ;;  %43 = vst.msk [vmem:[#allocation2 + $0x8] sm:$0x7] %vm40_vm2, %v4536_v37  ;;  %vm1839_vm3 = vsmask.f32 2306 }
  0x48   :  { %1397 = vst.msk [vmem:[#allocation3 + $0x10] sm:$0xff] %vm105_vm14, %v1377_v17  ;;  %vm5035_vm4 = vmand %vm40_vm2, %vm1839_vm3  ;;  %vm1917_vm5 = vcmask 523264   ;;  %vm4002_vm7 = vcmask 519168  }
  0x49   :  { %v1393_v20 = vrot.slane %v1379_v18, %v4601_v8  ;;  %44 = vst.msk [vmem:[#allocation2 + $0xc] sm:$0x7] %vm40_vm2, %v4536_v37  ;;  %45 = vst.msk [vmem:[#allocation2 + $0x10] sm:$0x7] %vm40_vm2, %v4536_v37 }
  0x4a   :  { %41 = vst.msk [vmem:[#allocation2] sm:$0x7] %vm40_vm2, %v4536_v37  ;;  %46 = vst.msk [vmem:[#allocation2 + $0x14] sm:$0x7] %vm40_vm2, %v4536_v37 }
  0x4b   :  { %v1394_v25 = vcombine.low %v1386_v5, %v1393_v20  ;;  %47 = vst.msk [vmem:[#allocation2 + $0x18] sm:$0x7] %vm40_vm2, %v4536_v37  ;;  %48 = vst.msk [vmem:[#allocation2 + $0x1c] sm:$0x7] %vm40_vm2, %v4536_v37 }
  0x4c   :  { %49 = vst.msk [vmem:[#allocation2 + $0x20] sm:$0x7] %vm40_vm2, %v4536_v37  ;;  %50 = vst.msk [vmem:[#allocation2 + $0x24] sm:$0x7] %vm40_vm2, %v4536_v37 }
  0x4d   :  { %1398 = vst.msk [vmem:[#allocation3 + $0x28] sm:$0xff] %vm105_vm14, %v1394_v25 }
  0x4e   :  { %51 = vst.msk [vmem:[#allocation2 + $0x28] sm:$0x7] %vm40_vm2, %v4536_v37  ;;  %52 = vst.msk [vmem:[#allocation2 + $0x2c] sm:$0x7] %vm40_vm2, %v4536_v37 }
  0x4f   :  { %v1401_v53 = vld [vmem:[#allocation3 + $0x10] sm:$0xff] }
  0x50   :  { %4399 = vmatprep.mubr.msk.bf16.mxu1 %vm105_vm14, %v1401_v53 }
  0x51   :  { %v4155_v58 = vld.sshfl [vmem:[#allocation2] sm:$0x13 pattern:$0x76325410] }
  0x52   :  { %v4206_v0 = vld.sshfl [vmem:[#allocation2 + $0x14] sm:$0x13 pattern:$0x76325410]  ;;  %v2001_v3 = vshrl.u32 %v4155_v58, 16  ;;  %v2004_v4 = vshll.u32 %v4155_v58, 16  ;;  %v1943_v14 = vcombine.high %v4155_v58, %v4155_v58 }
  0x53   :  { %v2925_v10 = vshrl.u32 %v4206_v0, 16  ;;  %v2928_v11 = vshll.u32 %v4206_v0, 16  ;;  %v4159_v17 = vld.sshfl [vmem:[#allocation2 + $0x18] sm:$0x13 pattern:$0x76325410]  ;;  %v2849_v5 = vcombine.high %v4206_v0, %v4206_v0 }
  0x54   :  { %v1404_v19 = vld [vmem:[#allocation3 + $0x28] sm:$0xff]  ;;  %v2003_v15 = vrot.slane %v2001_v3, 6  ;;  %v2006_v16 = vrot.slane %v2004_v4, 7  ;;  %v1975_v42 = vcombine.high %v4159_v17, %v4159_v17 }
  0x55   :  { %4400 = vmatmul.mubr.msk.bf16.vlgmr.msra.gmra.mrb[0].mxu1 %vm105_vm14, %v1404_v19  ;;  %v4210_v12 = vld.sshfl [vmem:[#allocation2 + $0x2c] sm:$0x13 pattern:$0x76325410]  ;;  %v2927_v20 = vrot.slane %v2925_v10, 6  ;;  %v2930_v25 = vrot.slane %v2928_v11, 7 }
  0x56   :  { %4330 = vmatpush3.bf16.msra.mxu1 %v4463_v43  ;;  %v2981_v53 = vshrl.u32 %v4210_v12, 16  ;;  %v2984_v19 = vshll.u32 %v4210_v12, 16 }
  0x57   :  { %4331 = vmatprep.subr.bf16.mxu1 %v4464_v44 }
  0x5a   :  { %4332 = vmatpush3.bf16.msra.mxu1 %v4465_v45 }
  0x5b   :  { %4333 = vmatprep.subr.bf16.mxu1 %v4466_v46 }
  0x5e   :  { %4334 = vmatpush3.bf16.msra.mxu1 %v4467_v47 }
  0x5f   :  { %4335 = vmatprep.subr.bf16.mxu1 %v4468_v50 }
  0x62   :  { %4336 = vmatpush3.bf16.msra.mxu1 %v4470_v51 }
  0x77   :  { %v1008_v22 = vpop.permute.xlu1 %1007 }
  0x7e   :  { %v564_v24 = vpop.permute.xlu1 %563 }
  0x84   :  { %v949_v21 = vpop.permute.xlu0 %948 }
  0x85   :  { %954 = vst.msk [vmem:[#allocation3 + $0x8] sm:$0xff] %vm347_vm15, %v949_v21 }
  0x86   :  { %1013 = vst.msk [vmem:[#allocation3 + $0x8] sm:$0xff] %vm509_vm0, %v1008_v22 }
  0x8b   :  { %v951_v23 = vpop.permute.xlu0 %950 }
  0x8c   :  { %955 = vst.msk [vmem:[#allocation3 + $0x20] sm:$0xff] %vm347_vm15, %v951_v23  ;;  %v504_v27 = vpop.permute.xlu1 %503  ;;  %v2057_v23 = vshrl.u32 %v4159_v17, 16 }
  0x98   :  { %v506_v30 = vpop.permute.xlu1 %505 }
  0x9b   :  { %v342_v26 = vpop.permute.xlu0 %341 }
  0x9c   :  { %348 = vst.msk [vmem:[#allocation3] sm:$0xff] %vm347_vm15, %v342_v26  ;;  %v2007_v26 = vor.u32 %v2006_v16, %v2003_v15 }
  0x9d   :  { %510 = vst.msk [vmem:[#allocation3] sm:$0xff] %vm509_vm0, %v504_v27  ;;  %v5000_v27 = vshll.u32 %v1943_v14, 16 }
  0x9e   :  { %570 = vst.msk [vmem:[#allocation3] sm:$0xff] %vm569_vm1, %v564_v24  ;;  %v2060_v24 = vshll.u32 %v4159_v17, 16  ;;  %v1844_v17 = vld [vmem:[#allocation2 + $0x8] sm:$0x7] }
  0xa0   :  { %v5010_v37 = vrot.slane %v2060_v24, 7  ;;  %v1850_v24 = vld [vmem:[#allocation2 + $0x10] sm:$0x7] }
  0xa4   :  { %v1242_v29 = vpop.permute.xlu0 %1241 }
  0xa5   :  { %1247 = vst.msk [vmem:[#allocation3 + $0x8] sm:$0xff] %vm569_vm1, %v1242_v29  ;;  %v1399_v33 = vld [vmem:[#allocation3] sm:$0xff] }
  0xa8   :  { %v1010_v31 = vpop.permute.xlu0 %1009 }
  0xa9   :  { %1014 = vst.msk [vmem:[#allocation3 + $0x20] sm:$0xff] %vm509_vm0, %v1010_v31  ;;  %v5002_v31 = vshll.u32 %v2849_v5, 16 }
  0xab   :  { %v2936_v51 = vrot.slane %v5002_v31, 7 }
  0xac   :  { %v1400_v32 = vld [vmem:[#allocation3 + $0x8] sm:$0xff] }
  0xad   :  { %1587 = vmatprep.mubr.bf16.mxu0 %v1400_v32  ;;  %v2931_v32 = vor.u32 %v2930_v25, %v2927_v20  ;;  %v5040_v20 = vld.sshfl [vmem:[#allocation2 + $0x18] sm:$0x12 pattern:$0x76325410] }
  0xae   :  { %v344_v60 = vpop.permute.xlu1 %343  ;;  %1588 = vmatmul.mubr.bf16.vlgmr.msra.gmra.mrb[0].mxu0 %v1399_v33  ;;  %v2881_v33 = vcombine.high %v4210_v12, %v4210_v12  ;;  %v1841_v12 = vld [vmem:[#allocation2 + $0x4] sm:$0x7] }
  0xaf   :  { %349 = vst.msk [vmem:[#allocation3 + $0x18] sm:$0xff] %vm347_vm15, %v344_v60  ;;  %4358 = vmatpush3.bf16.msra.mxu0 %v4471_v52  ;;  %v5004_v60 = vrot.slane %v2981_v53, 6  ;;  %v5017_v50 = vrot.slane %v2931_v32, 2 }
  0xb0   :  { %511 = vst.msk [vmem:[#allocation3 + $0x18] sm:$0xff] %vm509_vm0, %v506_v30  ;;  %v5046_v32 = vld.sshfl [vmem:[#allocation2 + $0x2c] sm:$0x12 pattern:$0x76325410] }
  0xb2   :  { %v566_v34 = vpop.permute.xlu1 %565 }
  0xb3   :  { %571 = vst.msk [vmem:[#allocation3 + $0x18] sm:$0xff] %vm569_vm1, %v566_v34  ;;  %v2986_v34 = vrot.slane %v2984_v19, 7 }
  0xb5   :  { %v1244_v35 = vpop.permute.xlu0 %1243  ;;  %v2987_v52 = vor.u32 %v2986_v34, %v5004_v60 }
  0xb6   :  { %1248 = vst.msk [vmem:[#allocation3 + $0x20] sm:$0xff] %vm569_vm1, %v1244_v35 }
  0xba   :  { %v1402_v28 = vld [vmem:[#allocation3 + $0x18] sm:$0xff] }
  0xbd   :  { %v1403_v36 = vld [vmem:[#allocation3 + $0x20] sm:$0xff] }
  0xbe   :  { %1595 = vmatprep.mubr.bf16.mxu0 %v1403_v36  ;;  %v5008_v36 = vrot.slane %v2057_v23, 6 }
  0xbf   :  { %1596 = vmatmul.mubr.bf16.gmra.mrb[4].mxu0 %v1402_v28 }
 0x128   :  { %v4952_v38 = vpop.f32.mrb[0].mxu1 }
 0x129   :  { %v1638_v39 = vpop.f32.mrb[1].mxu1 }
 0x12a   :  { %v4954_v40 = vpop.f32.mrb[2].mxu1 }
 0x12b   :  { %v1641_v41 = vpop.f32.mrb[3].mxu1 }
 0x181   :  { %v4313_v54 = vpop.f32.mrb[0].mxu0 }
 0x182   :  { %v4314_v55 = vpop.f32.mrb[1].mxu0 }
 0x183   :  { %v4315_v56 = vadd.f32 %v4314_v55, %v4313_v54  ;;  %v4316_v57 = vpop.f32.mrb[2].mxu0  ;;  %v5021_v54 = vshll.u32 %v2881_v33, 16 }
 0x184   :  { %v4317_v61 = vpop.f32.mrb[3].mxu0 }
 0x185   :  { %v1639_v62 = vadd.f32 %v4315_v56, %v1638_v39  ;;  %v4318_v63 = vadd.f32 %v4317_v61, %v4316_v57  ;;  %v5012_v39 = vrot.slane %v2007_v26, 2  ;;  %v2063_v61 = vor.u32 %v5010_v37, %v5008_v36 }
 0x186   :  { %v2988_v36 = vrot.slane %v2987_v52, 2 }
 0x187   :  { %v1660_v6 = vmul.f32 %v4989_v59, %v1639_v62  ;;  %v1642_v9 = vadd.f32 %v4318_v63, %v1641_v41  ;;  %v2012_v41 = vrot.slane %v5000_v27, 7  ;;  %v5027_v62 = vld.sshfl [vmem:[#allocation2] sm:$0x12 pattern:$0x76325410]  ;;  %v4226_v27 = vrot.slane %v5046_v32, 9 }
 0x189   :  { %v1671_v2 = vadd.f32 %v4994_v1, %v1660_v6  ;;  %v1661_v7 = vmul.f32 %v4989_v59, %v1642_v9  ;;  %v5029_v6 = vshll.u32 %v1975_v42, 16  ;;  %v5031_v9 = vld.sshfl [vmem:[#allocation2 + $0x14] sm:$0x12 pattern:$0x76325410] }
 0x18a   :  { %v3083_v34 = vcombine.high %v5031_v9, %v5031_v9 }
 0x18b   :  { %v1672_v18 = vadd.f32 %v4994_v1, %v1661_v7  ;;  %v1675_v21 = vmax.f32 %v1671_v2, 0.0 }
 0x18d   :  { %v1676_v22 = vmax.f32 %v1672_v18, 0.0 }
 0x18f   :  { %v1679_v29 = vpack.c.bf16 %v1676_v22, %v1675_v21  ;;  %v4153_v30 = vpack.c.bf16 %v1676_v22, %v1676_v22  ;;  %v1847_v22 = vld [vmem:[#allocation2 + $0xc] sm:$0x7] }
 0x191   :  { %v1690_v35 = vrot.slane %v1679_v29, %v4601_v8  ;;  %v1697_v28 = vrot.slane %v4153_v30, %v4601_v8  ;;  %v2178_v30 = vcombine.high %v5027_v62, %v5027_v62 }
 0x192   :  { %v4319_v47 = vpop.f32.mrb[4].mxu0 }
 0x193   :  { %v1698_v43 = vcombine.high %v1690_v35, %v1690_v35  ;;  %v1699_v44 = vcombine.high %v1697_v28, %v1697_v28  ;;  %v1723_v45 = vrot.slane %v1690_v35, %v4601_v8  ;;  %v1737_v46 = vrot.slane %v1697_v28, %v4601_v8  ;;  %v4320_v49 = vpop.f32.mrb[5].mxu0 }
 0x194   :  { %v4322_v58 = vpop.f32.mrb[6].mxu0  ;;  %v4321_v3 = vadd.f32 %v4320_v49, %v4319_v47  ;;  %v4171_v47 = vrot.slane %v5027_v62, 9  ;;  %v2068_v49 = vrot.slane %v5029_v6, 7  ;;  %v2237_v52 = vrot.slane %v2178_v30, 7 }
 0x195   :  { %v1730_v55 = vrot.slane %v1698_v43, %v4601_v8  ;;  %v1744_v56 = vrot.slane %v1699_v44, %v4601_v8  ;;  %v1774_v57 = vshrl.u32 %v1723_v45, 16  ;;  %v1777_v63 = vshll.u32 %v1723_v45, 16  ;;  %v4323_v4 = vpop.f32.mrb[7].mxu0 }
 0x196   :  { %v1788_v0 = vshrl.u32 %v1737_v46, 16  ;;  %v1791_v2 = vshll.u32 %v1737_v46, 16  ;;  %v1647_v18 = vadd.f32 %v4952_v38, %v4321_v3  ;;  %v4324_v5 = vadd.f32 %v4323_v4, %v4322_v58  ;;  %v4476_v3 = vld [vmem:[%s5474_s4 + $0x68] sm:$0xff]   ;;  %v4477_v4 = vld [vmem:[%s5474_s4 + $0xd0] sm:$0xff]  }
 0x197   :  { %v1776_v10 = vrot.slane %v1774_v57, 7  ;;  %v1781_v11 = vshrl.u32 %v1730_v55, 16  ;;  %v1795_v7 = vshrl.u32 %v1744_v56, 16  ;;  %v1784_v14 = vshll.u32 %v1730_v55, 16 }
 0x198   :  { %v1790_v15 = vrot.slane %v1788_v0, 7  ;;  %v1798_v21 = vshll.u32 %v1744_v56, 16  ;;  %v1662_v26 = vmul.f32 %v4989_v59, %v1647_v18  ;;  %v1650_v29 = vadd.f32 %v4954_v40, %v4324_v5  ;;  %v4475_v0 = vld [vmem:[%s5474_s4 + $0x88] sm:$0xff]  }
 0x199   :  { %v1779_v25 = vor.u32 %v1777_v63, %v1776_v10  ;;  %v1783_v53 = vrot.slane %v1781_v11, 7  ;;  %v1797_v19 = vrot.slane %v1795_v7, 7  ;;  %v2210_v43 = vcombine.high %v5040_v20, %v5040_v20  ;;  %v4472_v63 = vld [vmem:[%s5474_s4 + $0x60] sm:$0xff]  }
 0x19a   :  { %v1793_v23 = vor.u32 %v1791_v2, %v1790_v15  ;;  %v1673_v28 = vadd.f32 %v4994_v1, %v1662_v26  ;;  %v1663_v40 = vmul.f32 %v4989_v59, %v1650_v29  ;;  %v3115_v44 = vcombine.high %v5046_v32, %v5046_v32  ;;  %4337 = vmatprep.subr.bf16.mxu1 %v4472_v63  ;;  %v4479_v2 = vld [vmem:[%s5474_s4 + $0x90] sm:$0xff]   ;;  %v1856_v63 = vld [vmem:[#allocation2 + $0x20] sm:$0x7] }
 0x19b   :  { %v1786_v38 = vor.u32 %v1784_v14, %v1783_v53  ;;  %v1800_v33 = vor.u32 %v1798_v21, %v1797_v19  ;;  %v1842_v60 = vsel %vm5035_vm4, %v1779_v25, %v1841_v12  ;;  %v2992_v59 = vrot.slane %v5021_v54, 7  ;;  %v4474_v54 = vld [vmem:[%s5474_s4 + $0x20] sm:$0xff]  }
 0x19c   :  { %1843 = vst [vmem:[#allocation2 + $0x4] sm:$0x7] %v1842_v60  ;;  %v1848_v35 = vsel %vm5035_vm4, %v1793_v23, %v1847_v22  ;;  %v1674_v45 = vadd.f32 %v4994_v1, %v1663_v40  ;;  %v2064_v46 = vrot.slane %v2063_v61, 2  ;;  %v4222_v55 = vrot.slane %v5031_v9, 9  ;;  %v4473_v1 = vld [vmem:[%s5474_s4 + $0xc8] sm:$0xff]   ;;  %4338 = vmatpush3.bf16.msra.mxu1 %v4474_v54 }
 0x19d   :  { %v1845_v37 = vsel %vm5035_vm4, %v1786_v38, %v1844_v17  ;;  %1849 = vst [vmem:[#allocation2 + $0xc] sm:$0x7] %v1848_v35  ;;  %v1851_v42 = vsel %vm5035_vm4, %v1800_v33, %v1850_v24  ;;  %v3130_v56 = vrot.slane %v3083_v34, 7  ;;  %v1677_v57 = vmax.f32 %v1673_v28, 0.0  ;;  %4359 = vmatprep.subr.bf16.mxu0 %v4473_v1  ;;  %4339 = vmatprep.subr.bf16.mxu1 %v4476_v3  ;;  %v1853_v40 = vld [vmem:[#allocation2 + $0x1c] sm:$0x7] }
 0x19e   :  { %1846 = vst [vmem:[#allocation2 + $0x8] sm:$0x7] %v1845_v37  ;;  %1852 = vst [vmem:[#allocation2 + $0x10] sm:$0x7] %v1851_v42  ;;  %v1678_v58 = vmax.f32 %v1674_v45, 0.0  ;;  %v4175_v61 = vrot.slane %v5040_v20, 9  ;;  %v5084_v62 = vsel %vm4733_vm13, %v5012_v39, %v2012_v41  ;;  %v5101_v39 = vsel %vm4733_vm13, %v5017_v50, %v2936_v51  ;;  %4360 = vmatpush3.bf16.msra.mxu0 %v4475_v0 }
 0x19f   :  { %v2253_v6 = vrot.slane %v2210_v43, 7  ;;  %v3146_v9 = vrot.slane %v3115_v44, 7  ;;  %v4478_v41 = vld [vmem:[%s5474_s4 + $0x28] sm:$0xff]   ;;  %v5111_v12 = vsel %vm4733_vm13, %v2988_v36, %v2992_v59  ;;  %v5115_v31 = vsel %vm4733_vm13, %v2064_v46, %v2068_v49  ;;  %4361 = vmatprep.subr.bf16.mxu0 %v4477_v4  ;;  %v1859_v46 = vld [vmem:[#allocation2 + $0x24] sm:$0x7] }
 0x1a0   :  { %v1680_v10 = vpack.c.bf16 %v1678_v58, %v1677_v57  ;;  %v4154_v11 = vpack.c.bf16 %v1678_v58, %v1678_v58  ;;  %v5119_v50 = vsel %vm4609_vm6, %v4171_v47, %v2237_v52  ;;  %v5127_v17 = vsel %vm4609_vm6, %v4222_v55, %v3130_v56  ;;  %4340 = vmatpush3.bf16.msra.mxu1 %v4478_v41  ;;  %v1862_v1 = vld [vmem:[#allocation2 + $0x28] sm:$0x7] }
 0x1a1   :  { %v5133_v25 = vsel %vm4609_vm6, %v4175_v61, %v2253_v6  ;;  %v5137_v53 = vsel %vm4609_vm6, %v4226_v27, %v3146_v9 }
 0x1a2   :  { %v1707_v51 = vrot.slane %v1680_v10, %v4601_v8  ;;  %v1714_v14 = vrot.slane %v4154_v11, %v4601_v8  ;;  %4362 = vmatpush3.bf16.msra.mxu0 %v4479_v2 }
 0x1a3   :  { %v4156_v7 = vld.sshfl [vmem:[#allocation2 + $0x4] sm:$0x13 pattern:$0x76325410] }
 0x1a4   :  { %v5123_v15 = vld.sshfl [vmem:[#allocation2 + $0xc] sm:$0x13 pattern:$0x76325410]  ;;  %v1951_v5 = vcombine.high %v4156_v7, %v4156_v7  ;;  %v1715_v19 = vcombine.high %v1707_v51, %v1707_v51  ;;  %v1716_v21 = vcombine.high %v1714_v14, %v1714_v14  ;;  %v1751_v22 = vrot.slane %v1707_v51, %v4601_v8 }
 0x1a5   :  { %v4520_v18 = vld.sshfl [vmem:[#allocation2 + $0x4] sm:$0xf pattern:$0x76325410]  ;;  %v1967_v20 = vcombine.high %v5123_v15, %v5123_v15  ;;  %v1765_v23 = vrot.slane %v1714_v14, %v4601_v8  ;;  %v2015_v30 = vshrl.u32 %v4156_v7, 16  ;;  %v2018_v32 = vshll.u32 %v4156_v7, 16 }
 0x1a6   :  { %v4521_v24 = vld.sshfl [vmem:[#allocation2 + $0xc] sm:$0xf pattern:$0x76325410]  ;;  %v1758_v38 = vrot.slane %v1715_v19, %v4601_v8  ;;  %v1772_v33 = vrot.slane %v1716_v21, %v4601_v8  ;;  %v1802_v60 = vshrl.u32 %v1751_v22, 16  ;;  %v1805_v34 = vshll.u32 %v1751_v22, 16 }
 0x1a7   :  { %v4157_v26 = vld.sshfl [vmem:[#allocation2 + $0x8] sm:$0x13 pattern:$0x76325410]  ;;  %v1816_v35 = vshrl.u32 %v1765_v23, 16  ;;  %v1819_v28 = vshll.u32 %v1765_v23, 16  ;;  %v2337_v47 = vcombine.low %v4520_v18, %v4521_v24 }
 0x1a8   :  { %v1959_v29 = vcombine.high %v4157_v26, %v4157_v26  ;;  %v2017_v36 = vrot.slane %v2015_v30, 6  ;;  %v1804_v37 = vrot.slane %v1802_v60, 7  ;;  %v1809_v42 = vshrl.u32 %v1758_v38, 16 }
 0x1a9   :  { %v1812_v43 = vshll.u32 %v1758_v38, 16  ;;  %v1823_v44 = vshrl.u32 %v1772_v33, 16  ;;  %v1818_v45 = vrot.slane %v1816_v35, 7  ;;  %v1826_v59 = vshll.u32 %v1772_v33, 16  ;;  %2355 = vrot.lane.b32.xlu0 %v2337_v47, %s4533_s19 }
 0x1aa   :  { %v2020_v49 = vrot.slane %v2018_v32, 7  ;;  %v1807_v52 = vor.u32 %v1805_v34, %v1804_v37  ;;  %v1811_v55 = vrot.slane %v1809_v42, 7  ;;  %v2024_v57 = vshll.u32 %v1951_v5, 16 }
 0x1ab   :  { %v1825_v56 = vrot.slane %v1823_v44, 7  ;;  %v1821_v58 = vor.u32 %v1819_v28, %v1818_v45  ;;  %v2029_v61 = vshrl.u32 %v4157_v26, 16  ;;  %v2032_v0 = vshll.u32 %v4157_v26, 16  ;;  %v4485_v44 = vld [vmem:[%s5474_s4 + $0x98] sm:$0xff]  }
 0x1ac   :  { %v2021_v54 = vor.u32 %v2020_v49, %v2017_v36  ;;  %v1814_v3 = vor.u32 %v1812_v43, %v1811_v55  ;;  %v1854_v6 = vsel %vm5035_vm4, %v1807_v52, %v1853_v40  ;;  %v2026_v27 = vrot.slane %v2024_v57, 7  ;;  %v4205_v9 = vld.sshfl [vmem:[#allocation2 + $0x10] sm:$0x13 pattern:$0x76325410] }
 0x1ad   :  { %v1828_v4 = vor.u32 %v1826_v59, %v1825_v56  ;;  %1855 = vst [vmem:[#allocation2 + $0x1c] sm:$0x7] %v1854_v6  ;;  %v1860_v10 = vsel %vm5035_vm4, %v1821_v58, %v1859_v46  ;;  %v2031_v41 = vrot.slane %v2029_v61, 6  ;;  %v2034_v2 = vrot.slane %v2032_v0, 7  ;;  %v4484_v43 = vld [vmem:[%s5474_s4 + $0x30] sm:$0xff]  }
 0x1ae   :  { %v2022_v11 = vrot.slane %v2021_v54, 2  ;;  %v4187_v7 = vld.sshfl [vmem:[#allocation2 + $0x4] sm:$0x12 pattern:$0x76325410]  ;;  %v1857_v51 = vsel %vm5035_vm4, %v1814_v3, %v1856_v63  ;;  %v2038_v18 = vshll.u32 %v1959_v29, 16  ;;  %v2841_v38 = vcombine.high %v4205_v9, %v4205_v9 }
 0x1af   :  { %1861 = vst [vmem:[#allocation2 + $0x24] sm:$0x7] %v1860_v10  ;;  %v1863_v14 = vsel %vm5035_vm4, %v1828_v4, %v1862_v1  ;;  %v2043_v5 = vshrl.u32 %v5123_v15, 16  ;;  %1858 = vst [vmem:[#allocation2 + $0x20] sm:$0x7] %v1857_v51  ;;  %v2035_v22 = vor.u32 %v2034_v2, %v2031_v41  ;;  %v2046_v23 = vshll.u32 %v5123_v15, 16 }
 0x1b0   :  { %v5153_v19 = vld.sshfl [vmem:[#allocation2 + $0x8] sm:$0x12 pattern:$0x76325410]  ;;  %1864 = vst [vmem:[#allocation2 + $0x28] sm:$0x7] %v1863_v14  ;;  %v5157_v21 = vsel %vm4733_vm13, %v2022_v11, %v2026_v27  ;;  %v2616_v42 = vcombine.high %v4187_v7, %v4187_v7 }
 0x1b1   :  { %v2052_v24 = vshll.u32 %v1967_v20, 16  ;;  %v5163_v16 = vld.sshfl [vmem:[#allocation2 + $0xc] sm:$0x12 pattern:$0x76325410]  ;;  %v2040_v29 = vrot.slane %v2038_v18, 7  ;;  %v2112_v32 = vcombine.low %v5084_v62, %v5157_v21  ;;  %v2624_v49 = vcombine.high %v5153_v19, %v5153_v19 }
 0x1b2   :  { %v5165_v26 = vld.sshfl [vmem:[#allocation2 + $0x10] sm:$0x12 pattern:$0x76325410]  ;;  %v2045_v30 = vrot.slane %v2043_v5, 6  ;;  %v2036_v34 = vrot.slane %v2035_v22, 2  ;;  %v2632_v57 = vcombine.high %v5163_v16, %v5163_v16 }
 0x1b3   :  { %v5169_v33 = vld.sshfl [vmem:[#allocation2] sm:$0xf pattern:$0x76325410]  ;;  %v2048_v35 = vrot.slane %v2046_v23, 7  ;;  %v2054_v28 = vrot.slane %v2052_v24, 7  ;;  %v5180_v36 = vrot.slane %v2112_v32, %v4601_v8  ;;  %v2640_v58 = vcombine.high %v5165_v26, %v5165_v26 }
 0x1b4   :  { %v5171_v60 = vld.sshfl [vmem:[#allocation2 + $0x8] sm:$0xf pattern:$0x76325410]  ;;  %v2911_v40 = vshrl.u32 %v4205_v9, 16  ;;  %v4482_v15 = vld [vmem:[%s5474_s4 + $0x70] sm:$0xff]   ;;  %v5192_v59 = vsel %vm4733_vm13, %v2036_v34, %v2040_v29 }
 0x1b5   :  { %v4483_v20 = vld [vmem:[%s5474_s4 + $0xd8] sm:$0xff]   ;;  %v2914_v62 = vshll.u32 %v4205_v9, 16  ;;  %v2920_v37 = vshll.u32 %v2841_v38, 16  ;;  %v2049_v46 = vor.u32 %v2048_v35, %v2045_v30  ;;  %4341 = vmatprep.subr.bf16.mxu1 %v4482_v15  ;;  %v4489_v1 = vld [vmem:[%s5474_s4 + $0xe0] sm:$0xff]   ;;  %v4195_v61 = vrot.slane %v4187_v7, 9 }
 0x1b6   :  { %v5188_v45 = vld.sshfl [vmem:[#allocation2 + $0x8] sm:$0xf pattern:$0x76325410]  ;;  %v2913_v47 = vrot.slane %v2911_v40, 6  ;;  %4363 = vmatprep.subr.bf16.mxu0 %v4483_v20  ;;  %4342 = vmatpush3.bf16.msra.mxu1 %v4484_v43  ;;  %v4488_v63 = vld [vmem:[%s5474_s4 + $0x78] sm:$0xff]   ;;  %v2555_v41 = vcombine.low %v5157_v21, %v5192_v59 }
 0x1b7   :  { %v5196_v52 = vld.sshfl [vmem:[#allocation2 + $0x10] sm:$0xf pattern:$0x76325410]  ;;  %v2916_v55 = vrot.slane %v2914_v62, 7  ;;  %v2922_v56 = vrot.slane %v2920_v37, 7  ;;  %4364 = vmatpush3.bf16.msra.mxu0 %v4485_v44  ;;  %4343 = vmatprep.subr.bf16.mxu1 %v4488_v63 }
 0x1b8   :  { %v2050_v54 = vrot.slane %v2049_v46, 2  ;;  %v2675_v0 = vrot.slane %v2616_v42, 7  ;;  %v4196_v3 = vrot.slane %v5153_v19, 9  ;;  %4365 = vmatprep.subr.bf16.mxu0 %v4489_v1  ;;  %v4490_v18 = vld [vmem:[%s5474_s4 + $0x38] sm:$0xff]   ;;  %v4491_v34 = vld [vmem:[%s5474_s4 + $0xa0] sm:$0xff]   ;;  %v4198_v19 = vrot.slane %v5165_v26, 9 }
 0x1b9   :  { %v4526_v4 = vld.sshfl [vmem:[#allocation2 + $0x1c] sm:$0xf pattern:$0x76325410]  ;;  %v2917_v6 = vor.u32 %v2916_v55, %v2913_v47  ;;  %v2780_v13 = vcombine.low %v5188_v45, %v5196_v52 }
 0x1ba   :  { %v4527_v27 = vld.sshfl [vmem:[#allocation2 + $0x24] sm:$0xf pattern:$0x76325410]  ;;  %v5211_v9 = vsel %vm4733_vm13, %v2050_v54, %v2054_v28  ;;  %v5215_v11 = vsel %vm4609_vm6, %v4195_v61, %v2675_v0  ;;  %4344 = vmatpush3.bf16.msra.mxu1 %v4490_v18 }
 0x1bb   :  { %v4207_v10 = vld.sshfl [vmem:[#allocation2 + $0x20] sm:$0x13 pattern:$0x76325410]  ;;  %v2113_v2 = vcombine.low %v5192_v59, %v5211_v9  ;;  %v2918_v7 = vrot.slane %v2917_v6, 2  ;;  %v2354_v35 = vcombine.low %v4526_v4, %v4527_v27  ;;  %4366 = vmatpush3.bf16.msra.mxu0 %v4491_v34  ;;  %2800 = vst.msk [vmem:[#allocation4 + $0x18] sm:$0xff] %vm1917_vm5, %v2780_v13 }
 0x1bc   :  { %v4208_v51 = vld.sshfl [vmem:[#allocation2 + $0x24] sm:$0x13 pattern:$0x76325410]  ;;  %v2857_v14 = vcombine.high %v4207_v10, %v4207_v10  ;;  %v2939_v23 = vshrl.u32 %v4207_v10, 16  ;;  %v2942_v24 = vshll.u32 %v4207_v10, 16 }
 0x1bd   :  { %v4209_v5 = vld.sshfl [vmem:[#allocation2 + $0x28] sm:$0x13 pattern:$0x76325410]  ;;  %v2865_v22 = vcombine.high %v4208_v51, %v4208_v51  ;;  %v2127_v29 = vrot.slane %v2113_v2, %v4601_v8  ;;  %v5227_v30 = vsel %vm4733_vm13, %v2918_v7, %v2922_v56  ;;  %v2953_v37 = vshrl.u32 %v4208_v51, 16  ;;  %2357 = vrot.lane.b32.xlu0 %v2354_v35, %s4533_s19 }
 0x1be   :  { %v2873_v32 = vcombine.high %v4209_v5, %v4209_v5  ;;  %v2948_v38 = vshll.u32 %v2857_v14, 16  ;;  %v2995_v28 = vcombine.low %v5227_v30, %v5101_v39  ;;  %v2941_v40 = vrot.slane %v2939_v23, 6  ;;  %v4160_v55 = vld.sshfl [vmem:[#allocation2 + $0x1c] sm:$0x13 pattern:$0x76325410] }
 0x1bf   :  { %v2944_v15 = vrot.slane %v2942_v24, 7  ;;  %v2128_v20 = vcombine.low %v5180_v36, %v2127_v29  ;;  %v2956_v42 = vshll.u32 %v4208_v51, 16  ;;  %v2962_v46 = vshll.u32 %v2865_v22, 16 }
 0x1c0   :  { %v2950_v62 = vrot.slane %v2948_v38, 7  ;;  %v3009_v43 = vrot.slane %v2995_v28, %v4601_v8  ;;  %v2967_v47 = vshrl.u32 %v4209_v5, 16  ;;  %v2955_v56 = vrot.slane %v2953_v37, 6  ;;  %v4496_v28 = vld [vmem:[%s5474_s4 + $0xe8] sm:$0xff]  }
 0x1c1   :  { %v2945_v44 = vor.u32 %v2944_v15, %v2941_v40  ;;  %2146 = vrot.lane.b32.xlu1 %v2128_v20, %s4533_s19  ;;  %v2958_v39 = vrot.slane %v2956_v42, 7  ;;  %v2970_v63 = vshll.u32 %v4209_v5, 16  ;;  %v2976_v1 = vshll.u32 %v2873_v32, 16  ;;  %4367 = vmatprep.subr.bf16.mxu0 %v4496_v28 }
 0x1c2   :  { %v3010_v54 = vcombine.low %v2127_v29, %v3009_v43  ;;  %v2964_v61 = vrot.slane %v2962_v46, 7  ;;  %v2969_v0 = vrot.slane %v2967_v47, 6  ;;  %v1983_v10 = vcombine.high %v4160_v55, %v4160_v55  ;;  %v4191_v18 = vld.sshfl [vmem:[#allocation2 + $0x1c] sm:$0x12 pattern:$0x76325410] }
 0x1c3   :  { %v2946_v36 = vrot.slane %v2945_v44, 2  ;;  %v2959_v4 = vor.u32 %v2958_v39, %v2955_v56  ;;  %v2972_v6 = vrot.slane %v2970_v63, 7  ;;  %v2978_v27 = vrot.slane %v2976_v1, 7  ;;  %v4498_v43 = vld [vmem:[%s5474_s4 + $0xa8] sm:$0xff]   ;;  %v4499_v63 = vld [vmem:[%s5474_s4 + $0xf0] sm:$0xff]  }
 0x1c4   :  { %3028 = vrot.lane.b32.xlu0 %v3010_v54, %s4533_s19  ;;  %v2071_v7 = vshrl.u32 %v4160_v55, 16  ;;  %v2074_v51 = vshll.u32 %v4160_v55, 16  ;;  %v2679_v14 = vrot.slane %v2624_v49, 7  ;;  %v2080_v24 = vshll.u32 %v1983_v10, 16  ;;  %4368 = vmatpush3.bf16.msra.mxu0 %v4498_v43  ;;  %v4501_v1 = vld [vmem:[%s5474_s4 + $0xb0] sm:$0xff]  }
 0x1c5   :  { %v5241_v2 = vsel %vm4733_vm13, %v2946_v36, %v2950_v62  ;;  %v4192_v5 = vld.sshfl [vmem:[#allocation2 + $0x20] sm:$0x12 pattern:$0x76325410]  ;;  %v2960_v22 = vrot.slane %v2959_v4, 2  ;;  %v2973_v23 = vor.u32 %v2972_v6, %v2969_v0  ;;  %v4197_v29 = vrot.slane %v5163_v16, 9  ;;  %4369 = vmatprep.subr.bf16.mxu0 %v4499_v63 }
 0x1c6   :  { %v2073_v32 = vrot.slane %v2071_v7, 6  ;;  %v2076_v38 = vrot.slane %v2074_v51, 7  ;;  %v5251_v34 = vsel %vm4609_vm6, %v4196_v3, %v2679_v14  ;;  %v2683_v35 = vrot.slane %v2632_v57, 7  ;;  %v5267_v3 = vld [vmem:[%s5474_s4 + $0x100] sm:$0xff]  }
 0x1c7   :  { %v4193_v49 = vld.sshfl [vmem:[#allocation2 + $0x24] sm:$0x12 pattern:$0x76325410]  ;;  %v5261_v40 = vsel %vm4733_vm13, %v2960_v22, %v2964_v61  ;;  %v2974_v15 = vrot.slane %v2973_v23, 2  ;;  %v2082_v20 = vrot.slane %v2080_v24, 7  ;;  %v2705_v46 = vcombine.low %v5215_v11, %v5251_v34  ;;  %4403 = vmatprep.subr.bf16.mxu1 %v5267_v3 }
 0x1c8   :  { %v3011_v16 = vcombine.low %v5241_v2, %v5261_v40  ;;  %v2077_v57 = vor.u32 %v2076_v38, %v2073_v32  ;;  %v5273_v62 = vsel %vm4609_vm6, %v4197_v29, %v2683_v35  ;;  %v2687_v37 = vrot.slane %v2640_v58, 7  ;;  %v4194_v42 = vld.sshfl [vmem:[#allocation2 + $0x28] sm:$0x12 pattern:$0x76325410]  ;;  %4370 = vmatpush3.bf16.msra.mxu0 %v4501_v1  ;;  %v4502_v32 = vld [vmem:[%s5474_s4 + $0xf8] sm:$0xff]  }
 0x1c9   :  { %v5283_v44 = vsel %vm4733_vm13, %v2974_v15, %v2978_v27  ;;  %v2648_v47 = vcombine.high %v4191_v18, %v4191_v18  ;;  %v2656_v55 = vcombine.high %v4192_v5, %v4192_v5  ;;  %v2664_v36 = vcombine.high %v4193_v49, %v4193_v49  ;;  %v4528_v28 = vld.sshfl [vmem:[#allocation2 + $0x20] sm:$0xf pattern:$0x76325410]  ;;  %4371 = vmatprep.subr.bf16.mxu0 %v4502_v32 }
 0x1ca   :  { %v3012_v26 = vcombine.low %v5283_v44, %v5111_v12  ;;  %v3019_v58 = vrot.slane %v3011_v16, %v4601_v8  ;;  %v2078_v56 = vrot.slane %v2077_v57, 2  ;;  %v5293_v39 = vsel %vm4609_vm6, %v4198_v19, %v2687_v37  ;;  %v4529_v16 = vld.sshfl [vmem:[#allocation2 + $0x28] sm:$0xf pattern:$0x76325410] }
 0x1cb   :  { %v2706_v54 = vcombine.low %v5273_v62, %v5293_v39  ;;  %v2713_v12 = vrot.slane %v2705_v46, %v4601_v8  ;;  %v2672_v61 = vcombine.high %v4194_v42, %v4194_v42  ;;  %v4199_v6 = vrot.slane %v4191_v18, 9  ;;  %v4504_v18 = vld [vmem:[%s5474_s4 + $0xb8] sm:$0xff]   ;;  %v4281_v13 = vld.sshfl [vmem:[%s5472_s0 + $0x24] sm:$0x13 pattern:$0x76325410] }
 0x1cc   :  { %v3026_v0 = vrot.slane %v3012_v26, %v4601_v8  ;;  %v2083_v4 = vsel %vm4733_vm13, %v2078_v56, %v2082_v20  ;;  %v2691_v27 = vrot.slane %v2648_v47, 7  ;;  %v4200_v51 = vrot.slane %v4192_v5, 9  ;;  %v4530_v57 = vld.sshfl [vmem:[#allocation2 + $0x18] sm:$0xf pattern:$0x76325410]  ;;  %4372 = vmatpush3.bf16.msra.mxu0 %v4504_v18 }
 0x1cd   :  { %v2129_v10 = vcombine.low %v5115_v31, %v2083_v4  ;;  %v2720_v7 = vrot.slane %v2706_v54, %v4601_v8  ;;  %v2695_v14 = vrot.slane %v2656_v55, 7  ;;  %v4201_v24 = vrot.slane %v4193_v49, 9  ;;  %v4531_v47 = vld.sshfl [vmem:[#allocation2 + $0x20] sm:$0xf pattern:$0x76325410] }
 0x1ce   :  { %v3027_v22 = vcombine.low %v3019_v58, %v3026_v0  ;;  %v2692_v23 = vsel %vm4609_vm6, %v4199_v6, %v2691_v27  ;;  %v2699_v29 = vrot.slane %v2664_v36, 7  ;;  %v4202_v35 = vrot.slane %v4194_v42, 9  ;;  %v4276_v6 = vld.sshfl [vmem:[%s5472_s0 + $0x8] sm:$0x13 pattern:$0x76325410] }
 0x1cf   :  { %v2137_v31 = vrot.slane %v2129_v10, %v4601_v8  ;;  %v2721_v38 = vcombine.low %v2713_v12, %v2720_v7  ;;  %v2696_v5 = vsel %vm4609_vm6, %v4200_v51, %v2695_v14  ;;  %v2703_v15 = vrot.slane %v2672_v61, 7  ;;  %v4277_v7 = vld.sshfl [vmem:[%s5472_s0 + $0xc] sm:$0x13 pattern:$0x76325410] }
 0x1d0   :  { %3030 = vrot.lane.b32.xlu0 %v3027_v22, %s4533_s19  ;;  %v2700_v49 = vsel %vm4609_vm6, %v4201_v24, %v2699_v29  ;;  %v2722_v20 = vcombine.low %v2692_v23, %v2696_v5  ;;  %v2267_v19 = vcombine.low %v5119_v50, %v5215_v11  ;;  %v2268_v43 = vcombine.low %v5251_v34, %v5273_v62 }
 0x1d1   :  { %v2145_v37 = vcombine.low %v2137_v31, %v3019_v58  ;;  %v2284_v42 = vcombine.low %v5133_v25, %v2692_v23  ;;  %v2285_v46 = vcombine.low %v2696_v5, %v2700_v49  ;;  %v2704_v55 = vsel %vm4609_vm6, %v4202_v35, %v2703_v15  ;;  %v4278_v23 = vld.sshfl [vmem:[%s5472_s0 + $0x10] sm:$0x13 pattern:$0x76325410] }
 0x1d2   :  { %v2730_v26 = vrot.slane %v2722_v20, %v4601_v8  ;;  %v2275_v56 = vrot.slane %v2267_v19, %v4601_v8  ;;  %v1897_v50 = vcombine.low %v5169_v33, %v5171_v60  ;;  %v2723_v11 = vcombine.low %v2700_v49, %v2704_v55 }
 0x1d3   :  { %2148 = vrot.lane.b32.xlu1 %v2145_v37, %s4533_s19  ;;  %v2282_v34 = vrot.slane %v2268_v43, %v4601_v8  ;;  %v2292_v25 = vrot.slane %v2284_v42, %v4601_v8  ;;  %v2299_v62 = vrot.slane %v2285_v46, %v4601_v8  ;;  %v2797_v33 = vcombine.low %v4528_v28, %v4529_v16 }
 0x1d4   :  { %1918 = vst.msk [vmem:[#allocation4] sm:$0xff] %vm1917_vm5, %v1897_v50  ;;  %v2737_v58 = vrot.slane %v2723_v11, %v4601_v8  ;;  %v2556_v60 = vcombine.low %v5211_v9, %v5227_v30  ;;  %v2563_v54 = vrot.slane %v2555_v41, %v4601_v8  ;;  %v2572_v12 = vcombine.low %v2083_v4, %v5241_v2  ;;  %v4275_v4 = vld.sshfl [vmem:[%s5472_s0 + $0x4] sm:$0x13 pattern:$0x76325410]  ;;  %v4500_v50 = vld [vmem:[%s5474_s4 + $0x108] sm:$0xff]  }
 0x1d5   :  { %v2283_v63 = vcombine.low %v2275_v56, %v2282_v34  ;;  %v2300_v1 = vcombine.low %v2292_v25, %v2299_v62  ;;  %v1914_v45 = vcombine.low %v4530_v57, %v4531_v47  ;;  %v2573_v52 = vcombine.low %v5261_v40, %v5283_v44  ;;  %2801 = vst.msk [vmem:[#allocation4 + $0x40] sm:$0xff] %vm1917_vm5, %v2797_v33  ;;  %v4279_v56 = vld.sshfl [vmem:[%s5472_s0 + $0x1c] sm:$0x13 pattern:$0x76325410] }
 0x1d6   :  { %v2570_v9 = vrot.slane %v2556_v60, %v4601_v8  ;;  %v2580_v30 = vrot.slane %v2572_v12, %v4601_v8  ;;  %v3149_v21 = vcombine.low %v5293_v39, %v5127_v17  ;;  %v2738_v59 = vcombine.low %v2730_v26, %v2737_v58  ;;  %v4282_v33 = vld.sshfl [vmem:[%s5472_s0 + $0x28] sm:$0x13 pattern:$0x76325410] }
 0x1d7   :  { %2739 = vrot.lane.b32.xlu1 %v2721_v38, %s4533_s19  ;;  %2303 = vst.msk [vmem:[#allocation4 + $0x8] sm:$0xff] %vm1917_vm5, %v2283_v63  ;;  %2304 = vst.msk [vmem:[#allocation4 + $0x30] sm:$0xff] %vm1917_vm5, %v2300_v1  ;;  %v2587_v41 = vrot.slane %v2573_v52, %v4601_v8  ;;  %v3166_v2 = vcombine.low %v2704_v55, %v5137_v53  ;;  %vm2152_vm6 = vcmask 1048064   ;;  %v3740_v27 = vshrl.u32 %v4275_v4, 16 }
 0x1d8   :  { %1919 = vst.msk [vmem:[#allocation4 + $0x28] sm:$0xff] %vm1917_vm5, %v1914_v45  ;;  %v2571_v36 = vcombine.low %v2563_v54, %v2570_v9  ;;  %v3163_v61 = vrot.slane %v3149_v21, %v4601_v8  ;;  %v3743_v10 = vshll.u32 %v4275_v4, 16  ;;  %v3754_v51 = vshrl.u32 %v4276_v6, 16  ;;  %v4503_v9 = vld [vmem:[%s5474_s4 + $0x110] sm:$0xff]  }
 0x1d9   :  { %v2588_v40 = vcombine.low %v2580_v30, %v2587_v41  ;;  %v3180_v44 = vrot.slane %v3166_v2, %v4601_v8  ;;  %v3757_v14 = vshll.u32 %v4276_v6, 16  ;;  %v3682_v24 = vcombine.high %v4275_v4, %v4275_v4 }
 0x1da   :  { %2591 = vst.msk [vmem:[#allocation4 + $0x10] sm:$0xff] %vm1917_vm5, %v2571_v36  ;;  %v3164_v0 = vcombine.low %v2282_v34, %v3163_v61  ;;  %v3690_v32 = vcombine.high %v4276_v6, %v4276_v6  ;;  %v3742_v18 = vrot.slane %v3740_v27, 6  ;;  %v3745_v31 = vrot.slane %v3743_v10, 7  ;;  %v4505_v10 = vld [vmem:[%s5474_s4 + $0x118] sm:$0xff]  }
 0x1db   :  { %2741 = vrot.lane.b32.xlu1 %v2738_v59, %s4533_s19  ;;  %2592 = vst.msk [vmem:[#allocation4 + $0x38] sm:$0xff] %vm1917_vm5, %v2588_v40  ;;  %v3181_v17 = vcombine.low %v2299_v62, %v3180_v44  ;;  %v3768_v38 = vshrl.u32 %v4277_v7, 16  ;;  %v3771_v5 = vshll.u32 %v4277_v7, 16  ;;  %v3756_v35 = vrot.slane %v3754_v51, 6 }
 0x1dc   :  { %3184 = vst.msk [vmem:[#allocation4 + $0x20] sm:$0xff] %vm1917_vm5, %v3164_v0  ;;  %v3759_v28 = vrot.slane %v3757_v14, 7  ;;  %v3782_v49 = vshrl.u32 %v4278_v23, 16  ;;  %v3785_v15 = vshll.u32 %v4278_v23, 16  ;;  %v5385_v19 = vshll.u32 %v3682_v24, 16 }
 0x1dd   :  { %3185 = vst.msk [vmem:[#allocation4 + $0x48] sm:$0xff] %vm1917_vm5, %v3181_v17  ;;  %v3698_v16 = vcombine.high %v4277_v7, %v4277_v7  ;;  %v3706_v57 = vcombine.high %v4278_v23, %v4278_v23  ;;  %v5388_v37 = vshll.u32 %v3690_v32, 16  ;;  %v3770_v43 = vrot.slane %v3768_v38, 6 }
 0x1de   :  { %v3773_v42 = vrot.slane %v3771_v5, 7  ;;  %v3746_v46 = vor.u32 %v3745_v31, %v3742_v18  ;;  %v3760_v47 = vor.u32 %v3759_v28, %v3756_v35  ;;  %v3784_v55 = vrot.slane %v3782_v49, 6  ;;  %v4280_v34 = vld.sshfl [vmem:[%s5472_s0 + $0x20] sm:$0x13 pattern:$0x76325410] }
 0x1df   :  { %v3787_v26 = vrot.slane %v3785_v15, 7  ;;  %v3751_v11 = vrot.slane %v5385_v19, 7  ;;  %v3777_v62 = vshll.u32 %v3698_v16, 16  ;;  %v3791_v1 = vshll.u32 %v3706_v57, 16  ;;  %v4506_v28 = vld [vmem:[%s5477_s7] sm:$0xff]  }
 0x1e0   :  { %v3774_v63 = vor.u32 %v3773_v42, %v3770_v43  ;;  %v3747_v60 = vrot.slane %v3746_v46, 2  ;;  %v3761_v54 = vrot.slane %v3760_v47, 2  ;;  %v3765_v12 = vrot.slane %v5388_v37, 7 }
 0x1e1   :  { %v3788_v45 = vor.u32 %v3787_v26, %v3784_v55  ;;  %v3796_v30 = vshrl.u32 %v4279_v56, 16  ;;  %v3799_v21 = vshll.u32 %v4279_v56, 16  ;;  %v3810_v59 = vshrl.u32 %v4280_v34, 16 }
 0x1e2   :  { %v3813_v41 = vshll.u32 %v4280_v34, 16  ;;  %v3824_v2 = vshrl.u32 %v4281_v13, 16  ;;  %v3827_v36 = vshll.u32 %v4281_v13, 16  ;;  %v3838_v61 = vshrl.u32 %v4282_v33, 16 }
 0x1e3   :  { %v3775_v40 = vrot.slane %v3774_v63, 2  ;;  %v3779_v44 = vrot.slane %v3777_v62, 7  ;;  %v3793_v0 = vrot.slane %v3791_v1, 7  ;;  %v3714_v17 = vcombine.high %v4279_v56, %v4279_v56  ;;  %v3190_v63 = vld [vmem:[#allocation4 + $0x20] sm:$0xff] }
 0x1e4   :  { %v3730_v4 = vcombine.high %v4281_v13, %v4281_v13  ;;  %v3738_v6 = vcombine.high %v4282_v33, %v4282_v33  ;;  %v3798_v7 = vrot.slane %v3796_v30, 6  ;;  %v3801_v51 = vrot.slane %v3799_v21, 7 }
 0x1e5   :  { %v3812_v14 = vrot.slane %v3810_v59, 6  ;;  %v3826_v23 = vrot.slane %v3824_v2, 6  ;;  %v3829_v24 = vrot.slane %v3827_v36, 7  ;;  %v3752_v31 = vsel %vm4733_vm13, %v3747_v60, %v3751_v11  ;;  %v3195_v2 = vld [vmem:[#allocation4 + $0x48] sm:$0xff] }
 0x1e6   :  { %v3766_v38 = vsel %vm4733_vm13, %v3761_v54, %v3765_v12  ;;  %v3780_v5 = vsel %vm4733_vm13, %v3775_v40, %v3779_v44  ;;  %v3805_v35 = vshll.u32 %v3714_v17, 16  ;;  %v3802_v15 = vor.u32 %v3801_v51, %v3798_v7 }
 0x1e7   :  { %v3833_v19 = vshll.u32 %v3730_v4, 16  ;;  %v3830_v57 = vor.u32 %v3829_v24, %v3826_v23  ;;  %v3847_v43 = vshll.u32 %v3738_v6, 16  ;;  %v3855_v46 = vcombine.low %v3752_v31, %v3766_v38 }
 0x1e8   :  { %v3807_v47 = vrot.slane %v3805_v35, 7  ;;  %v3803_v26 = vrot.slane %v3802_v15, 2 }
 0x1e9   :  { %v3849_v62 = vrot.slane %v3847_v43, 7  ;;  %v3863_v1 = vrot.slane %v3855_v46, %v4601_v8  ;;  %v4266_v46 = vld [vmem:[%s5480_s6] ss:$0 sm:$0xff] }
 0x1ea   :  { %v3808_v60 = vsel %vm4733_vm13, %v3803_v26, %v3807_v47 }
 0x21b   :  { %v2356_v53 = vpop.permute.xlu0 %2355 }
 0x21c   :  { %2361 = vst.msk [vmem:[#allocation4 + $0x8] sm:$0xff] %vm2152_vm6, %v2356_v53  ;;  %v3789_v53 = vrot.slane %v3788_v45, 2 }
 0x21e   :  { %v3794_v49 = vsel %vm4733_vm13, %v3789_v53, %v3793_v0 }
 0x21f   :  { %v3856_v55 = vcombine.low %v3780_v5, %v3794_v49  ;;  %v4265_v49 = vld [vmem:[%s5478_s5] ss:$0 sm:$0xff] }
 0x223   :  { %v3187_v39 = vld [vmem:[#allocation4 + $0x8] sm:$0xff] }
 0x224   :  { %3522 = vmatprep.mubr.bf16.mxu1 %v3187_v39  ;;  %v3722_v39 = vcombine.high %v4280_v34, %v4280_v34  ;;  %v3831_v34 = vrot.slane %v3830_v57, 2 }
 0x22f   :  { %v2358_v22 = vpop.permute.xlu0 %2357 }
 0x230   :  { %2362 = vst.msk [vmem:[#allocation4 + $0x30] sm:$0xff] %vm2152_vm6, %v2358_v22  ;;  %v3815_v22 = vrot.slane %v3813_v41, 7  ;;  %v4507_v41 = vld [vmem:[%s5477_s7 + $0x8] sm:$0xff]  }
 0x232   :  { %v3816_v16 = vor.u32 %v3815_v22, %v3812_v14 }
 0x233   :  { %v2147_v29 = vpop.permute.xlu1 %2146 }
 0x234   :  { %2153 = vst.msk [vmem:[#allocation4] sm:$0xff] %vm2152_vm6, %v2147_v29  ;;  %v3840_v29 = vrot.slane %v3838_v61, 6  ;;  %v3817_v11 = vrot.slane %v3816_v16, 2 }
 0x236   :  { %v3029_v20 = vpop.permute.xlu0 %3028 }
 0x237   :  { %3034 = vst.msk [vmem:[#allocation4 + $0x18] sm:$0xff] %vm2152_vm6, %v3029_v20  ;;  %v3192_v58 = vld [vmem:[#allocation4 + $0x30] sm:$0xff]  ;;  %v3819_v20 = vshll.u32 %v3722_v39, 16 }
 0x239   :  { %v3821_v56 = vrot.slane %v3819_v20, 7 }
 0x23b   :  { %v3186_v25 = vld [vmem:[#allocation4] sm:$0xff]  ;;  %v3822_v54 = vsel %vm4733_vm13, %v3817_v11, %v3821_v56 }
 0x23c   :  { %3523 = vmatmul.mubr.bf16.vlgmr.msra.gmra.mrb[4].mxu1 %v3186_v25  ;;  %v3872_v30 = vcombine.low %v3808_v60, %v3822_v54  ;;  %v4288_v56 = vld [vmem:[%s5481_s9] ss:$0 sm:$0xff] }
 0x23d   :  { %3530 = vmatprep.mubr.bf16.mxu1 %v3192_v58  ;;  %4404 = vmatpush3.bf16.msra.mxu1 %v5267_v3  ;;  %v3841_v3 = vshll.u32 %v4282_v33, 16  ;;  %v3870_v33 = vrot.slane %v3856_v55, %v4601_v8 }
 0x23e   :  { %v3189_v52 = vld [vmem:[#allocation4 + $0x18] sm:$0xff]  ;;  %4405 = vmatprep.subr.bf16.mxu1 %v4500_v50  ;;  %v3880_v36 = vrot.slane %v3872_v30, %v4601_v8 }
 0x23f   :  { %3571 = vmatprep.mubr.bf16.mxu0 %v3189_v52  ;;  %v3843_v32 = vrot.slane %v3841_v3, 7  ;;  %v3871_v59 = vcombine.low %v3863_v1, %v3870_v33 }
 0x241   :  { %4406 = vmatpush3.bf16.msra.mxu1 %v4500_v50  ;;  %v3844_v37 = vor.u32 %v3843_v32, %v3840_v29  ;;  %v3835_v50 = vrot.slane %v3833_v19, 7 }
 0x242   :  { %v3031_v27 = vpop.permute.xlu0 %3030  ;;  %4407 = vmatprep.subr.bf16.mxu1 %v4503_v9 }
 0x243   :  { %3035 = vst.msk [vmem:[#allocation4 + $0x40] sm:$0xff] %vm2152_vm6, %v3031_v27  ;;  %v3845_v25 = vrot.slane %v3844_v37, 2  ;;  %v3836_v12 = vsel %vm4733_vm13, %v3831_v34, %v3835_v50  ;;  %v4287_v37 = vld [vmem:[%s5479_s8] ss:$0 sm:$0xff] }
 0x245   :  { %v2149_v18 = vpop.permute.xlu1 %2148  ;;  %4408 = vmatpush3.bf16.msra.mxu1 %v4503_v9  ;;  %v3850_v45 = vsel %vm4733_vm13, %v3845_v25, %v3849_v62 }
 0x246   :  { %2154 = vst.msk [vmem:[#allocation4 + $0x28] sm:$0xff] %vm2152_vm6, %v2149_v18  ;;  %4409 = vmatprep.subr.bf16.mxu1 %v4505_v10  ;;  %v3873_v21 = vcombine.low %v3836_v12, %v3850_v45 }
 0x248   :  { %v3887_v61 = vrot.slane %v3873_v21, %v4601_v8 }
 0x249   :  { %v2740_v42 = vpop.permute.xlu1 %2739  ;;  %4410 = vmatpush3.bf16.msra.mxu1 %v4505_v10 }
 0x24a   :  { %2745 = vst.msk [vmem:[#allocation4 + $0x10] sm:$0xff] %vm2152_vm6, %v2740_v42  ;;  %4415 = vmatprep.subr.bf16.mxu1 %v4506_v28  ;;  %v3194_v9 = vld [vmem:[#allocation4 + $0x40] sm:$0xff]  ;;  %v3888_v3 = vcombine.low %v3880_v36, %v3887_v61 }
 0x24d   :  { %v2742_v13 = vpop.permute.xlu1 %2741  ;;  %v3191_v58 = vld [vmem:[#allocation4 + $0x28] sm:$0xff] }
 0x24e   :  { %2746 = vst.msk [vmem:[#allocation4 + $0x38] sm:$0xff] %vm2152_vm6, %v2742_v13  ;;  %3531 = vmatmul.mubr.bf16.gmra.mrb[8].mxu1 %v3191_v58 }
 0x24f   :  { %4411 = vmatprep.mubr.msk.bf16.mxu1 %vm1917_vm5, %v3190_v63 }
 0x251   :  { %v3188_v52 = vld [vmem:[#allocation4 + $0x10] sm:$0xff] }
 0x252   :  { %3572 = vmatmul.mubr.bf16.vlgmr.msra.gmra.mrb[8].mxu0 %v3188_v52 }
 0x253   :  { %3579 = vmatprep.mubr.bf16.mxu0 %v3194_v9 }
 0x255   :  { %v3193_v48 = vld [vmem:[#allocation4 + $0x38] sm:$0xff] }
 0x256   :  { %4412 = vmatmul.mubr.msk.bf16.vlgmr.msra.gmra.mrb[12].mxu1 %vm1917_vm5, %v3195_v2 }
 0x257   :  { %4416 = vmatpush3.bf16.msra.mxu1 %v4506_v28  ;;  %4419 = vmatprep.mubr.msk.bf16.mxu1 %vm105_vm14, %v3871_v59 }
 0x258   :  { %4417 = vmatprep.subr.bf16.mxu1 %v4507_v41 }
 0x25a   :  { %3580 = vmatmul.mubr.bf16.gmra.mrb[12].mxu0 %v3193_v48 }
 0x25b   :  { %4418 = vmatpush3.bf16.msra.mxu1 %v4507_v41 }
 0x25e   :  { %4420 = vmatmul.mubr.msk.bf16.vlgmr.msra.gmra.mrb[16].mxu1 %vm105_vm14, %v3888_v3 }
 0x30f   :  { %v4345_v40 = vpop.f32.mrb[4].mxu1 }
 0x310   :  { %v4346_v44 = vpop.f32.mrb[5].mxu1 }
 0x311   :  { %v4347_v0 = vadd.f32 %v4346_v44, %v4345_v40  ;;  %v4348_v17 = vpop.f32.mrb[6].mxu1 }
 0x312   :  { %v4349_v53 = vpop.f32.mrb[7].mxu1 }
 0x313   :  { %v4350_v39 = vadd.f32 %v4349_v53, %v4348_v17 }
 0x321   :  { %v4351_v4 = vpop.f32.mrb[8].mxu1 }
 0x322   :  { %v4352_v6 = vpop.f32.mrb[9].mxu1 }
 0x323   :  { %v4353_v27 = vadd.f32 %v4352_v6, %v4351_v4  ;;  %v4354_v8 = vpop.f32.mrb[10].mxu1 }
 0x324   :  { %v4355_v10 = vpop.f32.mrb[11].mxu1 }
 0x325   :  { %v4356_v7 = vadd.f32 %v4355_v10, %v4354_v8  ;;  %v4373_v51 = vpop.f32.mrb[8].mxu0 }
 0x326   :  { %v4374_v14 = vpop.f32.mrb[9].mxu0 }
 0x327   :  { %v4375_v22 = vadd.f32 %v4374_v14, %v4373_v51  ;;  %v4376_v23 = vpop.f32.mrb[10].mxu0 }
 0x328   :  { %v4377_v24 = vpop.f32.mrb[11].mxu0 }
 0x329   :  { %v4378_v29 = vadd.f32 %v4377_v24, %v4376_v23  ;;  %v4413_v32 = vpop.f32.mrb[12].mxu1  ;;  %v3574_v18 = vadd.f32 %v4375_v22, %v4347_v0 }
 0x32a   :  { %v3622_v31 = vpop.f32.mrb[13].mxu1 }
 0x32b   :  { %v3623_v38 = vadd.f32 %v3622_v31, %v3574_v18  ;;  %v4414_v5 = vpop.f32.mrb[14].mxu1  ;;  %v3577_v35 = vadd.f32 %v4378_v29, %v4350_v39 }
 0x32c   :  { %v3625_v28 = vpop.f32.mrb[15].mxu1 }
 0x32d   :  { %v3626_v15 = vadd.f32 %v3625_v28, %v3577_v35  ;;  %v4379_v20 = vpop.f32.mrb[12].mxu0  ;;  %v3644_v43 = vmul.f32 %v4265_v49, %v3623_v38 }
 0x32e   :  { %v4380_v19 = vpop.f32.mrb[13].mxu0 }
 0x32f   :  { %v4381_v16 = vadd.f32 %v4380_v19, %v4379_v20  ;;  %v4382_v57 = vpop.f32.mrb[14].mxu0  ;;  %v3645_v50 = vmul.f32 %v4265_v49, %v3626_v15  ;;  %v3655_v63 = vadd.f32 %v4266_v46, %v3644_v43 }
 0x330   :  { %v4383_v42 = vpop.f32.mrb[15].mxu0 }
 0x331   :  { %v3582_v47 = vadd.f32 %v4381_v16, %v4353_v27  ;;  %v4384_v55 = vadd.f32 %v4383_v42, %v4382_v57  ;;  %v4421_v26 = vpop.f32.mrb[16].mxu1  ;;  %v3656_v9 = vadd.f32 %v4266_v46, %v3645_v50 }
 0x332   :  { %v3965_v11 = vmul.f32 %v4421_v26, %v4287_v37  ;;  %v3941_v34 = vpop.f32.mrb[17].mxu1 }
 0x333   :  { %v3631_v25 = vadd.f32 %v4413_v32, %v3582_v47  ;;  %v3585_v62 = vadd.f32 %v4384_v55, %v4356_v7  ;;  %v3963_v13 = vmul.f32 %v4287_v37, %v3941_v34  ;;  %v4422_v58 = vpop.f32.mrb[18].mxu1 }
 0x334   :  { %v3976_v1 = vadd.f32 %v4288_v56, %v3965_v11  ;;  %v3966_v33 = vmul.f32 %v4422_v58, %v4287_v37  ;;  %v3944_v60 = vpop.f32.mrb[19].mxu1 }
 0x335   :  { %v3646_v54 = vmul.f32 %v4265_v49, %v3631_v25  ;;  %v3634_v12 = vadd.f32 %v4414_v5, %v3585_v62  ;;  %v3974_v45 = vadd.f32 %v4288_v56, %v3963_v13  ;;  %v3964_v52 = vmul.f32 %v4287_v37, %v3944_v60 }
 0x336   :  { %v3977_v2 = vadd.f32 %v4288_v56, %v3966_v33 }
 0x337   :  { %v3647_v30 = vmul.f32 %v4265_v49, %v3634_v12  ;;  %v3657_v21 = vadd.f32 %v4266_v46, %v3646_v54  ;;  %v3978_v59 = vadd.f32 %v3974_v45, %v3655_v63  ;;  %v3975_v41 = vadd.f32 %v4288_v56, %v3964_v52 }
 0x339   :  { %v3980_v36 = vadd.f32 %v3976_v1, %v3657_v21  ;;  %v3982_v61 = vmax.f32 %v3978_v59, 0.0  ;;  %v3658_v48 = vadd.f32 %v4266_v46, %v3647_v30  ;;  %v3979_v3 = vadd.f32 %v3975_v41, %v3656_v9 }
 0x33b   :  { %v3984_v40 = vmax.f32 %v3980_v36, 0.0  ;;  %v4293_v44 = vpack.c.bf16 %v3982_v61, %v3982_v61  ;;  %v3981_v0 = vadd.f32 %v3977_v2, %v3658_v48  ;;  %v3983_v17 = vmax.f32 %v3979_v3, 0.0 }
 0x33d   :  { %v4295_v53 = vpack.c.bf16 %v3984_v40, %v3984_v40  ;;  %4003 = vst.msk [vmem:[%s5482_s10] sm:$0xf] %vm4002_vm7, %v4293_v44  ;;  %v3985_v39 = vmax.f32 %v3981_v0, 0.0  ;;  %v4294_v4 = vpack.c.bf16 %v3983_v17, %v3983_v17 }
 0x33f   :  { %4005 = vst.msk [vmem:[%s5482_s10 + $0x8] sm:$0xf] %vm4002_vm7, %v4295_v53  ;;  %v4296_v6 = vpack.c.bf16 %v3985_v39, %v3985_v39  ;;  %4004 = vst.msk [vmem:[%s5482_s10 + $0x4] sm:$0xf] %vm4002_vm7, %v4294_v4 }
 0x341   :  { %4006 = vst.msk [vmem:[%s5482_s10 + $0xc] sm:$0xf] %vm4002_vm7, %v4296_v6 }

// kernel: _lambda_.6
= control target key start
LH: loop header
LB: loop body
LE: loop exit
PB: predicated region body
PF: predicated region fallthrough
CT: control target
= control target key end

     0   :  { %vm526_vm0 = vcmask 1042432   ;;  %vm527_vm1 = vcmask 1046532   ;;  %vm178_vm3 = vsmask.f32 3328  ;;  %vm179_vm4 = vsmask.f32 7440  ;;  %s8005_s0 = inlined_call_operand.vmem [shape: bf16[2,10,10,32], index: 0, kind: input, shape index: {}]   ;;  %s8006_s1 = inlined_call_operand.vmem [shape: bf16[288,32], index: 1, kind: input, shape index: {}]   ;;  %s8007_s4 = inlined_call_operand.vmem [shape: bf16[288,32], index: 4, kind: input, shape index: {}]   ;;  %s8008_s2 = inlined_call_operand.vmem [shape: f32[1,32], index: 2, kind: input, shape index: {}]   ;;  %s8009_s3 = inlined_call_operand.vmem [shape: f32[1,32], index: 3, kind: input, shape index: {}]   ;;  %s8010_s5 = inlined_call_operand.vmem [shape: f32[1,32], index: 5, kind: input, shape index: {}]   ;;  %s8011_s6 = inlined_call_operand.vmem [shape: f32[1,32], index: 6, kind: input, shape index: {}]   ;;  %s8012_s7 = inlined_call_operand.vmem [shape: bf16[2,64,32], index: 7, kind: output, shape index: {}]  }
   0x1   :  { %vm5971_vm2 = vmor %vm526_vm0, %vm527_vm1  ;;  %v5194_v1 = vld [vmem:[%s8005_s0 + $0x8] sm:$0xe]  ;;  %v5195_v2 = vld [vmem:[%s8005_s0 + $0xc] sm:$0x1]  ;;  %s5927_s19 = smov 64   ;;  %s5928_s28 = smov 32  }
   0x2   :  { %v5196_v3 = vld [vmem:[%s8005_s0 + $0x10] sm:$0xe]  ;;  %v5197_v4 = vld [vmem:[%s8005_s0 + $0x14] sm:$0x1]  ;;  %v5226_v5 = vrot.slane %v5194_v1, 9  ;;  %v1102_v6 = vrot.slane %v5195_v2, 5  ;;  %vm6062_vm5 = vmor %vm178_vm3, %vm179_vm4 }
   0x3   :  { %v5227_v7 = vrot.slane %v5196_v3, 9  ;;  %v1106_v8 = vrot.slane %v5197_v4, 5  ;;  %v5838_v10 = vld [vmem:[%s8005_s0 + $0x10] ss:$8 sps:$4 sm:$0xff]   ;;  %v5199_v12 = vld [vmem:[%s8005_s0 + $0x1c] sm:$0x1] }
   0x4   :  { %v1103_v9 = vsel %vm5971_vm2, %v5226_v5, %v1102_v6  ;;  %v5198_v11 = vld [vmem:[%s8005_s0 + $0x18] sm:$0xe]  ;;  %v5200_v14 = vld [vmem:[%s8005_s0 + $0x20] sm:$0xe]  ;;  %v5201_v15 = vld [vmem:[%s8005_s0 + $0x24] sm:$0x1]  ;;  %1277 = vrot.lane.b32.xlu1 %v5838_v10, %s5927_s19 }
   0x5   :  { %v1107_v13 = vsel %vm5971_vm2, %v5227_v7, %v1106_v8  ;;  %v5228_v16 = vrot.slane %v5198_v11, 9  ;;  %v1110_v17 = vrot.slane %v5199_v12, 5  ;;  %v5229_v19 = vrot.slane %v5200_v14, 9  ;;  %v462_v21 = vld [vmem:[%s8005_s0] sm:$0xe]  ;;  %v5856_v57 = vld [vmem:[%s8006_s1 + $0x48] sm:$0xff]  }
   0x6   :  { %v5242_v18 = vcombine.low %v1103_v9, %v1107_v13  ;;  %v1114_v20 = vrot.slane %v5201_v15, 5  ;;  %v463_v22 = vld [vmem:[%s8005_s0 + $0x4] sm:$0x1]  ;;  %v464_v24 = vld [vmem:[%s8005_s0 + $0x8] sm:$0xe]  ;;  %v5106_v26 = vrot.slane %v462_v21, 9 }
   0x7   :  { %v1111_v23 = vsel %vm5971_vm2, %v5228_v16, %v1110_v17  ;;  %v465_v25 = vld [vmem:[%s8005_s0 + $0xc] sm:$0x1]  ;;  %v531_v27 = vrot.slane %v463_v22, 5  ;;  %v5107_v29 = vrot.slane %v464_v24, 9  ;;  %v146_v31 = vld [vmem:[%s8005_s0] sm:$0xf] }
   0x8   :  { %1188 = vrot.lane.b32.xlu0 %v5242_v18, %s5928_s28  ;;  %v1115_v28 = vsel %vm5971_vm2, %v5229_v19, %v1114_v20  ;;  %v535_v30 = vrot.slane %v465_v25, 5  ;;  %v147_v32 = vld [vmem:[%s8005_s0 + $0x4] sm:$0x1]  ;;  %v148_v35 = vld [vmem:[%s8005_s0 + $0x8] sm:$0xf]  ;;  %v182_v37 = vshrl.u32 %v146_v31, 16 }
   0x9   :  { %v5243_v33 = vcombine.low %v1111_v23, %v1115_v28  ;;  %v532_v34 = vsel %vm5971_vm2, %v5106_v26, %v531_v27  ;;  %v149_v36 = vld [vmem:[%s8005_s0 + $0xc] sm:$0x1]  ;;  %v185_v38 = vshll.u32 %v146_v31, 16  ;;  %v191_v40 = vshll.u32 %v147_v32, 16  ;;  %v5854_v47 = vld [vmem:[%s8006_s1 + $0x40] sm:$0xff]   ;;  %s5929_s13 = smov 96  }
   0xa   :  { %v536_v39 = vsel %vm5971_vm2, %v5107_v29, %v535_v30  ;;  %v196_v41 = vshrl.u32 %v148_v35, 16  ;;  %v199_v42 = vshll.u32 %v148_v35, 16  ;;  %v184_v44 = vrot.slane %v182_v37, 4  ;;  %v5839_v51 = vld [vmem:[%s8005_s0 + $0x8] ss:$8 sps:$4 sm:$0xff]   ;;  %v5855_v52 = vld [vmem:[%s8006_s1] sm:$0xff]   ;;  %5642 = vmatprep.subr.bf16.mxu0 %v5854_v47 }
   0xb   :  { %v5122_v43 = vcombine.low %v532_v34, %v536_v39  ;;  %v187_v45 = vrot.slane %v185_v38, 5  ;;  %v205_v46 = vshll.u32 %v149_v36, 16  ;;  %v193_v48 = vrot.slane %v191_v40, 5  ;;  %v5274_v55 = vld [vmem:[%s8005_s0 + $0x10] sm:$0xf]  ;;  %5643 = vmatpush3.bf16.msra.mxu0 %v5855_v52  ;;  %v5857_v16 = vld [vmem:[%s8006_s1 + $0x8] sm:$0xff]  }
   0xc   :  { %1190 = vrot.lane.b32.xlu0 %v5243_v33, %s5928_s28  ;;  %v198_v49 = vrot.slane %v196_v41, 4  ;;  %v201_v50 = vrot.slane %v199_v42, 5  ;;  %v5275_v56 = vld [vmem:[%s8005_s0 + $0x14] sm:$0x1]  ;;  %v5276_v60 = vld [vmem:[%s8005_s0 + $0x18] sm:$0xf]  ;;  %5644 = vmatprep.subr.bf16.mxu0 %v5856_v57 }
   0xd   :  { %617 = vrot.lane.b32.xlu1 %v5122_v43, %s5927_s19  ;;  %v188_v53 = vor.u32 %v187_v45, %v184_v44  ;;  %v207_v54 = vrot.slane %v205_v46, 5  ;;  %v5277_v61 = vld [vmem:[%s8005_s0 + $0x1c] sm:$0x1]  ;;  %v1342_v62 = vshrl.u32 %v5274_v55, 16  ;;  %v1345_v63 = vshll.u32 %v5274_v55, 16 }
   0xe   :  { %v202_v59 = vor.u32 %v201_v50, %v198_v49  ;;  %v1351_v2 = vshll.u32 %v5275_v56, 16  ;;  %v1356_v3 = vshrl.u32 %v5276_v60, 16  ;;  %v1359_v4 = vshll.u32 %v5276_v60, 16  ;;  %v150_v5 = vld [vmem:[%s8005_s0 + $0x10] sm:$0xf] }
   0xf   :  { %v189_v1 = vrot.slane %v188_v53, 4  ;;  %v1344_v7 = vrot.slane %v1342_v62, 4  ;;  %v1347_v8 = vrot.slane %v1345_v63, 5  ;;  %v1365_v9 = vshll.u32 %v5277_v61, 16  ;;  %v151_v10 = vld [vmem:[%s8005_s0 + $0x14] sm:$0x1]  ;;  %5645 = vmatpush3.bf16.msra.mxu0 %v5857_v16 }
  0x10   :  { %v203_v6 = vrot.slane %v202_v59, 4  ;;  %v1353_v12 = vrot.slane %v1351_v2, 5  ;;  %v1358_v13 = vrot.slane %v1356_v3, 4  ;;  %v1361_v14 = vrot.slane %v1359_v4, 5  ;;  %v152_v15 = vld [vmem:[%s8005_s0 + $0x18] sm:$0xf] }
  0x11   :  { %v194_v11 = vsel %vm6062_vm5, %v189_v1, %v193_v48  ;;  %707 = vrot.lane.b32.xlu1 %v5839_v51, %s5929_s13  ;;  %v1348_v18 = vor.u32 %v1347_v8, %v1344_v7  ;;  %v1367_v19 = vrot.slane %v1365_v9, 5  ;;  %v153_v20 = vld [vmem:[%s8005_s0 + $0x1c] sm:$0x1]  ;;  %v210_v21 = vshrl.u32 %v150_v5, 16  ;;  %v466_v30 = vld [vmem:[%s8005_s0 + $0x10] sm:$0xe] }
  0x12   :  { %v208_v17 = vsel %vm6062_vm5, %v203_v6, %v207_v54  ;;  %v1362_v23 = vor.u32 %v1361_v14, %v1358_v13  ;;  %v213_v24 = vshll.u32 %v150_v5, 16  ;;  %v219_v25 = vshll.u32 %v151_v10, 16  ;;  %v467_v35 = vld [vmem:[%s8005_s0 + $0x14] sm:$0x1]  ;;  %v468_v39 = vld [vmem:[%s8005_s0 + $0x18] sm:$0xe] }
  0x13   :  { %v5098_v22 = vcombine.low %v194_v11, %v208_v17  ;;  %v1349_v26 = vrot.slane %v1348_v18, 4  ;;  %v212_v27 = vrot.slane %v210_v21, 4  ;;  %v224_v28 = vshrl.u32 %v152_v15, 16  ;;  %v469_v40 = vld [vmem:[%s8005_s0 + $0x1c] sm:$0x1]  ;;  %v5858_v63 = vld [vmem:[%s8006_s1 + $0x50] sm:$0xff]  }
  0x14   :  { %v227_v29 = vshll.u32 %v152_v15, 16  ;;  %v1363_v31 = vrot.slane %v1362_v23, 4  ;;  %v215_v32 = vrot.slane %v213_v24, 5  ;;  %v221_v33 = vrot.slane %v219_v25, 5  ;;  %v5278_v45 = vld [vmem:[%s8005_s0 + $0x20] sm:$0xf]  ;;  %5646 = vmatprep.subr.bf16.mxu0 %v5858_v63 }
  0x15   :  { %429 = vrot.lane.b32.xlu0 %v5098_v22, %s5928_s28  ;;  %v233_v34 = vshll.u32 %v153_v20, 16  ;;  %v1354_v36 = vsel %vm6062_vm5, %v1349_v26, %v1353_v12  ;;  %v226_v37 = vrot.slane %v224_v28, 4  ;;  %v5108_v44 = vrot.slane %v466_v30, 9  ;;  %v5279_v46 = vld [vmem:[%s8005_s0 + $0x24] sm:$0x1] }
  0x16   :  { %v229_v38 = vrot.slane %v227_v29, 5  ;;  %v1368_v41 = vsel %vm6062_vm5, %v1363_v31, %v1367_v19  ;;  %v216_v42 = vor.u32 %v215_v32, %v212_v27  ;;  %v5840_v49 = vld [vmem:[%s8005_s0 + $0x20] ss:$8 sps:$4 sm:$0xff]   ;;  %v539_v50 = vrot.slane %v467_v35, 5  ;;  %v5281_v53 = vld [vmem:[%s8005_s0 + $0x2c] sm:$0x1] }
  0x17   :  { %v235_v43 = vrot.slane %v233_v34, 5  ;;  %v5306_v47 = vcombine.low %v1354_v36, %v1368_v41  ;;  %v5109_v51 = vrot.slane %v468_v39, 9  ;;  %v5280_v52 = vld [vmem:[%s8005_s0 + $0x28] sm:$0xf]  ;;  %v543_v55 = vrot.slane %v469_v40, 5  ;;  %v5859_v36 = vld [vmem:[%s8006_s1 + $0x10] sm:$0xff]  }
  0x18   :  { %v230_v48 = vor.u32 %v229_v38, %v226_v37  ;;  %v217_v54 = vrot.slane %v216_v42, 4  ;;  %v1370_v56 = vshrl.u32 %v5278_v45, 16  ;;  %v1373_v57 = vshll.u32 %v5278_v45, 16  ;;  %v5202_v5 = vld [vmem:[%s8005_s0 + $0x28] sm:$0xe]  ;;  %5647 = vmatpush3.bf16.msra.mxu0 %v5859_v36 }
  0x19   :  { %1589 = vrot.lane.b32.xlu0 %v5306_v47, %s5929_s13  ;;  %v540_v60 = vsel %vm5971_vm2, %v5108_v44, %v539_v50  ;;  %v1379_v61 = vshll.u32 %v5279_v46, 16  ;;  %v1384_v62 = vshrl.u32 %v5280_v52, 16  ;;  %v544_v2 = vsel %vm5971_vm2, %v5109_v51, %v543_v55  ;;  %v5203_v9 = vld [vmem:[%s8005_s0 + $0x2c] sm:$0x1]  ;;  %v5204_v10 = vld [vmem:[%s8005_s0 + $0x30] sm:$0xe] }
  0x1a   :  { %v231_v59 = vrot.slane %v230_v48, 4  ;;  %v222_v1 = vsel %vm6062_vm5, %v217_v54, %v221_v33  ;;  %v1372_v3 = vrot.slane %v1370_v56, 4  ;;  %v1375_v4 = vrot.slane %v1373_v57, 5  ;;  %v5205_v15 = vld [vmem:[%s8005_s0 + $0x34] sm:$0x1] }
  0x1b   :  { %v5123_v7 = vcombine.low %v540_v60, %v544_v2  ;;  %v1386_v8 = vrot.slane %v1384_v62, 4  ;;  %v1387_v13 = vshll.u32 %v5280_v52, 16  ;;  %v1393_v14 = vshll.u32 %v5281_v53, 16  ;;  %v154_v16 = vld [vmem:[%s8005_s0 + $0x20] sm:$0xf]  ;;  %v5860_v53 = vld [vmem:[%s8006_s1 + $0x58] sm:$0xff]  }
  0x1c   :  { %v236_v6 = vsel %vm6062_vm5, %v231_v59, %v235_v43  ;;  %v1376_v12 = vor.u32 %v1375_v4, %v1372_v3  ;;  %v5230_v17 = vrot.slane %v5202_v5, 9  ;;  %v1118_v18 = vrot.slane %v5203_v9, 5  ;;  %v155_v21 = vld [vmem:[%s8005_s0 + $0x24] sm:$0x1]  ;;  %v156_v25 = vld [vmem:[%s8005_s0 + $0x28] sm:$0xf]  ;;  %5648 = vmatprep.subr.bf16.mxu0 %v5860_v53 }
  0x1d   :  { %v5099_v11 = vcombine.low %v222_v1, %v236_v6  ;;  %1279 = vrot.lane.b32.xlu0 %v5840_v49, %s5927_s19  ;;  %v5231_v19 = vrot.slane %v5204_v10, 9  ;;  %v1122_v20 = vrot.slane %v5205_v15, 5  ;;  %v1381_v23 = vrot.slane %v1379_v61, 5  ;;  %v157_v29 = vld [vmem:[%s8005_s0 + $0x2c] sm:$0x1]  ;;  %v5861_v60 = vld [vmem:[%s8006_s1 + $0x18] sm:$0xff]  }
  0x1e   :  { %v1377_v22 = vrot.slane %v1376_v12, 4  ;;  %v1389_v24 = vrot.slane %v1387_v13, 5  ;;  %v238_v26 = vshrl.u32 %v154_v16, 16  ;;  %v6161_v27 = vsel %vm5971_vm2, %v5230_v17, %v1118_v18  ;;  %v5841_v34 = vld [vmem:[%s8005_s0 + $0x18] ss:$8 sps:$4 sm:$0xff]   ;;  %5649 = vmatpush3.bf16.msra.mxu0 %v5861_v60 }
  0x1f   :  { %431 = vrot.lane.b32.xlu1 %v5099_v11, %s5928_s28  ;;  %v6165_v28 = vsel %vm5971_vm2, %v5231_v19, %v1122_v20  ;;  %v241_v30 = vshll.u32 %v154_v16, 16  ;;  %v247_v31 = vshll.u32 %v155_v21, 16  ;;  %v1395_v33 = vrot.slane %v1393_v14, 5  ;;  %v470_v41 = vld [vmem:[%s8005_s0 + $0x20] sm:$0xe] }
  0x20   :  { %v1390_v32 = vor.u32 %v1389_v24, %v1386_v8  ;;  %v240_v35 = vrot.slane %v238_v26, 4  ;;  %v252_v39 = vshrl.u32 %v156_v25, 16  ;;  %v255_v40 = vshll.u32 %v156_v25, 16  ;;  %v471_v46 = vld [vmem:[%s8005_s0 + $0x24] sm:$0x1]  ;;  %v5865_v24 = vld [vmem:[%s8006_s1 + $0x68] sm:$0xff]  }
  0x21   :  { %v243_v37 = vrot.slane %v241_v30, 5  ;;  %v249_v38 = vrot.slane %v247_v31, 5  ;;  %v1382_v42 = vsel %vm6062_vm5, %v1377_v22, %v1381_v23  ;;  %v5244_v44 = vcombine.low %v6161_v27, %v6165_v28  ;;  %v472_v47 = vld [vmem:[%s8005_s0 + $0x28] sm:$0xe]  ;;  %v473_v51 = vld [vmem:[%s8005_s0 + $0x2c] sm:$0x1] }
  0x22   :  { %v1391_v43 = vrot.slane %v1390_v32, 4  ;;  %v261_v45 = vshll.u32 %v157_v29, 16  ;;  %v254_v49 = vrot.slane %v252_v39, 4  ;;  %v257_v50 = vrot.slane %v255_v40, 5  ;;  %v5282_v59 = vld [vmem:[%s8005_s0 + $0x30] sm:$0xf] }
  0x23   :  { %619 = vrot.lane.b32.xlu1 %v5123_v7, %s5927_s19  ;;  %v244_v48 = vor.u32 %v243_v37, %v240_v35  ;;  %v5110_v52 = vrot.slane %v470_v41, 9  ;;  %v547_v56 = vrot.slane %v471_v46, 5  ;;  %v5111_v57 = vrot.slane %v472_v47, 9  ;;  %v5283_v2 = vld [vmem:[%s8005_s0 + $0x34] sm:$0x1]  ;;  %v5862_v9 = vld [vmem:[%s8006_s1 + $0x60] sm:$0xff]  }
  0x24   :  { %v1396_v54 = vsel %vm6062_vm5, %v1391_v43, %v1395_v33  ;;  %v263_v55 = vrot.slane %v261_v45, 5  ;;  %v258_v63 = vor.u32 %v257_v50, %v254_v49  ;;  %v551_v1 = vrot.slane %v473_v51, 5  ;;  %v5284_v3 = vld [vmem:[%s8005_s0 + $0x38] sm:$0xf]  ;;  %v5285_v5 = vld [vmem:[%s8005_s0 + $0x3c] sm:$0x1]  ;;  %5650 = vmatprep.subr.bf16.mxu0 %v5862_v9 }
  0x25   :  { %v5307_v61 = vcombine.low %v1382_v42, %v1396_v54  ;;  %v245_v62 = vrot.slane %v244_v48, 4  ;;  %v548_v4 = vsel %vm5971_vm2, %v5110_v52, %v547_v56  ;;  %v1398_v6 = vshrl.u32 %v5282_v59, 16  ;;  %v5863_v17 = vld [vmem:[%s8006_s1 + $0x20] sm:$0xff]   ;;  %v5842_v19 = vld [vmem:[%s8005_s0 + $0x30] ss:$8 sps:$4 sm:$0xff]   ;;  %v5866_v52 = vld [vmem:[%s8006_s1 + $0x28] sm:$0xff]  }
  0x26   :  { %v1401_v7 = vshll.u32 %v5282_v59, 16  ;;  %v1407_v8 = vshll.u32 %v5283_v2, 16  ;;  %v259_v11 = vrot.slane %v258_v63, 4  ;;  %v552_v12 = vsel %vm5971_vm2, %v5111_v57, %v551_v1  ;;  %v5206_v23 = vld [vmem:[%s8005_s0 + $0x38] sm:$0xe]  ;;  %5651 = vmatpush3.bf16.msra.mxu0 %v5863_v17 }
  0x27   :  { %709 = vrot.lane.b32.xlu1 %v5841_v34, %s5929_s13  ;;  %1591 = vrot.lane.b32.xlu0 %v5307_v61, %s5929_s13  ;;  %v250_v10 = vsel %vm6062_vm5, %v245_v62, %v249_v38  ;;  %v1412_v13 = vshrl.u32 %v5284_v3, 16  ;;  %v1400_v14 = vrot.slane %v1398_v6, 4  ;;  %v1415_v21 = vshll.u32 %v5284_v3, 16  ;;  %v5207_v28 = vld [vmem:[%s8005_s0 + $0x3c] sm:$0x1] }
  0x28   :  { %v1403_v15 = vrot.slane %v1401_v7, 5  ;;  %v1409_v16 = vrot.slane %v1407_v8, 5  ;;  %v264_v18 = vsel %vm6062_vm5, %v259_v11, %v263_v55  ;;  %v1421_v22 = vshll.u32 %v5285_v5, 16  ;;  %v5208_v29 = vld [vmem:[%s8005_s0 + $0x40] sm:$0xe]  ;;  %5652 = vmatprep.subr.bf16.mxu0 %v5865_v24  ;;  %v5868_v8 = vld [vmem:[%s8006_s1 + $0x70] sm:$0xff]  }
  0x29   :  { %v1414_v20 = vrot.slane %v1412_v13, 4  ;;  %v5100_v25 = vcombine.low %v250_v10, %v264_v18  ;;  %v5124_v26 = vcombine.low %v548_v4, %v552_v12  ;;  %v5209_v30 = vld [vmem:[%s8005_s0 + $0x44] sm:$0x1]  ;;  %v1417_v31 = vrot.slane %v1415_v21, 5  ;;  %v158_v35 = vld [vmem:[%s8005_s0 + $0x30] sm:$0xf] }
  0x2a   :  { %v1404_v27 = vor.u32 %v1403_v15, %v1400_v14  ;;  %v1423_v32 = vrot.slane %v1421_v22, 5  ;;  %v5232_v33 = vrot.slane %v5206_v23, 9  ;;  %v1126_v34 = vrot.slane %v5207_v28, 5  ;;  %v159_v39 = vld [vmem:[%s8005_s0 + $0x34] sm:$0x1]  ;;  %5653 = vmatpush3.bf16.msra.mxu0 %v5866_v52  ;;  %v5870_v28 = vld [vmem:[%s8006_s1 + $0x80] sm:$0xff]  }
  0x2b   :  { %1192 = vrot.lane.b32.xlu0 %v5244_v44, %s5928_s28  ;;  %433 = vrot.lane.b32.xlu1 %v5100_v25, %s5928_s28  ;;  %v5233_v37 = vrot.slane %v5208_v29, 9  ;;  %v1130_v38 = vrot.slane %v5209_v30, 5  ;;  %v266_v40 = vshrl.u32 %v158_v35, 16  ;;  %v1418_v41 = vor.u32 %v1417_v31, %v1414_v20  ;;  %v160_v42 = vld [vmem:[%s8005_s0 + $0x38] sm:$0xf]  ;;  %v5869_v22 = vld [vmem:[%s8006_s1 + $0x30] sm:$0xff]  }
  0x2c   :  { %v1405_v36 = vrot.slane %v1404_v27, 4  ;;  %v161_v43 = vld [vmem:[%s8005_s0 + $0x3c] sm:$0x1]  ;;  %v269_v44 = vshll.u32 %v158_v35, 16  ;;  %v275_v45 = vshll.u32 %v159_v39, 16  ;;  %v280_v47 = vshrl.u32 %v160_v42, 16  ;;  %5654 = vmatprep.subr.bf16.mxu0 %v5868_v8  ;;  %5790 = vmatprep.subr.bf16.mxu1 %v5870_v28 }
  0x2d   :  { %v268_v46 = vrot.slane %v266_v40, 4  ;;  %v1419_v49 = vrot.slane %v1418_v41, 4  ;;  %v5843_v50 = vld [vmem:[%s8005_s0 + $0x28] ss:$8 sps:$4 sm:$0xff]   ;;  %v283_v55 = vshll.u32 %v160_v42, 16  ;;  %v289_v56 = vshll.u32 %v161_v43, 16  ;;  %5791 = vmatpush3.bf16.msra.mxu1 %v5870_v28 }
  0x2e   :  { %v1410_v48 = vsel %vm6062_vm5, %v1405_v36, %v1409_v16  ;;  %v271_v51 = vrot.slane %v269_v44, 5  ;;  %v277_v53 = vrot.slane %v275_v45, 5  ;;  %v282_v54 = vrot.slane %v280_v47, 4  ;;  %v474_v57 = vld [vmem:[%s8005_s0 + $0x30] sm:$0xe]  ;;  %5655 = vmatpush3.bf16.msra.mxu0 %v5869_v22  ;;  %v5871_v45 = vld [vmem:[%s8006_s1 + $0x78] sm:$0xff]  }
  0x2f   :  { %1281 = vrot.lane.b32.xlu0 %v5842_v19, %s5927_s19  ;;  %621 = vrot.lane.b32.xlu1 %v5124_v26, %s5927_s19  ;;  %v1424_v59 = vsel %vm6062_vm5, %v1419_v49, %v1423_v32  ;;  %v1127_v60 = vsel %vm5971_vm2, %v5232_v33, %v1126_v34  ;;  %v1131_v61 = vsel %vm5971_vm2, %v5233_v37, %v1130_v38  ;;  %v475_v63 = vld [vmem:[%s8005_s0 + $0x34] sm:$0x1]  ;;  %v476_v1 = vld [vmem:[%s8005_s0 + $0x38] sm:$0xe]  ;;  %v285_v4 = vrot.slane %v283_v55, 5 }
  0x30   :  { %v272_v62 = vor.u32 %v271_v51, %v268_v46  ;;  %v477_v2 = vld [vmem:[%s8005_s0 + $0x3c] sm:$0x1]  ;;  %v5308_v3 = vcombine.low %v1410_v48, %v1424_v59  ;;  %v291_v5 = vrot.slane %v289_v56, 5  ;;  %v5112_v6 = vrot.slane %v474_v57, 9  ;;  %v5286_v7 = vld [vmem:[%s8005_s0 + $0x40] sm:$0xf]  ;;  %5656 = vmatprep.subr.bf16.mxu0 %v5871_v45 }
  0x31   :  { %v555_v10 = vrot.slane %v475_v63, 5  ;;  %v5113_v11 = vrot.slane %v476_v1, 9  ;;  %v559_v12 = vrot.slane %v477_v2, 5  ;;  %v5287_v13 = vld [vmem:[%s8005_s0 + $0x44] sm:$0x1]  ;;  %v5245_v14 = vcombine.low %v1127_v60, %v1131_v61  ;;  %v5872_v2 = vld [vmem:[%s8006_s1 + $0x38] sm:$0xff]  }
  0x32   :  { %v273_v9 = vrot.slane %v272_v62, 4  ;;  %v286_v15 = vor.u32 %v285_v4, %v282_v54  ;;  %v5288_v16 = vld [vmem:[%s8005_s0 + $0x48] sm:$0xf]  ;;  %v5289_v17 = vld [vmem:[%s8005_s0 + $0x4c] sm:$0x1]  ;;  %v1426_v18 = vshrl.u32 %v5286_v7, 16  ;;  %5657 = vmatpush3.bf16.msra.mxu0 %v5872_v2 }
  0x33   :  { %1593 = vrot.lane.b32.xlu0 %v5308_v3, %s5929_s13  ;;  %711 = vrot.lane.b32.xlu1 %v5843_v50, %s5929_s13  ;;  %v1429_v19 = vshll.u32 %v5286_v7, 16  ;;  %v1435_v21 = vshll.u32 %v5287_v13, 16  ;;  %v5844_v24 = vld [vmem:[%s8005_s0 + $0x40] ss:$8 sps:$4 sm:$0xff]   ;;  %v556_v25 = vsel %vm5971_vm2, %v5112_v6, %v555_v10  ;;  %v1440_v30 = vshrl.u32 %v5288_v16, 16 }
  0x34   :  { %v278_v20 = vsel %vm6062_vm5, %v273_v9, %v277_v53  ;;  %v287_v23 = vrot.slane %v286_v15, 4  ;;  %v1428_v26 = vrot.slane %v1426_v18, 4  ;;  %v1443_v31 = vshll.u32 %v5288_v16, 16  ;;  %v5210_v33 = vld [vmem:[%s8005_s0 + $0x58] sm:$0xe]  ;;  %v5873_v8 = vld [vmem:[%s8006_s1 + $0x88] sm:$0xff]  }
  0x35   :  { %v1431_v27 = vrot.slane %v1429_v19, 5  ;;  %v1437_v29 = vrot.slane %v1435_v21, 5  ;;  %v1449_v32 = vshll.u32 %v5289_v17, 16  ;;  %v560_v35 = vsel %vm5971_vm2, %v5113_v11, %v559_v12  ;;  %v5211_v37 = vld [vmem:[%s8005_s0 + $0x5c] sm:$0x1]  ;;  %5792 = vmatprep.subr.bf16.mxu1 %v5873_v8 }
  0x36   :  { %v292_v34 = vsel %vm6062_vm5, %v287_v23, %v291_v5  ;;  %v5212_v38 = vld [vmem:[%s8005_s0 + $0x60] sm:$0xe]  ;;  %v5213_v39 = vld [vmem:[%s8005_s0 + $0x64] sm:$0x1]  ;;  %v1442_v41 = vrot.slane %v1440_v30, 4  ;;  %v1445_v42 = vrot.slane %v1443_v31, 5  ;;  %v5125_v51 = vcombine.low %v556_v25, %v560_v35  ;;  %5793 = vmatpush3.bf16.msra.mxu1 %v5873_v8 }
  0x37   :  { %1194 = vrot.lane.b32.xlu0 %v5245_v14, %s5928_s28  ;;  %v1432_v36 = vor.u32 %v1431_v27, %v1428_v26  ;;  %v5101_v40 = vcombine.low %v278_v20, %v292_v34  ;;  %v1451_v43 = vrot.slane %v1449_v32, 5  ;;  %v162_v44 = vld [vmem:[%s8005_s0 + $0x50] sm:$0xf]  ;;  %v5234_v47 = vrot.slane %v5210_v33, 9  ;;  %v163_v50 = vld [vmem:[%s8005_s0 + $0x54] sm:$0x1] }
  0x38   :  { %v1134_v48 = vrot.slane %v5211_v37, 5  ;;  %v5235_v49 = vrot.slane %v5212_v38, 9  ;;  %v1446_v52 = vor.u32 %v1445_v42, %v1442_v41  ;;  %v1138_v53 = vrot.slane %v5213_v39, 5  ;;  %v164_v54 = vld [vmem:[%s8005_s0 + $0x58] sm:$0xf] }
  0x39   :  { %v1433_v46 = vrot.slane %v1432_v36, 4  ;;  %435 = vrot.lane.b32.xlu1 %v5101_v40, %s5928_s28  ;;  %v165_v55 = vld [vmem:[%s8005_s0 + $0x5c] sm:$0x1]  ;;  %v294_v56 = vshrl.u32 %v162_v44, 16  ;;  %v297_v57 = vshll.u32 %v162_v44, 16  ;;  %v303_v59 = vshll.u32 %v163_v50, 16 }
  0x3a   :  { %v1447_v61 = vrot.slane %v1446_v52, 4  ;;  %v5845_v62 = vld [vmem:[%s8005_s0 + $0x38] ss:$8 sps:$4 sm:$0xff]   ;;  %v308_v1 = vshrl.u32 %v164_v54, 16  ;;  %v1135_v3 = vsel %vm5971_vm2, %v5234_v47, %v1134_v48  ;;  %v311_v6 = vshll.u32 %v164_v54, 16 }
  0x3b   :  { %1283 = vrot.lane.b32.xlu0 %v5844_v24, %s5927_s19  ;;  %v1438_v60 = vsel %vm6062_vm5, %v1433_v46, %v1437_v29  ;;  %v296_v63 = vrot.slane %v294_v56, 4  ;;  %v299_v4 = vrot.slane %v297_v57, 5  ;;  %v305_v5 = vrot.slane %v303_v59, 5  ;;  %v478_v7 = vld [vmem:[%s8005_s0 + $0x50] sm:$0xe] }
  0x3c   :  { %v1452_v9 = vsel %vm6062_vm5, %v1447_v61, %v1451_v43  ;;  %v1139_v10 = vsel %vm5971_vm2, %v5235_v49, %v1138_v53  ;;  %v310_v11 = vrot.slane %v308_v1, 4  ;;  %v317_v12 = vshll.u32 %v165_v55, 16  ;;  %v479_v13 = vld [vmem:[%s8005_s0 + $0x54] sm:$0x1]  ;;  %v480_v14 = vld [vmem:[%s8005_s0 + $0x58] sm:$0xe] }
  0x3d   :  { %623 = vrot.lane.b32.xlu1 %v5125_v51, %s5927_s19  ;;  %v5309_v15 = vcombine.low %v1438_v60, %v1452_v9  ;;  %v300_v16 = vor.u32 %v299_v4, %v296_v63  ;;  %v313_v17 = vrot.slane %v311_v6, 5  ;;  %v481_v18 = vld [vmem:[%s8005_s0 + $0x5c] sm:$0x1]  ;;  %v5114_v19 = vrot.slane %v478_v7, 9  ;;  %v5290_v20 = vld [vmem:[%s8005_s0 + $0x60] sm:$0xf] }
  0x3e   :  { %v319_v21 = vrot.slane %v317_v12, 5  ;;  %v563_v22 = vrot.slane %v479_v13, 5  ;;  %v5115_v23 = vrot.slane %v480_v14, 9  ;;  %v567_v24 = vrot.slane %v481_v18, 5  ;;  %v5291_v25 = vld [vmem:[%s8005_s0 + $0x64] sm:$0x1] }
  0x3f   :  { %1595 = vrot.lane.b32.xlu0 %v5309_v15, %s5929_s13  ;;  %v5246_v26 = vcombine.low %v1135_v3, %v1139_v10  ;;  %v301_v27 = vrot.slane %v300_v16, 4  ;;  %v314_v28 = vor.u32 %v313_v17, %v310_v11  ;;  %v5292_v29 = vld [vmem:[%s8005_s0 + $0x68] sm:$0xf]  ;;  %v5293_v30 = vld [vmem:[%s8005_s0 + $0x6c] sm:$0x1]  ;;  %v1454_v31 = vshrl.u32 %v5290_v20, 16 }
  0x40   :  { %v564_v32 = vsel %vm5971_vm2, %v5114_v19, %v563_v22  ;;  %v568_v33 = vsel %vm5971_vm2, %v5115_v23, %v567_v24  ;;  %v1457_v34 = vshll.u32 %v5290_v20, 16  ;;  %v1463_v35 = vshll.u32 %v5291_v25, 16  ;;  %v5846_v38 = vld [vmem:[%s8005_s0 + $0x60] ss:$8 sps:$4 sm:$0xff]   ;;  %v5215_v45 = vld [vmem:[%s8005_s0 + $0x6c] sm:$0x1] }
  0x41   :  { %713 = vrot.lane.b32.xlu1 %v5845_v62, %s5929_s13  ;;  %v306_v36 = vsel %vm6062_vm5, %v301_v27, %v305_v5  ;;  %v315_v37 = vrot.slane %v314_v28, 4  ;;  %v1456_v39 = vrot.slane %v1454_v31, 4  ;;  %v5214_v40 = vld [vmem:[%s8005_s0 + $0x68] sm:$0xe]  ;;  %v1468_v43 = vshrl.u32 %v5292_v29, 16 }
  0x42   :  { %v1459_v41 = vrot.slane %v1457_v34, 5  ;;  %v1465_v42 = vrot.slane %v1463_v35, 5  ;;  %v1471_v44 = vshll.u32 %v5292_v29, 16  ;;  %v5126_v47 = vcombine.low %v564_v32, %v568_v33  ;;  %v5216_v49 = vld [vmem:[%s8005_s0 + $0x70] sm:$0xe] }
  0x43   :  { %1196 = vrot.lane.b32.xlu0 %v5246_v26, %s5928_s28  ;;  %v320_v46 = vsel %vm6062_vm5, %v315_v37, %v319_v21  ;;  %v1477_v48 = vshll.u32 %v5293_v30, 16  ;;  %v5217_v50 = vld [vmem:[%s8005_s0 + $0x74] sm:$0x1]  ;;  %v5236_v51 = vrot.slane %v5214_v40, 9  ;;  %v1470_v54 = vrot.slane %v1468_v43, 4 }
  0x44   :  { %v5102_v52 = vcombine.low %v306_v36, %v320_v46  ;;  %v1460_v53 = vor.u32 %v1459_v41, %v1456_v39  ;;  %v1473_v55 = vrot.slane %v1471_v44, 5  ;;  %v166_v56 = vld [vmem:[%s8005_s0 + $0x60] sm:$0xf]  ;;  %v167_v57 = vld [vmem:[%s8005_s0 + $0x64] sm:$0x1]  ;;  %v1142_v60 = vrot.slane %v5215_v45, 5 }
  0x45   :  { %v1479_v59 = vrot.slane %v1477_v48, 5  ;;  %v5237_v61 = vrot.slane %v5216_v49, 9  ;;  %v1146_v62 = vrot.slane %v5217_v50, 5  ;;  %v168_v63 = vld [vmem:[%s8005_s0 + $0x68] sm:$0xf]  ;;  %v322_v4 = vshrl.u32 %v166_v56, 16 }
  0x46   :  { %437 = vrot.lane.b32.xlu1 %v5102_v52, %s5928_s28  ;;  %v1461_v1 = vrot.slane %v1460_v53, 4  ;;  %v1474_v2 = vor.u32 %v1473_v55, %v1470_v54  ;;  %v169_v3 = vld [vmem:[%s8005_s0 + $0x6c] sm:$0x1]  ;;  %v325_v5 = vshll.u32 %v166_v56, 16  ;;  %v331_v6 = vshll.u32 %v167_v57, 16 }
  0x47   :  { %1285 = vrot.lane.b32.xlu0 %v5846_v38, %s5927_s19  ;;  %v336_v7 = vshrl.u32 %v168_v63, 16  ;;  %v5847_v10 = vld [vmem:[%s8005_s0 + $0x58] ss:$8 sps:$4 sm:$0xff]   ;;  %v1143_v11 = vsel %vm5971_vm2, %v5236_v51, %v1142_v60  ;;  %v324_v12 = vrot.slane %v322_v4, 4  ;;  %v339_v17 = vshll.u32 %v168_v63, 16 }
  0x48   :  { %v1466_v8 = vsel %vm6062_vm5, %v1461_v1, %v1465_v42  ;;  %v1475_v9 = vrot.slane %v1474_v2, 4  ;;  %v482_v13 = vld [vmem:[%s8005_s0 + $0x60] sm:$0xe]  ;;  %v327_v14 = vrot.slane %v325_v5, 5  ;;  %v333_v15 = vrot.slane %v331_v6, 5 }
  0x49   :  { %v338_v16 = vrot.slane %v336_v7, 4  ;;  %v483_v18 = vld [vmem:[%s8005_s0 + $0x64] sm:$0x1]  ;;  %v1147_v20 = vsel %vm5971_vm2, %v5237_v61, %v1146_v62  ;;  %v345_v21 = vshll.u32 %v169_v3, 16  ;;  %v484_v22 = vld [vmem:[%s8005_s0 + $0x68] sm:$0xe] }
  0x4a   :  { %625 = vrot.lane.b32.xlu1 %v5126_v47, %s5927_s19  ;;  %v1480_v19 = vsel %vm6062_vm5, %v1475_v9, %v1479_v59  ;;  %v485_v23 = vld [vmem:[%s8005_s0 + $0x6c] sm:$0x1]  ;;  %v5116_v24 = vrot.slane %v482_v13, 9  ;;  %v328_v26 = vor.u32 %v327_v14, %v324_v12  ;;  %v341_v27 = vrot.slane %v339_v17, 5  ;;  %v5294_v29 = vld [vmem:[%s8005_s0 + $0x70] sm:$0xf] }
  0x4b   :  { %v5310_v25 = vcombine.low %v1466_v8, %v1480_v19  ;;  %v571_v28 = vrot.slane %v483_v18, 5  ;;  %v5295_v30 = vld [vmem:[%s8005_s0 + $0x74] sm:$0x1]  ;;  %v347_v31 = vrot.slane %v345_v21, 5  ;;  %v5117_v32 = vrot.slane %v484_v22, 9 }
  0x4c   :  { %v575_v33 = vrot.slane %v485_v23, 5  ;;  %v5296_v34 = vld [vmem:[%s8005_s0 + $0x78] sm:$0xf]  ;;  %v1482_v35 = vshrl.u32 %v5294_v29, 16  ;;  %v5247_v36 = vcombine.low %v1143_v11, %v1147_v20  ;;  %v329_v37 = vrot.slane %v328_v26, 4 }
  0x4d   :  { %1597 = vrot.lane.b32.xlu0 %v5310_v25, %s5929_s13  ;;  %v342_v38 = vor.u32 %v341_v27, %v338_v16  ;;  %v5297_v39 = vld [vmem:[%s8005_s0 + $0x7c] sm:$0x1]  ;;  %v1485_v40 = vshll.u32 %v5294_v29, 16  ;;  %v572_v41 = vsel %vm5971_vm2, %v5116_v24, %v571_v28  ;;  %v1491_v43 = vshll.u32 %v5295_v30, 16  ;;  %v5848_v47 = vld [vmem:[%s8005_s0 + $0x70] ss:$8 sps:$4 sm:$0xff]  }
  0x4e   :  { %715 = vrot.lane.b32.xlu1 %v5847_v10, %s5929_s13  ;;  %v1484_v42 = vrot.slane %v1482_v35, 4  ;;  %v1496_v44 = vshrl.u32 %v5296_v34, 16  ;;  %v334_v45 = vsel %vm6062_vm5, %v329_v37, %v333_v15  ;;  %v576_v48 = vsel %vm5971_vm2, %v5117_v32, %v575_v33  ;;  %v5218_v50 = vld [vmem:[%s8005_s0 + $0x78] sm:$0xe]  ;;  %v5219_v55 = vld [vmem:[%s8005_s0 + $0x7c] sm:$0x1] }
  0x4f   :  { %v343_v46 = vrot.slane %v342_v38, 4  ;;  %v1487_v49 = vrot.slane %v1485_v40, 5  ;;  %v1493_v51 = vrot.slane %v1491_v43, 5  ;;  %v1499_v53 = vshll.u32 %v5296_v34, 16  ;;  %v5220_v59 = vld [vmem:[%s8005_s0 + $0x80] sm:$0xe] }
  0x50   :  { %v1498_v52 = vrot.slane %v1496_v44, 4  ;;  %v1505_v54 = vshll.u32 %v5297_v39, 16  ;;  %v5221_v60 = vld [vmem:[%s8005_s0 + $0x84] sm:$0x1]  ;;  %v5238_v61 = vrot.slane %v5218_v50, 9  ;;  %v1150_v62 = vrot.slane %v5219_v55, 5 }
  0x51   :  { %1198 = vrot.lane.b32.xlu0 %v5247_v36, %s5928_s28  ;;  %v348_v56 = vsel %vm6062_vm5, %v343_v46, %v347_v31  ;;  %v1488_v57 = vor.u32 %v1487_v49, %v1484_v42  ;;  %v1501_v1 = vrot.slane %v1499_v53, 5  ;;  %v5239_v3 = vrot.slane %v5220_v59, 9  ;;  %v170_v4 = vld [vmem:[%s8005_s0 + $0x70] sm:$0xf]  ;;  %v171_v8 = vld [vmem:[%s8005_s0 + $0x74] sm:$0x1] }
  0x52   :  { %v5103_v63 = vcombine.low %v334_v45, %v348_v56  ;;  %v1507_v2 = vrot.slane %v1505_v54, 5  ;;  %v5127_v5 = vcombine.low %v572_v41, %v576_v48  ;;  %v1154_v7 = vrot.slane %v5221_v60, 5  ;;  %v172_v9 = vld [vmem:[%s8005_s0 + $0x78] sm:$0xf]  ;;  %v173_v11 = vld [vmem:[%s8005_s0 + $0x7c] sm:$0x1] }
  0x53   :  { %v1489_v6 = vrot.slane %v1488_v57, 4  ;;  %v1502_v10 = vor.u32 %v1501_v1, %v1498_v52  ;;  %v350_v12 = vshrl.u32 %v170_v4, 16  ;;  %v353_v13 = vshll.u32 %v170_v4, 16  ;;  %v5849_v21 = vld [vmem:[%s8005_s0 + $0x68] ss:$8 sps:$4 sm:$0xff]  }
  0x54   :  { %439 = vrot.lane.b32.xlu1 %v5103_v63, %s5928_s28  ;;  %v359_v14 = vshll.u32 %v171_v8, 16  ;;  %v1151_v15 = vsel %vm5971_vm2, %v5238_v61, %v1150_v62  ;;  %v1155_v16 = vsel %vm5971_vm2, %v5239_v3, %v1154_v7  ;;  %v364_v17 = vshrl.u32 %v172_v9, 16  ;;  %v486_v28 = vld [vmem:[%s8005_s0 + $0x70] sm:$0xe]  ;;  %v487_v32 = vld [vmem:[%s8005_s0 + $0x74] sm:$0x1] }
  0x55   :  { %1287 = vrot.lane.b32.xlu0 %v5848_v47, %s5927_s19  ;;  %v367_v18 = vshll.u32 %v172_v9, 16  ;;  %v1494_v19 = vsel %vm6062_vm5, %v1489_v6, %v1493_v51  ;;  %v1503_v20 = vrot.slane %v1502_v10, 4  ;;  %v352_v22 = vrot.slane %v350_v12, 4  ;;  %v488_v33 = vld [vmem:[%s8005_s0 + $0x78] sm:$0xe] }
  0x56   :  { %v355_v23 = vrot.slane %v353_v13, 5  ;;  %v361_v24 = vrot.slane %v359_v14, 5  ;;  %v366_v25 = vrot.slane %v364_v17, 4  ;;  %v373_v27 = vshll.u32 %v173_v11, 16  ;;  %v489_v34 = vld [vmem:[%s8005_s0 + $0x7c] sm:$0x1] }
  0x57   :  { %v369_v26 = vrot.slane %v367_v18, 5  ;;  %v1508_v29 = vsel %vm6062_vm5, %v1503_v20, %v1507_v2  ;;  %v5248_v30 = vcombine.low %v1151_v15, %v1155_v16  ;;  %v5118_v38 = vrot.slane %v486_v28, 9  ;;  %v5298_v39 = vld [vmem:[%s8005_s0 + $0x80] sm:$0xf]  ;;  %v5299_v40 = vld [vmem:[%s8005_s0 + $0x84] sm:$0x1] }
  0x58   :  { %627 = vrot.lane.b32.xlu1 %v5127_v5, %s5927_s19  ;;  %v356_v31 = vor.u32 %v355_v23, %v352_v22  ;;  %v5311_v35 = vcombine.low %v1494_v19, %v1508_v29  ;;  %v375_v37 = vrot.slane %v373_v27, 5  ;;  %v579_v42 = vrot.slane %v487_v32, 5  ;;  %v5300_v45 = vld [vmem:[%s8005_s0 + $0x88] sm:$0xf]  ;;  %v5301_v47 = vld [vmem:[%s8005_s0 + $0x8c] sm:$0x1] }
  0x59   :  { %v370_v36 = vor.u32 %v369_v26, %v366_v25  ;;  %v5119_v43 = vrot.slane %v488_v33, 9  ;;  %v583_v44 = vrot.slane %v489_v34, 5  ;;  %v1510_v48 = vshrl.u32 %v5298_v39, 16  ;;  %v5850_v55 = vld [vmem:[%s8005_s0 + $0x80] ss:$8 sps:$4 sm:$0xff]  }
  0x5a   :  { %v357_v41 = vrot.slane %v356_v31, 4  ;;  %1599 = vrot.lane.b32.xlu0 %v5311_v35, %s5929_s13  ;;  %v1513_v49 = vshll.u32 %v5298_v39, 16  ;;  %v1519_v50 = vshll.u32 %v5299_v40, 16  ;;  %v580_v52 = vsel %vm5971_vm2, %v5118_v38, %v579_v42  ;;  %v5222_v60 = vld [vmem:[%s8005_s0 + $0x88] sm:$0xe] }
  0x5b   :  { %v371_v46 = vrot.slane %v370_v36, 4  ;;  %v1524_v53 = vshrl.u32 %v5300_v45, 16  ;;  %v584_v56 = vsel %vm5971_vm2, %v5119_v43, %v583_v44  ;;  %v1512_v57 = vrot.slane %v1510_v48, 4  ;;  %v5223_v2 = vld [vmem:[%s8005_s0 + $0x8c] sm:$0x1] }
  0x5c   :  { %717 = vrot.lane.b32.xlu1 %v5849_v21, %s5929_s13  ;;  %v362_v51 = vsel %vm6062_vm5, %v357_v41, %v361_v24  ;;  %v1515_v59 = vrot.slane %v1513_v49, 5  ;;  %v1521_v62 = vrot.slane %v1519_v50, 5  ;;  %v1527_v1 = vshll.u32 %v5300_v45, 16  ;;  %v5224_v5 = vld [vmem:[%s8005_s0 + $0x90] sm:$0xe] }
  0x5d   :  { %v376_v54 = vsel %vm6062_vm5, %v371_v46, %v375_v37  ;;  %v1526_v63 = vrot.slane %v1524_v53, 4  ;;  %v1533_v4 = vshll.u32 %v5301_v47, 16  ;;  %v5225_v6 = vld [vmem:[%s8005_s0 + $0x94] sm:$0x1]  ;;  %v5240_v7 = vrot.slane %v5222_v60, 9 }
  0x5e   :  { %v5104_v61 = vcombine.low %v362_v51, %v376_v54  ;;  %1200 = vrot.lane.b32.xlu0 %v5248_v30, %s5928_s28  ;;  %v1516_v3 = vor.u32 %v1515_v59, %v1512_v57  ;;  %v5128_v8 = vcombine.low %v580_v52, %v584_v56  ;;  %v1529_v9 = vrot.slane %v1527_v1, 5  ;;  %v174_v12 = vld [vmem:[%s8005_s0 + $0x80] sm:$0xf]  ;;  %v175_v15 = vld [vmem:[%s8005_s0 + $0x84] sm:$0x1] }
  0x5f   :  { %v1158_v10 = vrot.slane %v5223_v2, 5  ;;  %v5241_v11 = vrot.slane %v5224_v5, 9  ;;  %v1162_v14 = vrot.slane %v5225_v6, 5  ;;  %v176_v16 = vld [vmem:[%s8005_s0 + $0x88] sm:$0xf]  ;;  %v1535_v18 = vrot.slane %v1533_v4, 5 }
  0x60   :  { %441 = vrot.lane.b32.xlu1 %v5104_v61, %s5928_s28  ;;  %v1517_v13 = vrot.slane %v1516_v3, 4  ;;  %v1530_v17 = vor.u32 %v1529_v9, %v1526_v63  ;;  %v177_v19 = vld [vmem:[%s8005_s0 + $0x8c] sm:$0x1]  ;;  %v378_v20 = vshrl.u32 %v174_v12, 16  ;;  %v5851_v22 = vld [vmem:[%s8005_s0 + $0x78] ss:$8 sps:$4 sm:$0xff]  }
  0x61   :  { %v1159_v23 = vsel %vm5971_vm2, %v5240_v7, %v1158_v10  ;;  %v381_v24 = vshll.u32 %v174_v12, 16  ;;  %v387_v25 = vshll.u32 %v175_v15, 16  ;;  %v392_v28 = vshrl.u32 %v176_v16, 16  ;;  %v490_v30 = vld [vmem:[%s8005_s0 + $0x80] sm:$0xe] }
  0x62   :  { %1289 = vrot.lane.b32.xlu0 %v5850_v55, %s5927_s19  ;;  %v1522_v21 = vsel %vm6062_vm5, %v1517_v13, %v1521_v62  ;;  %v1531_v26 = vrot.slane %v1530_v17, 4  ;;  %v380_v27 = vrot.slane %v378_v20, 4  ;;  %v395_v29 = vshll.u32 %v176_v16, 16  ;;  %v491_v34 = vld [vmem:[%s8005_s0 + $0x84] sm:$0x1] }
  0x63   :  { %v383_v31 = vrot.slane %v381_v24, 5  ;;  %v389_v32 = vrot.slane %v387_v25, 5  ;;  %v401_v33 = vshll.u32 %v177_v19, 16  ;;  %v5120_v35 = vrot.slane %v490_v30, 9  ;;  %v492_v40 = vld [vmem:[%s8005_s0 + $0x88] sm:$0xe] }
  0x64   :  { %629 = vrot.lane.b32.xlu1 %v5128_v8, %s5927_s19  ;;  %v1536_v36 = vsel %vm6062_vm5, %v1531_v26, %v1535_v18  ;;  %v1163_v37 = vsel %vm5971_vm2, %v5241_v11, %v1162_v14  ;;  %v394_v38 = vrot.slane %v392_v28, 4  ;;  %v397_v39 = vrot.slane %v395_v29, 5  ;;  %v493_v41 = vld [vmem:[%s8005_s0 + $0x8c] sm:$0x1]  ;;  %v5302_v46 = vld [vmem:[%s8005_s0 + $0x90] sm:$0xf] }
  0x65   :  { %v5312_v42 = vcombine.low %v1522_v21, %v1536_v36  ;;  %v384_v43 = vor.u32 %v383_v31, %v380_v27  ;;  %v403_v44 = vrot.slane %v401_v33, 5  ;;  %v587_v45 = vrot.slane %v491_v34, 5  ;;  %v5303_v47 = vld [vmem:[%s8005_s0 + $0x94] sm:$0x1]  ;;  %v5304_v51 = vld [vmem:[%s8005_s0 + $0x98] sm:$0xf] }
  0x66   :  { %v398_v48 = vor.u32 %v397_v39, %v394_v38  ;;  %v5121_v49 = vrot.slane %v492_v40, 9  ;;  %v591_v50 = vrot.slane %v493_v41, 5  ;;  %v5305_v52 = vld [vmem:[%s8005_s0 + $0x9c] sm:$0x1]  ;;  %v5249_v53 = vcombine.low %v1159_v23, %v1163_v37  ;;  %v5852_v3 = vld [vmem:[%s8005_s0 + $0x90] ss:$8 sps:$4 sm:$0xff]  }
  0x67   :  { %1601 = vrot.lane.b32.xlu0 %v5312_v42, %s5929_s13  ;;  %v385_v54 = vrot.slane %v384_v43, 4  ;;  %v1538_v55 = vshrl.u32 %v5302_v46, 16  ;;  %v1541_v56 = vshll.u32 %v5302_v46, 16  ;;  %v1547_v59 = vshll.u32 %v5303_v47, 16  ;;  %v5853_v16 = vld [vmem:[%s8005_s0 + $0x88] ss:$8 sps:$4 sm:$0xff]  }
  0x68   :  { %719 = vrot.lane.b32.xlu1 %v5851_v22, %s5929_s13  ;;  %v399_v57 = vrot.slane %v398_v48, 4  ;;  %v1552_v60 = vshrl.u32 %v5304_v51, 16  ;;  %v588_v62 = vsel %vm5971_vm2, %v5120_v35, %v587_v45  ;;  %v592_v4 = vsel %vm5971_vm2, %v5121_v49, %v591_v50  ;;  %v5154_v17 = vld [vmem:[%s8005_s0 + $0x8] sm:$0xf]  ;;  %v5155_v18 = vld [vmem:[%s8005_s0 + $0xc] sm:$0x1] }
  0x69   :  { %v390_v61 = vsel %vm6062_vm5, %v385_v54, %v389_v32  ;;  %v1540_v63 = vrot.slane %v1538_v55, 4  ;;  %v1543_v1 = vrot.slane %v1541_v56, 5  ;;  %v1555_v6 = vshll.u32 %v5304_v51, 16  ;;  %v5156_v21 = vld [vmem:[%s8005_s0 + $0x10] sm:$0xf] }
  0x6a   :  { %v404_v2 = vsel %vm6062_vm5, %v399_v57, %v403_v44  ;;  %v1554_v5 = vrot.slane %v1552_v60, 4  ;;  %v1561_v9 = vshll.u32 %v5305_v52, 16  ;;  %v1549_v10 = vrot.slane %v1547_v59, 5  ;;  %v5157_v22 = vld [vmem:[%s8005_s0 + $0x14] sm:$0x1] }
  0x6b   :  { %1202 = vrot.lane.b32.xlu0 %v5249_v53, %s5928_s28  ;;  %v5105_v7 = vcombine.low %v390_v61, %v404_v2  ;;  %v1544_v8 = vor.u32 %v1543_v1, %v1540_v63  ;;  %v1557_v11 = vrot.slane %v1555_v6, 5  ;;  %v5129_v12 = vcombine.low %v588_v62, %v592_v4  ;;  %v5158_v37 = vld [vmem:[%s8005_s0 + $0x18] sm:$0xf]  ;;  %v5159_v38 = vld [vmem:[%s8005_s0 + $0x1c] sm:$0x1] }
  0x6c   :  { %v1563_v14 = vrot.slane %v1561_v9, 5  ;;  %v773_v23 = vshrl.u32 %v5154_v17, 16  ;;  %v776_v24 = vshll.u32 %v5154_v17, 16  ;;  %v782_v25 = vshll.u32 %v5155_v18, 16  ;;  %v5160_v42 = vld [vmem:[%s8005_s0 + $0x20] sm:$0xf] }
  0x6d   :  { %443 = vrot.lane.b32.xlu1 %v5105_v7, %s5928_s28  ;;  %v1545_v13 = vrot.slane %v1544_v8, 4  ;;  %v1558_v15 = vor.u32 %v1557_v11, %v1554_v5  ;;  %v787_v26 = vshrl.u32 %v5156_v21, 16  ;;  %v790_v27 = vshll.u32 %v5156_v21, 16  ;;  %v5161_v43 = vld [vmem:[%s8005_s0 + $0x24] sm:$0x1] }
  0x6e   :  { %vm137_vm6 = vcmask 261120   ;;  %v775_v29 = vrot.slane %v773_v23, 4  ;;  %v796_v30 = vshll.u32 %v5157_v22, 16  ;;  %v778_v32 = vrot.slane %v776_v24, 5  ;;  %v5864_v1 = vld [vmem:[%s8005_s0] ss:$8 sps:$4 sm:$0xff]  }
  0x6f   :  { %1291 = vrot.lane.b32.xlu0 %v5852_v3, %s5927_s19  ;;  %v1550_v19 = vsel %vm6062_vm5, %v1545_v13, %v1549_v10  ;;  %v1559_v20 = vrot.slane %v1558_v15, 4  ;;  %v784_v33 = vrot.slane %v782_v25, 5  ;;  %v789_v34 = vrot.slane %v787_v26, 4  ;;  %138 = vst.msk [vmem:[#allocation3] sm:$0xff] %vm137_vm6, %v5864_v1  ;;  %v5867_v8 = vld [vmem:[%s8005_s0 + $0x10] ss:$8 sps:$4 sm:$0xff]  }
  0x70   :  { %v792_v35 = vrot.slane %v790_v27, 5  ;;  %v798_v36 = vrot.slane %v796_v30, 5  ;;  %v779_v40 = vor.u32 %v778_v32, %v775_v29  ;;  %v801_v44 = vshrl.u32 %v5158_v37, 16  ;;  %139 = vst.msk [vmem:[#allocation3 + $0x18] sm:$0xff] %vm137_vm6, %v5867_v8  ;;  %v5314_v13 = vld [vmem:[%s8005_s0 + $0x10] sm:$0xe] }
  0x71   :  { %631 = vrot.lane.b32.xlu1 %v5129_v12, %s5927_s19  ;;  %v1564_v28 = vsel %vm6062_vm5, %v1559_v20, %v1563_v14  ;;  %v804_v45 = vshll.u32 %v5158_v37, 16  ;;  %v810_v47 = vshll.u32 %v5159_v38, 16  ;;  %v815_v48 = vshrl.u32 %v5160_v42, 16  ;;  %v5315_v14 = vld [vmem:[%s8005_s0 + $0x14] sm:$0x1] }
  0x72   :  { %v5313_v31 = vcombine.low %v1550_v19, %v1564_v28  ;;  %v793_v46 = vor.u32 %v792_v35, %v789_v34  ;;  %v818_v49 = vshll.u32 %v5160_v42, 16  ;;  %v780_v50 = vrot.slane %v779_v40, 4  ;;  %v5316_v15 = vld [vmem:[%s8005_s0 + $0x18] sm:$0xe]  ;;  %v5318_v21 = vld [vmem:[%s8005_s0 + $0x20] sm:$0xe] }
  0x73   :  { %v803_v51 = vrot.slane %v801_v44, 4  ;;  %v806_v52 = vrot.slane %v804_v45, 5  ;;  %v824_v53 = vshll.u32 %v5161_v43, 16  ;;  %vm453_vm7 = vcmask 523520   ;;  %v5319_v22 = vld [vmem:[%s8005_s0 + $0x24] sm:$0x1] }
  0x74   :  { %1603 = vrot.lane.b32.xlu0 %v5313_v31, %s5929_s13  ;;  %v794_v54 = vrot.slane %v793_v46, 4  ;;  %v817_v55 = vrot.slane %v815_v48, 4  ;;  %v820_v56 = vrot.slane %v818_v49, 5  ;;  %v785_v57 = vsel %vm6062_vm5, %v780_v50, %v784_v33  ;;  %v5320_v23 = vld [vmem:[%s8005_s0 + $0x28] sm:$0xe] }
  0x75   :  { %721 = vrot.lane.b32.xlu1 %v5853_v16, %s5929_s13  ;;  %v807_v59 = vor.u32 %v806_v52, %v803_v51  ;;  %v812_v60 = vrot.slane %v810_v47, 5  ;;  %v826_v61 = vrot.slane %v824_v53, 5  ;;  %vm641_vm8 = vcmask 785920   ;;  %v5317_v16 = vld [vmem:[%s8005_s0 + $0x1c] sm:$0x1] }
  0x76   :  { %v1278_v41 = vpop.permute.xlu1 %1277  ;;  %v799_v62 = vsel %vm6062_vm5, %v794_v54, %v798_v36  ;;  %v821_v63 = vor.u32 %v820_v56, %v817_v55  ;;  %vm731_vm9 = vcmask 1048320   ;;  %v5346_v17 = vrot.slane %v5314_v13, 9  ;;  %v5321_v24 = vld [vmem:[%s8005_s0 + $0x2c] sm:$0x1]  ;;  %v5162_v29 = vld [vmem:[%s8005_s0 + $0x28] sm:$0xf] }
  0x77   :  { %v5186_v2 = vcombine.low %v785_v57, %v799_v62  ;;  %v808_v4 = vrot.slane %v807_v59, 4  ;;  %v1687_v18 = vrot.slane %v5315_v14, 5  ;;  %v5347_v19 = vrot.slane %v5316_v15, 9  ;;  %v5163_v30 = vld [vmem:[%s8005_s0 + $0x2c] sm:$0x1] }
  0x78   :  { %v822_v6 = vrot.slane %v821_v63, 4  ;;  %v1691_v20 = vrot.slane %v5317_v16, 5  ;;  %v5348_v27 = vrot.slane %v5318_v21, 9  ;;  %v1695_v28 = vrot.slane %v5319_v22, 5  ;;  %v5164_v35 = vld [vmem:[%s8005_s0 + $0x30] sm:$0xf] }
  0x79   :  { %1028 = vst.msk [vmem:[#allocation3 + $0x8] sm:$0xff] %vm137_vm6, %v5186_v2  ;;  %v813_v7 = vsel %vm6062_vm5, %v808_v4, %v812_v60  ;;  %v1688_v25 = vsel %vm5971_vm2, %v5346_v17, %v1687_v18  ;;  %v5349_v33 = vrot.slane %v5320_v23, 9  ;;  %v1699_v34 = vrot.slane %v5321_v24, 5  ;;  %v5165_v36 = vld [vmem:[%s8005_s0 + $0x34] sm:$0x1] }
  0x7a   :  { %v1189_v39 = vpop.permute.xlu0 %1188  ;;  %v827_v9 = vsel %vm6062_vm5, %v822_v6, %v826_v61  ;;  %v1692_v26 = vsel %vm5971_vm2, %v5347_v19, %v1691_v20  ;;  %v1696_v37 = vsel %vm5971_vm2, %v5348_v27, %v1695_v28  ;;  %v829_v38 = vshrl.u32 %v5162_v29, 16  ;;  %v5874_v48 = vld [vmem:[%s8005_s0 + $0x20] ss:$8 sps:$4 sm:$0xff]   ;;  %v5166_v53 = vld [vmem:[%s8005_s0 + $0x38] sm:$0xf] }
  0x7b   :  { %1212 = vst.msk [vmem:[#allocation3 + $0x8] sm:$0xff] %vm453_vm7, %v1189_v39  ;;  %v5187_v10 = vcombine.low %v813_v7, %v827_v9  ;;  %v5362_v32 = vcombine.low %v1688_v25, %v1692_v26  ;;  %v832_v39 = vshll.u32 %v5162_v29, 16  ;;  %v838_v40 = vshll.u32 %v5163_v30, 16  ;;  %v5167_v57 = vld [vmem:[%s8005_s0 + $0x3c] sm:$0x1] }
  0x7c   :  { %1301 = vst.msk [vmem:[#allocation3 + $0x8] sm:$0xff] %vm641_vm8, %v1278_v41  ;;  %v1700_v41 = vsel %vm5971_vm2, %v5349_v33, %v1699_v34  ;;  %v843_v42 = vshrl.u32 %v5164_v35, 16  ;;  %v846_v43 = vshll.u32 %v5164_v35, 16  ;;  %v852_v44 = vshll.u32 %v5165_v36, 16  ;;  %v5168_v59 = vld [vmem:[%s8005_s0 + $0x40] sm:$0xf] }
  0x7d   :  { %1029 = vst.msk [vmem:[#allocation3 + $0x20] sm:$0xff] %vm137_vm6, %v5187_v10  ;;  %1781 = vst.msk [vmem:[#allocation3 + $0x10] sm:$0xff] %vm137_vm6, %v5362_v32  ;;  %v5363_v45 = vcombine.low %v1696_v37, %v1700_v41  ;;  %v831_v46 = vrot.slane %v829_v38, 4  ;;  %v834_v47 = vrot.slane %v832_v39, 5  ;;  %v840_v50 = vrot.slane %v838_v40, 5 }
  0x7e   :  { %v1191_v3 = vpop.permute.xlu0 %1190  ;;  %v845_v51 = vrot.slane %v843_v42, 4  ;;  %v848_v52 = vrot.slane %v846_v43, 5  ;;  %v854_v56 = vrot.slane %v852_v44, 5  ;;  %140 = vst.msk [vmem:[#allocation3 + $0x30] sm:$0xff] %vm137_vm6, %v5874_v48  ;;  %v857_v60 = vshrl.u32 %v5166_v53, 16 }
  0x7f   :  { %v618_v5 = vpop.permute.xlu1 %617  ;;  %1213 = vst.msk [vmem:[#allocation3 + $0x20] sm:$0xff] %vm453_vm7, %v1191_v3  ;;  %v835_v55 = vor.u32 %v834_v47, %v831_v46  ;;  %v5169_v62 = vld [vmem:[%s8005_s0 + $0x44] sm:$0x1]  ;;  %v860_v63 = vshll.u32 %v5166_v53, 16  ;;  %v866_v1 = vshll.u32 %v5167_v57, 16  ;;  %v871_v2 = vshrl.u32 %v5168_v59, 16 }
  0x80   :  { %1782 = vst.msk [vmem:[#allocation3 + $0x28] sm:$0xff] %vm137_vm6, %v5363_v45  ;;  %v849_v61 = vor.u32 %v848_v52, %v845_v51  ;;  %v859_v4 = vrot.slane %v857_v60, 4  ;;  %v880_v6 = vshll.u32 %v5169_v62, 16  ;;  %v5875_v20 = vld [vmem:[%s8005_s0 + $0x30] ss:$8 sps:$4 sm:$0xff]   ;;  %vm31_vm10 = vcmask 257024  }
  0x81   :  { %v836_v3 = vrot.slane %v835_v55, 4  ;;  %v862_v10 = vrot.slane %v860_v63, 5  ;;  %v868_v15 = vrot.slane %v866_v1, 5  ;;  %v5322_v21 = vld [vmem:[%s8005_s0 + $0x30] sm:$0xe]  ;;  %141 = vst.msk [vmem:[#allocation3 + $0x48] sm:$0xff] %vm137_vm6, %v5875_v20 }
  0x82   :  { %v850_v9 = vrot.slane %v849_v61, 4  ;;  %v882_v17 = vrot.slane %v880_v6, 5  ;;  %v5323_v22 = vld [vmem:[%s8005_s0 + $0x34] sm:$0x1]  ;;  %v5324_v25 = vld [vmem:[%s8005_s0 + $0x38] sm:$0xe] }
  0x83   :  { %v708_v12 = vpop.permute.xlu1 %707  ;;  %v841_v14 = vsel %vm6062_vm5, %v836_v3, %v840_v50  ;;  %v863_v19 = vor.u32 %v862_v10, %v859_v4  ;;  %v5325_v26 = vld [vmem:[%s8005_s0 + $0x3c] sm:$0x1]  ;;  %v5350_v27 = vrot.slane %v5322_v21, 9  ;;  %v1703_v28 = vrot.slane %v5323_v22, 5  ;;  %v5326_v33 = vld [vmem:[%s8005_s0 + $0x40] sm:$0xe] }
  0x84   :  { %v1791_v13 = vld [vmem:[#allocation3 + $0x10] sm:$0xff]  ;;  %v855_v18 = vsel %vm6062_vm5, %v850_v9, %v854_v56  ;;  %v1707_v32 = vrot.slane %v5325_v26, 5  ;;  %v5327_v37 = vld [vmem:[%s8005_s0 + $0x44] sm:$0x1]  ;;  %v5328_v38 = vld [vmem:[%s8005_s0 + $0x48] sm:$0xe] }
  0x85   :  { %5794 = vmatprep.mubr.msk.bf16.mxu1 %vm137_vm6, %v1791_v13  ;;  %v5188_v23 = vcombine.low %v841_v14, %v855_v18  ;;  %v864_v30 = vrot.slane %v863_v19, 4  ;;  %v1704_v36 = vsel %vm5971_vm2, %v5350_v27, %v1703_v28  ;;  %v5352_v39 = vrot.slane %v5326_v33, 9  ;;  %v5329_v43 = vld [vmem:[%s8005_s0 + $0x4c] sm:$0x1]  ;;  %v5170_v46 = vld [vmem:[%s8005_s0 + $0x58] sm:$0xf] }
  0x86   :  { %v1711_v44 = vrot.slane %v5327_v37, 5  ;;  %v5353_v45 = vrot.slane %v5328_v38, 9  ;;  %v5171_v50 = vld [vmem:[%s8005_s0 + $0x5c] sm:$0x1]  ;;  %v5172_v51 = vld [vmem:[%s8005_s0 + $0x60] sm:$0xf] }
  0x87   :  { %v430_v11 = vpop.permute.xlu0 %429  ;;  %v1794_v29 = vld [vmem:[#allocation3 + $0x28] sm:$0xff]  ;;  %1030 = vst.msk [vmem:[#allocation3 + $0x38] sm:$0xff] %vm137_vm6, %v5188_v23  ;;  %v869_v41 = vsel %vm6062_vm5, %v864_v30, %v868_v15  ;;  %v885_v52 = vshrl.u32 %v5170_v46, 16  ;;  %v5173_v55 = vld [vmem:[%s8005_s0 + $0x64] sm:$0x1]  ;;  %v888_v56 = vshll.u32 %v5170_v46, 16 }
  0x88   :  { %454 = vst.msk [vmem:[#allocation3] sm:$0xff] %vm453_vm7, %v430_v11  ;;  %v873_v11 = vrot.slane %v871_v2, 4  ;;  %5795 = vmatmul.mubr.msk.bf16.vlgmr.msra.gmra.mrb[0].mxu1 %vm137_vm6, %v1794_v29  ;;  %v894_v57 = vshll.u32 %v5171_v50, 16  ;;  %v899_v61 = vshrl.u32 %v5172_v51, 16  ;;  %v902_v62 = vshll.u32 %v5172_v51, 16 }
  0x89   :  { %642 = vst.msk [vmem:[#allocation3] sm:$0xff] %vm641_vm8, %v618_v5  ;;  %v874_v5 = vshll.u32 %v5168_v59, 16  ;;  %v887_v60 = vrot.slane %v885_v52, 4  ;;  %v890_v2 = vrot.slane %v888_v56, 5  ;;  %v908_v4 = vshll.u32 %v5173_v55, 16 }
  0x8a   :  { %732 = vst.msk [vmem:[#allocation3] sm:$0xff] %vm731_vm9, %v708_v12  ;;  %v896_v3 = vrot.slane %v894_v57, 5  ;;  %v5174_v9 = vld [vmem:[%s8005_s0 + $0x68] sm:$0xf]  ;;  %v5175_v10 = vld [vmem:[%s8005_s0 + $0x6c] sm:$0x1] }
  0x8b   :  { %v1590_v31 = vpop.permute.xlu0 %1589  ;;  %v876_v16 = vrot.slane %v874_v5, 5  ;;  %v5876_v5 = vld [vmem:[%s8005_s0 + $0x50] ss:$8 sps:$4 sm:$0xff]   ;;  %v5177_v14 = vld [vmem:[%s8005_s0 + $0x74] sm:$0x1]  ;;  %v913_v15 = vshrl.u32 %v5174_v9, 16 }
  0x8c   :  { %1613 = vst.msk [vmem:[#allocation3 + $0x8] sm:$0xff] %vm731_vm9, %v1590_v31  ;;  %v5351_v31 = vrot.slane %v5324_v25, 9  ;;  %v5176_v13 = vld [vmem:[%s8005_s0 + $0x70] sm:$0xf]  ;;  %v916_v18 = vshll.u32 %v5174_v9, 16  ;;  %v922_v19 = vshll.u32 %v5175_v10, 16 }
  0x8d   :  { %v877_v24 = vor.u32 %v876_v16, %v873_v11  ;;  %v891_v11 = vor.u32 %v890_v2, %v887_v60  ;;  %142 = vst.msk [vmem:[#allocation3 + $0x60] sm:$0xff] %vm137_vm6, %v5876_v5  ;;  %v927_v20 = vshrl.u32 %v5176_v13, 16  ;;  %v930_v25 = vshll.u32 %v5176_v13, 16  ;;  %v5336_v57 = vld [vmem:[%s8005_s0 + $0x78] sm:$0xe] }
  0x8e   :  { %v1708_v42 = vsel %vm5971_vm2, %v5351_v31, %v1707_v32  ;;  %v936_v26 = vshll.u32 %v5177_v14, 16  ;;  %v918_v29 = vrot.slane %v916_v18, 5  ;;  %v924_v33 = vrot.slane %v922_v19, 5  ;;  %v5178_v2 = vld [vmem:[%s8005_s0 + $0x78] sm:$0xf] }
  0x8f   :  { %v1280_v49 = vpop.permute.xlu0 %1279  ;;  %v878_v35 = vrot.slane %v877_v24, 4  ;;  %v5364_v48 = vcombine.low %v1704_v36, %v1708_v42  ;;  %v892_v23 = vrot.slane %v891_v11, 4  ;;  %v915_v24 = vrot.slane %v913_v15, 4  ;;  %v5877_v36 = vld [vmem:[%s8005_s0 + $0x60] ss:$8 sps:$4 sm:$0xff]  }
  0x90   :  { %1302 = vst.msk [vmem:[#allocation3 + $0x20] sm:$0xff] %vm641_vm8, %v1280_v49  ;;  %v1715_v49 = vrot.slane %v5329_v43, 5  ;;  %v929_v30 = vrot.slane %v927_v20, 4  ;;  %v941_v9 = vshrl.u32 %v5178_v2, 16  ;;  %v944_v13 = vshll.u32 %v5178_v2, 16 }
  0x91   :  { %v432_v54 = vpop.permute.xlu1 %431  ;;  %v1789_v8 = vld [vmem:[#allocation3] sm:$0xff]  ;;  %v883_v47 = vsel %vm6062_vm5, %v878_v35, %v882_v17  ;;  %1783 = vst.msk [vmem:[#allocation3 + $0x40] sm:$0xff] %vm137_vm6, %v5364_v48  ;;  %v897_v32 = vsel %vm6062_vm5, %v892_v23, %v896_v3  ;;  %v938_v35 = vrot.slane %v936_v26, 5  ;;  %v919_v38 = vor.u32 %v918_v29, %v915_v24  ;;  %143 = vst.msk [vmem:[#allocation3 + $0x78] sm:$0xff] %vm137_vm6, %v5877_v36  ;;  %v5179_v3 = vld [vmem:[%s8005_s0 + $0x7c] sm:$0x1] }
  0x92   :  { %455 = vst.msk [vmem:[#allocation3 + $0x18] sm:$0xff] %vm453_vm7, %v432_v54  ;;  %v5189_v53 = vcombine.low %v869_v41, %v883_v47  ;;  %v1712_v54 = vsel %vm5971_vm2, %v5352_v39, %v1711_v44  ;;  %v1716_v59 = vsel %vm5971_vm2, %v5353_v45, %v1715_v49  ;;  %v5330_v39 = vld [vmem:[%s8005_s0 + $0x60] sm:$0xe]  ;;  %v5332_v41 = vld [vmem:[%s8005_s0 + $0x68] sm:$0xe]  ;;  %v950_v14 = vshll.u32 %v5179_v3, 16 }
  0x93   :  { %v1790_v7 = vld [vmem:[#allocation3 + $0x8] sm:$0xff]  ;;  %v5365_v1 = vcombine.low %v1712_v54, %v1716_v59  ;;  %v5354_v45 = vrot.slane %v5330_v39, 9  ;;  %v5334_v47 = vld [vmem:[%s8005_s0 + $0x70] sm:$0xe]  ;;  %v920_v51 = vrot.slane %v919_v38, 4  ;;  %v5355_v52 = vrot.slane %v5332_v41, 9 }
  0x94   :  { %2013 = vmatprep.mubr.bf16.mxu0 %v1790_v7  ;;  %1031 = vst.msk [vmem:[#allocation3 + $0x50] sm:$0xff] %vm137_vm6, %v5189_v53  ;;  %v901_v7 = vrot.slane %v899_v61, 4  ;;  %v5333_v44 = vld [vmem:[%s8005_s0 + $0x6c] sm:$0x1]  ;;  %v5335_v54 = vld [vmem:[%s8005_s0 + $0x74] sm:$0x1] }
  0x95   :  { %v620_v12 = vpop.permute.xlu1 %619  ;;  %2014 = vmatmul.mubr.bf16.vlgmr.msra.gmra.mrb[0].mxu0 %v1789_v8  ;;  %v904_v8 = vrot.slane %v902_v62, 5  ;;  %1784 = vst.msk [vmem:[#allocation3 + $0x58] sm:$0xff] %vm137_vm6, %v5365_v1  ;;  %v1723_v53 = vrot.slane %v5333_v44, 5  ;;  %v5337_v59 = vld [vmem:[%s8005_s0 + $0x7c] sm:$0x1]  ;;  %v5356_v60 = vrot.slane %v5334_v47, 9  ;;  %v925_v61 = vsel %vm6062_vm5, %v920_v51, %v924_v33 }
  0x96   :  { %643 = vst.msk [vmem:[#allocation3 + $0x18] sm:$0xff] %vm641_vm8, %v620_v12  ;;  %v910_v12 = vrot.slane %v908_v4, 5  ;;  %v5357_v1 = vrot.slane %v5336_v57, 9  ;;  %v5878_v19 = vld [vmem:[%s8005_s0 + $0x70] ss:$8 sps:$4 sm:$0xff]   ;;  %vm33_vm11 = vcmask 253952  }
  0x97   :  { %v905_v17 = vor.u32 %v904_v8, %v901_v7  ;;  %v1724_v62 = vsel %vm5971_vm2, %v5355_v52, %v1723_v53  ;;  %v5180_v7 = vld [vmem:[%s8005_s0 + $0x80] sm:$0xf]  ;;  %v5181_v8 = vld [vmem:[%s8005_s0 + $0x84] sm:$0x1]  ;;  %v5182_v24 = vld [vmem:[%s8005_s0 + $0x88] sm:$0xf] }
  0x98   :  { %v1797_v31 = vld [vmem:[#allocation3 + $0x40] sm:$0xff]  ;;  %v958_v18 = vshll.u32 %v5180_v7, 16  ;;  %v964_v23 = vshll.u32 %v5181_v8, 16  ;;  %144 = vst.msk [vmem:[#allocation3 + $0x90] sm:$0xff] %vm137_vm6, %v5878_v19  ;;  %v5184_v29 = vld [vmem:[%s8005_s0 + $0x90] sm:$0xf] }
  0x99   :  { %v710_v34 = vpop.permute.xlu1 %709  ;;  %v1592_v40 = vpop.permute.xlu0 %1591  ;;  %v906_v28 = vrot.slane %v905_v17, 4  ;;  %5798 = vmatprep.mubr.msk.bf16.mxu1 %vm137_vm6, %v1797_v31  ;;  %v955_v17 = vshrl.u32 %v5180_v7, 16  ;;  %v969_v36 = vshrl.u32 %v5182_v24, 16  ;;  %v972_v38 = vshll.u32 %v5182_v24, 16 }
  0x9a   :  { %733 = vst.msk [vmem:[#allocation3 + $0x18] sm:$0xff] %vm731_vm9, %v710_v34  ;;  %1614 = vst.msk [vmem:[#allocation3 + $0x20] sm:$0xff] %vm731_vm9, %v1592_v40  ;;  %v932_v34 = vrot.slane %v930_v25, 5  ;;  %v5331_v40 = vld [vmem:[%s8005_s0 + $0x64] sm:$0x1] }
  0x9b   :  { %v911_v37 = vsel %vm6062_vm5, %v906_v28, %v910_v12  ;;  %v1719_v46 = vrot.slane %v5331_v40, 5  ;;  %v957_v26 = vrot.slane %v955_v17, 4  ;;  %v5183_v28 = vld [vmem:[%s8005_s0 + $0x8c] sm:$0x1]  ;;  %v983_v40 = vshrl.u32 %v5184_v29, 16 }
  0x9c   :  { %v5190_v42 = vcombine.low %v897_v32, %v911_v37  ;;  %v933_v43 = vor.u32 %v932_v34, %v929_v30  ;;  %v1800_v50 = vld [vmem:[#allocation3 + $0x58] sm:$0xff]  ;;  %v966_v34 = vrot.slane %v964_v23, 5  ;;  %v978_v39 = vshll.u32 %v5183_v28, 16 }
  0x9d   :  { %v1193_v63 = vpop.permute.xlu0 %1192  ;;  %v434_v6 = vpop.permute.xlu1 %433  ;;  %5799 = vmatmul.mubr.msk.bf16.gmra.mrb[4].mxu1 %vm137_vm6, %v1800_v50  ;;  %v1720_v56 = vsel %vm5971_vm2, %v5354_v45, %v1719_v46  ;;  %v974_v47 = vrot.slane %v972_v38, 5  ;;  %vm2447_vm12 = vsmask.f32 7938  ;;  %vm2453_vm13 = vsmask.f32 256 }
  0x9e   :  { %1214 = vst.msk [vmem:[#allocation3 + $0x38] sm:$0xff] %vm453_vm7, %v1193_v63  ;;  %456 = vst.msk [vmem:[#allocation3 + $0x30] sm:$0xff] %vm453_vm7, %v434_v6  ;;  %v934_v55 = vrot.slane %v933_v43, 4  ;;  %v1727_v63 = vrot.slane %v5335_v54, 5  ;;  %v5366_v5 = vcombine.low %v1720_v56, %v1724_v62  ;;  %v1731_v6 = vrot.slane %v5337_v59, 5 }
  0x9f   :  { %1032 = vst.msk [vmem:[#allocation3 + $0x68] sm:$0xff] %vm137_vm6, %v5190_v42  ;;  %v971_v42 = vrot.slane %v969_v36, 4  ;;  %v986_v43 = vshll.u32 %v5184_v29, 16  ;;  %v980_v52 = vrot.slane %v978_v39, 5  ;;  %v5339_v59 = vld [vmem:[%s8005_s0 + $0x84] sm:$0x1]  ;;  %vm7074_vm14 = vmand %vm31_vm10, %vm2447_vm12 }
  0xa0   :  { %v939_v4 = vsel %vm6062_vm5, %v934_v55, %v938_v35  ;;  %v1728_v12 = vsel %vm5971_vm2, %v5356_v60, %v1727_v63  ;;  %1785 = vst.msk [vmem:[#allocation3 + $0x70] sm:$0xff] %vm137_vm6, %v5366_v5  ;;  %v1732_v15 = vsel %vm5971_vm2, %v5357_v1, %v1731_v6  ;;  %v5185_v35 = vld [vmem:[%s8005_s0 + $0x94] sm:$0x1]  ;;  %v5338_v55 = vld [vmem:[%s8005_s0 + $0x80] sm:$0xe]  ;;  %v1735_v3 = vrot.slane %v5339_v59, 5  ;;  %vm7080_vm15 = vmand %vm33_vm11, %vm2453_vm13 }
  0xa1   :  { %v1792_v16 = vld [vmem:[#allocation3 + $0x18] sm:$0xff]  ;;  %v1282_v21 = vpop.permute.xlu0 %1281  ;;  %v1793_v22 = vld [vmem:[#allocation3 + $0x20] sm:$0xff]  ;;  %v622_v27 = vpop.permute.xlu1 %621  ;;  %v5191_v11 = vcombine.low %v925_v61, %v939_v4  ;;  %v5367_v20 = vcombine.low %v1728_v12, %v1732_v15  ;;  %v992_v44 = vshll.u32 %v5185_v35, 16  ;;  %v988_v53 = vrot.slane %v986_v43, 5  ;;  %v5340_v60 = vld [vmem:[%s8005_s0 + $0x88] sm:$0xe] }
  0xa2   :  { %1303 = vst.msk [vmem:[#allocation3 + $0x38] sm:$0xff] %vm641_vm8, %v1282_v21  ;;  %2021 = vmatprep.mubr.bf16.mxu0 %v1793_v22  ;;  %644 = vst.msk [vmem:[#allocation3 + $0x30] sm:$0xff] %vm641_vm8, %v622_v27  ;;  %v946_v21 = vrot.slane %v944_v13, 5  ;;  %v952_v22 = vrot.slane %v950_v14, 5  ;;  %v960_v27 = vrot.slane %v958_v18, 5  ;;  %v975_v57 = vor.u32 %v974_v47, %v971_v42 }
  0xa3   :  { %2022 = vmatmul.mubr.bf16.gmra.mrb[4].mxu0 %v1792_v16  ;;  %v943_v16 = vrot.slane %v941_v9, 4  ;;  %1033 = vst.msk [vmem:[#allocation3 + $0x80] sm:$0xff] %vm137_vm6, %v5191_v11  ;;  %1786 = vst.msk [vmem:[#allocation3 + $0x88] sm:$0xff] %vm137_vm6, %v5367_v20  ;;  %v994_v54 = vrot.slane %v992_v44, 5  ;;  %v5341_v61 = vld [vmem:[%s8005_s0 + $0x8c] sm:$0x1] }
  0xa4   :  { %v961_v37 = vor.u32 %v960_v27, %v957_v26  ;;  %v5358_v2 = vrot.slane %v5338_v55, 9  ;;  %v5342_v4 = vld [vmem:[%s8005_s0 + $0x90] sm:$0xe]  ;;  %v5343_v5 = vld [vmem:[%s8005_s0 + $0x94] sm:$0x1]  ;;  %v976_v8 = vrot.slane %v975_v57, 4 }
  0xa5   :  { %v1594_v48 = vpop.permute.xlu0 %1593  ;;  %v712_v49 = vpop.permute.xlu1 %711  ;;  %v947_v33 = vor.u32 %v946_v21, %v943_v16  ;;  %v5359_v9 = vrot.slane %v5340_v60, 9  ;;  %v5344_v11 = vld [vmem:[%s8005_s0 + $0x98] sm:$0xe]  ;;  %v5345_v14 = vld [vmem:[%s8005_s0 + $0x9c] sm:$0x1]  ;;  %v5360_v15 = vrot.slane %v5342_v4, 9 }
  0xa6   :  { %1615 = vst.msk [vmem:[#allocation3 + $0x38] sm:$0xff] %vm731_vm9, %v1594_v48  ;;  %734 = vst.msk [vmem:[#allocation3 + $0x30] sm:$0xff] %vm731_vm9, %v712_v49  ;;  %v962_v46 = vrot.slane %v961_v37, 4  ;;  %v985_v48 = vrot.slane %v983_v40, 4  ;;  %v5879_v49 = vld [vmem:[%s8005_s0 + $0x80] ss:$8 sps:$4 sm:$0xff]   ;;  %v1736_v13 = vsel %vm5971_vm2, %v5358_v2, %v1735_v3  ;;  %v981_v17 = vsel %vm6062_vm5, %v976_v8, %v980_v52 }
  0xa7   :  { %v948_v41 = vrot.slane %v947_v33, 4  ;;  %v1803_v50 = vld [vmem:[#allocation3 + $0x70] sm:$0xff]  ;;  %145 = vst.msk [vmem:[#allocation3 + $0xa8] sm:$0xff] %vm137_vm6, %v5879_v49  ;;  %v1743_v16 = vrot.slane %v5343_v5, 5  ;;  %v5361_v19 = vrot.slane %v5344_v11, 9  ;;  %v1747_v20 = vrot.slane %v5345_v14, 5 }
  0xa8   :  { %5802 = vmatprep.mubr.msk.bf16.mxu1 %vm137_vm6, %v1803_v50  ;;  %v967_v56 = vsel %vm6062_vm5, %v962_v46, %v966_v34  ;;  %v989_v1 = vor.u32 %v988_v53, %v985_v48  ;;  %v5884_v2 = vld [vmem:[%s8007_s4 + $0x80] sm:$0xff]   ;;  %v5886_v3 = vld [vmem:[%s8007_s4 + $0x88] sm:$0xff]  }
  0xa9   :  { %v1195_v10 = vpop.permute.xlu0 %1194  ;;  %v953_v51 = vsel %vm6062_vm5, %v948_v41, %v952_v22  ;;  %v1744_v24 = vsel %vm5971_vm2, %v5360_v15, %v1743_v16  ;;  %v1748_v26 = vsel %vm5971_vm2, %v5361_v19, %v1747_v20  ;;  %5810 = vmatprep.subr.bf16.mxu0 %v5884_v2  ;;  %v7063_v15 = vld [vmem:[%s8009_s3] ss:$0 sm:$0xff] }
  0xaa   :  { %1215 = vst.msk [vmem:[#allocation3 + $0x50] sm:$0xff] %vm453_vm7, %v1195_v10  ;;  %v5192_v63 = vcombine.low %v953_v51, %v967_v56  ;;  %v1806_v7 = vld [vmem:[#allocation3 + $0x88] sm:$0xff]  ;;  %v1739_v10 = vrot.slane %v5341_v61, 5  ;;  %v990_v12 = vrot.slane %v989_v1, 4  ;;  %v5369_v27 = vcombine.low %v1744_v24, %v1748_v26  ;;  %5811 = vmatpush3.bf16.msra.mxu0 %v5884_v2 }
  0xab   :  { %v436_v25 = vpop.permute.xlu1 %435  ;;  %5803 = vmatmul.mubr.msk.bf16.gmra.mrb[8].mxu1 %vm137_vm6, %v1806_v7  ;;  %5812 = vmatprep.subr.bf16.mxu0 %v5886_v3 }
  0xac   :  { %457 = vst.msk [vmem:[#allocation3 + $0x48] sm:$0xff] %vm453_vm7, %v436_v25  ;;  %v1740_v18 = vsel %vm5971_vm2, %v5359_v9, %v1739_v10  ;;  %v995_v22 = vsel %vm6062_vm5, %v990_v12, %v994_v54  ;;  %v7058_v12 = vld [vmem:[%s8008_s2] ss:$0 sm:$0xff] }
  0xad   :  { %v1284_v30 = vpop.permute.xlu0 %1283  ;;  %v1796_v31 = vld [vmem:[#allocation3 + $0x38] sm:$0xff]  ;;  %v1795_v32 = vld [vmem:[#allocation3 + $0x30] sm:$0xff]  ;;  %1034 = vst.msk [vmem:[#allocation3 + $0x98] sm:$0xff] %vm137_vm6, %v5192_v63  ;;  %v5368_v23 = vcombine.low %v1736_v13, %v1740_v18  ;;  %v5193_v25 = vcombine.low %v981_v17, %v995_v22  ;;  %1788 = vst.msk [vmem:[#allocation3 + $0xb8] sm:$0xff] %vm137_vm6, %v5369_v27 }
  0xae   :  { %1304 = vst.msk [vmem:[#allocation3 + $0x50] sm:$0xff] %vm641_vm8, %v1284_v30  ;;  %2029 = vmatprep.mubr.bf16.mxu0 %v1796_v31  ;;  %5813 = vmatpush3.bf16.msra.mxu0 %v5886_v3 }
  0xaf   :  { %2030 = vmatmul.mubr.bf16.gmra.mrb[8].mxu0 %v1795_v32  ;;  %v624_v45 = vpop.permute.xlu1 %623  ;;  %1787 = vst.msk [vmem:[#allocation3 + $0xa0] sm:$0xff] %vm137_vm6, %v5368_v23  ;;  %1035 = vst.msk [vmem:[#allocation3 + $0xb0] sm:$0xff] %vm137_vm6, %v5193_v25 }
  0xb0   :  { %645 = vst.msk [vmem:[#allocation3 + $0x48] sm:$0xff] %vm641_vm8, %v624_v45 }
  0xb1   :  { %v1596_v62 = vpop.permute.xlu0 %1595 }
  0xb2   :  { %1616 = vst.msk [vmem:[#allocation3 + $0x50] sm:$0xff] %vm731_vm9, %v1596_v62  ;;  %v5930_v62 = vmov 0  }
  0xb3   :  { %v714_v6 = vpop.permute.xlu1 %713  ;;  %35 = vst.msk [vmem:[#allocation2 + $0x8] sm:$0xf] %vm31_vm10, %v5930_v62  ;;  %32 = vst.msk [vmem:[#allocation2] sm:$0xf] %vm31_vm10, %v5930_v62 }
  0xb4   :  { %735 = vst.msk [vmem:[#allocation3 + $0x48] sm:$0xff] %vm731_vm9, %v714_v6  ;;  %v1812_v36 = vld [vmem:[#allocation3 + $0xb8] sm:$0xff] }
  0xb5   :  { %v1197_v21 = vpop.permute.xlu0 %1196  ;;  %36 = vst.msk [vmem:[#allocation2 + $0xc] sm:$0x1] %vm33_vm11, %v5930_v62  ;;  %34 = vst.msk [vmem:[#allocation2 + $0x4] sm:$0x1] %vm33_vm11, %v5930_v62 }
  0xb6   :  { %1216 = vst.msk [vmem:[#allocation3 + $0x68] sm:$0xff] %vm453_vm7, %v1197_v21  ;;  %v1809_v33 = vld [vmem:[#allocation3 + $0xa0] sm:$0xff] }
  0xb7   :  { %5806 = vmatprep.mubr.msk.bf16.mxu1 %vm137_vm6, %v1809_v33  ;;  %37 = vst.msk [vmem:[#allocation2 + $0x10] sm:$0xf] %vm31_vm10, %v5930_v62  ;;  %39 = vst.msk [vmem:[#allocation2 + $0x18] sm:$0xf] %vm31_vm10, %v5930_v62 }
  0xb8   :  { %v438_v28 = vpop.permute.xlu1 %437  ;;  %5807 = vmatmul.mubr.msk.bf16.gmra.mrb[12].mxu1 %vm137_vm6, %v1812_v36  ;;  %38 = vst.msk [vmem:[#allocation2 + $0x14] sm:$0x1] %vm33_vm11, %v5930_v62  ;;  %40 = vst.msk [vmem:[#allocation2 + $0x1c] sm:$0x1] %vm33_vm11, %v5930_v62 }
  0xb9   :  { %458 = vst.msk [vmem:[#allocation3 + $0x60] sm:$0xff] %vm453_vm7, %v438_v28  ;;  %v1286_v29 = vpop.permute.xlu0 %1285  ;;  %v1799_v30 = vld [vmem:[#allocation3 + $0x50] sm:$0xff] }
  0xba   :  { %1305 = vst.msk [vmem:[#allocation3 + $0x68] sm:$0xff] %vm641_vm8, %v1286_v29  ;;  %2037 = vmatprep.mubr.bf16.mxu0 %v1799_v30  ;;  %v2620_v21 = vld [vmem:[#allocation2] sm:$0xf]  ;;  %v2449_v36 = vld [vmem:[#allocation2 + $0x8] sm:$0xf] }
  0xbb   :  { %v1798_v31 = vld [vmem:[#allocation3 + $0x48] sm:$0xff]  ;;  %41 = vst.msk [vmem:[#allocation2 + $0x20] sm:$0xf] %vm31_vm10, %v5930_v62  ;;  %43 = vst.msk [vmem:[#allocation2 + $0x28] sm:$0xf] %vm31_vm10, %v5930_v62  ;;  %v2653_v25 = vshrl.u32 %v2620_v21, 16 }
  0xbc   :  { %2038 = vmatmul.mubr.bf16.gmra.mrb[12].mxu0 %v1798_v31  ;;  %v626_v32 = vpop.permute.xlu1 %625  ;;  %42 = vst.msk [vmem:[#allocation2 + $0x24] sm:$0x1] %vm33_vm11, %v5930_v62  ;;  %44 = vst.msk [vmem:[#allocation2 + $0x2c] sm:$0x1] %vm33_vm11, %v5930_v62  ;;  %v2656_v26 = vshll.u32 %v2620_v21, 16 }
  0xbd   :  { %646 = vst.msk [vmem:[#allocation3 + $0x60] sm:$0xff] %vm641_vm8, %v626_v32  ;;  %v7069_v29 = vld [vmem:[#allocation2] sm:$0xe] }
  0xbe   :  { %45 = vst.msk [vmem:[#allocation2 + $0x30] sm:$0xf] %vm31_vm10, %v5930_v62  ;;  %47 = vst.msk [vmem:[#allocation2 + $0x38] sm:$0xf] %vm31_vm10, %v5930_v62 }
  0xbf   :  { %v1598_v34 = vpop.permute.xlu0 %1597  ;;  %46 = vst.msk [vmem:[#allocation2 + $0x34] sm:$0x1] %vm33_vm11, %v5930_v62  ;;  %48 = vst.msk [vmem:[#allocation2 + $0x3c] sm:$0x1] %vm33_vm11, %v5930_v62 }
  0xc0   :  { %1617 = vst.msk [vmem:[#allocation3 + $0x68] sm:$0xff] %vm731_vm9, %v1598_v34  ;;  %v716_v35 = vpop.permute.xlu1 %715 }
  0xc1   :  { %736 = vst.msk [vmem:[#allocation3 + $0x60] sm:$0xff] %vm731_vm9, %v716_v35 }
  0xc2   :  { %49 = vst.msk [vmem:[#allocation2 + $0x40] sm:$0xf] %vm31_vm10, %v5930_v62  ;;  %51 = vst.msk [vmem:[#allocation2 + $0x48] sm:$0xf] %vm31_vm10, %v5930_v62 }
  0xc3   :  { %v1199_v37 = vpop.permute.xlu0 %1198  ;;  %50 = vst.msk [vmem:[#allocation2 + $0x44] sm:$0x1] %vm33_vm11, %v5930_v62  ;;  %52 = vst.msk [vmem:[#allocation2 + $0x4c] sm:$0x1] %vm33_vm11, %v5930_v62 }
  0xc4   :  { %1217 = vst.msk [vmem:[#allocation3 + $0x80] sm:$0xff] %vm453_vm7, %v1199_v37  ;;  %v2455_v37 = vld [vmem:[#allocation2 + $0xc] sm:$0x1] }
  0xc5   :  { %53 = vst.msk [vmem:[#allocation2 + $0x50] sm:$0xf] %vm31_vm10, %v5930_v62  ;;  %55 = vst.msk [vmem:[#allocation2 + $0x58] sm:$0xf] %vm31_vm10, %v5930_v62 }
  0xc6   :  { %v440_v38 = vpop.permute.xlu1 %439  ;;  %54 = vst.msk [vmem:[#allocation2 + $0x54] sm:$0x1] %vm33_vm11, %v5930_v62  ;;  %56 = vst.msk [vmem:[#allocation2 + $0x5c] sm:$0x1] %vm33_vm11, %v5930_v62 }
  0xc7   :  { %459 = vst.msk [vmem:[#allocation3 + $0x78] sm:$0xff] %vm453_vm7, %v440_v38  ;;  %v1288_v39 = vpop.permute.xlu0 %1287  ;;  %v1802_v40 = vld [vmem:[#allocation3 + $0x68] sm:$0xff] }
  0xc8   :  { %1306 = vst.msk [vmem:[#allocation3 + $0x80] sm:$0xff] %vm641_vm8, %v1288_v39  ;;  %2045 = vmatprep.mubr.bf16.mxu0 %v1802_v40  ;;  %v1801_v41 = vld [vmem:[#allocation3 + $0x60] sm:$0xff]  ;;  %v5430_v40 = vrot.slane %v7069_v29, 9 }
  0xc9   :  { %2046 = vmatmul.mubr.bf16.gmra.mrb[16].mxu0 %v1801_v41  ;;  %57 = vst.msk [vmem:[#allocation2 + $0x60] sm:$0xf] %vm31_vm10, %v5930_v62  ;;  %59 = vst.msk [vmem:[#allocation2 + $0x68] sm:$0xf] %vm31_vm10, %v5930_v62  ;;  %v3787_v24 = vld [vmem:[#allocation2 + $0x48] sm:$0xf] }
  0xca   :  { %v628_v42 = vpop.permute.xlu1 %627  ;;  %58 = vst.msk [vmem:[#allocation2 + $0x64] sm:$0x1] %vm33_vm11, %v5930_v62  ;;  %60 = vst.msk [vmem:[#allocation2 + $0x6c] sm:$0x1] %vm33_vm11, %v5930_v62  ;;  %v3904_v31 = vshrl.u32 %v3787_v24, 16  ;;  %v3907_v32 = vshll.u32 %v3787_v24, 16 }
  0xcb   :  { %647 = vst.msk [vmem:[#allocation3 + $0x78] sm:$0xff] %vm641_vm8, %v628_v42  ;;  %v2655_v41 = vrot.slane %v2653_v25, 4  ;;  %v2658_v42 = vrot.slane %v2656_v26, 5 }
  0xcc   :  { %v1600_v43 = vpop.permute.xlu0 %1599  ;;  %61 = vst.msk [vmem:[#allocation2 + $0x70] sm:$0xf] %vm31_vm10, %v5930_v62  ;;  %63 = vst.msk [vmem:[#allocation2 + $0x78] sm:$0xf] %vm31_vm10, %v5930_v62 }
  0xcd   :  { %1618 = vst.msk [vmem:[#allocation3 + $0x80] sm:$0xff] %vm731_vm9, %v1600_v43 }
  0xce   :  { %v718_v44 = vpop.permute.xlu1 %717  ;;  %62 = vst.msk [vmem:[#allocation2 + $0x74] sm:$0x1] %vm33_vm11, %v5930_v62  ;;  %64 = vst.msk [vmem:[#allocation2 + $0x7c] sm:$0x1] %vm33_vm11, %v5930_v62 }
  0xcf   :  { %737 = vst.msk [vmem:[#allocation3 + $0x78] sm:$0xff] %vm731_vm9, %v718_v44 }
  0xd0   :  { %v1201_v45 = vpop.permute.xlu0 %1200  ;;  %65 = vst.msk [vmem:[#allocation2 + $0x80] sm:$0xf] %vm31_vm10, %v5930_v62  ;;  %67 = vst.msk [vmem:[#allocation2 + $0x88] sm:$0xf] %vm31_vm10, %v5930_v62 }
  0xd1   :  { %1218 = vst.msk [vmem:[#allocation3 + $0x98] sm:$0xff] %vm453_vm7, %v1201_v45 }
  0xd2   :  { %v442_v46 = vpop.permute.xlu1 %441  ;;  %66 = vst.msk [vmem:[#allocation2 + $0x84] sm:$0x1] %vm33_vm11, %v5930_v62  ;;  %68 = vst.msk [vmem:[#allocation2 + $0x8c] sm:$0x1] %vm33_vm11, %v5930_v62 }
  0xd3   :  { %460 = vst.msk [vmem:[#allocation3 + $0x90] sm:$0xff] %vm453_vm7, %v442_v46 }
  0xd4   :  { %v1290_v47 = vpop.permute.xlu0 %1289  ;;  %v1805_v48 = vld [vmem:[#allocation3 + $0x80] sm:$0xff]  ;;  %69 = vst.msk [vmem:[#allocation2 + $0x90] sm:$0xf] %vm31_vm10, %v5930_v62  ;;  %71 = vst.msk [vmem:[#allocation2 + $0x98] sm:$0xf] %vm31_vm10, %v5930_v62 }
  0xd5   :  { %1307 = vst.msk [vmem:[#allocation3 + $0x98] sm:$0xff] %vm641_vm8, %v1290_v47  ;;  %2053 = vmatprep.mubr.bf16.mxu0 %v1805_v48  ;;  %v2621_v48 = vld [vmem:[#allocation2 + $0x4] sm:$0x1] }
  0xd6   :  { %v630_v49 = vpop.permute.xlu1 %629  ;;  %v1804_v50 = vld [vmem:[#allocation3 + $0x78] sm:$0xff]  ;;  %70 = vst.msk [vmem:[#allocation2 + $0x94] sm:$0x1] %vm33_vm11, %v5930_v62  ;;  %72 = vst.msk [vmem:[#allocation2 + $0x9c] sm:$0x1] %vm33_vm11, %v5930_v62 }
  0xd7   :  { %648 = vst.msk [vmem:[#allocation3 + $0x90] sm:$0xff] %vm641_vm8, %v630_v49  ;;  %2054 = vmatmul.mubr.bf16.gmra.mrb[20].mxu0 %v1804_v50  ;;  %v2458_v50 = vld [vmem:[#allocation2 + $0x10] sm:$0xf]  ;;  %v3788_v62 = vld [vmem:[#allocation2 + $0x4c] sm:$0x1] }
  0xd9   :  { %v1602_v52 = vpop.permute.xlu0 %1601 }
  0xda   :  { %v720_v51 = vpop.permute.xlu1 %719  ;;  %1619 = vst.msk [vmem:[#allocation3 + $0x98] sm:$0xff] %vm731_vm9, %v1602_v52 }
  0xdb   :  { %738 = vst.msk [vmem:[#allocation3 + $0x90] sm:$0xff] %vm731_vm9, %v720_v51 }
  0xdd   :  { %v1203_v53 = vpop.permute.xlu0 %1202 }
  0xde   :  { %1219 = vst.msk [vmem:[#allocation3 + $0xb0] sm:$0xff] %vm453_vm7, %v1203_v53 }
  0xdf   :  { %v444_v54 = vpop.permute.xlu1 %443 }
  0xe0   :  { %461 = vst.msk [vmem:[#allocation3 + $0xa8] sm:$0xff] %vm453_vm7, %v444_v54  ;;  %v3906_v54 = vrot.slane %v3904_v31, 4 }
  0xe1   :  { %v1292_v56 = vpop.permute.xlu0 %1291  ;;  %v1808_v57 = vld [vmem:[#allocation3 + $0x98] sm:$0xff] }
  0xe2   :  { %v1807_v55 = vld [vmem:[#allocation3 + $0x90] sm:$0xff]  ;;  %1308 = vst.msk [vmem:[#allocation3 + $0xb0] sm:$0xff] %vm641_vm8, %v1292_v56  ;;  %2061 = vmatprep.mubr.bf16.mxu0 %v1808_v57 }
  0xe3   :  { %v632_v59 = vpop.permute.xlu1 %631  ;;  %2062 = vmatmul.mubr.bf16.gmra.mrb[24].mxu0 %v1807_v55  ;;  %v3909_v55 = vrot.slane %v3907_v32, 5 }
  0xe4   :  { %649 = vst.msk [vmem:[#allocation3 + $0xa8] sm:$0xff] %vm641_vm8, %v632_v59 }
  0xe6   :  { %v1604_v60 = vpop.permute.xlu0 %1603 }
  0xe7   :  { %v722_v61 = vpop.permute.xlu1 %721  ;;  %1620 = vst.msk [vmem:[#allocation3 + $0xb0] sm:$0xff] %vm731_vm9, %v1604_v60 }
  0xe8   :  { %739 = vst.msk [vmem:[#allocation3 + $0xa8] sm:$0xff] %vm731_vm9, %v722_v61 }
  0xee   :  { %v1811_v63 = vld [vmem:[#allocation3 + $0xb0] sm:$0xff] }
  0xef   :  { %v1810_v1 = vld [vmem:[#allocation3 + $0xa8] sm:$0xff]  ;;  %2069 = vmatprep.mubr.bf16.mxu0 %v1811_v63  ;;  %v2461_v63 = vld [vmem:[#allocation2 + $0x14] sm:$0x1] }
  0xf0   :  { %2070 = vmatmul.mubr.bf16.gmra.mrb[28].mxu0 %v1810_v1 }
 0x15b   :  { %v5796_v8 = vpop.f32.mrb[0].mxu1 }
 0x15c   :  { %v2112_v11 = vpop.f32.mrb[1].mxu1 }
 0x15d   :  { %v5797_v14 = vpop.f32.mrb[2].mxu1 }
 0x15e   :  { %v2115_v16 = vpop.f32.mrb[3].mxu1 }
 0x168   :  { %v5658_v4 = vpop.f32.mrb[0].mxu0 }
 0x169   :  { %v5659_v5 = vpop.f32.mrb[1].mxu0 }
 0x16a   :  { %v5660_v6 = vadd.f32 %v5659_v5, %v5658_v4  ;;  %v5661_v7 = vpop.f32.mrb[2].mxu0  ;;  %v2659_v4 = vor.u32 %v2658_v42, %v2655_v41  ;;  %v2662_v5 = vshll.u32 %v2621_v48, 16 }
 0x16b   :  { %v5662_v9 = vpop.f32.mrb[3].mxu0 }
 0x16c   :  { %v5663_v10 = vadd.f32 %v5662_v9, %v5661_v7  ;;  %v2113_v13 = vadd.f32 %v5660_v6, %v2112_v11  ;;  %v2636_v6 = vld [vmem:[#allocation2 + $0x50] sm:$0xf]  ;;  %v7112_v31 = vrot.slane %v2659_v4, 4  ;;  %v2470_v4 = vld [vmem:[#allocation2 + $0x20] sm:$0xf] }
 0x16d   :  { %v2768_v24 = vshll.u32 %v2636_v6, 16 }
 0x16e   :  { %v2182_v17 = vmul.f32 %v7058_v12, %v2113_v13  ;;  %v2116_v18 = vadd.f32 %v5663_v10, %v2115_v16  ;;  %v2933_v13 = vld [vmem:[#allocation2 + $0x4] sm:$0x1] }
 0x170   :  { %v2205_v19 = vadd.f32 %v7063_v15, %v2182_v17  ;;  %v2183_v20 = vmul.f32 %v7058_v12, %v2116_v18  ;;  %v7084_v53 = vpop.f32.mrb[4].mxu1  ;;  %v7099_v17 = vld [vmem:[#allocation2 + $0x48] sm:$0xe]  ;;  %v3910_v18 = vor.u32 %v3909_v55, %v3906_v54  ;;  %v2464_v54 = vld [vmem:[#allocation2 + $0x18] sm:$0xf] }
 0x171   :  { %v7086_v61 = vpop.f32.mrb[5].mxu1  ;;  %v5517_v32 = vrot.slane %v7099_v17, 9  ;;  %v2467_v55 = vld [vmem:[#allocation2 + $0x1c] sm:$0x1] }
 0x172   :  { %v2221_v22 = vmax.f32 %v2205_v19, 0.0  ;;  %v2206_v23 = vadd.f32 %v7063_v15, %v2183_v20  ;;  %v7089_v3 = vpop.f32.mrb[6].mxu1  ;;  %v3913_v19 = vshll.u32 %v3788_v62, 16 }
 0x173   :  { %v7095_v11 = vpop.f32.mrb[7].mxu1 }
 0x174   :  { %v5610_v27 = vpack.c.bf16 %v2221_v22, %v2221_v22  ;;  %v2222_v28 = vmax.f32 %v2206_v23, 0.0  ;;  %v7105_v22 = vld [vmem:[#allocation2 + $0x4c] sm:$0x1]  ;;  %v2765_v23 = vshrl.u32 %v2636_v6, 16  ;;  %v7122_v41 = vrot.slane %v3913_v19, 5 }
 0x176   :  { %v5664_v30 = vpop.f32.mrb[4].mxu0  ;;  %v2286_v33 = vshrl.u32 %v5610_v27, 16  ;;  %v5611_v34 = vpack.c.bf16 %v2222_v28, %v2222_v28  ;;  %v2289_v44 = vshll.u32 %v5610_v27, 16  ;;  %v2998_v27 = vrot.slane %v2933_v13, 5 }
 0x177   :  { %v5665_v35 = vpop.f32.mrb[5].mxu0  ;;  %v7108_v28 = vrot.slane %v2662_v5, 5  ;;  %v2473_v5 = vld [vmem:[#allocation2 + $0x24] sm:$0x1] }
 0x178   :  { %v5666_v38 = vadd.f32 %v5665_v35, %v5664_v30  ;;  %v5667_v39 = vpop.f32.mrb[6].mxu0  ;;  %v2288_v43 = vrot.slane %v2286_v33, 7  ;;  %v2294_v46 = vshrl.u32 %v5611_v34, 16  ;;  %v2297_v60 = vshll.u32 %v5611_v34, 16  ;;  %v7110_v30 = vld [vmem:[#allocation2 + $0x50] sm:$0xe] }
 0x179   :  { %v5668_v47 = vpop.f32.mrb[7].mxu0  ;;  %v7115_v33 = vld [vmem:[#allocation2 + $0x54] sm:$0x1]  ;;  %v5438_v42 = vrot.slane %v7110_v30, 9 }
 0x17a   :  { %v2121_v51 = vadd.f32 %v5796_v8, %v5666_v38  ;;  %v5669_v52 = vadd.f32 %v5668_v47, %v5667_v39  ;;  %v2291_v56 = vor.u32 %v2289_v44, %v2288_v43  ;;  %v2292_v57 = vrot.slane %v2288_v43, 4  ;;  %v7117_v34 = vld [vmem:[#allocation2 + $0x54] sm:$0x1] }
 0x17b   :  { %v2296_v59 = vrot.slane %v2294_v46, 7  ;;  %v7120_v38 = vrot.slane %v3910_v18, 4  ;;  %v7125_v43 = vrot.slane %v2765_v23, 4  ;;  %v7127_v44 = vrot.slane %v2768_v24, 5 }
 0x17c   :  { %v2184_v1 = vmul.f32 %v7058_v12, %v2121_v51  ;;  %v2124_v2 = vadd.f32 %v5797_v14, %v5669_v52  ;;  %v2450_v7 = vsel %vm7074_vm14, %v2291_v56, %v2449_v36  ;;  %v2456_v8 = vsel %vm7080_vm15, %v2292_v57, %v2455_v37 }
 0x17d   :  { %v2299_v9 = vor.u32 %v2297_v60, %v2296_v59  ;;  %v2300_v10 = vrot.slane %v2296_v59, 4  ;;  %2451 = vst [vmem:[#allocation2 + $0x8] sm:$0xf] %v2450_v7  ;;  %2457 = vst [vmem:[#allocation2 + $0xc] sm:$0x1] %v2456_v8  ;;  %v4179_v37 = vrot.slane %v7105_v22, 5  ;;  %v2771_v13 = vor.u32 %v7127_v44, %v7125_v43 }
 0x17e   :  { %v2207_v14 = vadd.f32 %v7063_v15, %v2184_v1  ;;  %v2185_v16 = vmul.f32 %v7058_v12, %v2124_v2  ;;  %v2774_v51 = vshll.u32 %v7117_v34, 16  ;;  %v2665_v34 = vsel %vm6062_vm5, %v7112_v31, %v7108_v28 }
 0x17f   :  { %v2459_v20 = vsel %vm7074_vm14, %v2299_v9, %v2458_v50  ;;  %v2462_v21 = vsel %vm7080_vm15, %v2300_v10, %v2461_v63  ;;  %v3030_v50 = vrot.slane %v7115_v33, 5  ;;  %v2999_v10 = vsel %vm5971_vm2, %v5430_v40, %v2998_v27 }
 0x180   :  { %2460 = vst [vmem:[#allocation2 + $0x10] sm:$0xf] %v2459_v20  ;;  %2463 = vst [vmem:[#allocation2 + $0x14] sm:$0x1] %v2462_v21  ;;  %v2223_v25 = vmax.f32 %v2207_v14, 0.0  ;;  %v2208_v26 = vadd.f32 %v7063_v15, %v2185_v16 }
 0x182   :  { %v5612_v35 = vpack.c.bf16 %v2223_v25, %v2223_v25  ;;  %v2224_v36 = vmax.f32 %v2208_v26, 0.0  ;;  %v5670_v39 = vpop.f32.mrb[8].mxu0 }
 0x183   :  { %v5671_v48 = vpop.f32.mrb[9].mxu0 }
 0x184   :  { %v2302_v46 = vshrl.u32 %v5612_v35, 16  ;;  %v5613_v47 = vpack.c.bf16 %v2224_v36, %v2224_v36  ;;  %v2305_v52 = vshll.u32 %v5612_v35, 16  ;;  %v5672_v56 = vadd.f32 %v5671_v48, %v5670_v39  ;;  %v5673_v57 = vpop.f32.mrb[10].mxu0  ;;  %v3500_v59 = vld [vmem:[#allocation2 + $0x8] sm:$0xe]  ;;  %v7145_v39 = vpop.f32.mrb[8].mxu1 }
 0x185   :  { %v5674_v1 = vpop.f32.mrb[11].mxu0  ;;  %v3501_v2 = vld [vmem:[#allocation2 + $0xc] sm:$0x1]  ;;  %v5470_v20 = vrot.slane %v3500_v59, 9  ;;  %v2934_v29 = vld [vmem:[#allocation2 + $0x8] sm:$0xe] }
 0x186   :  { %v2304_v60 = vrot.slane %v2302_v46, 7  ;;  %v2310_v62 = vshrl.u32 %v5613_v47, 16  ;;  %v2313_v63 = vshll.u32 %v5613_v47, 16  ;;  %v2129_v6 = vadd.f32 %v5672_v56, %v7086_v61  ;;  %v2935_v25 = vld [vmem:[#allocation2 + $0xc] sm:$0x1]  ;;  %v7151_v48 = vpop.f32.mrb[9].mxu1 }
 0x187   :  { %v5675_v7 = vadd.f32 %v5674_v1, %v5673_v57  ;;  %v5880_v8 = vld [vmem:[#allocation2 + $0x8] ss:$8 sps:$4 sm:$0xff]   ;;  %v3503_v19 = vld [vmem:[#allocation2 + $0x14] sm:$0x1]  ;;  %v3566_v23 = vrot.slane %v3501_v2, 5  ;;  %v3002_v56 = vrot.slane %v2935_v25, 5 }
 0x188   :  { %v3502_v9 = vld [vmem:[#allocation2 + $0x10] sm:$0xe]  ;;  %v2307_v14 = vor.u32 %v2305_v52, %v2304_v60  ;;  %v2308_v16 = vrot.slane %v2304_v60, 4  ;;  %v2312_v18 = vrot.slane %v2310_v62, 7  ;;  %v2186_v21 = vmul.f32 %v7058_v12, %v2129_v6  ;;  %3172 = vrot.lane.b32.xlu1 %v5880_v8, %s5929_s13  ;;  %v2622_v36 = vld [vmem:[#allocation2 + $0x8] sm:$0xf] }
 0x189   :  { %v2132_v61 = vadd.f32 %v5675_v7, %v7095_v11  ;;  %v5471_v24 = vrot.slane %v3502_v9, 9  ;;  %v3567_v44 = vsel %vm5971_vm2, %v5470_v20, %v3566_v23  ;;  %v3570_v46 = vrot.slane %v3503_v19, 5  ;;  %v2623_v47 = vld [vmem:[#allocation2 + $0xc] sm:$0x1]  ;;  %v7157_v57 = vpop.f32.mrb[10].mxu1 }
 0x18a   :  { %v2465_v40 = vsel %vm7074_vm14, %v2307_v14, %v2464_v54  ;;  %v2468_v26 = vsel %vm7080_vm15, %v2308_v16, %v2467_v55  ;;  %v2315_v27 = vor.u32 %v2313_v63, %v2312_v18  ;;  %v2316_v35 = vrot.slane %v2312_v18, 4  ;;  %v2936_v59 = vld [vmem:[#allocation2 + $0x10] sm:$0xe]  ;;  %v7162_v2 = vpop.f32.mrb[11].mxu1 }
 0x18b   :  { %2466 = vst [vmem:[#allocation2 + $0x18] sm:$0xf] %v2465_v40  ;;  %2469 = vst [vmem:[#allocation2 + $0x1c] sm:$0x1] %v2468_v26  ;;  %v2209_v11 = vadd.f32 %v7063_v15, %v2186_v21  ;;  %v2187_v43 = vmul.f32 %v7058_v12, %v2132_v61  ;;  %v5431_v55 = vrot.slane %v2934_v29, 9  ;;  %v3571_v63 = vsel %vm5971_vm2, %v5471_v24, %v3570_v46 }
 0x18c   :  { %v2471_v52 = vsel %vm7074_vm14, %v2315_v27, %v2470_v4  ;;  %v2474_v54 = vsel %vm7080_vm15, %v2316_v35, %v2473_v5  ;;  %v2667_v1 = vshrl.u32 %v2622_v36, 16  ;;  %v2937_v4 = vld [vmem:[#allocation2 + $0x14] sm:$0x1]  ;;  %v5486_v6 = vcombine.low %v3567_v44, %v3571_v63  ;;  %v7167_v61 = vld [vmem:[#allocation2 + $0x10] sm:$0xe] }
 0x18d   :  { %2472 = vst [vmem:[#allocation2 + $0x20] sm:$0xf] %v2471_v52  ;;  %2475 = vst [vmem:[#allocation2 + $0x24] sm:$0x1] %v2474_v54  ;;  %v2225_v60 = vmax.f32 %v2209_v11, 0.0  ;;  %v2210_v62 = vadd.f32 %v7063_v15, %v2187_v43  ;;  %v3003_v5 = vsel %vm5971_vm2, %v5431_v55, %v3002_v56  ;;  %v2670_v7 = vshll.u32 %v2622_v36, 16 }
 0x18e   :  { %v2676_v8 = vshll.u32 %v2623_v47, 16  ;;  %v5446_v16 = vcombine.low %v2999_v10, %v3003_v5  ;;  %v2669_v18 = vrot.slane %v2667_v1, 4  ;;  %3652 = vrot.lane.b32.xlu0 %v5486_v6, %s5928_s28  ;;  %v5432_v20 = vrot.slane %v2936_v59, 9  ;;  %v7174_v26 = vld [vmem:[#allocation2 + $0x14] sm:$0x1] }
 0x18f   :  { %v5614_v9 = vpack.c.bf16 %v2225_v60, %v2225_v60  ;;  %v2226_v14 = vmax.f32 %v2210_v62, 0.0  ;;  %v2672_v19 = vrot.slane %v2670_v7, 5  ;;  %v3006_v21 = vrot.slane %v2937_v4, 5  ;;  %v5676_v25 = vpop.f32.mrb[12].mxu0  ;;  %v2476_v35 = vld [vmem:[#allocation2 + $0x28] sm:$0xf] }
 0x190   :  { %v7171_v23 = vrot.slane %v2774_v51, 5  ;;  %3084 = vrot.lane.b32.xlu1 %v5446_v16, %s5927_s19  ;;  %v2678_v40 = vrot.slane %v2676_v8, 5  ;;  %v7176_v10 = vrot.slane %v2771_v13, 4  ;;  %v2479_v36 = vld [vmem:[#allocation2 + $0x2c] sm:$0x1]  ;;  %v5677_v11 = vpop.f32.mrb[13].mxu0  ;;  %v7188_v44 = vsel %vm5971_vm2, %v5517_v32, %v4179_v37 }
 0x191   :  { %v2318_v24 = vshrl.u32 %v5614_v9, 16  ;;  %v5615_v29 = vpack.c.bf16 %v2226_v14, %v2226_v14  ;;  %v2321_v27 = vshll.u32 %v5614_v9, 16  ;;  %v2673_v51 = vor.u32 %v2672_v19, %v2669_v18  ;;  %v5679_v52 = vpop.f32.mrb[14].mxu0  ;;  %v2482_v59 = vld [vmem:[#allocation2 + $0x30] sm:$0xf] }
 0x192   :  { %v5881_v43 = vld [vmem:[#allocation2 + $0x10] ss:$8 sps:$4 sm:$0xff]   ;;  %v5678_v47 = vadd.f32 %v5677_v11, %v5676_v25  ;;  %v5510_v55 = vrot.slane %v7167_v61, 9  ;;  %v2485_v60 = vld [vmem:[#allocation2 + $0x34] sm:$0x1]  ;;  %v5680_v28 = vpop.f32.mrb[15].mxu0  ;;  %v7194_v17 = vsel %vm5971_vm2, %v5432_v20, %v3006_v21 }
 0x193   :  { %v2320_v13 = vrot.slane %v2318_v24, 7  ;;  %v2326_v46 = vshrl.u32 %v5615_v29, 16  ;;  %v3504_v54 = vld [vmem:[#allocation2 + $0x18] sm:$0xe]  ;;  %v2329_v56 = vshll.u32 %v5615_v29, 16  ;;  %3741 = vrot.lane.b32.xlu0 %v5881_v43, %s5927_s19  ;;  %v2674_v22 = vrot.slane %v2673_v51, 4 }
 0x194   :  { %v3505_v31 = vld [vmem:[#allocation2 + $0x1c] sm:$0x1]  ;;  %v4151_v32 = vrot.slane %v7174_v26, 5  ;;  %v2137_v1 = vadd.f32 %v7084_v53, %v5678_v47  ;;  %v3506_v4 = vld [vmem:[#allocation2 + $0x20] sm:$0xe]  ;;  %v5681_v6 = vadd.f32 %v5680_v28, %v5679_v52  ;;  %v5472_v8 = vrot.slane %v3504_v54, 9 }
 0x195   :  { %v2323_v37 = vor.u32 %v2321_v27, %v2320_v13  ;;  %v2324_v62 = vrot.slane %v2320_v13, 4  ;;  %v2328_v63 = vrot.slane %v2326_v46, 7  ;;  %v2679_v5 = vsel %vm6062_vm5, %v2674_v22, %v2678_v40  ;;  %v3507_v7 = vld [vmem:[#allocation2 + $0x24] sm:$0x1]  ;;  %v2624_v14 = vld [vmem:[#allocation2 + $0x10] sm:$0xf] }
 0x196   :  { %v3574_v9 = vrot.slane %v3505_v31, 5  ;;  %v2938_v21 = vld [vmem:[#allocation2 + $0x18] sm:$0xe]  ;;  %v2939_v61 = vld [vmem:[#allocation2 + $0x1c] sm:$0x1]  ;;  %v7204_v53 = vpop.f32.mrb[12].mxu1  ;;  %v2188_v24 = vmul.f32 %v7058_v12, %v2137_v1  ;;  %v2140_v29 = vadd.f32 %v7089_v3, %v5681_v6  ;;  %v5422_v25 = vcombine.low %v2665_v34, %v2679_v5 }
 0x197   :  { %v2477_v16 = vsel %vm7074_vm14, %v2323_v37, %v2476_v35  ;;  %v2480_v18 = vsel %vm7080_vm15, %v2324_v62, %v2479_v36  ;;  %v2331_v19 = vor.u32 %v2329_v56, %v2328_v63  ;;  %v2332_v20 = vrot.slane %v2328_v63, 4  ;;  %v4087_v26 = vld [vmem:[#allocation2 + $0x18] sm:$0xe]  ;;  %v4088_v27 = vld [vmem:[#allocation2 + $0x1c] sm:$0x1] }
 0x198   :  { %2478 = vst [vmem:[#allocation2 + $0x28] sm:$0xf] %v2477_v16  ;;  %2481 = vst [vmem:[#allocation2 + $0x2c] sm:$0x1] %v2480_v18  ;;  %v3575_v40 = vsel %vm5971_vm2, %v5472_v8, %v3574_v9  ;;  %v5473_v11 = vrot.slane %v3506_v4, 9  ;;  %v3578_v43 = vrot.slane %v3507_v7, 5  ;;  %v2211_v51 = vadd.f32 %v7063_v15, %v2188_v24  ;;  %2900 = vrot.lane.b32.xlu1 %v5422_v25, %s5928_s28 }
 0x199   :  { %v2483_v35 = vsel %vm7074_vm14, %v2331_v19, %v2482_v59  ;;  %v2486_v36 = vsel %vm7080_vm15, %v2332_v20, %v2485_v60  ;;  %v2189_v3 = vmul.f32 %v7058_v12, %v2140_v29  ;;  %v5433_v34 = vrot.slane %v2938_v21, 9  ;;  %v2625_v54 = vld [vmem:[#allocation2 + $0x14] sm:$0x1]  ;;  %v7219_v59 = vpop.f32.mrb[13].mxu1  ;;  %v5882_v31 = vld [vmem:[#allocation2 + $0x18] ss:$8 sps:$4 sm:$0xff]  }
 0x19a   :  { %2484 = vst [vmem:[#allocation2 + $0x30] sm:$0xf] %v2483_v35  ;;  %2487 = vst [vmem:[#allocation2 + $0x34] sm:$0x1] %v2486_v36  ;;  %v3010_v13 = vrot.slane %v2939_v61, 5  ;;  %v3579_v46 = vsel %vm5971_vm2, %v5473_v11, %v3578_v43  ;;  %v5511_v47 = vrot.slane %v4087_v26, 9  ;;  %v4152_v63 = vsel %vm5971_vm2, %v5510_v55, %v4151_v32 }
 0x19b   :  { %v4155_v52 = vrot.slane %v4088_v27, 5  ;;  %v2681_v56 = vshrl.u32 %v2624_v14, 16  ;;  %v2227_v60 = vmax.f32 %v2211_v51, 0.0  ;;  %v2212_v28 = vadd.f32 %v7063_v15, %v2189_v3  ;;  %v7224_v62 = vpop.f32.mrb[14].mxu1  ;;  %v2626_v9 = vld [vmem:[#allocation2 + $0x18] sm:$0xf] }
 0x19c   :  { %v5487_v22 = vcombine.low %v3575_v40, %v3579_v46  ;;  %v3011_v37 = vsel %vm5971_vm2, %v5433_v34, %v3010_v13  ;;  %v2684_v6 = vshll.u32 %v2624_v14, 16  ;;  %3174 = vrot.lane.b32.xlu1 %v5882_v31, %s5929_s13  ;;  %v2627_v16 = vld [vmem:[#allocation2 + $0x1c] sm:$0x1]  ;;  %v2690_v18 = vshll.u32 %v2625_v54, 16  ;;  %v5682_v19 = vpop.f32.mrb[16].mxu0  ;;  %v7248_v11 = vpop.f32.mrb[15].mxu1 }
 0x19d   :  { %v4156_v1 = vsel %vm5971_vm2, %v5511_v47, %v4155_v52  ;;  %v2683_v4 = vrot.slane %v2681_v56, 4  ;;  %v5616_v5 = vpack.c.bf16 %v2227_v60, %v2227_v60  ;;  %v2228_v7 = vmax.f32 %v2212_v28, 0.0  ;;  %v5683_v25 = vpop.f32.mrb[17].mxu0  ;;  %v2488_v40 = vld [vmem:[#allocation2 + $0x38] sm:$0xf] }
 0x19e   :  { %3654 = vrot.lane.b32.xlu0 %v5487_v22, %s5928_s28  ;;  %v5526_v8 = vcombine.low %v4152_v63, %v4156_v1  ;;  %v5447_v20 = vcombine.low %v7194_v17, %v3011_v37  ;;  %v2686_v55 = vrot.slane %v2684_v6, 5  ;;  %v3916_v32 = vsel %vm6062_vm5, %v7120_v38, %v7122_v41  ;;  %v5685_v27 = vpop.f32.mrb[18].mxu0  ;;  %v2491_v3 = vld [vmem:[#allocation2 + $0x3c] sm:$0x1]  ;;  %v2494_v34 = vld [vmem:[#allocation2 + $0x40] sm:$0xf] }
 0x19f   :  { %v5883_v21 = vld [vmem:[#allocation2 + $0x20] ss:$8 sps:$4 sm:$0xff]   ;;  %v7243_v14 = vsel %vm5971_vm2, %v5438_v42, %v3030_v50  ;;  %v2334_v61 = vshrl.u32 %v5616_v5, 16  ;;  %v2337_v24 = vshll.u32 %v5616_v5, 16  ;;  %v5617_v29 = vpack.c.bf16 %v2228_v7, %v2228_v7  ;;  %v5686_v50 = vpop.f32.mrb[19].mxu0 }
 0x1a0   :  { %4245 = vst.msk [vmem:[#allocation4 + $0x10] sm:$0xff] %vm137_vm6, %v5526_v8  ;;  %v7246_v17 = vrot.slane %v2690_v18, 5  ;;  %v5684_v26 = vadd.f32 %v5683_v25, %v5682_v19  ;;  %v2687_v35 = vor.u32 %v2686_v55, %v2683_v4  ;;  %v2695_v36 = vshrl.u32 %v2626_v9, 16  ;;  %3086 = vrot.lane.b32.xlu1 %v5447_v20, %s5927_s19  ;;  %v3773_v22 = vld [vmem:[#allocation2 + $0x10] sm:$0xf] }
 0x1a1   :  { %v2698_v33 = vshll.u32 %v2626_v9, 16  ;;  %v2336_v30 = vrot.slane %v2334_v61, 7  ;;  %v2342_v43 = vshrl.u32 %v5617_v29, 16  ;;  %v2345_v42 = vshll.u32 %v5617_v29, 16  ;;  %v2497_v31 = vld [vmem:[#allocation2 + $0x44] sm:$0x1] }
 0x1a2   :  { %3743 = vrot.lane.b32.xlu0 %v5883_v21, %s5927_s19  ;;  %v2704_v51 = vshll.u32 %v2627_v16, 16  ;;  %v5687_v13 = vadd.f32 %v5686_v50, %v5685_v27  ;;  %v2145_v46 = vadd.f32 %v5684_v26, %v7151_v48  ;;  %v2688_v47 = vrot.slane %v2687_v35, 4  ;;  %v3774_v6 = vld [vmem:[#allocation2 + $0x14] sm:$0x1]  ;;  %v5898_v48 = vld [vmem:[%s8007_s4 + $0x40] sm:$0xff]  }
 0x1a3   :  { %v2697_v52 = vrot.slane %v2695_v36, 4  ;;  %v2339_v54 = vor.u32 %v2337_v24, %v2336_v30  ;;  %v2340_v56 = vrot.slane %v2336_v30, 4  ;;  %v2344_v60 = vrot.slane %v2342_v43, 7  ;;  %v3775_v21 = vld [vmem:[#allocation2 + $0x18] sm:$0xf]  ;;  %5716 = vmatprep.subr.bf16.mxu1 %v5898_v48  ;;  %v5900_v36 = vld [vmem:[%s8007_s4 + $0x48] sm:$0xff]  }
 0x1a4   :  { %v2700_v28 = vrot.slane %v2698_v33, 5  ;;  %v2190_v37 = vmul.f32 %v7058_v12, %v2145_v46  ;;  %v2148_v63 = vadd.f32 %v5687_v13, %v7162_v2  ;;  %v2693_v1 = vsel %vm6062_vm5, %v2688_v47, %v7246_v17  ;;  %v5899_v2 = vld [vmem:[%s8007_s4] sm:$0xff]   ;;  %v3776_v29 = vld [vmem:[#allocation2 + $0x1c] sm:$0x1]  ;;  %v3508_v13 = vld [vmem:[#allocation2 + $0x28] sm:$0xe] }
 0x1a5   :  { %v2706_v4 = vrot.slane %v2704_v51, 5  ;;  %v2489_v5 = vsel %vm7074_vm14, %v2339_v54, %v2488_v40  ;;  %v2492_v7 = vsel %vm7080_vm15, %v2340_v56, %v2491_v3  ;;  %v2347_v8 = vor.u32 %v2345_v42, %v2344_v60  ;;  %5717 = vmatpush3.bf16.msra.mxu1 %v5899_v2  ;;  %v3509_v46 = vld [vmem:[#allocation2 + $0x2c] sm:$0x1]  ;;  %v2500_v48 = vld [vmem:[#allocation2 + $0x58] sm:$0xf] }
 0x1a6   :  { %v2348_v9 = vrot.slane %v2344_v60, 4  ;;  %2490 = vst [vmem:[#allocation2 + $0x38] sm:$0xf] %v2489_v5  ;;  %2493 = vst [vmem:[#allocation2 + $0x3c] sm:$0x1] %v2492_v7  ;;  %v2213_v16 = vadd.f32 %v7063_v15, %v2190_v37  ;;  %v2191_v18 = vmul.f32 %v7058_v12, %v2148_v63  ;;  %v2701_v20 = vor.u32 %v2700_v28, %v2697_v52 }
 0x1a7   :  { %v4255_v19 = vld [vmem:[#allocation4 + $0x10] sm:$0xff]  ;;  %v3806_v55 = vshrl.u32 %v3773_v22, 16  ;;  %v2495_v61 = vsel %vm7074_vm14, %v2347_v8, %v2494_v34  ;;  %v3809_v25 = vshll.u32 %v3773_v22, 16  ;;  %v3815_v17 = vshll.u32 %v3774_v6, 16  ;;  %5718 = vmatprep.subr.bf16.mxu1 %v5900_v36  ;;  %v7283_v6 = vld [vmem:[#allocation2 + $0x20] sm:$0xe] }
 0x1a8   :  { %v2498_v24 = vsel %vm7080_vm15, %v2348_v9, %v2497_v31  ;;  %5814 = vmatprep.mubr.msk.bf16.mxu0 %vm137_vm6, %v4255_v19  ;;  %2496 = vst [vmem:[#allocation2 + $0x40] sm:$0xf] %v2495_v61  ;;  %v2229_v40 = vmax.f32 %v2213_v16, 0.0  ;;  %v2214_v26 = vadd.f32 %v7063_v15, %v2191_v18  ;;  %v2702_v27 = vrot.slane %v2701_v20, 4  ;;  %v3510_v63 = vld [vmem:[#allocation2 + $0x30] sm:$0xe] }
 0x1a9   :  { %2499 = vst [vmem:[#allocation2 + $0x44] sm:$0x1] %v2498_v24  ;;  %v3808_v35 = vrot.slane %v3806_v55, 4  ;;  %v3811_v33 = vrot.slane %v3809_v25, 5  ;;  %v7279_v30 = vrot.slane %v3815_v17, 5  ;;  %v3820_v43 = vshrl.u32 %v3775_v21, 16 }
 0x1aa   :  { %v3823_v42 = vshll.u32 %v3775_v21, 16  ;;  %v5618_v50 = vpack.c.bf16 %v2229_v40, %v2229_v40  ;;  %v2230_v51 = vmax.f32 %v2214_v26, 0.0  ;;  %v2707_v3 = vsel %vm6062_vm5, %v2702_v27, %v2706_v4  ;;  %v5688_v37 = vpop.f32.mrb[20].mxu0  ;;  %v2503_v5 = vld [vmem:[#allocation2 + $0x5c] sm:$0x1]  ;;  %v5901_v26 = vld [vmem:[%s8007_s4 + $0x8] sm:$0xff]  }
 0x1ab   :  { %v3829_v34 = vshll.u32 %v3776_v29, 16  ;;  %v5423_v47 = vcombine.low %v2693_v1, %v2707_v3  ;;  %v3812_v52 = vor.u32 %v3811_v33, %v3808_v35  ;;  %v3822_v54 = vrot.slane %v3820_v43, 4  ;;  %v5689_v8 = vpop.f32.mrb[21].mxu0  ;;  %v5885_v9 = vld [vmem:[#allocation2 + $0x28] ss:$8 sps:$4 sm:$0xff]   ;;  %5719 = vmatpush3.bf16.msra.mxu1 %v5901_v26 }
 0x1ac   :  { %v3825_v56 = vrot.slane %v3823_v42, 5  ;;  %v2350_v60 = vshrl.u32 %v5618_v50, 16  ;;  %v2353_v28 = vshll.u32 %v5618_v50, 16  ;;  %v5619_v22 = vpack.c.bf16 %v2230_v51, %v2230_v51  ;;  %v5691_v21 = vpop.f32.mrb[22].mxu0  ;;  %v3511_v55 = vld [vmem:[#allocation2 + $0x34] sm:$0x1] }
 0x1ad   :  { %v3831_v31 = vrot.slane %v3829_v34, 5  ;;  %2902 = vrot.lane.b32.xlu1 %v5423_v47, %s5928_s28  ;;  %v3813_v4 = vrot.slane %v3812_v52, 4  ;;  %v5474_v1 = vrot.slane %v3508_v13, 9  ;;  %v3582_v2 = vrot.slane %v3509_v46, 5  ;;  %v2506_v61 = vld [vmem:[#allocation2 + $0x60] sm:$0xf] }
 0x1ae   :  { %v3826_v7 = vor.u32 %v3825_v56, %v3822_v54  ;;  %v2352_v16 = vrot.slane %v2350_v60, 7  ;;  %v2358_v18 = vshrl.u32 %v5619_v22, 16  ;;  %v2361_v19 = vshll.u32 %v5619_v22, 16  ;;  %v5692_v25 = vpop.f32.mrb[23].mxu0  ;;  %v2509_v33 = vld [vmem:[#allocation2 + $0x64] sm:$0x1] }
 0x1af   :  { %v5690_v20 = vadd.f32 %v5689_v8, %v5688_v37  ;;  %v3818_v24 = vsel %vm6062_vm5, %v3813_v4, %v7279_v30  ;;  %v7291_v17 = vsel %vm5971_vm2, %v5474_v1, %v3582_v2  ;;  %v5475_v40 = vrot.slane %v3510_v63, 9  ;;  %v2941_v51 = vld [vmem:[#allocation2 + $0x24] sm:$0x1]  ;;  %v2943_v52 = vld [vmem:[#allocation2 + $0x2c] sm:$0x1]  ;;  %v5902_v54 = vld [vmem:[%s8007_s4 + $0x50] sm:$0xff]  }
 0x1b0   :  { %v3827_v29 = vrot.slane %v3826_v7, 4  ;;  %v2355_v27 = vor.u32 %v2353_v28, %v2352_v16  ;;  %v2356_v35 = vrot.slane %v2352_v16, 4  ;;  %v2360_v36 = vrot.slane %v2358_v18, 7  ;;  %v4090_v37 = vld [vmem:[#allocation2 + $0x24] sm:$0x1]  ;;  %5720 = vmatprep.subr.bf16.mxu1 %v5902_v54 }
 0x1b1   :  { %v2153_v43 = vadd.f32 %v7145_v39, %v5690_v20  ;;  %3176 = vrot.lane.b32.xlu1 %v5885_v9, %s5929_s13  ;;  %v5693_v42 = vadd.f32 %v5692_v25, %v5691_v21  ;;  %v3586_v50 = vrot.slane %v3511_v55, 5  ;;  %v5434_v3 = vrot.slane %v7283_v6, 9  ;;  %v2942_v39 = vld [vmem:[#allocation2 + $0x28] sm:$0xe]  ;;  %v4092_v7 = vld [vmem:[#allocation2 + $0x2c] sm:$0x1] }
 0x1b2   :  { %v3832_v30 = vsel %vm6062_vm5, %v3827_v29, %v3831_v31  ;;  %v2501_v34 = vsel %vm7074_vm14, %v2355_v27, %v2500_v48  ;;  %v2504_v13 = vsel %vm7080_vm15, %v2356_v35, %v2503_v5  ;;  %v2363_v46 = vor.u32 %v2361_v19, %v2360_v36  ;;  %v4089_v31 = vld [vmem:[#allocation2 + $0x20] sm:$0xe]  ;;  %v4091_v63 = vld [vmem:[#allocation2 + $0x28] sm:$0xe]  ;;  %v2629_v55 = vld [vmem:[#allocation2 + $0x24] sm:$0x1] }
 0x1b3   :  { %v2364_v47 = vrot.slane %v2360_v36, 4  ;;  %2502 = vst [vmem:[#allocation2 + $0x58] sm:$0xf] %v2501_v34  ;;  %2505 = vst [vmem:[#allocation2 + $0x5c] sm:$0x1] %v2504_v13  ;;  %v5502_v56 = vcombine.low %v3818_v24, %v3832_v30  ;;  %v2192_v60 = vmul.f32 %v7058_v12, %v2153_v43  ;;  %v2156_v28 = vadd.f32 %v7157_v57, %v5693_v42  ;;  %v5904_v57 = vld [vmem:[%s8007_s4 + $0x10] sm:$0xff]  }
 0x1b4   :  { %v3587_v22 = vsel %vm5971_vm2, %v5475_v40, %v3586_v50  ;;  %v2507_v6 = vsel %vm7074_vm14, %v2363_v46, %v2506_v61  ;;  %v3014_v4 = vrot.slane %v2941_v51, 5  ;;  %v5435_v1 = vrot.slane %v2942_v39, 9  ;;  %v2628_v16 = vld [vmem:[#allocation2 + $0x20] sm:$0xf]  ;;  %5721 = vmatpush3.bf16.msra.mxu1 %v5904_v57  ;;  %v5905_v61 = vld [vmem:[%s8007_s4 + $0x58] sm:$0xff]  }
 0x1b5   :  { %v2510_v48 = vsel %vm7080_vm15, %v2364_v47, %v2509_v33  ;;  %v5488_v5 = vcombine.low %v7291_v17, %v3587_v22  ;;  %2508 = vst [vmem:[#allocation2 + $0x60] sm:$0xf] %v2507_v6  ;;  %4053 = vrot.lane.b32.xlu0 %v5502_v56, %s5929_s13  ;;  %v2215_v8 = vadd.f32 %v7063_v15, %v2192_v60  ;;  %v3018_v2 = vrot.slane %v2943_v52, 5  ;;  %v2630_v17 = vld [vmem:[#allocation2 + $0x28] sm:$0xf] }
 0x1b6   :  { %2511 = vst [vmem:[#allocation2 + $0x64] sm:$0x1] %v2510_v48  ;;  %v2193_v9 = vmul.f32 %v7058_v12, %v2156_v28  ;;  %v3015_v18 = vsel %vm5971_vm2, %v5434_v3, %v3014_v4  ;;  %v5512_v19 = vrot.slane %v4089_v31, 9  ;;  %v4159_v20 = vrot.slane %v4090_v37, 5  ;;  %5722 = vmatprep.subr.bf16.mxu1 %v5905_v61  ;;  %v2631_v30 = vld [vmem:[#allocation2 + $0x2c] sm:$0x1] }
 0x1b7   :  { %v5513_v21 = vrot.slane %v4091_v63, 9  ;;  %v2231_v24 = vmax.f32 %v2215_v8, 0.0  ;;  %v3019_v12 = vsel %vm5971_vm2, %v5435_v1, %v3018_v2  ;;  %v4163_v25 = vrot.slane %v4092_v7, 5  ;;  %v3777_v13 = vld [vmem:[#allocation2 + $0x20] sm:$0xf]  ;;  %v7337_v46 = vpop.f32.mrb[24].mxu0 }
 0x1b8   :  { %v2216_v29 = vadd.f32 %v7063_v15, %v2193_v9  ;;  %v5448_v40 = vcombine.low %v3015_v18, %v3019_v12  ;;  %v4160_v26 = vsel %vm5971_vm2, %v5512_v19, %v4159_v20  ;;  %v2709_v27 = vshrl.u32 %v2628_v16, 16  ;;  %v5887_v15 = vld [vmem:[#allocation2 + $0x30] ss:$8 sps:$4 sm:$0xff]   ;;  %v7339_v54 = vpop.f32.mrb[25].mxu0  ;;  %v2512_v60 = vld [vmem:[#allocation2 + $0x68] sm:$0xf] }
 0x1b9   :  { %v2712_v35 = vshll.u32 %v2628_v16, 16  ;;  %v5620_v36 = vpack.c.bf16 %v2231_v24, %v2231_v24  ;;  %3656 = vrot.lane.b32.xlu0 %v5488_v5, %s5928_s28  ;;  %v4164_v43 = vsel %vm5971_vm2, %v5513_v21, %v4163_v25  ;;  %v2718_v42 = vshll.u32 %v2629_v55, 16  ;;  %v2515_v28 = vld [vmem:[#allocation2 + $0x6c] sm:$0x1]  ;;  %v3778_v6 = vld [vmem:[#allocation2 + $0x24] sm:$0x1] }
 0x1ba   :  { %v2232_v33 = vmax.f32 %v2216_v29, 0.0  ;;  %3088 = vrot.lane.b32.xlu1 %v5448_v40, %s5927_s19  ;;  %v5527_v50 = vcombine.low %v4160_v26, %v4164_v43  ;;  %v2711_v51 = vrot.slane %v2709_v27, 4  ;;  %v2723_v34 = vshrl.u32 %v2630_v17, 16  ;;  %v7346_v48 = vpop.f32.mrb[26].mxu0  ;;  %v3779_v57 = vld [vmem:[#allocation2 + $0x28] sm:$0xf] }
 0x1bb   :  { %v2714_v3 = vrot.slane %v2712_v35, 5  ;;  %v2366_v47 = vshrl.u32 %v5620_v36, 16  ;;  %v2369_v39 = vshll.u32 %v5620_v36, 16  ;;  %v2777_v56 = vsel %vm6062_vm5, %v7176_v10, %v7171_v23  ;;  %v5698_v9 = vpop.f32.mrb[27].mxu0  ;;  %v5906_v1 = vld [vmem:[%s8007_s4 + $0x18] sm:$0xff]   ;;  %v5907_v12 = vld [vmem:[%s8007_s4 + $0x60] sm:$0xff]  }
 0x1bc   :  { %v5621_v52 = vpack.c.bf16 %v2232_v33, %v2232_v33  ;;  %4246 = vst.msk [vmem:[#allocation4 + $0x28] sm:$0xff] %vm137_vm6, %v5527_v50  ;;  %v2725_v31 = vrot.slane %v2723_v34, 4  ;;  %v2726_v37 = vshll.u32 %v2630_v17, 16  ;;  %v2732_v63 = vshll.u32 %v2631_v30, 16  ;;  %v2518_v16 = vld [vmem:[#allocation2 + $0x70] sm:$0xf]  ;;  %5723 = vmatpush3.bf16.msra.mxu1 %v5906_v1 }
 0x1bd   :  { %v2715_v22 = vor.u32 %v2714_v3, %v2711_v51  ;;  %v2368_v5 = vrot.slane %v2366_v47, 7  ;;  %3745 = vrot.lane.b32.xlu0 %v5887_v15, %s5927_s19  ;;  %v2720_v7 = vrot.slane %v2718_v42, 5  ;;  %v3834_v8 = vshrl.u32 %v3777_v13, 16  ;;  %v2521_v18 = vld [vmem:[#allocation2 + $0x74] sm:$0x1]  ;;  %5724 = vmatprep.subr.bf16.mxu1 %v5907_v12  ;;  %v5908_v30 = vld [vmem:[%s8007_s4 + $0x20] sm:$0xff]  }
 0x1be   :  { %v2374_v4 = vshrl.u32 %v5621_v52, 16  ;;  %v2377_v2 = vshll.u32 %v5621_v52, 16  ;;  %v2728_v20 = vrot.slane %v2726_v37, 5  ;;  %v3837_v21 = vshll.u32 %v3777_v13, 16  ;;  %v3780_v40 = vld [vmem:[#allocation2 + $0x2c] sm:$0x1] }
 0x1bf   :  { %v2716_v19 = vrot.slane %v2715_v22, 4  ;;  %v2371_v55 = vor.u32 %v2369_v39, %v2368_v5  ;;  %v2372_v61 = vrot.slane %v2368_v5, 4  ;;  %v3836_v29 = vrot.slane %v3834_v8, 4  ;;  %v2944_v15 = vld [vmem:[#allocation2 + $0x30] sm:$0xe]  ;;  %v5909_v13 = vld [vmem:[%s8007_s4 + $0x68] sm:$0xff]  }
 0x1c0   :  { %v2376_v24 = vrot.slane %v2374_v4, 7  ;;  %v2729_v25 = vor.u32 %v2728_v20, %v2725_v31  ;;  %v2734_v17 = vrot.slane %v2732_v63, 5  ;;  %v3839_v26 = vrot.slane %v3837_v21, 5  ;;  %v2945_v34 = vld [vmem:[#allocation2 + $0x34] sm:$0x1]  ;;  %5725 = vmatpush3.bf16.msra.mxu1 %v5908_v30  ;;  %v5911_v37 = vld [vmem:[%s8007_s4 + $0x28] sm:$0xff]  }
 0x1c1   :  { %v3843_v27 = vshll.u32 %v3778_v6, 16  ;;  %v2513_v35 = vsel %vm7074_vm14, %v2371_v55, %v2512_v60  ;;  %v2516_v36 = vsel %vm7080_vm15, %v2372_v61, %v2515_v28  ;;  %v2721_v42 = vsel %vm6062_vm5, %v2716_v19, %v2720_v7  ;;  %v2946_v22 = vld [vmem:[#allocation2 + $0x38] sm:$0xe]  ;;  %v4093_v31 = vld [vmem:[#allocation2 + $0x30] sm:$0xe]  ;;  %5726 = vmatprep.subr.bf16.mxu1 %v5909_v13 }
 0x1c2   :  { %v2379_v33 = vor.u32 %v2377_v2, %v2376_v24  ;;  %v2380_v43 = vrot.slane %v2376_v24, 4  ;;  %2514 = vst [vmem:[#allocation2 + $0x68] sm:$0xf] %v2513_v35  ;;  %2517 = vst [vmem:[#allocation2 + $0x6c] sm:$0x1] %v2516_v36  ;;  %v2730_v50 = vrot.slane %v2729_v25, 4  ;;  %v3840_v51 = vor.u32 %v3839_v26, %v3836_v29 }
 0x1c3   :  { %v3848_v3 = vshrl.u32 %v3779_v57, 16  ;;  %v4258_v52 = vld [vmem:[#allocation4 + $0x28] sm:$0xff]  ;;  %v3851_v60 = vshll.u32 %v3779_v57, 16  ;;  %v3857_v28 = vshll.u32 %v3780_v40, 16  ;;  %v5696_v4 = vadd.f32 %v7339_v54, %v7337_v46  ;;  %v2947_v7 = vld [vmem:[#allocation2 + $0x3c] sm:$0x1] }
 0x1c4   :  { %v2519_v47 = vsel %vm7074_vm14, %v2379_v33, %v2518_v16  ;;  %v2522_v39 = vsel %vm7080_vm15, %v2380_v43, %v2521_v18  ;;  %5815 = vmatmul.mubr.msk.bf16.vlgmr.msra.gmra.mrb[32].mxu0 %vm137_vm6, %v4258_v52  ;;  %v2735_v63 = vsel %vm6062_vm5, %v2730_v50, %v2734_v17  ;;  %v3841_v6 = vrot.slane %v3840_v51, 4  ;;  %v4094_v57 = vld [vmem:[#allocation2 + $0x34] sm:$0x1]  ;;  %v4095_v18 = vld [vmem:[#allocation2 + $0x38] sm:$0xe]  ;;  %5727 = vmatpush3.bf16.msra.mxu1 %v5911_v37  ;;  %v7393_v36 = vpop.f32.mrb[28].mxu0 }
 0x1c5   :  { %2520 = vst [vmem:[#allocation2 + $0x70] sm:$0xf] %v2519_v47  ;;  %2523 = vst [vmem:[#allocation2 + $0x74] sm:$0x1] %v2522_v39  ;;  %v3850_v5 = vrot.slane %v3848_v3, 4  ;;  %v5424_v8 = vcombine.low %v2721_v42, %v2735_v63  ;;  %v3845_v1 = vrot.slane %v3843_v27, 5  ;;  %v5699_v16 = vadd.f32 %v5698_v9, %v7346_v48 }
 0x1c6   :  { %v3853_v2 = vrot.slane %v3851_v60, 5  ;;  %v4096_v19 = vld [vmem:[#allocation2 + $0x3c] sm:$0x1]  ;;  %v3859_v20 = vrot.slane %v3857_v28, 5  ;;  %v2161_v21 = vadd.f32 %v5696_v4, %v7219_v59  ;;  %v5436_v55 = vrot.slane %v2944_v15, 9  ;;  %v7401_v51 = vpop.f32.mrb[29].mxu0 }
 0x1c7   :  { %v3022_v61 = vrot.slane %v2945_v34, 5  ;;  %v7381_v24 = vld [vmem:[#allocation2 + $0x38] sm:$0xe]  ;;  %2904 = vrot.lane.b32.xlu1 %v5424_v8, %s5928_s28  ;;  %v2164_v29 = vadd.f32 %v5699_v16, %v7248_v11  ;;  %v5437_v12 = vrot.slane %v2946_v22, 9  ;;  %v3026_v25 = vrot.slane %v2947_v7, 5  ;;  %v5912_v11 = vld [vmem:[%s8007_s4 + $0x70] sm:$0xff]  }
 0x1c8   :  { %v3854_v46 = vor.u32 %v3853_v2, %v3850_v5  ;;  %v5888_v54 = vld [vmem:[#allocation2 + $0x38] ss:$8 sps:$4 sm:$0xff]   ;;  %v3513_v17 = vld [vmem:[#allocation2 + $0x3c] sm:$0x1]  ;;  %v3846_v48 = vsel %vm6062_vm5, %v3841_v6, %v3845_v1  ;;  %v5514_v26 = vrot.slane %v4093_v31, 9  ;;  %v4167_v27 = vrot.slane %v4094_v57, 5  ;;  %5728 = vmatprep.subr.bf16.mxu1 %v5912_v11 }
 0x1c9   :  { %v3514_v40 = vld [vmem:[#allocation2 + $0x40] sm:$0xe]  ;;  %v7390_v59 = vld [vmem:[%s8008_s2] ss:$0 sm:$0xff]  ;;  %v3515_v35 = vld [vmem:[#allocation2 + $0x44] sm:$0x1]  ;;  %v3023_v15 = vsel %vm5971_vm2, %v5436_v55, %v3022_v61  ;;  %v3027_v47 = vsel %vm5971_vm2, %v5437_v12, %v3026_v25 }
 0x1ca   :  { %v2194_v9 = vmul.f32 %v7390_v59, %v2161_v21  ;;  %v3855_v33 = vrot.slane %v3854_v46, 4  ;;  %v2195_v43 = vmul.f32 %v7390_v59, %v2164_v29  ;;  %v5515_v30 = vrot.slane %v4095_v18, 9  ;;  %v4097_v42 = vld [vmem:[#allocation2 + $0x40] sm:$0xe]  ;;  %v4098_v50 = vld [vmem:[#allocation2 + $0x44] sm:$0x1] }
 0x1cb   :  { %v5913_v3 = vld [vmem:[%s8007_s4 + $0x30] sm:$0xff]   ;;  %v7409_v34 = vld [vmem:[%s8009_s3] ss:$0 sm:$0xff]  ;;  %v4168_v39 = vsel %vm5971_vm2, %v5514_v26, %v4167_v27  ;;  %v4171_v52 = vrot.slane %v4096_v19, 5  ;;  %v7416_v28 = vpop.f32.mrb[30].mxu0  ;;  %3178 = vrot.lane.b32.xlu1 %v5888_v54, %s5929_s13  ;;  %v5476_v37 = vrot.slane %v7381_v24, 9  ;;  %v5449_v2 = vcombine.low %v3023_v15, %v3027_v47 }
 0x1cc   :  { %v2217_v13 = vadd.f32 %v7409_v34, %v2194_v9  ;;  %v2632_v60 = vld [vmem:[#allocation2 + $0x30] sm:$0xf]  ;;  %v3860_v22 = vsel %vm6062_vm5, %v3855_v33, %v3859_v20  ;;  %v2218_v31 = vadd.f32 %v7409_v34, %v2195_v43  ;;  %v3590_v63 = vrot.slane %v3513_v17, 5  ;;  %v7423_v6 = vpop.f32.mrb[31].mxu0  ;;  %5729 = vmatpush3.bf16.msra.mxu1 %v5913_v3  ;;  %v5914_v5 = vld [vmem:[%s8007_s4 + $0x78] sm:$0xff]  }
 0x1cd   :  { %v5503_v4 = vcombine.low %v3846_v48, %v3860_v22  ;;  %v4172_v57 = vsel %vm5971_vm2, %v5515_v30, %v4171_v52  ;;  %v5477_v8 = vrot.slane %v3514_v40, 9  ;;  %v3594_v18 = vrot.slane %v3515_v35, 5  ;;  %v2633_v19 = vld [vmem:[#allocation2 + $0x34] sm:$0x1]  ;;  %5730 = vmatprep.subr.bf16.mxu1 %v5914_v5  ;;  %v5889_v21 = vld [vmem:[#allocation2 + $0x40] ss:$8 sps:$4 sm:$0xff]  }
 0x1ce   :  { %v2233_v7 = vmax.f32 %v2217_v13, 0.0  ;;  %v2234_v1 = vmax.f32 %v2218_v31, 0.0  ;;  %v5528_v16 = vcombine.low %v4168_v39, %v4172_v57  ;;  %v5516_v55 = vrot.slane %v4097_v42, 9  ;;  %v5915_v46 = vld [vmem:[%s8007_s4 + $0x38] sm:$0xff]   ;;  %v3781_v35 = vld [vmem:[#allocation2 + $0x30] sm:$0xf] }
 0x1cf   :  { %4055 = vrot.lane.b32.xlu0 %v5503_v4, %s5929_s13  ;;  %v4175_v61 = vrot.slane %v4098_v50, 5  ;;  %v2737_v24 = vshrl.u32 %v2632_v60, 16  ;;  %3090 = vrot.lane.b32.xlu1 %v5449_v2, %s5927_s19  ;;  %v3591_v29 = vsel %vm5971_vm2, %v5476_v37, %v3590_v63  ;;  %v3595_v12 = vsel %vm5971_vm2, %v5477_v8, %v3594_v18  ;;  %v2634_v25 = vld [vmem:[#allocation2 + $0x38] sm:$0xf]  ;;  %v2635_v17 = vld [vmem:[#allocation2 + $0x3c] sm:$0x1] }
 0x1d0   :  { %v5622_v20 = vpack.c.bf16 %v2233_v7, %v2233_v7  ;;  %v5623_v54 = vpack.c.bf16 %v2234_v1, %v2234_v1  ;;  %4247 = vst.msk [vmem:[#allocation4 + $0x40] sm:$0xff] %vm137_vm6, %v5528_v16  ;;  %v2740_v40 = vshll.u32 %v2632_v60, 16  ;;  %v2746_v27 = vshll.u32 %v2633_v19, 16  ;;  %5731 = vmatpush3.bf16.msra.mxu1 %v5915_v46  ;;  %v2524_v11 = vld [vmem:[#allocation2 + $0x78] sm:$0xf]  ;;  %v5924_v50 = vld [vmem:[%s8007_s4 + $0x80] sm:$0xff]  }
 0x1d1   :  { %v4176_v26 = vsel %vm5971_vm2, %v5516_v55, %v4175_v61  ;;  %v2527_v33 = vld [vmem:[#allocation2 + $0x7c] sm:$0x1]  ;;  %v5489_v15 = vcombine.low %v3591_v29, %v3595_v12  ;;  %v2739_v42 = vrot.slane %v2737_v24, 4  ;;  %5830 = vmatprep.subr.bf16.mxu1 %v5924_v50  ;;  %v2751_v39 = vshrl.u32 %v2634_v25, 16  ;;  %v2530_v60 = vld [vmem:[#allocation2 + $0x80] sm:$0xf] }
 0x1d2   :  { %v2382_v48 = vshrl.u32 %v5622_v20, 16  ;;  %v2385_v9 = vshll.u32 %v5622_v20, 16  ;;  %v2390_v43 = vshrl.u32 %v5623_v54, 16  ;;  %v5529_v30 = vcombine.low %v4176_v26, %v7188_v44  ;;  %v2533_v5 = vld [vmem:[#allocation2 + $0x84] sm:$0x1] }
 0x1d3   :  { %v2393_v13 = vshll.u32 %v5623_v54, 16  ;;  %3747 = vrot.lane.b32.xlu0 %v5889_v21, %s5927_s19  ;;  %v2742_v47 = vrot.slane %v2740_v40, 5  ;;  %v2754_v22 = vshll.u32 %v2634_v25, 16  ;;  %v2760_v31 = vshll.u32 %v2635_v17, 16  ;;  %v3782_v57 = vld [vmem:[#allocation2 + $0x34] sm:$0x1] }
 0x1d4   :  { %v2384_v3 = vrot.slane %v2382_v48, 7  ;;  %v2392_v52 = vrot.slane %v2390_v43, 7  ;;  %4248 = vst.msk [vmem:[#allocation4 + $0x58] sm:$0xff] %vm137_vm6, %v5529_v30  ;;  %v3862_v37 = vshrl.u32 %v3781_v35, 16  ;;  %v2753_v7 = vrot.slane %v2751_v39, 4 }
 0x1d5   :  { %v2743_v4 = vor.u32 %v2742_v47, %v2739_v42  ;;  %v2748_v2 = vrot.slane %v2746_v27, 5  ;;  %v2756_v16 = vrot.slane %v2754_v22, 5  ;;  %v3783_v18 = vld [vmem:[#allocation2 + $0x38] sm:$0xf]  ;;  %v3784_v61 = vld [vmem:[#allocation2 + $0x3c] sm:$0x1] }
 0x1d6   :  { %v2387_v44 = vor.u32 %v2385_v9, %v2384_v3  ;;  %v2388_v63 = vrot.slane %v2384_v3, 4  ;;  %v2395_v8 = vor.u32 %v2393_v13, %v2392_v52  ;;  %v2396_v1 = vrot.slane %v2392_v52, 4  ;;  %v3786_v50 = vld [vmem:[#allocation2 + $0x44] sm:$0x1]  ;;  %v2951_v39 = vld [vmem:[#allocation2 + $0x5c] sm:$0x1] }
 0x1d7   :  { %v4261_v21 = vld [vmem:[#allocation4 + $0x40] sm:$0xff]  ;;  %3658 = vrot.lane.b32.xlu0 %v5489_v15, %s5928_s28  ;;  %v2744_v55 = vrot.slane %v2743_v4, 4  ;;  %v3864_v24 = vrot.slane %v3862_v37, 4  ;;  %v2757_v29 = vor.u32 %v2756_v16, %v2753_v7  ;;  %v3865_v12 = vshll.u32 %v3781_v35, 16  ;;  %v3516_v37 = vld [vmem:[#allocation2 + $0x58] sm:$0xe] }
 0x1d8   :  { %v2525_v19 = vsel %vm7074_vm14, %v2387_v44, %v2524_v11  ;;  %v2528_v20 = vsel %vm7080_vm15, %v2388_v63, %v2527_v33  ;;  %v2531_v46 = vsel %vm7074_vm14, %v2395_v8, %v2530_v60  ;;  %v2534_v54 = vsel %vm7080_vm15, %v2396_v1, %v2533_v5  ;;  %5818 = vmatprep.mubr.msk.bf16.mxu0 %vm137_vm6, %v4261_v21  ;;  %v3785_v33 = vld [vmem:[#allocation2 + $0x40] sm:$0xf]  ;;  %v3517_v44 = vld [vmem:[#allocation2 + $0x5c] sm:$0x1]  ;;  %v2642_v45 = vld [vmem:[#allocation2 + $0x68] sm:$0xf] }
 0x1d9   :  { %2526 = vst [vmem:[#allocation2 + $0x78] sm:$0xf] %v2525_v19  ;;  %2529 = vst [vmem:[#allocation2 + $0x7c] sm:$0x1] %v2528_v20  ;;  %v2762_v25 = vrot.slane %v2760_v31, 5  ;;  %v3871_v17 = vshll.u32 %v3782_v57, 16  ;;  %v5702_v11 = vadd.f32 %v7401_v51, %v7393_v36  ;;  %v2749_v15 = vsel %vm6062_vm5, %v2744_v55, %v2748_v2 }
 0x1da   :  { %2532 = vst [vmem:[#allocation2 + $0x80] sm:$0xf] %v2531_v46  ;;  %2535 = vst [vmem:[#allocation2 + $0x84] sm:$0x1] %v2534_v54  ;;  %v3876_v40 = vshrl.u32 %v3783_v18, 16  ;;  %v3879_v48 = vshll.u32 %v3783_v18, 16  ;;  %v5705_v35 = vadd.f32 %v7423_v6, %v7416_v28 }
 0x1db   :  { %v2758_v9 = vrot.slane %v2757_v29, 4  ;;  %v3867_v26 = vrot.slane %v3865_v12, 5  ;;  %v3885_v27 = vshll.u32 %v3784_v61, 16  ;;  %v4264_v43 = vld [vmem:[#allocation4 + $0x58] sm:$0xff]  ;;  %v3873_v47 = vrot.slane %v3871_v17, 5 }
 0x1dc   :  { %v3878_v30 = vrot.slane %v3876_v40, 4  ;;  %v3881_v42 = vrot.slane %v3879_v48, 5  ;;  %5819 = vmatmul.mubr.msk.bf16.gmra.mrb[36].mxu0 %vm137_vm6, %v4264_v43  ;;  %v2169_v36 = vadd.f32 %v7204_v53, %v5702_v11  ;;  %v2950_v51 = vld [vmem:[#allocation2 + $0x58] sm:$0xe]  ;;  %v2172_v22 = vadd.f32 %v7224_v62, %v5705_v35  ;;  %v3518_v4 = vld [vmem:[#allocation2 + $0x60] sm:$0xe] }
 0x1dd   :  { %v2763_v3 = vsel %vm6062_vm5, %v2758_v9, %v2762_v25  ;;  %v3868_v13 = vor.u32 %v3867_v26, %v3864_v24  ;;  %v3890_v31 = vshrl.u32 %v3785_v33, 16  ;;  %v3887_v6 = vrot.slane %v3885_v27, 5  ;;  %v3519_v18 = vld [vmem:[#allocation2 + $0x64] sm:$0x1]  ;;  %v5890_v20 = vld [vmem:[#allocation2 + $0x58] ss:$8 sps:$4 sm:$0xff]  }
 0x1de   :  { %v5425_v52 = vcombine.low %v2749_v15, %v2763_v3  ;;  %v3882_v60 = vor.u32 %v3881_v42, %v3878_v30  ;;  %v2196_v63 = vmul.f32 %v7390_v59, %v2169_v36  ;;  %v3893_v5 = vshll.u32 %v3785_v33, 16  ;;  %v2638_v29 = vld [vmem:[#allocation2 + $0x58] sm:$0xf]  ;;  %v2639_v27 = vld [vmem:[#allocation2 + $0x5c] sm:$0x1] }
 0x1df   :  { %v3869_v28 = vrot.slane %v3868_v13, 4  ;;  %v2197_v53 = vmul.f32 %v7390_v59, %v2172_v22  ;;  %v3892_v57 = vrot.slane %v3890_v31, 4  ;;  %v5439_v8 = vrot.slane %v2950_v51, 9  ;;  %v3520_v11 = vld [vmem:[#allocation2 + $0x68] sm:$0xe] }
 0x1e0   :  { %2906 = vrot.lane.b32.xlu1 %v5425_v52, %s5928_s28  ;;  %v3883_v7 = vrot.slane %v3882_v60, 4  ;;  %v2219_v62 = vadd.f32 %v7409_v34, %v2196_v63  ;;  %v3895_v2 = vrot.slane %v3893_v5, 5  ;;  %v3899_v16 = vshll.u32 %v3786_v50, 16  ;;  %v3521_v42 = vld [vmem:[#allocation2 + $0x6c] sm:$0x1] }
 0x1e1   :  { %v3874_v1 = vsel %vm6062_vm5, %v3869_v28, %v3873_v47  ;;  %v2220_v21 = vadd.f32 %v7409_v34, %v2197_v53  ;;  %v3034_v55 = vrot.slane %v2951_v39, 5  ;;  %v5478_v61 = vrot.slane %v3516_v37, 9  ;;  %v3522_v35 = vld [vmem:[#allocation2 + $0x70] sm:$0xe]  ;;  %v3523_v36 = vld [vmem:[#allocation2 + $0x74] sm:$0x1] }
 0x1e2   :  { %v3888_v19 = vsel %vm6062_vm5, %v3883_v7, %v3887_v6  ;;  %v2235_v59 = vmax.f32 %v2219_v62, 0.0  ;;  %v3896_v46 = vor.u32 %v3895_v2, %v3892_v57  ;;  %v3598_v54 = vrot.slane %v3517_v44, 5  ;;  %v2539_v51 = vld [vmem:[#allocation2 + $0x8c] sm:$0x1]  ;;  %v2542_v37 = vld [vmem:[#allocation2 + $0x90] sm:$0xf] }
 0x1e3   :  { %v5504_v24 = vcombine.low %v3874_v1, %v3888_v19  ;;  %v2236_v12 = vmax.f32 %v2220_v21, 0.0  ;;  %v3035_v25 = vsel %vm5971_vm2, %v5439_v8, %v3034_v55  ;;  %v5479_v17 = vrot.slane %v3518_v4, 9  ;;  %v2545_v44 = vld [vmem:[#allocation2 + $0x94] sm:$0x1]  ;;  %v2952_v5 = vld [vmem:[#allocation2 + $0x60] sm:$0xe] }
 0x1e4   :  { %3180 = vrot.lane.b32.xlu1 %v5890_v20, %s5929_s13  ;;  %v3602_v40 = vrot.slane %v3519_v18, 5  ;;  %v5624_v48 = vpack.c.bf16 %v2235_v59, %v2235_v59  ;;  %v3897_v9 = vrot.slane %v3896_v46, 4  ;;  %v3901_v34 = vrot.slane %v3899_v16, 5  ;;  %v2953_v8 = vld [vmem:[#allocation2 + $0x64] sm:$0x1] }
 0x1e5   :  { %4057 = vrot.lane.b32.xlu0 %v5504_v24, %s5929_s13  ;;  %v5450_v26 = vcombine.low %v7243_v14, %v3035_v25  ;;  %v5625_v33 = vpack.c.bf16 %v2236_v12, %v2236_v12  ;;  %v3599_v43 = vsel %vm5971_vm2, %v5478_v61, %v3598_v54  ;;  %v2779_v15 = vshrl.u32 %v2638_v29, 16  ;;  %v2536_v14 = vld [vmem:[#allocation2 + $0x88] sm:$0xf]  ;;  %v4101_v2 = vld [vmem:[#allocation2 + $0x60] sm:$0xe] }
 0x1e6   :  { %v2782_v30 = vshll.u32 %v2638_v29, 16  ;;  %v2398_v50 = vshrl.u32 %v5624_v48, 16  ;;  %v2401_v3 = vshll.u32 %v5624_v48, 16  ;;  %v3902_v13 = vsel %vm6062_vm5, %v3897_v9, %v3901_v34  ;;  %v2954_v62 = vld [vmem:[#allocation2 + $0x68] sm:$0xe] }
 0x1e7   :  { %v3603_v47 = vsel %vm5971_vm2, %v5479_v17, %v3602_v40  ;;  %v2406_v39 = vshrl.u32 %v5625_v33, 16  ;;  %v2409_v52 = vshll.u32 %v5625_v33, 16  ;;  %v5505_v60 = vcombine.low %v3902_v13, %v3916_v32  ;;  %v2955_v21 = vld [vmem:[#allocation2 + $0x6c] sm:$0x1]  ;;  %v4102_v55 = vld [vmem:[#allocation2 + $0x64] sm:$0x1] }
 0x1e8   :  { %3092 = vrot.lane.b32.xlu1 %v5450_v26, %s5927_s19  ;;  %v2781_v22 = vrot.slane %v2779_v15, 4  ;;  %v2400_v31 = vrot.slane %v2398_v50, 7  ;;  %v2784_v28 = vrot.slane %v2782_v30, 5  ;;  %v2788_v6 = vshll.u32 %v2639_v27, 16  ;;  %v4103_v54 = vld [vmem:[#allocation2 + $0x68] sm:$0xe] }
 0x1e9   :  { %v5480_v63 = vrot.slane %v3520_v11, 9  ;;  %v2408_v4 = vrot.slane %v2406_v39, 7  ;;  %4059 = vrot.lane.b32.xlu0 %v5505_v60, %s5929_s13  ;;  %v3606_v7 = vrot.slane %v3521_v42, 5  ;;  %v5481_v53 = vrot.slane %v3522_v35, 9  ;;  %v4104_v29 = vld [vmem:[#allocation2 + $0x6c] sm:$0x1] }
 0x1ea   :  { %v3610_v57 = vrot.slane %v3523_v36, 5  ;;  %v2403_v1 = vor.u32 %v2401_v3, %v2400_v31  ;;  %v2404_v38 = vrot.slane %v2400_v31, 4  ;;  %v5490_v41 = vcombine.low %v3599_v43, %v3603_v47  ;;  %v5891_v17 = vld [vmem:[#allocation2 + $0x60] ss:$8 sps:$4 sm:$0xff]   ;;  %v2641_v34 = vld [vmem:[#allocation2 + $0x64] sm:$0x1] }
 0x1eb   :  { %v2785_v32 = vor.u32 %v2784_v28, %v2781_v22  ;;  %v2411_v16 = vor.u32 %v2409_v52, %v2408_v4  ;;  %v2412_v18 = vrot.slane %v2408_v4, 4  ;;  %v2790_v19 = vrot.slane %v2788_v6, 5  ;;  %v2640_v9 = vld [vmem:[#allocation2 + $0x60] sm:$0xf]  ;;  %v2643_v42 = vld [vmem:[#allocation2 + $0x6c] sm:$0x1] }
 0x1ec   :  { %v7498_v20 = vsel %vm5971_vm2, %v5480_v63, %v3606_v7  ;;  %v2537_v61 = vsel %vm7074_vm14, %v2403_v1, %v2536_v14  ;;  %v2540_v24 = vsel %vm7080_vm15, %v2404_v38, %v2539_v51  ;;  %v3611_v46 = vsel %vm5971_vm2, %v5481_v53, %v3610_v57  ;;  %v3789_v35 = vld [vmem:[#allocation2 + $0x60] sm:$0xf]  ;;  %v3790_v36 = vld [vmem:[#allocation2 + $0x64] sm:$0x1]  ;;  %v5892_v14 = vld [vmem:[#allocation2 + $0x68] ss:$8 sps:$4 sm:$0xff]  }
 0x1ed   :  { %v2786_v59 = vrot.slane %v2785_v32, 4  ;;  %2538 = vst [vmem:[#allocation2 + $0x88] sm:$0xf] %v2537_v61  ;;  %2541 = vst [vmem:[#allocation2 + $0x8c] sm:$0x1] %v2540_v24  ;;  %v2543_v12 = vsel %vm7074_vm14, %v2411_v16, %v2542_v37  ;;  %v2546_v25 = vsel %vm7080_vm15, %v2412_v18, %v2545_v44  ;;  %3660 = vrot.lane.b32.xlu0 %v5490_v41, %s5928_s28  ;;  %v5440_v40 = vrot.slane %v2952_v5, 9 }
 0x1ee   :  { %v3038_v48 = vrot.slane %v2953_v8, 5  ;;  %2544 = vst [vmem:[#allocation2 + $0x90] sm:$0xf] %v2543_v12  ;;  %2547 = vst [vmem:[#allocation2 + $0x94] sm:$0x1] %v2546_v25  ;;  %v5441_v27 = vrot.slane %v2954_v62, 9  ;;  %v5491_v43 = vcombine.low %v7498_v20, %v3611_v46 }
 0x1ef   :  { %v2791_v26 = vsel %vm6062_vm5, %v2786_v59, %v2790_v19  ;;  %v3042_v11 = vrot.slane %v2955_v21, 5  ;;  %v5518_v33 = vrot.slane %v4101_v2, 9  ;;  %v4183_v15 = vrot.slane %v4102_v55, 5  ;;  %v3791_v39 = vld [vmem:[#allocation2 + $0x68] sm:$0xf] }
 0x1f0   :  { %v5426_v49 = vcombine.low %v2777_v56, %v2791_v26  ;;  %v5519_v30 = vrot.slane %v4103_v54, 9  ;;  %v4187_v3 = vrot.slane %v4104_v29, 5  ;;  %v2793_v13 = vshrl.u32 %v2640_v9, 16  ;;  %v3792_v37 = vld [vmem:[#allocation2 + $0x6c] sm:$0x1] }
 0x1f1   :  { %v3043_v50 = vsel %vm5971_vm2, %v5441_v27, %v3042_v11  ;;  %v2796_v47 = vshll.u32 %v2640_v9, 16  ;;  %3749 = vrot.lane.b32.xlu0 %v5891_v17, %s5927_s19  ;;  %v3039_v23 = vsel %vm5971_vm2, %v5440_v40, %v3038_v48  ;;  %v4184_v10 = vsel %vm5971_vm2, %v5518_v33, %v4183_v15  ;;  %v5903_v44 = vld [vmem:[#allocation2] ss:$8 sps:$4 sm:$0xff]   ;;  %v5893_v63 = vld [vmem:[#allocation2 + $0x70] ss:$8 sps:$4 sm:$0xff]  }
 0x1f2   :  { %2908 = vrot.lane.b32.xlu1 %v5426_v49, %s5928_s28  ;;  %v2802_v56 = vshll.u32 %v2641_v34, 16  ;;  %v2807_v51 = vshrl.u32 %v2642_v45, 16  ;;  %v4188_v52 = vsel %vm5971_vm2, %v5519_v30, %v4187_v3  ;;  %v2795_v60 = vrot.slane %v2793_v13, 4  ;;  %v3524_v7 = vld [vmem:[#allocation2 + $0x78] sm:$0xe]  ;;  %2612 = vst.msk [vmem:[#allocation4] sm:$0xff] %vm137_vm6, %v5903_v44 }
 0x1f3   :  { %v2798_v22 = vrot.slane %v2796_v47, 5  ;;  %v2810_v31 = vshll.u32 %v2642_v45, 16  ;;  %v5451_v28 = vcombine.low %v3039_v23, %v3043_v50  ;;  %v5530_v6 = vcombine.low %v4184_v10, %v4188_v52  ;;  %v3525_v2 = vld [vmem:[#allocation2 + $0x7c] sm:$0x1]  ;;  %v3526_v21 = vld [vmem:[#allocation2 + $0x80] sm:$0xe] }
 0x1f4   :  { %v2809_v5 = vrot.slane %v2807_v51, 4  ;;  %v2816_v4 = vshll.u32 %v2643_v42, 16  ;;  %v3918_v8 = vshrl.u32 %v3789_v35, 16  ;;  %v3921_v1 = vshll.u32 %v3789_v35, 16  ;;  %v2956_v55 = vld [vmem:[#allocation2 + $0x70] sm:$0xe] }
 0x1f5   :  { %v2799_v53 = vor.u32 %v2798_v22, %v2795_v60  ;;  %v2812_v57 = vrot.slane %v2810_v31, 5  ;;  %3662 = vrot.lane.b32.xlu0 %v5491_v43, %s5928_s28  ;;  %4249 = vst.msk [vmem:[#allocation4 + $0x70] sm:$0xff] %vm137_vm6, %v5530_v6  ;;  %v2804_v38 = vrot.slane %v2802_v56, 5  ;;  %v3927_v41 = vshll.u32 %v3790_v36, 16  ;;  %v2957_v61 = vld [vmem:[#allocation2 + $0x74] sm:$0x1] }
 0x1f6   :  { %3182 = vrot.lane.b32.xlu1 %v5892_v14, %s5929_s13  ;;  %v3932_v32 = vshrl.u32 %v3791_v39, 16  ;;  %v3935_v62 = vshll.u32 %v3791_v39, 16  ;;  %v3920_v19 = vrot.slane %v3918_v8, 4  ;;  %v3923_v20 = vrot.slane %v3921_v1, 5  ;;  %v3527_v29 = vld [vmem:[#allocation2 + $0x84] sm:$0x1] }
 0x1f7   :  { %v2800_v16 = vrot.slane %v2799_v53, 4  ;;  %v2813_v18 = vor.u32 %v2812_v57, %v2809_v5  ;;  %v2818_v24 = vrot.slane %v2816_v4, 5  ;;  %v3941_v54 = vshll.u32 %v3792_v37, 16  ;;  %v4105_v48 = vld [vmem:[#allocation2 + $0x70] sm:$0xe] }
 0x1f8   :  { %v3934_v59 = vrot.slane %v3932_v32, 4  ;;  %v3937_v46 = vrot.slane %v3935_v62, 5  ;;  %v3924_v25 = vor.u32 %v3923_v20, %v3920_v19  ;;  %v3929_v17 = vrot.slane %v3927_v41, 5  ;;  %v2958_v11 = vld [vmem:[#allocation2 + $0x78] sm:$0xe] }
 0x1f9   :  { %v2814_v12 = vrot.slane %v2813_v18, 4  ;;  %v5482_v40 = vrot.slane %v3524_v7, 9  ;;  %3751 = vrot.lane.b32.xlu0 %v5893_v63, %s5927_s19  ;;  %v2805_v9 = vsel %vm6062_vm5, %v2800_v16, %v2804_v38  ;;  %v3614_v26 = vrot.slane %v3525_v2, 5  ;;  %v2959_v33 = vld [vmem:[#allocation2 + $0x7c] sm:$0x1] }
 0x1fa   :  { %3094 = vrot.lane.b32.xlu1 %v5451_v28, %s5927_s19  ;;  %v3938_v34 = vor.u32 %v3937_v46, %v3934_v59  ;;  %v5483_v27 = vrot.slane %v3526_v21, 9  ;;  %v4106_v45 = vld [vmem:[#allocation2 + $0x74] sm:$0x1]  ;;  %v3925_v43 = vrot.slane %v3924_v25, 4  ;;  %v3943_v15 = vrot.slane %v3941_v54, 5  ;;  %v7554_v16 = vpop.permute.xlu1 %3172 }
 0x1fb   :  { %v2819_v49 = vsel %vm6062_vm5, %v2814_v12, %v2818_v24  ;;  %v3618_v30 = vrot.slane %v3527_v29, 5  ;;  %v2644_v42 = vld [vmem:[#allocation2 + $0x70] sm:$0xf]  ;;  %v5442_v3 = vrot.slane %v2956_v55, 9  ;;  %v3046_v13 = vrot.slane %v2957_v61, 5 }
 0x1fc   :  { %v5427_v35 = vcombine.low %v2805_v9, %v2819_v49  ;;  %v3939_v50 = vrot.slane %v3938_v34, 4  ;;  %v4107_v47 = vld [vmem:[#allocation2 + $0x78] sm:$0xe]  ;;  %v2645_v36 = vld [vmem:[#allocation2 + $0x74] sm:$0x1]  ;;  %v3615_v23 = vsel %vm5971_vm2, %v5482_v40, %v3614_v26  ;;  %v5443_v56 = vrot.slane %v2958_v11, 9 }
 0x1fd   :  { %v4267_v14 = vld [vmem:[#allocation4 + $0x70] sm:$0xff]  ;;  %v3619_v10 = vsel %vm5971_vm2, %v5483_v27, %v3618_v30  ;;  %v3050_v51 = vrot.slane %v2959_v33, 5  ;;  %v4108_v39 = vld [vmem:[#allocation2 + $0x7c] sm:$0x1]  ;;  %v3930_v52 = vsel %vm6062_vm5, %v3925_v43, %v3929_v17  ;;  %v5894_v22 = vld [vmem:[#allocation2 + $0x78] ss:$8 sps:$4 sm:$0xff]   ;;  %v3047_v53 = vsel %vm5971_vm2, %v5442_v3, %v3046_v13 }
 0x1fe   :  { %5822 = vmatprep.mubr.msk.bf16.mxu0 %vm137_vm6, %v4267_v14  ;;  %2910 = vrot.lane.b32.xlu1 %v5427_v35, %s5928_s28  ;;  %v3944_v60 = vsel %vm6062_vm5, %v3939_v50, %v3943_v15  ;;  %v5492_v31 = vcombine.low %v3615_v23, %v3619_v10  ;;  %v5520_v37 = vrot.slane %v4105_v48, 9  ;;  %v2646_v44 = vld [vmem:[#allocation2 + $0x78] sm:$0xf]  ;;  %v4191_v63 = vrot.slane %v4106_v45, 5  ;;  %v2647_v4 = vld [vmem:[#allocation2 + $0x7c] sm:$0x1] }
 0x1ff   :  { %v5506_v28 = vcombine.low %v3930_v52, %v3944_v60  ;;  %v3051_v6 = vsel %vm5971_vm2, %v5443_v56, %v3050_v51  ;;  %v5521_v5 = vrot.slane %v4107_v47, 9  ;;  %v3793_v7 = vld [vmem:[#allocation2 + $0x70] sm:$0xf]  ;;  %v4195_v57 = vrot.slane %v4108_v39, 5  ;;  %v3794_v2 = vld [vmem:[#allocation2 + $0x74] sm:$0x1] }
 0x200   :  { %v2821_v8 = vshrl.u32 %v2644_v42, 16  ;;  %v2824_v1 = vshll.u32 %v2644_v42, 16  ;;  %v5452_v38 = vcombine.low %v3047_v53, %v3051_v6  ;;  %v2830_v41 = vshll.u32 %v2645_v36, 16  ;;  %v3795_v55 = vld [vmem:[#allocation2 + $0x78] sm:$0xf] }
 0x201   :  { %4061 = vrot.lane.b32.xlu0 %v5506_v28, %s5929_s13  ;;  %v2835_v32 = vshrl.u32 %v2646_v44, 16  ;;  %v2838_v62 = vshll.u32 %v2646_v44, 16  ;;  %v4192_v18 = vsel %vm5971_vm2, %v5520_v37, %v4191_v63  ;;  %v4196_v19 = vsel %vm5971_vm2, %v5521_v5, %v4195_v57  ;;  %v3796_v61 = vld [vmem:[#allocation2 + $0x7c] sm:$0x1]  ;;  %v5895_v59 = vld [vmem:[#allocation2 + $0x80] ss:$8 sps:$4 sm:$0xff]  }
 0x202   :  { %3184 = vrot.lane.b32.xlu1 %v5894_v22, %s5929_s13  ;;  %v2823_v20 = vrot.slane %v2821_v8, 4  ;;  %v2826_v21 = vrot.slane %v2824_v1, 5  ;;  %v5531_v24 = vcombine.low %v4192_v18, %v4196_v19  ;;  %v2844_v29 = vshll.u32 %v2647_v4, 16  ;;  %v2960_v12 = vld [vmem:[#allocation2 + $0x80] sm:$0xe]  ;;  %v3085_v23 = vpop.permute.xlu1 %3084 }
 0x203   :  { %v2837_v46 = vrot.slane %v2835_v32, 4  ;;  %v2840_v54 = vrot.slane %v2838_v62, 5  ;;  %v2832_v17 = vrot.slane %v2830_v41, 5  ;;  %v3946_v40 = vshrl.u32 %v3793_v7, 16  ;;  %v2961_v9 = vld [vmem:[#allocation2 + $0x84] sm:$0x1] }
 0x204   :  { %v2827_v25 = vor.u32 %v2826_v21, %v2823_v20  ;;  %v3949_v48 = vshll.u32 %v3793_v7, 16  ;;  %v2962_v34 = vld [vmem:[#allocation2 + $0x88] sm:$0xe]  ;;  %4250 = vst.msk [vmem:[#allocation4 + $0x88] sm:$0xff] %vm137_vm6, %v5531_v24  ;;  %v3955_v27 = vshll.u32 %v3794_v2, 16  ;;  %v3960_v11 = vshrl.u32 %v3795_v55, 16 }
 0x205   :  { %3664 = vrot.lane.b32.xlu0 %v5492_v31, %s5928_s28  ;;  %v2841_v26 = vor.u32 %v2840_v54, %v2837_v46  ;;  %v3963_v33 = vshll.u32 %v3795_v55, 16  ;;  %v2963_v45 = vld [vmem:[#allocation2 + $0x8c] sm:$0x1]  ;;  %v3948_v43 = vrot.slane %v3946_v40, 4  ;;  %v3969_v30 = vshll.u32 %v3796_v61, 16 }
 0x206   :  { %3096 = vrot.lane.b32.xlu1 %v5452_v38, %s5927_s19  ;;  %v2828_v49 = vrot.slane %v2827_v25, 4  ;;  %v3951_v15 = vrot.slane %v3949_v48, 5  ;;  %v3528_v42 = vld [vmem:[#allocation2 + $0x88] sm:$0xe]  ;;  %v3529_v35 = vld [vmem:[#allocation2 + $0x8c] sm:$0x1] }
 0x207   :  { %v3530_v50 = vld [vmem:[#allocation2 + $0x90] sm:$0xe]  ;;  %v2842_v3 = vrot.slane %v2841_v26, 4  ;;  %v2846_v13 = vrot.slane %v2844_v29, 5  ;;  %v3962_v47 = vrot.slane %v3960_v11, 4  ;;  %v3965_v36 = vrot.slane %v3963_v33, 5 }
 0x208   :  { %v2648_v14 = vld [vmem:[#allocation2 + $0x80] sm:$0xf]  ;;  %v2833_v10 = vsel %vm6062_vm5, %v2828_v49, %v2832_v17  ;;  %v3952_v56 = vor.u32 %v3951_v15, %v3948_v43  ;;  %v3957_v51 = vrot.slane %v3955_v27, 5  ;;  %v5444_v39 = vrot.slane %v2960_v12, 9  ;;  %v5910_v52 = vld [vmem:[#allocation2 + $0x10] ss:$8 sps:$4 sm:$0xff]  }
 0x209   :  { %3753 = vrot.lane.b32.xlu0 %v5895_v59, %s5927_s19  ;;  %v2847_v60 = vsel %vm6062_vm5, %v2842_v3, %v2846_v13  ;;  %v3966_v22 = vor.u32 %v3965_v36, %v3962_v47  ;;  %v3054_v31 = vrot.slane %v2961_v9, 5  ;;  %v5445_v37 = vrot.slane %v2962_v34, 9  ;;  %v3531_v44 = vld [vmem:[#allocation2 + $0x94] sm:$0x1]  ;;  %v2649_v28 = vld [vmem:[#allocation2 + $0x84] sm:$0x1] }
 0x20a   :  { %v5428_v6 = vcombine.low %v2833_v10, %v2847_v60  ;;  %v3953_v63 = vrot.slane %v3952_v56, 4  ;;  %v3971_v5 = vrot.slane %v3969_v30, 5  ;;  %v3058_v4 = vrot.slane %v2963_v45, 5  ;;  %v2650_v7 = vld [vmem:[#allocation2 + $0x88] sm:$0xf]  ;;  %2613 = vst.msk [vmem:[#allocation4 + $0x18] sm:$0xff] %vm137_vm6, %v5910_v52  ;;  %v2901_v24 = vpop.permute.xlu1 %2900  ;;  %v7591_v56 = vpop.permute.xlu0 %3652 }
 0x20b   :  { %v3967_v53 = vrot.slane %v3966_v22, 4  ;;  %v5484_v57 = vrot.slane %v3528_v42, 9  ;;  %v3622_v8 = vrot.slane %v3529_v35, 5  ;;  %v5485_v1 = vrot.slane %v3530_v50, 9  ;;  %v2651_v38 = vld [vmem:[#allocation2 + $0x8c] sm:$0x1] }
 0x20c   :  { %v3797_v41 = vld [vmem:[#allocation2 + $0x80] sm:$0xf]  ;;  %v4270_v32 = vld [vmem:[#allocation4 + $0x88] sm:$0xff]  ;;  %2912 = vrot.lane.b32.xlu1 %v5428_v6, %s5928_s28  ;;  %v3055_v62 = vsel %vm5971_vm2, %v5444_v39, %v3054_v31  ;;  %v3059_v2 = vsel %vm5971_vm2, %v5445_v37, %v3058_v4  ;;  %v3626_v18 = vrot.slane %v3531_v44, 5  ;;  %v2849_v19 = vshrl.u32 %v2648_v14, 16  ;;  %2924 = vst.msk [vmem:[#allocation4] sm:$0xff] %vm453_vm7, %v2901_v24 }
 0x20d   :  { %5823 = vmatmul.mubr.msk.bf16.gmra.mrb[40].mxu0 %vm137_vm6, %v4270_v32  ;;  %v3958_v20 = vsel %vm6062_vm5, %v3953_v63, %v3957_v51  ;;  %v3972_v21 = vsel %vm6062_vm5, %v3967_v53, %v3971_v5  ;;  %v5453_v55 = vcombine.low %v3055_v62, %v3059_v2  ;;  %v2852_v61 = vshll.u32 %v2648_v14, 16  ;;  %v5916_v59 = vld [vmem:[#allocation2 + $0x20] ss:$8 sps:$4 sm:$0xff]   ;;  %v3798_v25 = vld [vmem:[#allocation2 + $0x84] sm:$0x1]  ;;  %3108 = vst.msk [vmem:[#allocation4] sm:$0xff] %vm641_vm8, %v3085_v23 }
 0x20e   :  { %v5507_v46 = vcombine.low %v3958_v20, %v3972_v21  ;;  %v3627_v54 = vsel %vm5971_vm2, %v5485_v1, %v3626_v18  ;;  %v2851_v29 = vrot.slane %v2849_v19, 4  ;;  %v2858_v12 = vshll.u32 %v2649_v28, 16  ;;  %v3799_v17 = vld [vmem:[#allocation2 + $0x88] sm:$0xf]  ;;  %v3800_v26 = vld [vmem:[#allocation2 + $0x8c] sm:$0x1]  ;;  %v7594_v6 = vpop.permute.xlu1 %3174 }
 0x20f   :  { %v3623_v40 = vsel %vm5971_vm2, %v5484_v57, %v3622_v8  ;;  %v2854_v48 = vrot.slane %v2852_v61, 5  ;;  %v2863_v9 = vshrl.u32 %v2650_v7, 16  ;;  %v2866_v34 = vshll.u32 %v2650_v7, 16  ;;  %2614 = vst.msk [vmem:[#allocation4 + $0x30] sm:$0xff] %vm137_vm6, %v5916_v59  ;;  %v3801_v49 = vld [vmem:[#allocation2 + $0x90] sm:$0xf] }
 0x210   :  { %4063 = vrot.lane.b32.xlu0 %v5507_v46, %s5929_s13  ;;  %3098 = vrot.lane.b32.xlu1 %v5453_v55, %s5927_s19  ;;  %v5493_v27 = vcombine.low %v3623_v40, %v3627_v54  ;;  %v2872_v11 = vshll.u32 %v2651_v38, 16  ;;  %v3974_v33 = vshrl.u32 %v3797_v41, 16  ;;  %v3977_v45 = vshll.u32 %v3797_v41, 16  ;;  %3196 = vst.msk [vmem:[#allocation4] sm:$0xff] %vm731_vm9, %v7554_v16  ;;  %v3802_v35 = vld [vmem:[#allocation2 + $0x94] sm:$0x1]  ;;  %v7601_v46 = vpop.permute.xlu0 %3741 }
 0x211   :  { %v2855_v43 = vor.u32 %v2854_v48, %v2851_v29  ;;  %v2865_v15 = vrot.slane %v2863_v9, 4  ;;  %v2868_v30 = vrot.slane %v2866_v34, 5  ;;  %v3983_v42 = vshll.u32 %v3798_v25, 16  ;;  %v5917_v51 = vld [vmem:[#allocation2 + $0x30] ss:$8 sps:$4 sm:$0xff]  }
 0x212   :  { %v2860_v50 = vrot.slane %v2858_v12, 5  ;;  %v3976_v3 = vrot.slane %v3974_v33, 4  ;;  %v3979_v13 = vrot.slane %v3977_v45, 5  ;;  %v3988_v47 = vshrl.u32 %v3799_v17, 16  ;;  %v3803_v60 = vld [vmem:[#allocation2 + $0x98] sm:$0xf] }
 0x213   :  { %v2856_v36 = vrot.slane %v2855_v43, 4  ;;  %v2869_v14 = vor.u32 %v2868_v30, %v2865_v15  ;;  %v2874_v23 = vrot.slane %v2872_v11, 5  ;;  %v3991_v10 = vshll.u32 %v3799_v17, 16  ;;  %2615 = vst.msk [vmem:[#allocation4 + $0x48] sm:$0xff] %vm137_vm6, %v5917_v51  ;;  %v3804_v4 = vld [vmem:[#allocation2 + $0x9c] sm:$0x1]  ;;  %v3087_v11 = vpop.permute.xlu1 %3086 }
 0x214   :  { %3666 = vrot.lane.b32.xlu0 %v5493_v27, %s5928_s28  ;;  %v3980_v39 = vor.u32 %v3979_v13, %v3976_v3  ;;  %v3990_v16 = vrot.slane %v3988_v47, 4  ;;  %v3997_v52 = vshll.u32 %v3800_v26, 16  ;;  %v4002_v22 = vshrl.u32 %v3801_v49, 16  ;;  %v3205_v41 = vld [vmem:[#allocation2 + $0xc] sm:$0x1] }
 0x215   :  { %v2870_v31 = vrot.slane %v2869_v14, 4  ;;  %v3985_v37 = vrot.slane %v3983_v42, 5  ;;  %v3993_v44 = vrot.slane %v3991_v10, 5  ;;  %v4005_v28 = vshll.u32 %v3801_v49, 16  ;;  %v3206_v32 = vld [vmem:[#allocation2 + $0x10] sm:$0xf] }
 0x216   :  { %v2861_v63 = vsel %vm6062_vm5, %v2856_v36, %v2860_v50  ;;  %v3981_v5 = vrot.slane %v3980_v39, 4  ;;  %v4004_v7 = vrot.slane %v4002_v22, 4  ;;  %v4011_v53 = vshll.u32 %v3802_v35, 16  ;;  %v3207_v19 = vld [vmem:[#allocation2 + $0x14] sm:$0x1] }
 0x217   :  { %v2875_v57 = vsel %vm6062_vm5, %v2870_v31, %v2874_v23  ;;  %v3994_v8 = vor.u32 %v3993_v44, %v3990_v16  ;;  %v4007_v1 = vrot.slane %v4005_v28, 5  ;;  %v4016_v38 = vshrl.u32 %v3803_v60, 16  ;;  %v3204_v20 = vld [vmem:[#allocation2 + $0x8] sm:$0xf]  ;;  %v5918_v21 = vld [vmem:[#allocation2 + $0x50] ss:$8 sps:$4 sm:$0xff]  }
 0x218   :  { %v5429_v62 = vcombine.low %v2861_v63, %v2875_v57  ;;  %v3999_v2 = vrot.slane %v3997_v52, 5  ;;  %v4019_v18 = vshll.u32 %v3803_v60, 16  ;;  %v4025_v59 = vshll.u32 %v3804_v4, 16  ;;  %v3208_v54 = vld [vmem:[#allocation2 + $0x18] sm:$0xf]  ;;  %2616 = vst.msk [vmem:[#allocation4 + $0x60] sm:$0xff] %vm137_vm6, %v5918_v21  ;;  %v7613_v60 = vpop.permute.xlu0 %3654 }
 0x219   :  { %v3995_v55 = vrot.slane %v3994_v8, 4  ;;  %v4008_v61 = vor.u32 %v4007_v1, %v4004_v7  ;;  %v4018_v24 = vrot.slane %v4016_v38, 4  ;;  %v3986_v29 = vsel %vm6062_vm5, %v3981_v5, %v3985_v37  ;;  %v5896_v12 = vld [vmem:[#allocation2 + $0x88] ss:$8 sps:$4 sm:$0xff]   ;;  %v3209_v27 = vld [vmem:[#allocation2 + $0x1c] sm:$0x1] }
 0x21a   :  { %2914 = vrot.lane.b32.xlu1 %v5429_v62, %s5928_s28  ;;  %v4021_v25 = vrot.slane %v4019_v18, 5  ;;  %v3251_v17 = vshrl.u32 %v3206_v32, 16  ;;  %v3254_v40 = vshll.u32 %v3206_v32, 16  ;;  %v4013_v34 = vrot.slane %v4011_v53, 5  ;;  %v3210_v15 = vld [vmem:[#allocation2 + $0x20] sm:$0xf] }
 0x21b   :  { %v4000_v48 = vsel %vm6062_vm5, %v3995_v55, %v3999_v2  ;;  %v4009_v9 = vrot.slane %v4008_v61, 4  ;;  %v3246_v26 = vshll.u32 %v3205_v41, 16  ;;  %v4027_v49 = vrot.slane %v4025_v59, 5  ;;  %v3211_v3 = vld [vmem:[#allocation2 + $0x24] sm:$0x1] }
 0x21c   :  { %v5508_v33 = vcombine.low %v3986_v29, %v4000_v48  ;;  %v4022_v45 = vor.u32 %v4021_v25, %v4018_v24  ;;  %v3253_v43 = vrot.slane %v3251_v17, 4  ;;  %v3256_v42 = vrot.slane %v3254_v40, 5  ;;  %v5897_v13 = vld [vmem:[#allocation2 + $0x90] ss:$8 sps:$4 sm:$0xff]   ;;  %v5919_v10 = vld [vmem:[#allocation2 + $0x60] ss:$8 sps:$4 sm:$0xff]  }
 0x21d   :  { %v4014_v30 = vsel %vm6062_vm5, %v4009_v9, %v4013_v34  ;;  %v3260_v35 = vshll.u32 %v3207_v19, 16  ;;  %v3237_v50 = vshrl.u32 %v3204_v20, 16  ;;  %v3240_v36 = vshll.u32 %v3204_v20, 16  ;;  %v3212_v22 = vld [vmem:[#allocation2 + $0x28] sm:$0xf]  ;;  %2617 = vst.msk [vmem:[#allocation4 + $0x78] sm:$0xff] %vm137_vm6, %v5919_v10  ;;  %v7622_v19 = vpop.permute.xlu0 %3743 }
 0x21e   :  { %4065 = vrot.lane.b32.xlu0 %v5508_v33, %s5929_s13  ;;  %3186 = vrot.lane.b32.xlu1 %v5896_v12, %s5929_s13  ;;  %v4023_v47 = vrot.slane %v4022_v45, 4  ;;  %v3265_v14 = vshrl.u32 %v3208_v54, 16  ;;  %v3268_v23 = vshll.u32 %v3208_v54, 16  ;;  %v3257_v51 = vor.u32 %v3256_v42, %v3253_v43  ;;  %v7617_v63 = vld [vmem:[#allocation2 + $0x2c] sm:$0x1] }
 0x21f   :  { %v3239_v39 = vrot.slane %v3237_v50, 4  ;;  %v3274_v16 = vshll.u32 %v3209_v27, 16  ;;  %v3279_v52 = vshrl.u32 %v3210_v15, 16  ;;  %v3242_v37 = vrot.slane %v3240_v36, 5  ;;  %v2903_v57 = vpop.permute.xlu1 %2902  ;;  %v3214_v8 = vld [vmem:[#allocation2 + $0x30] sm:$0xf] }
 0x220   :  { %v4028_v31 = vsel %vm6062_vm5, %v4023_v47, %v4027_v49  ;;  %v3267_v44 = vrot.slane %v3265_v14, 4  ;;  %v3270_v28 = vrot.slane %v3268_v23, 5  ;;  %v3248_v5 = vrot.slane %v3246_v26, 5  ;;  %2925 = vst.msk [vmem:[#allocation4 + $0x18] sm:$0xff] %vm453_vm7, %v2903_v57  ;;  %v3215_v62 = vld [vmem:[#allocation2 + $0x34] sm:$0x1] }
 0x221   :  { %v3258_v4 = vrot.slane %v3257_v51, 4  ;;  %v3262_v7 = vrot.slane %v3260_v35, 5  ;;  %v3281_v53 = vrot.slane %v3279_v52, 4  ;;  %v3243_v1 = vor.u32 %v3242_v37, %v3239_v39  ;;  %3109 = vst.msk [vmem:[#allocation4 + $0x18] sm:$0xff] %vm641_vm8, %v3087_v11  ;;  %v5920_v54 = vld [vmem:[#allocation2 + $0x70] ss:$8 sps:$4 sm:$0xff]  }
 0x222   :  { %3755 = vrot.lane.b32.xlu0 %v5897_v13, %s5927_s19  ;;  %v3271_v38 = vor.u32 %v3270_v28, %v3267_v44  ;;  %v3282_v41 = vshll.u32 %v3210_v15, 16  ;;  %v3288_v32 = vshll.u32 %v3211_v3, 16  ;;  %v5509_v2 = vcombine.low %v4014_v30, %v4028_v31  ;;  %3197 = vst.msk [vmem:[#allocation4 + $0x18] sm:$0xff] %vm731_vm9, %v7594_v6  ;;  %v3216_v40 = vld [vmem:[#allocation2 + $0x38] sm:$0xf] }
 0x223   :  { %v3276_v18 = vrot.slane %v3274_v16, 5  ;;  %v3293_v20 = vshrl.u32 %v3212_v22, 16  ;;  %v3296_v21 = vshll.u32 %v3212_v22, 16  ;;  %v3263_v55 = vsel %vm6062_vm5, %v3258_v4, %v3262_v7  ;;  %v3217_v27 = vld [vmem:[#allocation2 + $0x3c] sm:$0x1]  ;;  %2618 = vst.msk [vmem:[#allocation4 + $0x90] sm:$0xff] %vm137_vm6, %v5920_v54 }
 0x224   :  { %v3244_v61 = vrot.slane %v3243_v1, 4  ;;  %v3284_v24 = vrot.slane %v3282_v41, 5  ;;  %v3302_v59 = vshll.u32 %v7617_v63, 16  ;;  %v3272_v29 = vrot.slane %v3271_v38, 4  ;;  %v3218_v11 = vld [vmem:[#allocation2 + $0x40] sm:$0xf] }
 0x225   :  { %v3295_v12 = vrot.slane %v3293_v20, 4  ;;  %v3298_v25 = vrot.slane %v3296_v21, 5  ;;  %v3307_v17 = vshrl.u32 %v3214_v8, 16  ;;  %v3290_v34 = vrot.slane %v3288_v32, 5  ;;  %v3219_v43 = vld [vmem:[#allocation2 + $0x44] sm:$0x1] }
 0x226   :  { %4067 = vrot.lane.b32.xlu0 %v5509_v2, %s5929_s13  ;;  %v3249_v48 = vsel %vm6062_vm5, %v3244_v61, %v3248_v5  ;;  %v3285_v9 = vor.u32 %v3284_v24, %v3281_v53  ;;  %v3310_v26 = vshll.u32 %v3214_v8, 16  ;;  %v3316_v49 = vshll.u32 %v3215_v62, 16  ;;  %v5921_v14 = vld [vmem:[#allocation2 + $0x80] ss:$8 sps:$4 sm:$0xff]   ;;  %v3220_v16 = vld [vmem:[#allocation2 + $0x58] sm:$0xf] }
 0x227   :  { %v5462_v6 = vcombine.low %v3249_v48, %v3263_v55  ;;  %v3299_v33 = vor.u32 %v3298_v25, %v3295_v12  ;;  %v3309_v45 = vrot.slane %v3307_v17, 4  ;;  %v3321_v42 = vshrl.u32 %v3216_v40, 16  ;;  %v4054_v3 = vpop.permute.xlu0 %4053  ;;  %v3222_v52 = vld [vmem:[#allocation2 + $0x60] sm:$0xf]  ;;  %v3221_v28 = vld [vmem:[#allocation2 + $0x5c] sm:$0x1] }
 0x228   :  { %v3286_v15 = vrot.slane %v3285_v9, 4  ;;  %v3312_v30 = vrot.slane %v3310_v26, 5  ;;  %v3324_v35 = vshll.u32 %v3216_v40, 16  ;;  %v3277_v50 = vsel %vm6062_vm5, %v3272_v29, %v3276_v18  ;;  %2619 = vst.msk [vmem:[#allocation4 + $0xa8] sm:$0xff] %vm137_vm6, %v5921_v14  ;;  %v3224_v2 = vld [vmem:[#allocation2 + $0x68] sm:$0xf]  ;;  %v7654_v18 = vpop.permute.xlu1 %3176 }
 0x229   :  { %3492 = vst.msk [vmem:[#allocation4 + $0x8] sm:$0xff] %vm137_vm6, %v5462_v6  ;;  %v3300_v13 = vrot.slane %v3299_v33, 4  ;;  %v3330_v47 = vshll.u32 %v3217_v27, 16  ;;  %v3335_v36 = vshrl.u32 %v3218_v11, 16  ;;  %v3323_v51 = vrot.slane %v3321_v42, 4 }
 0x22a   :  { %3676 = vst.msk [vmem:[#allocation4 + $0x8] sm:$0xff] %vm453_vm7, %v7591_v56  ;;  %v3291_v23 = vsel %vm6062_vm5, %v3286_v15, %v3290_v34  ;;  %v3313_v10 = vor.u32 %v3312_v30, %v3309_v45  ;;  %v3326_v39 = vrot.slane %v3324_v35, 5  ;;  %v3304_v31 = vrot.slane %v3302_v59, 5  ;;  %v3226_v24 = vld [vmem:[#allocation2 + $0x70] sm:$0xf] }
 0x22b   :  { %3765 = vst.msk [vmem:[#allocation4 + $0x8] sm:$0xff] %vm641_vm8, %v7601_v46  ;;  %v5463_v22 = vcombine.low %v3277_v50, %v3291_v23  ;;  %v3318_v37 = vrot.slane %v3316_v49, 5  ;;  %v3337_v44 = vrot.slane %v3335_v36, 4  ;;  %v3338_v5 = vshll.u32 %v3218_v11, 16  ;;  %v3657_v53 = vpop.permute.xlu0 %3656  ;;  %v3223_v46 = vld [vmem:[#allocation2 + $0x64] sm:$0x1] }
 0x22c   :  { %4077 = vst.msk [vmem:[#allocation4 + $0x8] sm:$0xff] %vm731_vm9, %v4054_v3  ;;  %v3314_v56 = vrot.slane %v3313_v10, 4  ;;  %v3327_v63 = vor.u32 %v3326_v39, %v3323_v51  ;;  %v3344_v4 = vshll.u32 %v3219_v43, 16  ;;  %v3305_v7 = vsel %vm6062_vm5, %v3300_v13, %v3304_v31  ;;  %v3225_v40 = vld [vmem:[#allocation2 + $0x6c] sm:$0x1]  ;;  %v5925_v39 = vld [vmem:[%s8007_s4 + $0x80] sm:$0xff]  }
 0x22d   :  { %3493 = vst.msk [vmem:[#allocation4 + $0x20] sm:$0xff] %vm137_vm6, %v5463_v22  ;;  %v3349_v57 = vshrl.u32 %v3220_v16, 16  ;;  %v3352_v8 = vshll.u32 %v3220_v16, 16  ;;  %v3363_v1 = vshrl.u32 %v3222_v52, 16  ;;  %v3332_v41 = vrot.slane %v3330_v47, 5  ;;  %v3089_v47 = vpop.permute.xlu1 %3088 }
 0x22e   :  { %3677 = vst.msk [vmem:[#allocation4 + $0x20] sm:$0xff] %vm453_vm7, %v7613_v60  ;;  %v3319_v38 = vsel %vm6062_vm5, %v3314_v56, %v3318_v37  ;;  %v3340_v32 = vrot.slane %v3338_v5, 5  ;;  %v3358_v62 = vshll.u32 %v3221_v28, 16  ;;  %v3328_v21 = vrot.slane %v3327_v63, 4  ;;  %v3228_v15 = vld [vmem:[#allocation2 + $0x78] sm:$0xf] }
 0x22f   :  { %3766 = vst.msk [vmem:[#allocation4 + $0x20] sm:$0xff] %vm641_vm8, %v7622_v19  ;;  %v5464_v20 = vcombine.low %v3305_v7, %v3319_v38  ;;  %v3351_v55 = vrot.slane %v3349_v57, 4  ;;  %v3354_v61 = vrot.slane %v3352_v8, 5  ;;  %v3346_v54 = vrot.slane %v3344_v4, 5  ;;  %v3746_v12 = vpop.permute.xlu0 %3745  ;;  %v4253_v19 = vld [vmem:[#allocation4] sm:$0xff]  ;;  %v5926_v5 = vld [vmem:[%s8007_s4 + $0x88] sm:$0xff]  }
 0x230   :  { %v3341_v59 = vor.u32 %v3340_v32, %v3337_v44  ;;  %v3365_v60 = vrot.slane %v3363_v1, 4  ;;  %v3366_v29 = vshll.u32 %v3222_v52, 16  ;;  %v3372_v17 = vshll.u32 %v3223_v46, 16  ;;  %v3227_v50 = vld [vmem:[#allocation2 + $0x74] sm:$0x1] }
 0x231   :  { %3494 = vst.msk [vmem:[#allocation4 + $0x38] sm:$0xff] %vm137_vm6, %v5464_v20  ;;  %v3355_v25 = vor.u32 %v3354_v61, %v3351_v55  ;;  %v3377_v48 = vshrl.u32 %v3224_v2, 16  ;;  %v3380_v9 = vshll.u32 %v3224_v2, 16  ;;  %v3360_v26 = vrot.slane %v3358_v62, 5  ;;  %v3230_v13 = vld [vmem:[#allocation2 + $0x80] sm:$0xf] }
 0x232   :  { %3678 = vst.msk [vmem:[#allocation4 + $0x38] sm:$0xff] %vm453_vm7, %v3657_v53  ;;  %v3342_v34 = vrot.slane %v3341_v59, 4  ;;  %v3368_v27 = vrot.slane %v3366_v29, 5  ;;  %v3391_v11 = vshrl.u32 %v3226_v24, 16  ;;  %v3333_v33 = vsel %vm6062_vm5, %v3328_v21, %v3332_v41  ;;  %v3229_v51 = vld [vmem:[#allocation2 + $0x7c] sm:$0x1] }
 0x233   :  { %3767 = vst.msk [vmem:[#allocation4 + $0x38] sm:$0xff] %vm641_vm8, %v3746_v12  ;;  %v4254_v6 = vld [vmem:[#allocation4 + $0x8] sm:$0xff]  ;;  %v3356_v45 = vrot.slane %v3355_v25, 4  ;;  %v3379_v49 = vrot.slane %v3377_v48, 4  ;;  %v3382_v43 = vrot.slane %v3380_v9, 5  ;;  %v3374_v35 = vrot.slane %v3372_v17, 5 }
 0x234   :  { %4477 = vmatprep.mubr.bf16.mxu1 %v4254_v6  ;;  %v3347_v30 = vsel %vm6062_vm5, %v3342_v34, %v3346_v54  ;;  %v3369_v42 = vor.u32 %v3368_v27, %v3365_v60  ;;  %v3386_v3 = vshll.u32 %v3225_v40, 16  ;;  %v3393_v23 = vrot.slane %v3391_v11, 4  ;;  %v3231_v56 = vld [vmem:[#allocation2 + $0x84] sm:$0x1]  ;;  %v3232_v57 = vld [vmem:[#allocation2 + $0x88] sm:$0xf] }
 0x235   :  { %4478 = vmatmul.mubr.bf16.vlgmr.msra.gmra.mrb[16].mxu1 %v4253_v19  ;;  %v5465_v36 = vcombine.low %v3333_v33, %v3347_v30  ;;  %v3383_v14 = vor.u32 %v3382_v43, %v3379_v49  ;;  %v3394_v10 = vshll.u32 %v3226_v24, 16  ;;  %v3361_v16 = vsel %vm6062_vm5, %v3356_v45, %v3360_v26  ;;  %v7674_v41 = vld [vmem:[#allocation2 + $0x8c] sm:$0x1]  ;;  %v3234_v32 = vld [vmem:[#allocation2 + $0x90] sm:$0xf] }
 0x236   :  { %5832 = vmatpush3.bf16.msra.mxu1 %v5925_v39  ;;  %v3370_v52 = vrot.slane %v3369_v42, 4  ;;  %v3405_v22 = vshrl.u32 %v3228_v15, 16  ;;  %v3408_v31 = vshll.u32 %v3228_v15, 16  ;;  %v3400_v28 = vshll.u32 %v3227_v50, 16  ;;  %v4109_v55 = vld [vmem:[#allocation2 + $0x80] sm:$0xe] }
 0x237   :  { %3495 = vst.msk [vmem:[#allocation4 + $0x50] sm:$0xff] %vm137_vm6, %v5465_v36  ;;  %v3384_v37 = vrot.slane %v3383_v14, 4  ;;  %v3396_v44 = vrot.slane %v3394_v10, 5  ;;  %v3419_v63 = vshrl.u32 %v3230_v13, 16  ;;  %5831 = vmatprep.subr.bf16.mxu1 %v5926_v5  ;;  %v3414_v46 = vshll.u32 %v3229_v51, 16 }
 0x238   :  { %v3375_v4 = vsel %vm6062_vm5, %v3370_v52, %v3374_v35  ;;  %v3407_v7 = vrot.slane %v3405_v22, 4  ;;  %v3410_v53 = vrot.slane %v3408_v31, 5  ;;  %v3388_v1 = vrot.slane %v3386_v3, 5  ;;  %v4110_v29 = vld [vmem:[#allocation2 + $0x84] sm:$0x1] }
 0x239   :  { %v5466_v8 = vcombine.low %v3361_v16, %v3375_v4  ;;  %v3397_v38 = vor.u32 %v3396_v44, %v3393_v23  ;;  %v3421_v2 = vrot.slane %v3419_v63, 4  ;;  %v3422_v20 = vshll.u32 %v3230_v13, 16  ;;  %v2905_v61 = vpop.permute.xlu1 %2904  ;;  %v4111_v48 = vld [vmem:[#allocation2 + $0x88] sm:$0xe]  ;;  %v4112_v27 = vld [vmem:[#allocation2 + $0x8c] sm:$0x1] }
 0x23a   :  { %v3411_v62 = vor.u32 %v3410_v53, %v3407_v7  ;;  %v3428_v21 = vshll.u32 %v3231_v56, 16  ;;  %5833 = vmatpush3.bf16.msra.mxu1 %v5926_v5  ;;  %v3402_v59 = vrot.slane %v3400_v28, 5  ;;  %v3433_v54 = vshrl.u32 %v3232_v57, 16  ;;  %2926 = vst.msk [vmem:[#allocation4 + $0x30] sm:$0xff] %vm453_vm7, %v2905_v61  ;;  %v3235_v45 = vld [vmem:[#allocation2 + $0x94] sm:$0x1] }
 0x23b   :  { %3496 = vst.msk [vmem:[#allocation4 + $0x68] sm:$0xff] %vm137_vm6, %v5466_v8  ;;  %v3398_v24 = vrot.slane %v3397_v38, 4  ;;  %v3436_v60 = vshll.u32 %v3232_v57, 16  ;;  %v3389_v12 = vsel %vm6062_vm5, %v3384_v37, %v3388_v1  ;;  %v3416_v25 = vrot.slane %v3414_v46, 5  ;;  %v4113_v43 = vld [vmem:[#allocation2 + $0x90] sm:$0xe] }
 0x23c   :  { %v3424_v17 = vrot.slane %v3422_v20, 5  ;;  %v3447_v40 = vshrl.u32 %v3234_v32, 16  ;;  %3110 = vst.msk [vmem:[#allocation4 + $0x30] sm:$0xff] %vm641_vm8, %v3089_v47  ;;  %v3412_v19 = vrot.slane %v3411_v62, 4  ;;  %v3435_v34 = vrot.slane %v3433_v54, 4 }
 0x23d   :  { %v3403_v9 = vsel %vm6062_vm5, %v3398_v24, %v3402_v59  ;;  %v3438_v26 = vrot.slane %v3436_v60, 5  ;;  %3198 = vst.msk [vmem:[#allocation4 + $0x30] sm:$0xff] %vm731_vm9, %v7654_v18  ;;  %v3430_v33 = vrot.slane %v3428_v21, 5  ;;  %v3442_v49 = vshll.u32 %v7674_v41, 16  ;;  %v4114_v50 = vld [vmem:[#allocation2 + $0x94] sm:$0x1]  ;;  %v3179_v8 = vpop.permute.xlu1 %3178 }
 0x23e   :  { %v5467_v11 = vcombine.low %v3389_v12, %v3403_v9  ;;  %v3425_v6 = vor.u32 %v3424_v17, %v3421_v2  ;;  %v3449_v30 = vrot.slane %v3447_v40, 4  ;;  %v3450_v42 = vshll.u32 %v3234_v32, 16  ;;  %v4115_v14 = vld [vmem:[#allocation2 + $0x98] sm:$0xe]  ;;  %v4116_v51 = vld [vmem:[#allocation2 + $0x9c] sm:$0x1] }
 0x23f   :  { %v3439_v15 = vor.u32 %v3438_v26, %v3435_v34  ;;  %v5522_v35 = vrot.slane %v4109_v55, 9  ;;  %v4199_v13 = vrot.slane %v4110_v29, 5  ;;  %v5523_v47 = vrot.slane %v4111_v48, 9  ;;  %v4256_v55 = vld [vmem:[#allocation4 + $0x18] sm:$0xff] }
 0x240   :  { %3497 = vst.msk [vmem:[#allocation4 + $0x80] sm:$0xff] %vm137_vm6, %v5467_v11  ;;  %v3426_v3 = vrot.slane %v3425_v6, 4  ;;  %v4203_v36 = vrot.slane %v4112_v27, 5  ;;  %v3417_v18 = vsel %vm6062_vm5, %v3412_v19, %v3416_v25  ;;  %v3452_v23 = vrot.slane %v3450_v42, 5 }
 0x241   :  { %v3456_v10 = vshll.u32 %v3235_v45, 16  ;;  %v5524_v39 = vrot.slane %v4113_v43, 9  ;;  %v4056_v16 = vpop.permute.xlu0 %4055  ;;  %v4200_v22 = vsel %vm5971_vm2, %v5522_v35, %v4199_v13  ;;  %v4207_v37 = vrot.slane %v4114_v50, 5  ;;  %v3091_v0 = vpop.permute.xlu1 %3090 }
 0x242   :  { %v3431_v52 = vsel %vm6062_vm5, %v3426_v3, %v3430_v33  ;;  %v4204_v31 = vsel %vm5971_vm2, %v5523_v47, %v4203_v36  ;;  %4078 = vst.msk [vmem:[#allocation4 + $0x20] sm:$0xff] %vm731_vm9, %v4056_v16  ;;  %v3440_v28 = vrot.slane %v3439_v15, 4  ;;  %v3453_v56 = vor.u32 %v3452_v23, %v3449_v30 }
 0x243   :  { %v5468_v44 = vcombine.low %v3417_v18, %v3431_v52  ;;  %v5532_v63 = vcombine.low %v4200_v22, %v4204_v31  ;;  %v4208_v5 = vsel %vm5971_vm2, %v5524_v39, %v4207_v37  ;;  %v5525_v4 = vrot.slane %v4115_v14, 9 }
 0x244   :  { %v4211_v7 = vrot.slane %v4116_v51, 5  ;;  %v3444_v53 = vrot.slane %v3442_v49, 5  ;;  %v3454_v46 = vrot.slane %v3453_v56, 4  ;;  %v3458_v57 = vrot.slane %v3456_v10, 5  ;;  %v4259_v25 = vld [vmem:[#allocation4 + $0x30] sm:$0xff] }
 0x245   :  { %3498 = vst.msk [vmem:[#allocation4 + $0x98] sm:$0xff] %vm137_vm6, %v5468_v44  ;;  %4251 = vst.msk [vmem:[#allocation4 + $0xa0] sm:$0xff] %vm137_vm6, %v5532_v63  ;;  %v3748_v1 = vpop.permute.xlu0 %3747 }
 0x246   :  { %v4212_v38 = vsel %vm5971_vm2, %v5525_v4, %v4211_v7  ;;  %v3445_v41 = vsel %vm6062_vm5, %v3440_v28, %v3444_v53  ;;  %v3459_v32 = vsel %vm6062_vm5, %v3454_v46, %v3458_v57 }
 0x247   :  { %v5533_v62 = vcombine.low %v4208_v5, %v4212_v38  ;;  %v5469_v2 = vcombine.low %v3445_v41, %v3459_v32  ;;  %v5564_v38 = vld [vmem:[%s8005_s0 + $0x10] sm:$0xf] }
 0x249   :  { %4252 = vst.msk [vmem:[#allocation4 + $0xb8] sm:$0xff] %vm137_vm6, %v5533_v62  ;;  %v3659_v20 = vpop.permute.xlu0 %3658  ;;  %v4257_v21 = vld [vmem:[#allocation4 + $0x20] sm:$0xff]  ;;  %3499 = vst.msk [vmem:[#allocation4 + $0xb0] sm:$0xff] %vm137_vm6, %v5469_v2  ;;  %v4732_v62 = vshrl.u32 %v5564_v38, 16  ;;  %v4735_v2 = vshll.u32 %v5564_v38, 16 }
 0x24a   :  { %3679 = vst.msk [vmem:[#allocation4 + $0x50] sm:$0xff] %vm453_vm7, %v3659_v20  ;;  %4485 = vmatprep.mubr.bf16.mxu1 %v4257_v21 }
 0x24b   :  { %3768 = vst.msk [vmem:[#allocation4 + $0x50] sm:$0xff] %vm641_vm8, %v3748_v1  ;;  %4486 = vmatmul.mubr.bf16.gmra.mrb[20].mxu1 %v4256_v55  ;;  %v5562_v1 = vld [vmem:[%s8005_s0 + $0x8] sm:$0xf]  ;;  %v5563_v55 = vld [vmem:[%s8005_s0 + $0xc] sm:$0x1] }
 0x24c   :  { %v4273_v28 = vld [vmem:[#allocation4 + $0xa0] sm:$0xff]  ;;  %v4718_v41 = vshrl.u32 %v5562_v1, 16  ;;  %v4721_v32 = vshll.u32 %v5562_v1, 16 }
 0x24e   :  { %v4720_v20 = vrot.slane %v4718_v41, 4  ;;  %v4723_v21 = vrot.slane %v4721_v32, 5  ;;  %v5569_v41 = vld [vmem:[%s8005_s0 + $0x24] sm:$0x1] }
 0x250   :  { %v4276_v56 = vld [vmem:[#allocation4 + $0xb8] sm:$0xff] }
 0x252   :  { %v2907_v61 = vpop.permute.xlu1 %2906 }
 0x253   :  { %2927 = vst.msk [vmem:[#allocation4 + $0x48] sm:$0xff] %vm453_vm7, %v2907_v61  ;;  %v4737_v61 = vrot.slane %v4735_v2, 5 }
 0x254   :  { %3111 = vst.msk [vmem:[#allocation4 + $0x48] sm:$0xff] %vm641_vm8, %v3091_v0  ;;  %v4734_v0 = vrot.slane %v4732_v62, 4 }
 0x255   :  { %3199 = vst.msk [vmem:[#allocation4 + $0x48] sm:$0xff] %vm731_vm9, %v3179_v8 }
 0x256   :  { %v3181_v59 = vpop.permute.xlu1 %3180 }
 0x257   :  { %v4058_v24 = vpop.permute.xlu0 %4057 }
 0x258   :  { %4079 = vst.msk [vmem:[#allocation4 + $0x38] sm:$0xff] %vm731_vm9, %v4058_v24  ;;  %v5565_v24 = vld [vmem:[%s8005_s0 + $0x14] sm:$0x1] }
 0x25a   :  { %v3093_v60 = vpop.permute.xlu1 %3092 }
 0x25b   :  { %v4060_v54 = vpop.permute.xlu0 %4059 }
 0x25c   :  { %4080 = vst.msk [vmem:[#allocation4 + $0x50] sm:$0xff] %vm731_vm9, %v4060_v54  ;;  %v4262_v34 = vld [vmem:[#allocation4 + $0x48] sm:$0xff]  ;;  %v4727_v54 = vshll.u32 %v5563_v55, 16 }
 0x25f   :  { %v4260_v29 = vld [vmem:[#allocation4 + $0x38] sm:$0xff]  ;;  %v3661_v12 = vpop.permute.xlu0 %3660 }
 0x260   :  { %4493 = vmatprep.mubr.bf16.mxu1 %v4260_v29  ;;  %3680 = vst.msk [vmem:[#allocation4 + $0x68] sm:$0xff] %vm453_vm7, %v3661_v12  ;;  %v4741_v29 = vshll.u32 %v5565_v24, 16 }
 0x261   :  { %4494 = vmatmul.mubr.bf16.gmra.mrb[24].mxu1 %v4259_v25  ;;  %v4729_v25 = vrot.slane %v4727_v54, 5 }
 0x263   :  { %v3750_v40 = vpop.permute.xlu0 %3749  ;;  %v4263_v48 = vld [vmem:[#allocation4 + $0x50] sm:$0xff] }
 0x264   :  { %v2909_v17 = vpop.permute.xlu1 %2908  ;;  %3769 = vst.msk [vmem:[#allocation4 + $0x68] sm:$0xff] %vm641_vm8, %v3750_v40  ;;  %4501 = vmatprep.mubr.bf16.mxu1 %v4263_v48 }
 0x265   :  { %2928 = vst.msk [vmem:[#allocation4 + $0x60] sm:$0xff] %vm453_vm7, %v2909_v17 }
 0x266   :  { %3112 = vst.msk [vmem:[#allocation4 + $0x60] sm:$0xff] %vm641_vm8, %v3093_v60  ;;  %v4738_v60 = vor.u32 %v4737_v61, %v4734_v0 }
 0x267   :  { %3200 = vst.msk [vmem:[#allocation4 + $0x60] sm:$0xff] %vm731_vm9, %v3181_v59  ;;  %v3663_v19 = vpop.permute.xlu0 %3662  ;;  %v4724_v59 = vor.u32 %v4723_v21, %v4720_v20  ;;  %v4769_v20 = vshll.u32 %v5569_v41, 16 }
 0x268   :  { %v3183_v9 = vpop.permute.xlu1 %3182  ;;  %3681 = vst.msk [vmem:[#allocation4 + $0x80] sm:$0xff] %vm453_vm7, %v3663_v19  ;;  %v4739_v48 = vrot.slane %v4738_v60, 4 }
 0x269   :  { %4502 = vmatmul.mubr.bf16.gmra.mrb[28].mxu1 %v4262_v34  ;;  %v4725_v12 = vrot.slane %v4724_v59, 4  ;;  %v4771_v59 = vrot.slane %v4769_v20, 5  ;;  %v5575_v20 = vld [vmem:[%s8005_s0 + $0x3c] sm:$0x1] }
 0x26b   :  { %v3752_v27 = vpop.permute.xlu0 %3751 }
 0x26c   :  { %v3095_v26 = vpop.permute.xlu1 %3094  ;;  %3770 = vst.msk [vmem:[#allocation4 + $0x80] sm:$0xff] %vm641_vm8, %v3752_v27  ;;  %v4730_v27 = vsel %vm6062_vm5, %v4725_v12, %v4729_v25 }
 0x26e   :  { %v4265_v30 = vld [vmem:[#allocation4 + $0x60] sm:$0xff] }
 0x270   :  { %v2911_v11 = vpop.permute.xlu1 %2910 }
 0x271   :  { %2929 = vst.msk [vmem:[#allocation4 + $0x78] sm:$0xff] %vm453_vm7, %v2911_v11 }
 0x272   :  { %3113 = vst.msk [vmem:[#allocation4 + $0x78] sm:$0xff] %vm641_vm8, %v3095_v26  ;;  %v7776_v26 = vld [vmem:[%s8010_s5] ss:$0 sm:$0xff] }
 0x273   :  { %3201 = vst.msk [vmem:[#allocation4 + $0x78] sm:$0xff] %vm731_vm9, %v3183_v9  ;;  %v4062_v6 = vpop.permute.xlu0 %4061  ;;  %v4743_v9 = vrot.slane %v4741_v29, 5 }
 0x274   :  { %4081 = vst.msk [vmem:[#allocation4 + $0x68] sm:$0xff] %vm731_vm9, %v4062_v6  ;;  %v3185_v33 = vpop.permute.xlu1 %3184 }
 0x277   :  { %v3665_v45 = vpop.permute.xlu0 %3664 }
 0x278   :  { %3682 = vst.msk [vmem:[#allocation4 + $0x98] sm:$0xff] %vm453_vm7, %v3665_v45  ;;  %v3097_v49 = vpop.permute.xlu1 %3096  ;;  %v7783_v45 = vld [vmem:[%s8011_s6] ss:$0 sm:$0xff] }
 0x27a   :  { %v4268_v47 = vld [vmem:[#allocation4 + $0x78] sm:$0xff] }
 0x27b   :  { %v3754_v43 = vpop.permute.xlu0 %3753  ;;  %v4266_v15 = vld [vmem:[#allocation4 + $0x68] sm:$0xff] }
 0x27c   :  { %3771 = vst.msk [vmem:[#allocation4 + $0x98] sm:$0xff] %vm641_vm8, %v3754_v43  ;;  %4509 = vmatprep.mubr.bf16.mxu1 %v4266_v15  ;;  %v4957_v15 = vunpack.c.l.bf16 %v4730_v27 }
 0x27d   :  { %4510 = vmatmul.mubr.bf16.gmra.mrb[32].mxu1 %v4265_v30 }
 0x27e   :  { %v2913_v42 = vpop.permute.xlu1 %2912 }
 0x27f   :  { %2930 = vst.msk [vmem:[#allocation4 + $0x90] sm:$0xff] %vm453_vm7, %v2913_v42  ;;  %v5566_v42 = vld [vmem:[%s8005_s0 + $0x18] sm:$0xf] }
 0x280   :  { %3114 = vst.msk [vmem:[#allocation4 + $0x90] sm:$0xff] %vm641_vm8, %v3097_v49  ;;  %v4744_v49 = vsel %vm6062_vm5, %v4739_v48, %v4743_v9 }
 0x281   :  { %3202 = vst.msk [vmem:[#allocation4 + $0x90] sm:$0xff] %vm731_vm9, %v3185_v33 }
 0x282   :  { %v4064_v35 = vpop.permute.xlu0 %4063  ;;  %v3099_v50 = vpop.permute.xlu1 %3098 }
 0x283   :  { %4082 = vst.msk [vmem:[#allocation4 + $0x80] sm:$0xff] %vm731_vm9, %v4064_v35 }
 0x286   :  { %v3667_v3 = vpop.permute.xlu0 %3666 }
 0x287   :  { %3683 = vst.msk [vmem:[#allocation4 + $0xb0] sm:$0xff] %vm453_vm7, %v3667_v3  ;;  %v4958_v3 = vunpack.c.l.bf16 %v4744_v49 }
 0x288   :  { %v4271_v39 = vld [vmem:[#allocation4 + $0x90] sm:$0xff] }
 0x28a   :  { %v4269_v13 = vld [vmem:[#allocation4 + $0x80] sm:$0xff] }
 0x28b   :  { %4517 = vmatprep.mubr.bf16.mxu1 %v4269_v13  ;;  %v5568_v13 = vld [vmem:[%s8005_s0 + $0x20] sm:$0xf] }
 0x28c   :  { %v2915_v36 = vpop.permute.xlu1 %2914  ;;  %4518 = vmatmul.mubr.bf16.gmra.mrb[36].mxu1 %v4268_v47 }
 0x28d   :  { %2931 = vst.msk [vmem:[#allocation4 + $0xa8] sm:$0xff] %vm453_vm7, %v2915_v36 }
 0x28e   :  { %3115 = vst.msk [vmem:[#allocation4 + $0xa8] sm:$0xff] %vm641_vm8, %v3099_v50 }
 0x290   :  { %v4066_v14 = vpop.permute.xlu0 %4065  ;;  %v3187_v18 = vpop.permute.xlu1 %3186 }
 0x291   :  { %4083 = vst.msk [vmem:[#allocation4 + $0x98] sm:$0xff] %vm731_vm9, %v4066_v14  ;;  %3203 = vst.msk [vmem:[#allocation4 + $0xa8] sm:$0xff] %vm731_vm9, %v3187_v18  ;;  %v4746_v14 = vshrl.u32 %v5566_v42, 16  ;;  %v4749_v18 = vshll.u32 %v5566_v42, 16 }
 0x294   :  { %v3756_v23 = vpop.permute.xlu0 %3755 }
 0x295   :  { %3772 = vst.msk [vmem:[#allocation4 + $0xb0] sm:$0xff] %vm641_vm8, %v3756_v23 }
 0x297   :  { %v7739_v16 = vpop.f32.mrb[32].mxu0 }
 0x298   :  { %v4068_v10 = vpop.permute.xlu0 %4067  ;;  %v4272_v51 = vld [vmem:[#allocation4 + $0x98] sm:$0xff]  ;;  %v4576_v52 = vpop.f32.mrb[33].mxu0  ;;  %v4274_v44 = vld [vmem:[#allocation4 + $0xa8] sm:$0xff] }
 0x299   :  { %4084 = vst.msk [vmem:[#allocation4 + $0xb0] sm:$0xff] %vm731_vm9, %v4068_v10  ;;  %4525 = vmatprep.mubr.bf16.mxu1 %v4272_v51  ;;  %v7741_v22 = vpop.f32.mrb[34].mxu0  ;;  %v4760_v51 = vshrl.u32 %v5568_v13, 16 }
 0x29a   :  { %4526 = vmatmul.mubr.bf16.gmra.mrb[40].mxu1 %v4271_v39  ;;  %v4579_v31 = vpop.f32.mrb[35].mxu0  ;;  %v4763_v39 = vshll.u32 %v5568_v13, 16 }
 0x29b   :  { %v4762_v1 = vrot.slane %v4760_v51, 4 }
 0x29c   :  { %v4765_v38 = vrot.slane %v4763_v39, 5  ;;  %v5573_v39 = vld [vmem:[%s8005_s0 + $0x34] sm:$0x1] }
 0x29e   :  { %v4766_v2 = vor.u32 %v4765_v38, %v4762_v1 }
 0x2a0   :  { %v4275_v37 = vld [vmem:[#allocation4 + $0xb0] sm:$0xff]  ;;  %v4767_v24 = vrot.slane %v4766_v2, 4 }
 0x2a1   :  { %4533 = vmatprep.mubr.bf16.mxu1 %v4275_v37  ;;  %v4748_v37 = vrot.slane %v4746_v14, 4 }
 0x2a2   :  { %4534 = vmatmul.mubr.bf16.gmra.mrb[44].mxu1 %v4274_v44  ;;  %v4751_v44 = vrot.slane %v4749_v18, 5  ;;  %v4772_v48 = vsel %vm6062_vm5, %v4767_v24, %v4771_v59 }
 0x2a3   :  { %5826 = vmatprep.mubr.msk.bf16.mxu1 %vm137_vm6, %v4273_v28  ;;  %v5567_v28 = vld [vmem:[%s8005_s0 + $0x1c] sm:$0x1]  ;;  %v4960_v49 = vunpack.c.l.bf16 %v4772_v48 }
 0x2a4   :  { %v4752_v32 = vor.u32 %v4751_v44, %v4748_v37  ;;  %v4755_v62 = vshll.u32 %v5567_v28, 16  ;;  %v5576_v37 = vld [vmem:[%s8005_s0 + $0x40] sm:$0xf] }
 0x2a5   :  { %v4816_v1 = vshrl.u32 %v5576_v37, 16  ;;  %v4819_v38 = vshll.u32 %v5576_v37, 16 }
 0x2a6   :  { %v4753_v21 = vrot.slane %v4752_v32, 4  ;;  %v4757_v55 = vrot.slane %v4755_v62, 5 }
 0x2a7   :  { %v4818_v24 = vrot.slane %v4816_v1, 4  ;;  %v4821_v59 = vrot.slane %v4819_v38, 5 }
 0x2a8   :  { %v4758_v29 = vsel %vm6062_vm5, %v4753_v21, %v4757_v55 }
 0x2aa   :  { %5827 = vmatmul.mubr.msk.bf16.vlgmr.msra.gmra.mrb[48].mxu1 %vm137_vm6, %v4276_v56 }
 0x2af   :  { %v7745_v63 = vpop.f32.mrb[36].mxu0 }
 0x2b0   :  { %v7747_v5 = vpop.f32.mrb[37].mxu0 }
 0x2b1   :  { %v7749_v4 = vpop.f32.mrb[38].mxu0 }
 0x2b2   :  { %v7751_v7 = vpop.f32.mrb[39].mxu0 }
 0x2e0   :  { %v7753_v53 = vpop.f32.mrb[40].mxu0 }
 0x2e1   :  { %v7755_v46 = vpop.f32.mrb[41].mxu0 }
 0x2e2   :  { %v7757_v57 = vpop.f32.mrb[42].mxu0 }
 0x2e3   :  { %v7759_v8 = vpop.f32.mrb[43].mxu0 }
 0x308   :  { %v5732_v17 = vpop.f32.mrb[16].mxu1 }
 0x309   :  { %v5733_v40 = vpop.f32.mrb[17].mxu1 }
 0x30a   :  { %v5734_v19 = vadd.f32 %v5733_v40, %v5732_v17  ;;  %v5735_v34 = vpop.f32.mrb[18].mxu1  ;;  %v5570_v40 = vld [vmem:[%s8005_s0 + $0x28] sm:$0xf] }
 0x30b   :  { %v5736_v11 = vpop.f32.mrb[19].mxu1  ;;  %v4774_v27 = vshrl.u32 %v5570_v40, 16 }
 0x30c   :  { %v4577_v6 = vadd.f32 %v5734_v19, %v4576_v52  ;;  %v5737_v33 = vadd.f32 %v5736_v11, %v5735_v34  ;;  %v4959_v19 = vunpack.c.l.bf16 %v4758_v29  ;;  %v4777_v11 = vshll.u32 %v5570_v40, 16 }
 0x30e   :  { %v4646_v43 = vmul.f32 %v7776_v26, %v4577_v6  ;;  %v4580_v30 = vadd.f32 %v5737_v33, %v4579_v31  ;;  %v5572_v6 = vld [vmem:[%s8005_s0 + $0x30] sm:$0xf] }
 0x30f   :  { %v4788_v42 = vshrl.u32 %v5572_v6, 16 }
 0x310   :  { %v4669_v35 = vadd.f32 %v7783_v45, %v4646_v43  ;;  %v4647_v50 = vmul.f32 %v7776_v26, %v4580_v30  ;;  %v5571_v30 = vld [vmem:[%s8005_s0 + $0x2c] sm:$0x1] }
 0x312   :  { %v4973_v47 = vadd.f32 %v4957_v15, %v4669_v35  ;;  %v4670_v36 = vadd.f32 %v7783_v45, %v4647_v50  ;;  %v4776_v35 = vrot.slane %v4774_v27, 4  ;;  %v4779_v50 = vrot.slane %v4777_v11, 5 }
 0x313   :  { %v4822_v27 = vor.u32 %v4821_v59, %v4818_v24 }
 0x314   :  { %v4989_v23 = vmax.f32 %v4973_v47, 0.0  ;;  %v4974_v10 = vadd.f32 %v4958_v3, %v4670_v36  ;;  %v5574_v47 = vld [vmem:[%s8005_s0 + $0x38] sm:$0xf]  ;;  %v4783_v36 = vshll.u32 %v5571_v30, 16  ;;  %v4780_v51 = vor.u32 %v4779_v50, %v4776_v35 }
 0x316   :  { %v5626_v52 = vpack.c.bf16 %v4989_v23, %v4989_v23  ;;  %v4990_v31 = vmax.f32 %v4974_v10, 0.0  ;;  %v4790_v23 = vrot.slane %v4788_v42, 4  ;;  %v4781_v41 = vrot.slane %v4780_v51, 4 }
 0x317   :  { %v4785_v32 = vrot.slane %v4783_v36, 5 }
 0x318   :  { %5070 = vst.msk [vmem:[%s8012_s7] sm:$0xf] %vm31_vm10, %v5626_v52  ;;  %v5627_v56 = vpack.c.bf16 %v4990_v31, %v4990_v31  ;;  %v4802_v52 = vshrl.u32 %v5574_v47, 16  ;;  %v4805_v31 = vshll.u32 %v5574_v47, 16 }
 0x31a   :  { %5071 = vst.msk [vmem:[%s8012_s7 + $0x4] sm:$0xf] %vm31_vm10, %v5627_v56  ;;  %v4797_v56 = vshll.u32 %v5573_v39, 16  ;;  %v4804_v62 = vrot.slane %v4802_v52, 4  ;;  %v4807_v2 = vrot.slane %v4805_v31, 5 }
 0x31b   :  { %v5580_v39 = vld [vmem:[%s8005_s0 + $0x60] sm:$0xf] }
 0x31e   :  { %v5738_v0 = vpop.f32.mrb[20].mxu1 }
 0x31f   :  { %v5739_v61 = vpop.f32.mrb[21].mxu1 }
 0x320   :  { %v5740_v54 = vadd.f32 %v5739_v61, %v5738_v0  ;;  %v5741_v60 = vpop.f32.mrb[22].mxu1  ;;  %v4799_v61 = vrot.slane %v4797_v56, 5 }
 0x321   :  { %v5742_v12 = vpop.f32.mrb[23].mxu1 }
 0x322   :  { %v4585_v25 = vadd.f32 %v7739_v16, %v5740_v54  ;;  %v5743_v17 = vadd.f32 %v5742_v12, %v5741_v60  ;;  %v4786_v60 = vsel %vm6062_vm5, %v4781_v41, %v4785_v32  ;;  %v4808_v12 = vor.u32 %v4807_v2, %v4804_v62 }
 0x323   :  { %v4844_v41 = vshrl.u32 %v5580_v39, 16  ;;  %v4847_v32 = vshll.u32 %v5580_v39, 16  ;;  %v5583_v39 = vld [vmem:[%s8005_s0 + $0x6c] sm:$0x1] }
 0x324   :  { %v4648_v9 = vmul.f32 %v7776_v26, %v4585_v25  ;;  %v4588_v34 = vadd.f32 %v7741_v22, %v5743_v17  ;;  %v4791_v22 = vshll.u32 %v5572_v6, 16  ;;  %v4811_v25 = vshll.u32 %v5575_v20, 16  ;;  %v5577_v17 = vld [vmem:[%s8005_s0 + $0x44] sm:$0x1] }
 0x325   :  { %v4825_v11 = vshll.u32 %v5577_v17, 16  ;;  %v4846_v24 = vrot.slane %v4844_v41, 4  ;;  %v4849_v59 = vrot.slane %v4847_v32, 5 }
 0x326   :  { %v4671_v16 = vadd.f32 %v7783_v45, %v4648_v9  ;;  %v4649_v33 = vmul.f32 %v7776_v26, %v4588_v34  ;;  %v4793_v10 = vrot.slane %v4791_v22, 5  ;;  %v4823_v22 = vrot.slane %v4822_v27, 4 }
 0x327   :  { %v4827_v35 = vrot.slane %v4825_v11, 5 }
 0x328   :  { %v4975_v43 = vadd.f32 %v4959_v19, %v4671_v16  ;;  %v4672_v15 = vadd.f32 %v7783_v45, %v4649_v33  ;;  %v4794_v28 = vor.u32 %v4793_v10, %v4790_v23  ;;  %v4961_v19 = vunpack.c.l.bf16 %v4786_v60 }
 0x329   :  { %v4809_v33 = vrot.slane %v4808_v12, 4  ;;  %v4828_v31 = vsel %vm6062_vm5, %v4823_v22, %v4827_v35 }
 0x32a   :  { %v4991_v3 = vmax.f32 %v4975_v43, 0.0  ;;  %v4976_v13 = vadd.f32 %v4960_v49, %v4672_v15  ;;  %v4795_v0 = vrot.slane %v4794_v28, 4  ;;  %v4813_v49 = vrot.slane %v4811_v25, 5 }
 0x32b   :  { %v4964_v20 = vunpack.c.l.bf16 %v4828_v31 }
 0x32c   :  { %v5628_v14 = vpack.c.bf16 %v4991_v3, %v4991_v3  ;;  %v4992_v18 = vmax.f32 %v4976_v13, 0.0  ;;  %v4800_v34 = vsel %vm6062_vm5, %v4795_v0, %v4799_v61  ;;  %v4814_v47 = vsel %vm6062_vm5, %v4809_v33, %v4813_v49  ;;  %v5579_v61 = vld [vmem:[%s8005_s0 + $0x5c] sm:$0x1] }
 0x32d   :  { %v4962_v30 = vunpack.c.l.bf16 %v4800_v34  ;;  %v4963_v52 = vunpack.c.l.bf16 %v4814_v47 }
 0x32e   :  { %5072 = vst.msk [vmem:[%s8012_s7 + $0x8] sm:$0xf] %vm31_vm10, %v5628_v14  ;;  %v5629_v44 = vpack.c.bf16 %v4992_v18, %v4992_v18 }
 0x330   :  { %5073 = vst.msk [vmem:[%s8012_s7 + $0xc] sm:$0xf] %vm31_vm10, %v5629_v44 }
 0x334   :  { %v5744_v21 = vpop.f32.mrb[24].mxu1 }
 0x335   :  { %v5745_v55 = vpop.f32.mrb[25].mxu1 }
 0x336   :  { %v5746_v54 = vadd.f32 %v5745_v55, %v5744_v21  ;;  %v5747_v29 = vpop.f32.mrb[26].mxu1 }
 0x337   :  { %v5748_v40 = vpop.f32.mrb[27].mxu1 }
 0x338   :  { %v4593_v48 = vadd.f32 %v5746_v54, %v7747_v5  ;;  %v5749_v9 = vadd.f32 %v5748_v40, %v5747_v29  ;;  %v5581_v29 = vld [vmem:[%s8005_s0 + $0x64] sm:$0x1]  ;;  %v4839_v40 = vshll.u32 %v5579_v61, 16 }
 0x33a   :  { %v4650_v6 = vmul.f32 %v7776_v26, %v4593_v48  ;;  %v4596_v16 = vadd.f32 %v5749_v9, %v7751_v7  ;;  %v5578_v7 = vld [vmem:[%s8005_s0 + $0x58] sm:$0xf]  ;;  %v4850_v48 = vor.u32 %v4849_v59, %v4846_v24  ;;  %v4853_v9 = vshll.u32 %v5581_v29, 16 }
 0x33b   :  { %v4830_v37 = vshrl.u32 %v5578_v7, 16  ;;  %v4833_v44 = vshll.u32 %v5578_v7, 16  ;;  %v4841_v27 = vrot.slane %v4839_v40, 5 }
 0x33c   :  { %v4673_v43 = vadd.f32 %v7783_v45, %v4650_v6  ;;  %v4651_v15 = vmul.f32 %v7776_v26, %v4596_v16  ;;  %v5750_v42 = vpop.f32.mrb[28].mxu1  ;;  %v4851_v11 = vrot.slane %v4850_v48, 4  ;;  %v4855_v6 = vrot.slane %v4853_v9, 5  ;;  %v5582_v16 = vld [vmem:[%s8005_s0 + $0x68] sm:$0xf] }
 0x33d   :  { %v5751_v5 = vpop.f32.mrb[29].mxu1  ;;  %v4832_v55 = vrot.slane %v4830_v37, 4  ;;  %v4835_v0 = vrot.slane %v4833_v44, 5  ;;  %v4861_v22 = vshll.u32 %v5582_v16, 16  ;;  %v5585_v44 = vld [vmem:[%s8005_s0 + $0x74] sm:$0x1] }
 0x33e   :  { %v4977_v50 = vadd.f32 %v4961_v19, %v4673_v43  ;;  %v4674_v3 = vadd.f32 %v7783_v45, %v4651_v15  ;;  %v5752_v13 = vadd.f32 %v5751_v5, %v5750_v42  ;;  %v5753_v36 = vpop.f32.mrb[30].mxu1  ;;  %v5584_v43 = vld [vmem:[%s8005_s0 + $0x70] sm:$0xf]  ;;  %v4858_v5 = vshrl.u32 %v5582_v16, 16 }
 0x33f   :  { %v5754_v14 = vpop.f32.mrb[31].mxu1  ;;  %v4836_v17 = vor.u32 %v4835_v0, %v4832_v55  ;;  %v4872_v47 = vshrl.u32 %v5584_v43, 16 }
 0x340   :  { %v4993_v18 = vmax.f32 %v4977_v50, 0.0  ;;  %v4978_v23 = vadd.f32 %v4962_v30, %v4674_v3  ;;  %v4601_v10 = vadd.f32 %v7745_v63, %v5752_v13  ;;  %v5755_v51 = vadd.f32 %v5754_v14, %v5753_v36 }
 0x341   :  { %v4837_v34 = vrot.slane %v4836_v17, 4  ;;  %v4856_v50 = vsel %vm6062_vm5, %v4851_v11, %v4855_v6  ;;  %v4875_v36 = vshll.u32 %v5584_v43, 16 }
 0x342   :  { %v5630_v28 = vpack.c.bf16 %v4993_v18, %v4993_v18  ;;  %v4994_v56 = vmax.f32 %v4978_v23, 0.0  ;;  %v4652_v1 = vmul.f32 %v7776_v26, %v4601_v10  ;;  %v4604_v38 = vadd.f32 %v7749_v4, %v5755_v51 }
 0x343   :  { %v4842_v30 = vsel %vm6062_vm5, %v4837_v34, %v4841_v27  ;;  %v4860_v23 = vrot.slane %v4858_v5, 4  ;;  %v4863_v10 = vrot.slane %v4861_v22, 5  ;;  %v4966_v51 = vunpack.c.l.bf16 %v4856_v50  ;;  %v5588_v22 = vld [vmem:[%s8005_s0 + $0x80] sm:$0xf] }
 0x344   :  { %5074 = vst.msk [vmem:[%s8012_s7 + $0x10] sm:$0xf] %vm31_vm10, %v5630_v28  ;;  %v5631_v63 = vpack.c.bf16 %v4994_v56, %v4994_v56  ;;  %v4675_v62 = vadd.f32 %v7783_v45, %v4652_v1  ;;  %v4653_v2 = vmul.f32 %v7776_v26, %v4604_v38  ;;  %v4965_v7 = vunpack.c.l.bf16 %v4842_v30 }
 0x345   :  { %v4877_v37 = vrot.slane %v4875_v36, 5  ;;  %v4864_v56 = vor.u32 %v4863_v10, %v4860_v23  ;;  %v4867_v1 = vshll.u32 %v5583_v39, 16  ;;  %v4900_v23 = vshrl.u32 %v5588_v22, 16 }
 0x346   :  { %5075 = vst.msk [vmem:[%s8012_s7 + $0x14] sm:$0xf] %vm31_vm10, %v5631_v63  ;;  %v4979_v21 = vadd.f32 %v4963_v52, %v4675_v62  ;;  %v4676_v4 = vadd.f32 %v7783_v45, %v4653_v2  ;;  %v4881_v63 = vshll.u32 %v5585_v44, 16  ;;  %v4903_v10 = vshll.u32 %v5588_v22, 16  ;;  %v5587_v44 = vld [vmem:[%s8005_s0 + $0x7c] sm:$0x1] }
 0x348   :  { %v4995_v54 = vmax.f32 %v4979_v21, 0.0  ;;  %v4980_v60 = vadd.f32 %v4964_v20, %v4676_v4  ;;  %v4865_v20 = vrot.slane %v4864_v56, 4  ;;  %v4869_v21 = vrot.slane %v4867_v1, 5  ;;  %v5593_v56 = vld [vmem:[%s8005_s0 + $0x94] sm:$0x1] }
 0x349   :  { %v4883_v24 = vrot.slane %v4881_v63, 5  ;;  %v4902_v1 = vrot.slane %v4900_v23, 4 }
 0x34a   :  { %v5632_v12 = vpack.c.bf16 %v4995_v54, %v4995_v54  ;;  %v4996_v25 = vmax.f32 %v4980_v60, 0.0  ;;  %v4870_v60 = vsel %vm6062_vm5, %v4865_v20, %v4869_v21  ;;  %v4895_v21 = vshll.u32 %v5587_v44, 16 }
 0x34b   :  { %v4967_v48 = vunpack.c.l.bf16 %v4870_v60 }
 0x34c   :  { %5076 = vst.msk [vmem:[%s8012_s7 + $0x18] sm:$0xf] %vm31_vm10, %v5632_v12  ;;  %v5633_v19 = vpack.c.bf16 %v4996_v25, %v4996_v25 }
 0x34e   :  { %5077 = vst.msk [vmem:[%s8012_s7 + $0x1c] sm:$0xf] %vm31_vm10, %v5633_v19 }
 0x350   :  { %v5756_v33 = vpop.f32.mrb[32].mxu1 }
 0x351   :  { %v5757_v49 = vpop.f32.mrb[33].mxu1 }
 0x352   :  { %v5758_v15 = vadd.f32 %v5757_v49, %v5756_v33  ;;  %v5759_v42 = vpop.f32.mrb[34].mxu1  ;;  %v5586_v49 = vld [vmem:[%s8005_s0 + $0x78] sm:$0xf] }
 0x353   :  { %v5760_v35 = vpop.f32.mrb[35].mxu1  ;;  %v4886_v50 = vshrl.u32 %v5586_v49, 16 }
 0x354   :  { %v4609_v3 = vadd.f32 %v5758_v15, %v7755_v46  ;;  %v5761_v13 = vadd.f32 %v5760_v35, %v5759_v42  ;;  %v4874_v46 = vrot.slane %v4872_v47, 4 }
 0x356   :  { %v4654_v14 = vmul.f32 %v7776_v26, %v4609_v3  ;;  %v4612_v18 = vadd.f32 %v5761_v13, %v7759_v8  ;;  %v4878_v32 = vor.u32 %v4877_v37, %v4874_v46  ;;  %v4889_v3 = vshll.u32 %v5586_v49, 16 }
 0x357   :  { %v4888_v46 = vrot.slane %v4886_v50, 4 }
 0x358   :  { %v4677_v52 = vadd.f32 %v7783_v45, %v4654_v14  ;;  %v4655_v31 = vmul.f32 %v7776_v26, %v4612_v18  ;;  %v4879_v61 = vrot.slane %v4878_v32, 4  ;;  %v4891_v37 = vrot.slane %v4889_v3, 5 }
 0x35a   :  { %v4981_v28 = vadd.f32 %v4965_v7, %v4677_v52  ;;  %v4678_v8 = vadd.f32 %v7783_v45, %v4655_v31  ;;  %v4884_v17 = vsel %vm6062_vm5, %v4879_v61, %v4883_v24  ;;  %v5591_v31 = vld [vmem:[%s8005_s0 + $0x8c] sm:$0x1]  ;;  %v4892_v20 = vor.u32 %v4891_v37, %v4888_v46 }
 0x35b   :  { %v4968_v27 = vunpack.c.l.bf16 %v4884_v17  ;;  %v4923_v63 = vshll.u32 %v5591_v31, 16  ;;  %v4937_v61 = vshll.u32 %v5593_v56, 16  ;;  %v4897_v17 = vrot.slane %v4895_v21, 5 }
 0x35c   :  { %v4997_v38 = vmax.f32 %v4981_v28, 0.0  ;;  %v4982_v41 = vadd.f32 %v4966_v51, %v4678_v8 }
 0x35e   :  { %v5634_v62 = vpack.c.bf16 %v4997_v38, %v4997_v38  ;;  %v4998_v2 = vmax.f32 %v4982_v41, 0.0  ;;  %v4905_v38 = vrot.slane %v4903_v10, 5 }
 0x35f   :  { %v5762_v4 = vpop.f32.mrb[36].mxu1 }
 0x360   :  { %5078 = vst.msk [vmem:[%s8012_s7 + $0x20] sm:$0xf] %vm31_vm10, %v5634_v62  ;;  %v5635_v55 = vpack.c.bf16 %v4998_v2, %v4998_v2  ;;  %v5763_v0 = vpop.f32.mrb[37].mxu1  ;;  %v5589_v62 = vld [vmem:[%s8005_s0 + $0x84] sm:$0x1] }
 0x361   :  { %v5764_v59 = vadd.f32 %v5763_v0, %v5762_v4  ;;  %v5765_v54 = vpop.f32.mrb[38].mxu1 }
 0x362   :  { %5079 = vst.msk [vmem:[%s8012_s7 + $0x24] sm:$0xf] %vm31_vm10, %v5635_v55  ;;  %v5766_v29 = vpop.f32.mrb[39].mxu1 }
 0x363   :  { %v4617_v12 = vadd.f32 %v7753_v53, %v5764_v59  ;;  %v5767_v25 = vadd.f32 %v5766_v29, %v5765_v54  ;;  %v5590_v53 = vld [vmem:[%s8005_s0 + $0x88] sm:$0xf]  ;;  %v4906_v59 = vor.u32 %v4905_v38, %v4902_v1  ;;  %v4909_v54 = vshll.u32 %v5589_v62, 16 }
 0x364   :  { %v4914_v42 = vshrl.u32 %v5590_v53, 16  ;;  %v4917_v5 = vshll.u32 %v5590_v53, 16 }
 0x365   :  { %v4656_v40 = vmul.f32 %v7776_v26, %v4617_v12  ;;  %v4620_v9 = vadd.f32 %v7757_v57, %v5767_v25  ;;  %v5592_v57 = vld [vmem:[%s8005_s0 + $0x90] sm:$0xf]  ;;  %v4925_v12 = vrot.slane %v4923_v63, 5  ;;  %v4893_v25 = vrot.slane %v4892_v20, 4 }
 0x366   :  { %v4928_v7 = vshrl.u32 %v5592_v57, 16  ;;  %v4931_v14 = vshll.u32 %v5592_v57, 16  ;;  %v4916_v39 = vrot.slane %v4914_v42, 4  ;;  %v4919_v52 = vrot.slane %v4917_v5, 5 }
 0x367   :  { %v4679_v19 = vadd.f32 %v7783_v45, %v4656_v40  ;;  %v4657_v34 = vmul.f32 %v7776_v26, %v4620_v9  ;;  %v4907_v9 = vrot.slane %v4906_v59, 4  ;;  %v4898_v53 = vsel %vm6062_vm5, %v4893_v25, %v4897_v17 }
 0x368   :  { %v4930_v28 = vrot.slane %v4928_v7, 4  ;;  %v4933_v8 = vrot.slane %v4931_v14, 5  ;;  %v4920_v32 = vor.u32 %v4919_v52, %v4916_v39  ;;  %v4969_v22 = vunpack.c.l.bf16 %v4898_v53 }
 0x369   :  { %v4983_v11 = vadd.f32 %v4967_v48, %v4679_v19  ;;  %v4680_v6 = vadd.f32 %v7783_v45, %v4657_v34  ;;  %v4939_v48 = vrot.slane %v4937_v61, 5  ;;  %v4911_v19 = vrot.slane %v4909_v54, 5 }
 0x36a   :  { %v4934_v0 = vor.u32 %v4933_v8, %v4930_v28  ;;  %v4921_v29 = vrot.slane %v4920_v32, 4 }
 0x36b   :  { %v4999_v16 = vmax.f32 %v4983_v11, 0.0  ;;  %v4984_v33 = vadd.f32 %v4968_v27, %v4680_v6  ;;  %v4912_v42 = vsel %vm6062_vm5, %v4907_v9, %v4911_v19 }
 0x36c   :  { %v4935_v40 = vrot.slane %v4934_v0, 4  ;;  %v4926_v27 = vsel %vm6062_vm5, %v4921_v29, %v4925_v12  ;;  %v4970_v7 = vunpack.c.l.bf16 %v4912_v42 }
 0x36d   :  { %v5636_v43 = vpack.c.bf16 %v4999_v16, %v4999_v16  ;;  %v5000_v15 = vmax.f32 %v4984_v33, 0.0  ;;  %v5768_v30 = vpop.f32.mrb[40].mxu1 }
 0x36e   :  { %v5769_v35 = vpop.f32.mrb[41].mxu1  ;;  %v4940_v49 = vsel %vm6062_vm5, %v4935_v40, %v4939_v48 }
 0x36f   :  { %5080 = vst.msk [vmem:[%s8012_s7 + $0x28] sm:$0xf] %vm31_vm10, %v5636_v43  ;;  %v5637_v13 = vpack.c.bf16 %v5000_v15, %v5000_v15  ;;  %v5770_v47 = vadd.f32 %v5769_v35, %v5768_v30  ;;  %v5771_v36 = vpop.f32.mrb[42].mxu1  ;;  %v4971_v43 = vunpack.c.l.bf16 %v4926_v27 }
 0x370   :  { %v5772_v18 = vpop.f32.mrb[43].mxu1 }
 0x371   :  { %5081 = vst.msk [vmem:[%s8012_s7 + $0x2c] sm:$0xf] %vm31_vm10, %v5637_v13  ;;  %v5773_v51 = vadd.f32 %v5772_v18, %v5771_v36  ;;  %v4972_v13 = vunpack.c.l.bf16 %v4940_v49 }
 0x375   :  { %v5774_v41 = vpop.f32.mrb[44].mxu1 }
 0x376   :  { %v5775_v2 = vpop.f32.mrb[45].mxu1 }
 0x377   :  { %v5776_v4 = vadd.f32 %v5775_v2, %v5774_v41  ;;  %v5777_v55 = vpop.f32.mrb[46].mxu1 }
 0x378   :  { %v5778_v24 = vpop.f32.mrb[47].mxu1 }
 0x379   :  { %v5779_v60 = vadd.f32 %v5778_v24, %v5777_v55 }
 0x37d   :  { %v5828_v34 = vpop.f32.mrb[48].mxu1 }
 0x37e   :  { %v4633_v11 = vadd.f32 %v5828_v34, %v5776_v4  ;;  %v4624_v6 = vpop.f32.mrb[49].mxu1 }
 0x37f   :  { %v4625_v16 = vadd.f32 %v5770_v47, %v4624_v6  ;;  %v5829_v33 = vpop.f32.mrb[50].mxu1 }
 0x380   :  { %v4660_v57 = vmul.f32 %v7776_v26, %v4633_v11  ;;  %v4636_v15 = vadd.f32 %v5829_v33, %v5779_v60  ;;  %v4627_v30 = vpop.f32.mrb[51].mxu1 }
 0x381   :  { %v4658_v5 = vmul.f32 %v7776_v26, %v4625_v16  ;;  %v4628_v35 = vadd.f32 %v5773_v51, %v4627_v30 }
 0x382   :  { %v4683_v50 = vadd.f32 %v7783_v45, %v4660_v57  ;;  %v4661_v3 = vmul.f32 %v7776_v26, %v4636_v15 }
 0x383   :  { %v4681_v47 = vadd.f32 %v7783_v45, %v4658_v5  ;;  %v4659_v36 = vmul.f32 %v7776_v26, %v4628_v35 }
 0x384   :  { %v4987_v14 = vadd.f32 %v4971_v43, %v4683_v50  ;;  %v4684_v18 = vadd.f32 %v7783_v45, %v4661_v3 }
 0x385   :  { %v4985_v23 = vadd.f32 %v4969_v22, %v4681_v47  ;;  %v4682_v58 = vadd.f32 %v7783_v45, %v4659_v36 }
 0x386   :  { %v5003_v10 = vmax.f32 %v4987_v14, 0.0  ;;  %v4988_v39 = vadd.f32 %v4972_v13, %v4684_v18 }
 0x387   :  { %v5001_v52 = vmax.f32 %v4985_v23, 0.0  ;;  %v4986_v51 = vadd.f32 %v4970_v7, %v4682_v58 }
 0x388   :  { %v5640_v31 = vpack.c.bf16 %v5003_v10, %v5003_v10  ;;  %v5004_v46 = vmax.f32 %v4988_v39, 0.0 }
 0x389   :  { %v5638_v37 = vpack.c.bf16 %v5001_v52, %v5001_v52  ;;  %v5002_v44 = vmax.f32 %v4986_v51, 0.0 }
 0x38a   :  { %5084 = vst.msk [vmem:[%s8012_s7 + $0x38] sm:$0xf] %vm31_vm10, %v5640_v31  ;;  %v5641_v26 = vpack.c.bf16 %v5004_v46, %v5004_v46 }
 0x38b   :  { %5082 = vst.msk [vmem:[%s8012_s7 + $0x30] sm:$0xf] %vm31_vm10, %v5638_v37  ;;  %v5639_v45 = vpack.c.bf16 %v5002_v44, %v5002_v44 }
 0x38c   :  { %5085 = vst.msk [vmem:[%s8012_s7 + $0x3c] sm:$0xf] %vm31_vm10, %v5641_v26 }
 0x38d   :  { %5083 = vst.msk [vmem:[%s8012_s7 + $0x34] sm:$0xf] %vm31_vm10, %v5639_v45 }

</bundles_post_ra>
